<compile_context>
chip_gen: v7x
topology: tpu7x:2x2x1
jax: 0.10.0
libtpu: 0.0.40
codegen_flags: <defaults>
</compile_context>

<pallas_src>
import jax
import jax.numpy as jnp
from jax.experimental import pallas as pl
from jax.experimental.pallas import tpu as pltpu


FEAT = 32      # style-code width
HID = 128      # hidden conv width (lane-dense intermediates)
C_CLS = 4
C_IMG = 3


# ---------------------------------------------------------------------------
# In-kernel building blocks (operate on VMEM values / refs)
# ---------------------------------------------------------------------------

def _apply_act(x, activation):
    if activation == "relu":
        return jnp.maximum(x, 0.0)
    if activation == "tanh":
        return jnp.tanh(x)
    return x


def _conv3x3_flat(x_flat, hw, w_ref, b_ref, activation):
    """3x3 'same' conv (zero padding) on a row-major flattened (H*W, Cin) map.

    x_flat : (H*W, Cin) bf16 value held in VMEM.
    w_ref  : (3, 3, Cin, Cout) bf16 ref, taps indexed [dy, dx].
    b_ref  : (1, Cout) f32 ref.
    Returns (H*W, Cout) float32 after bias + activation.
    """
    H, W = hw
    HW = H * W
    cin = x_flat.shape[-1]
    cout = w_ref.shape[-1]

    # H halo: two zero rows top/bottom so every tap slice below stays in
    # bounds.  Axis-0 concat pieces (2*W=32, H*W=256 rows) are sublane-tile
    # aligned for bf16, so this is a cheap aligned concat in VMEM.
    zrows = jnp.zeros((2 * W, cin), x_flat.dtype)
    xf = jnp.concatenate([zrows, x_flat, zrows], axis=0)          # ((H+4)*W, Cin)

    # Column index of each flattened row; used to zero the values that wrap
    # across the W boundary for the dx = -1 / +1 shifted slabs (this replaces
    # an explicit W halo, so no unaligned sublane concat/store is needed).
    col = jax.lax.broadcasted_iota(jnp.int32, ((H + 2) * W, 1), 0) % W

    acc = jnp.zeros((HW, cout), jnp.float32)
    # dx-shifted slabs hoisted out of the dy loop: 3 shifted slices per conv
    # (only the +/-1 ones are sublane-unaligned) instead of 9.
    for dx, ox in enumerate((-1, 0, 1)):
        g = xf[W + ox:W + ox + (H + 2) * W, :]                    # ((H+2)*W, Cin)
        if ox == -1:
            g = jnp.where(col != 0, g, jnp.zeros_like(g))
        elif ox == 1:
            g = jnp.where(col != W - 1, g, jnp.zeros_like(g))
        for dy in range(3):
            a = g[dy * W:dy * W + HW, :]                          # aligned slice
            acc = acc + jnp.dot(a, w_ref[dy, dx],
                                preferred_element_type=jnp.float32)
    acc = acc + b_ref[...]
    return _apply_act(acc, activation)


def _fg_encode(img_flat, mask_flat, hw, e1w_ref, e1b_ref, e2w_ref, e2b_ref):
    """Masked-pooled style code of a 3-channel image held in VMEM.

    img_flat : (H*W, C_IMG) bf16,  mask_flat : (H*W, 1) f32 (0/1 valued).
    Returns (1, FEAT) float32.
    """
    h1 = _conv3x3_flat(img_flat, hw, e1w_ref, e1b_ref, "relu").astype(jnp.bfloat16)
    h2 = _conv3x3_flat(h1, hw, e2w_ref, e2b_ref, "relu")          # (HW, FEAT) f32
    num = jnp.sum(h2 * mask_flat, axis=0, keepdims=True)          # (1, FEAT)
    den = jnp.sum(mask_flat, axis=0, keepdims=True) + 1e-6        # (1, 1)
    return num / den


# ---------------------------------------------------------------------------
# Fully fused generator kernel (one grid step == one batch element)
# ---------------------------------------------------------------------------

def _generator_kernel(cls_ref, inst_ref, sty_ref, scls_ref,
                      e1w, e1b, e2w, e2b, d1w, d1b, d2w, d2b,
                      img_ref, code_ref, cyc_ref):
    _, H, W, _ = cls_ref.shape
    hw = (H, W)
    HW = H * W

    # ---- style code from the style image inside its class-map foreground ----
    sty = sty_ref[0].reshape(HW, C_IMG).astype(jnp.bfloat16)
    fg = jnp.max(scls_ref[0].reshape(HW, C_CLS), axis=-1, keepdims=True)  # (HW,1)
    code = _fg_encode(sty, fg, hw, e1w, e1b, e2w, e2b)            # (1, FEAT) f32
    code_ref[0] = code

    # ---- decode: inject style code into target layout, gated by inst mask ----
    cls = cls_ref[0].reshape(HW, C_CLS)                           # f32
    inst = inst_ref[0].reshape(HW, 1)                             # f32 (0/1)
    dec_in = jnp.concatenate([cls, inst * code], axis=-1).astype(jnp.bfloat16)
    h = _conv3x3_flat(dec_in, hw, d1w, d1b, "relu").astype(jnp.bfloat16)
    gen = _conv3x3_flat(h, hw, d2w, d2b, "tanh")                  # (HW, C_IMG) f32
    img_ref[0] = gen.reshape(H, W, C_IMG)

    # ---- cycle: re-encode the generated image inside the instance mask ----
    cyc_ref[0] = _fg_encode(gen.astype(jnp.bfloat16), inst, hw, e1w, e1b, e2w, e2b)


# ---------------------------------------------------------------------------
# Parameters (deterministic, synthetic; exact unpadded shapes)
# ---------------------------------------------------------------------------

def init_params(key):
    k1, k2, k3, k4 = jax.random.split(key, 4)

    def wconv(k, cin, cout):
        w = jax.random.normal(k, (3, 3, cin, cout), jnp.float32) / jnp.sqrt(9.0 * cin)
        return w.astype(jnp.bfloat16)

    return {
        "enc1_w": wconv(k1, C_IMG, HID),
        "enc1_b": jnp.zeros((1, HID), jnp.float32),
        "enc2_w": wconv(k2, HID, FEAT),
        "enc2_b": jnp.zeros((1, FEAT), jnp.float32),
        "dec1_w": wconv(k3, C_CLS + FEAT, HID),
        "dec1_b": jnp.zeros((1, HID), jnp.float32),
        "dec2_w": wconv(k4, HID, C_IMG),
        "dec2_b": jnp.zeros((1, C_IMG), jnp.float32),
    }


# ---------------------------------------------------------------------------
# generator.forward
# ---------------------------------------------------------------------------

def generator_forward(params, cls_map, sty_img, sty_cls_map, inst_mask):
    """NCHW f32 inputs; returns (style_img NCHW f32, sty_code, cycle_sc)."""
    to_nhwc = lambda x: jnp.transpose(x, (0, 2, 3, 1)).astype(jnp.float32)
    cls_nhwc = to_nhwc(cls_map)            # (B,H,W,C_CLS)
    sty_nhwc = to_nhwc(sty_img)            # (B,H,W,C_IMG)
    scls_nhwc = to_nhwc(sty_cls_map)       # (B,H,W,C_CLS)
    inst_nhwc = to_nhwc(inst_mask)         # (B,H,W,1)
    B, H, W, _ = cls_nhwc.shape

    wmap4 = lambda i: (0, 0, 0, 0)         # weights resident across the grid
    wmap2 = lambda i: (0, 0)

    img_nhwc, sty_code, cycle_sc = pl.pallas_call(
        _generator_kernel,
        out_shape=(
            jax.ShapeDtypeStruct((B, H, W, C_IMG), jnp.float32),
            jax.ShapeDtypeStruct((B, 1, FEAT), jnp.float32),
            jax.ShapeDtypeStruct((B, 1, FEAT), jnp.float32),
        ),
        grid=(B,),
        in_specs=[
            pl.BlockSpec((1, H, W, C_CLS), lambda i: (i, 0, 0, 0)),
            pl.BlockSpec((1, H, W, 1), lambda i: (i, 0, 0, 0)),
            pl.BlockSpec((1, H, W, C_IMG), lambda i: (i, 0, 0, 0)),
            pl.BlockSpec((1, H, W, C_CLS), lambda i: (i, 0, 0, 0)),
            pl.BlockSpec((3, 3, C_IMG, HID), wmap4),
            pl.BlockSpec((1, HID), wmap2),
            pl.BlockSpec((3, 3, HID, FEAT), wmap4),
            pl.BlockSpec((1, FEAT), wmap2),
            pl.BlockSpec((3, 3, C_CLS + FEAT, HID), wmap4),
            pl.BlockSpec((1, HID), wmap2),
            pl.BlockSpec((3, 3, HID, C_IMG), wmap4),
            pl.BlockSpec((1, C_IMG), wmap2),
        ],
        out_specs=(
            pl.BlockSpec((1, H, W, C_IMG), lambda i: (i, 0, 0, 0)),
            pl.BlockSpec((1, 1, FEAT), lambda i: (i, 0, 0)),
            pl.BlockSpec((1, 1, FEAT), lambda i: (i, 0, 0)),
        ),
        compiler_params=pltpu.CompilerParams(
            dimension_semantics=("parallel",)),
    )(cls_nhwc, inst_nhwc, sty_nhwc, scls_nhwc,
      params["enc1_w"], params["enc1_b"], params["enc2_w"], params["enc2_b"],
      params["dec1_w"], params["dec1_b"], params["dec2_w"], params["dec2_b"])

    style_img = jnp.transpose(img_nhwc, (0, 3, 1, 2))   # NCHW, only real channels
    return style_img, sty_code[:, 0, :], cycle_sc[:, 0, :]


# ---------------------------------------------------------------------------
# Example run
# ---------------------------------------------------------------------------

if __name__ == "__main__":
    B, H, W = 2, 16, 16

    key = jax.random.PRNGKey(0)
    k_par, k_cls, k_img, k_scls, k_mask = jax.random.split(key, 5)

    params = init_params(k_par)

    cls_lbl = jax.random.randint(k_cls, (B, H, W), 0, C_CLS)
    cls_map = jax.nn.one_hot(cls_lbl, C_CLS, axis=1).astype(jnp.float32)       # (B,4,16,16)

    sty_img = jax.random.normal(k_img, (B, C_IMG, H, W), jnp.float32)          # (B,3,16,16)

    scls_lbl = jax.random.randint(k_scls, (B, H, W), 0, C_CLS)
    sty_cls_map = jax.nn.one_hot(scls_lbl, C_CLS, axis=1).astype(jnp.float32)  # (B,4,16,16)

    inst_mask = jax.random.bernoulli(k_mask, 0.5, (B, 1, H, W)).astype(jnp.float32)

    fwd = jax.jit(generator_forward)
    style_img, sty_code, cycle_sc = fwd(params, cls_map, sty_img,
                                        sty_cls_map, inst_mask)
    jax.block_until_ready((style_img, sty_code, cycle_sc))

    assert style_img.shape == (B, C_IMG, H, W)
    assert sty_code.shape == (B, FEAT)
    assert cycle_sc.shape == (B, FEAT)
    assert bool(jnp.all(jnp.isfinite(style_img)))
    assert bool(jnp.all(jnp.isfinite(sty_code)))
    assert bool(jnp.all(jnp.isfinite(cycle_sc)))
    print("KERNEL_OK")
</pallas_src>

<mosaic_0001>
module attributes {stable_mosaic.version = 11 : i64} {
  func.func @_generator_kernel(%arg0: i32, %arg1: memref<1x16x16x4xf32, #tpu.memory_space<vmem>>, %arg2: memref<1x16x16x1xf32, #tpu.memory_space<vmem>>, %arg3: memref<1x16x16x3xf32, #tpu.memory_space<vmem>>, %arg4: memref<1x16x16x4xf32, #tpu.memory_space<vmem>>, %arg5: memref<3x3x3x128xbf16, #tpu.memory_space<vmem>>, %arg6: memref<1x128xf32, #tpu.memory_space<vmem>>, %arg7: memref<3x3x128x32xbf16, #tpu.memory_space<vmem>>, %arg8: memref<1x32xf32, #tpu.memory_space<vmem>>, %arg9: memref<3x3x36x128xbf16, #tpu.memory_space<vmem>>, %arg10: memref<1x128xf32, #tpu.memory_space<vmem>>, %arg11: memref<3x3x128x3xbf16, #tpu.memory_space<vmem>>, %arg12: memref<1x3xf32, #tpu.memory_space<vmem>>, %arg13: memref<1x16x16x3xf32, #tpu.memory_space<vmem>>, %arg14: memref<1x1x32xf32, #tpu.memory_space<vmem>>, %arg15: memref<1x1x32xf32, #tpu.memory_space<vmem>>) attributes {dimension_semantics = [#tpu.dimension_semantics<parallel>], iteration_bounds = array<i64: 2>, scalar_prefetch = 0 : i64, scratch_operands = 0 : i64, tpu.core_type = #tpu.core_type<tc>, window_params = [{transform_indices = @transform_0, window_bounds = array<i64: 1, 16, 16, 4>}, {transform_indices = @transform_1, window_bounds = array<i64: 1, 16, 16, 1>}, {transform_indices = @transform_2, window_bounds = array<i64: 1, 16, 16, 3>}, {transform_indices = @transform_3, window_bounds = array<i64: 1, 16, 16, 4>}, {pipeline_mode = #tpu.pipeline_mode<synchronous>, transform_indices = @transform_4, window_bounds = array<i64: 3, 3, 3, 128>}, {pipeline_mode = #tpu.pipeline_mode<synchronous>, transform_indices = @transform_5, window_bounds = array<i64: 1, 128>}, {pipeline_mode = #tpu.pipeline_mode<synchronous>, transform_indices = @transform_6, window_bounds = array<i64: 3, 3, 128, 32>}, {pipeline_mode = #tpu.pipeline_mode<synchronous>, transform_indices = @transform_7, window_bounds = array<i64: 1, 32>}, {pipeline_mode = #tpu.pipeline_mode<synchronous>, transform_indices = @transform_8, window_bounds = array<i64: 3, 3, 36, 128>}, {pipeline_mode = #tpu.pipeline_mode<synchronous>, transform_indices = @transform_9, window_bounds = array<i64: 1, 128>}, {pipeline_mode = #tpu.pipeline_mode<synchronous>, transform_indices = @transform_10, window_bounds = array<i64: 3, 3, 128, 3>}, {pipeline_mode = #tpu.pipeline_mode<synchronous>, transform_indices = @transform_11, window_bounds = array<i64: 1, 3>}, {transform_indices = @transform_12, window_bounds = array<i64: 1, 16, 16, 3>}, {transform_indices = @transform_13, window_bounds = array<i64: 1, 1, 32>}, {transform_indices = @transform_14, window_bounds = array<i64: 1, 1, 32>}]} {
    %c0 = arith.constant 0 : index
    %c0_0 = arith.constant 0 : index
    %c0_1 = arith.constant 0 : index
    %c0_2 = arith.constant 0 : index
    %0 = vector.load %arg3[%c0, %c0_0, %c0_1, %c0_2] : memref<1x16x16x3xf32, #tpu.memory_space<vmem>>, vector<1x16x16x3xf32>
    %1 = vector.shape_cast %0 : vector<1x16x16x3xf32> to vector<16x16x3xf32>
    %2 = vector.shape_cast %1 : vector<16x16x3xf32> to vector<256x3xf32>
    %3 = arith.truncf %2 : vector<256x3xf32> to vector<256x3xbf16>
    %c0_3 = arith.constant 0 : index
    %c0_4 = arith.constant 0 : index
    %c0_5 = arith.constant 0 : index
    %c0_6 = arith.constant 0 : index
    %4 = vector.load %arg4[%c0_3, %c0_4, %c0_5, %c0_6] : memref<1x16x16x4xf32, #tpu.memory_space<vmem>>, vector<1x16x16x4xf32>
    %5 = vector.shape_cast %4 : vector<1x16x16x4xf32> to vector<16x16x4xf32>
    %6 = vector.shape_cast %5 : vector<16x16x4xf32> to vector<256x4xf32>
    %cst = arith.constant dense<0xFF800000> : vector<256xf32>
    %7 = vector.multi_reduction <maximumf>, %6, %cst [1] : vector<256x4xf32> to vector<256xf32>
    %8 = vector.shape_cast %7 : vector<256xf32> to vector<256x1xf32>
    %cst_7 = arith.constant 0.000000e+00 : bf16
    %9 = vector.broadcast %cst_7 : bf16 to vector<32x3xbf16>
    %10 = tpu.concatenate %9, %3, %9 in 0 : vector<32x3xbf16>, vector<256x3xbf16>, vector<32x3xbf16> -> vector<320x3xbf16>
    %11 = tpu.iota {dimensions = array<i32: 0>} : vector<288x1xi32>
    %c16_i32 = arith.constant 16 : i32
    %c0_i32 = arith.constant 0 : i32
    %12 = arith.cmpi eq, %c16_i32, %c0_i32 : i32
    %c1_i32 = arith.constant 1 : i32
    %13 = arith.select %12, %c1_i32, %c16_i32 : i32
    %14 = vector.broadcast %13 : i32 to vector<288x1xi32>
    %15 = arith.remsi %11, %14 : vector<288x1xi32>
    %c0_i32_8 = arith.constant 0 : i32
    %16 = vector.broadcast %c0_i32_8 : i32 to vector<288x1xi32>
    %17 = arith.cmpi ne, %15, %16 : vector<288x1xi32>
    %c0_i32_9 = arith.constant 0 : i32
    %18 = vector.broadcast %c0_i32_9 : i32 to vector<288x1xi32>
    %19 = arith.cmpi slt, %15, %18 : vector<288x1xi32>
    %c0_i32_10 = arith.constant 0 : i32
    %20 = arith.cmpi slt, %13, %c0_i32_10 : i32
    %21 = vector.broadcast %20 : i1 to vector<288x1xi1>
    %22 = vector.broadcast %21 : vector<288x1xi1> to vector<288x1xi1>
    %23 = arith.xori %19, %22 : vector<288x1xi1>
    %24 = arith.andi %23, %17 : vector<288x1xi1>
    %25 = vector.broadcast %13 : i32 to vector<288x1xi32>
    %26 = arith.addi %15, %25 : vector<288x1xi32>
    %27 = arith.select %24, %26, %15 : vector<288x1xi1>, vector<288x1xi32>
    %cst_11 = arith.constant 0.000000e+00 : f32
    %28 = vector.broadcast %cst_11 : f32 to vector<256x128xf32>
    %29 = vector.extract_strided_slice %10 {offsets = [15, 0], sizes = [288, 3], strides = [1, 1]} : vector<320x3xbf16> to vector<288x3xbf16>
    %c0_i32_12 = arith.constant 0 : i32
    %30 = vector.broadcast %c0_i32_12 : i32 to vector<288x1xi32>
    %31 = arith.cmpi ne, %27, %30 : vector<288x1xi32>
    %cst_13 = arith.constant 0.000000e+00 : bf16
    %32 = vector.broadcast %cst_13 : bf16 to vector<288x3xbf16>
    %33 = vector.shape_cast %31 : vector<288x1xi1> to vector<288x1xi1>
    %34 = vector.broadcast %33 : vector<288x1xi1> to vector<288x3xi1>
    %35 = arith.select %34, %29, %32 : vector<288x3xi1>, vector<288x3xbf16>
    %36 = vector.extract_strided_slice %35 {offsets = [0, 0], sizes = [256, 3], strides = [1, 1]} : vector<288x3xbf16> to vector<256x3xbf16>
    %c0_14 = arith.constant 0 : index
    %c0_15 = arith.constant 0 : index
    %c0_16 = arith.constant 0 : index
    %c0_17 = arith.constant 0 : index
    %37 = vector.load %arg5[%c0_14, %c0_15, %c0_16, %c0_17] : memref<3x3x3x128xbf16, #tpu.memory_space<vmem>>, vector<1x1x3x128xbf16>
    %38 = vector.shape_cast %37 : vector<1x1x3x128xbf16> to vector<3x128xbf16>
    %cst_18 = arith.constant dense<0.000000e+00> : vector<256x128xf32>
    %39 = tpu.matmul %36, %38, %cst_18 {dimension_numbers = #tpu.dot_dimension_numbers<[1], [0], [0], [1], [0, 0, 1, 1], [], []>} : vector<256x3xbf16>, vector<3x128xbf16>, vector<256x128xf32> -> vector<256x128xf32>
    %40 = arith.addf %28, %39 : vector<256x128xf32>
    %41 = vector.extract_strided_slice %35 {offsets = [16, 0], sizes = [256, 3], strides = [1, 1]} : vector<288x3xbf16> to vector<256x3xbf16>
    %c1 = arith.constant 1 : index
    %c0_19 = arith.constant 0 : index
    %c0_20 = arith.constant 0 : index
    %c0_21 = arith.constant 0 : index
    %42 = vector.load %arg5[%c1, %c0_19, %c0_20, %c0_21] : memref<3x3x3x128xbf16, #tpu.memory_space<vmem>>, vector<1x1x3x128xbf16>
    %43 = vector.shape_cast %42 : vector<1x1x3x128xbf16> to vector<3x128xbf16>
    %cst_22 = arith.constant dense<0.000000e+00> : vector<256x128xf32>
    %44 = tpu.matmul %41, %43, %cst_22 {dimension_numbers = #tpu.dot_dimension_numbers<[1], [0], [0], [1], [0, 0, 1, 1], [], []>} : vector<256x3xbf16>, vector<3x128xbf16>, vector<256x128xf32> -> vector<256x128xf32>
    %45 = arith.addf %40, %44 : vector<256x128xf32>
    %46 = vector.extract_strided_slice %35 {offsets = [32, 0], sizes = [256, 3], strides = [1, 1]} : vector<288x3xbf16> to vector<256x3xbf16>
    %c2 = arith.constant 2 : index
    %c0_23 = arith.constant 0 : index
    %c0_24 = arith.constant 0 : index
    %c0_25 = arith.constant 0 : index
    %47 = vector.load %arg5[%c2, %c0_23, %c0_24, %c0_25] : memref<3x3x3x128xbf16, #tpu.memory_space<vmem>>, vector<1x1x3x128xbf16>
    %48 = vector.shape_cast %47 : vector<1x1x3x128xbf16> to vector<3x128xbf16>
    %cst_26 = arith.constant dense<0.000000e+00> : vector<256x128xf32>
    %49 = tpu.matmul %46, %48, %cst_26 {dimension_numbers = #tpu.dot_dimension_numbers<[1], [0], [0], [1], [0, 0, 1, 1], [], []>} : vector<256x3xbf16>, vector<3x128xbf16>, vector<256x128xf32> -> vector<256x128xf32>
    %50 = arith.addf %45, %49 : vector<256x128xf32>
    %51 = vector.extract_strided_slice %10 {offsets = [16, 0], sizes = [288, 3], strides = [1, 1]} : vector<320x3xbf16> to vector<288x3xbf16>
    %52 = vector.extract_strided_slice %51 {offsets = [0, 0], sizes = [256, 3], strides = [1, 1]} : vector<288x3xbf16> to vector<256x3xbf16>
    %c0_27 = arith.constant 0 : index
    %c1_28 = arith.constant 1 : index
    %c0_29 = arith.constant 0 : index
    %c0_30 = arith.constant 0 : index
    %53 = vector.load %arg5[%c0_27, %c1_28, %c0_29, %c0_30] : memref<3x3x3x128xbf16, #tpu.memory_space<vmem>>, vector<1x1x3x128xbf16>
    %54 = vector.shape_cast %53 : vector<1x1x3x128xbf16> to vector<3x128xbf16>
    %cst_31 = arith.constant dense<0.000000e+00> : vector<256x128xf32>
    %55 = tpu.matmul %52, %54, %cst_31 {dimension_numbers = #tpu.dot_dimension_numbers<[1], [0], [0], [1], [0, 0, 1, 1], [], []>} : vector<256x3xbf16>, vector<3x128xbf16>, vector<256x128xf32> -> vector<256x128xf32>
    %56 = arith.addf %50, %55 : vector<256x128xf32>
    %57 = vector.extract_strided_slice %51 {offsets = [16, 0], sizes = [256, 3], strides = [1, 1]} : vector<288x3xbf16> to vector<256x3xbf16>
    %c1_32 = arith.constant 1 : index
    %c1_33 = arith.constant 1 : index
    %c0_34 = arith.constant 0 : index
    %c0_35 = arith.constant 0 : index
    %58 = vector.load %arg5[%c1_32, %c1_33, %c0_34, %c0_35] : memref<3x3x3x128xbf16, #tpu.memory_space<vmem>>, vector<1x1x3x128xbf16>
    %59 = vector.shape_cast %58 : vector<1x1x3x128xbf16> to vector<3x128xbf16>
    %cst_36 = arith.constant dense<0.000000e+00> : vector<256x128xf32>
    %60 = tpu.matmul %57, %59, %cst_36 {dimension_numbers = #tpu.dot_dimension_numbers<[1], [0], [0], [1], [0, 0, 1, 1], [], []>} : vector<256x3xbf16>, vector<3x128xbf16>, vector<256x128xf32> -> vector<256x128xf32>
    %61 = arith.addf %56, %60 : vector<256x128xf32>
    %62 = vector.extract_strided_slice %51 {offsets = [32, 0], sizes = [256, 3], strides = [1, 1]} : vector<288x3xbf16> to vector<256x3xbf16>
    %c2_37 = arith.constant 2 : index
    %c1_38 = arith.constant 1 : index
    %c0_39 = arith.constant 0 : index
    %c0_40 = arith.constant 0 : index
    %63 = vector.load %arg5[%c2_37, %c1_38, %c0_39, %c0_40] : memref<3x3x3x128xbf16, #tpu.memory_space<vmem>>, vector<1x1x3x128xbf16>
    %64 = vector.shape_cast %63 : vector<1x1x3x128xbf16> to vector<3x128xbf16>
    %cst_41 = arith.constant dense<0.000000e+00> : vector<256x128xf32>
    %65 = tpu.matmul %62, %64, %cst_41 {dimension_numbers = #tpu.dot_dimension_numbers<[1], [0], [0], [1], [0, 0, 1, 1], [], []>} : vector<256x3xbf16>, vector<3x128xbf16>, vector<256x128xf32> -> vector<256x128xf32>
    %66 = arith.addf %61, %65 : vector<256x128xf32>
    %67 = vector.extract_strided_slice %10 {offsets = [17, 0], sizes = [288, 3], strides = [1, 1]} : vector<320x3xbf16> to vector<288x3xbf16>
    %c15_i32 = arith.constant 15 : i32
    %68 = vector.broadcast %c15_i32 : i32 to vector<288x1xi32>
    %69 = arith.cmpi ne, %27, %68 : vector<288x1xi32>
    %cst_42 = arith.constant 0.000000e+00 : bf16
    %70 = vector.broadcast %cst_42 : bf16 to vector<288x3xbf16>
    %71 = vector.shape_cast %69 : vector<288x1xi1> to vector<288x1xi1>
    %72 = vector.broadcast %71 : vector<288x1xi1> to vector<288x3xi1>
    %73 = arith.select %72, %67, %70 : vector<288x3xi1>, vector<288x3xbf16>
    %74 = vector.extract_strided_slice %73 {offsets = [0, 0], sizes = [256, 3], strides = [1, 1]} : vector<288x3xbf16> to vector<256x3xbf16>
    %c0_43 = arith.constant 0 : index
    %c2_44 = arith.constant 2 : index
    %c0_45 = arith.constant 0 : index
    %c0_46 = arith.constant 0 : index
    %75 = vector.load %arg5[%c0_43, %c2_44, %c0_45, %c0_46] : memref<3x3x3x128xbf16, #tpu.memory_space<vmem>>, vector<1x1x3x128xbf16>
    %76 = vector.shape_cast %75 : vector<1x1x3x128xbf16> to vector<3x128xbf16>
    %cst_47 = arith.constant dense<0.000000e+00> : vector<256x128xf32>
    %77 = tpu.matmul %74, %76, %cst_47 {dimension_numbers = #tpu.dot_dimension_numbers<[1], [0], [0], [1], [0, 0, 1, 1], [], []>} : vector<256x3xbf16>, vector<3x128xbf16>, vector<256x128xf32> -> vector<256x128xf32>
    %78 = arith.addf %66, %77 : vector<256x128xf32>
    %79 = vector.extract_strided_slice %73 {offsets = [16, 0], sizes = [256, 3], strides = [1, 1]} : vector<288x3xbf16> to vector<256x3xbf16>
    %c1_48 = arith.constant 1 : index
    %c2_49 = arith.constant 2 : index
    %c0_50 = arith.constant 0 : index
    %c0_51 = arith.constant 0 : index
    %80 = vector.load %arg5[%c1_48, %c2_49, %c0_50, %c0_51] : memref<3x3x3x128xbf16, #tpu.memory_space<vmem>>, vector<1x1x3x128xbf16>
    %81 = vector.shape_cast %80 : vector<1x1x3x128xbf16> to vector<3x128xbf16>
    %cst_52 = arith.constant dense<0.000000e+00> : vector<256x128xf32>
    %82 = tpu.matmul %79, %81, %cst_52 {dimension_numbers = #tpu.dot_dimension_numbers<[1], [0], [0], [1], [0, 0, 1, 1], [], []>} : vector<256x3xbf16>, vector<3x128xbf16>, vector<256x128xf32> -> vector<256x128xf32>
    %83 = arith.addf %78, %82 : vector<256x128xf32>
    %84 = vector.extract_strided_slice %73 {offsets = [32, 0], sizes = [256, 3], strides = [1, 1]} : vector<288x3xbf16> to vector<256x3xbf16>
    %c2_53 = arith.constant 2 : index
    %c2_54 = arith.constant 2 : index
    %c0_55 = arith.constant 0 : index
    %c0_56 = arith.constant 0 : index
    %85 = vector.load %arg5[%c2_53, %c2_54, %c0_55, %c0_56] : memref<3x3x3x128xbf16, #tpu.memory_space<vmem>>, vector<1x1x3x128xbf16>
    %86 = vector.shape_cast %85 : vector<1x1x3x128xbf16> to vector<3x128xbf16>
    %cst_57 = arith.constant dense<0.000000e+00> : vector<256x128xf32>
    %87 = tpu.matmul %84, %86, %cst_57 {dimension_numbers = #tpu.dot_dimension_numbers<[1], [0], [0], [1], [0, 0, 1, 1], [], []>} : vector<256x3xbf16>, vector<3x128xbf16>, vector<256x128xf32> -> vector<256x128xf32>
    %88 = arith.addf %83, %87 : vector<256x128xf32>
    %c0_58 = arith.constant 0 : index
    %c0_59 = arith.constant 0 : index
    %89 = vector.load %arg6[%c0_58, %c0_59] : memref<1x128xf32, #tpu.memory_space<vmem>>, vector<1x128xf32>
    %90 = vector.broadcast %89 : vector<1x128xf32> to vector<256x128xf32>
    %91 = arith.addf %88, %90 : vector<256x128xf32>
    %cst_60 = arith.constant 0.000000e+00 : f32
    %92 = vector.broadcast %cst_60 : f32 to vector<256x128xf32>
    %93 = arith.maximumf %91, %92 : vector<256x128xf32>
    %94 = arith.truncf %93 : vector<256x128xf32> to vector<256x128xbf16>
    %cst_61 = arith.constant 0.000000e+00 : bf16
    %95 = vector.broadcast %cst_61 : bf16 to vector<32x128xbf16>
    %96 = tpu.concatenate %95, %94, %95 in 0 : vector<32x128xbf16>, vector<256x128xbf16>, vector<32x128xbf16> -> vector<320x128xbf16>
    %97 = tpu.iota {dimensions = array<i32: 0>} : vector<288x1xi32>
    %c16_i32_62 = arith.constant 16 : i32
    %c0_i32_63 = arith.constant 0 : i32
    %98 = arith.cmpi eq, %c16_i32_62, %c0_i32_63 : i32
    %c1_i32_64 = arith.constant 1 : i32
    %99 = arith.select %98, %c1_i32_64, %c16_i32_62 : i32
    %100 = vector.broadcast %99 : i32 to vector<288x1xi32>
    %101 = arith.remsi %97, %100 : vector<288x1xi32>
    %c0_i32_65 = arith.constant 0 : i32
    %102 = vector.broadcast %c0_i32_65 : i32 to vector<288x1xi32>
    %103 = arith.cmpi ne, %101, %102 : vector<288x1xi32>
    %c0_i32_66 = arith.constant 0 : i32
    %104 = vector.broadcast %c0_i32_66 : i32 to vector<288x1xi32>
    %105 = arith.cmpi slt, %101, %104 : vector<288x1xi32>
    %c0_i32_67 = arith.constant 0 : i32
    %106 = arith.cmpi slt, %99, %c0_i32_67 : i32
    %107 = vector.broadcast %106 : i1 to vector<288x1xi1>
    %108 = vector.broadcast %107 : vector<288x1xi1> to vector<288x1xi1>
    %109 = arith.xori %105, %108 : vector<288x1xi1>
    %110 = arith.andi %109, %103 : vector<288x1xi1>
    %111 = vector.broadcast %99 : i32 to vector<288x1xi32>
    %112 = arith.addi %101, %111 : vector<288x1xi32>
    %113 = arith.select %110, %112, %101 : vector<288x1xi1>, vector<288x1xi32>
    %cst_68 = arith.constant 0.000000e+00 : f32
    %114 = vector.broadcast %cst_68 : f32 to vector<256x32xf32>
    %115 = vector.extract_strided_slice %96 {offsets = [15, 0], sizes = [288, 128], strides = [1, 1]} : vector<320x128xbf16> to vector<288x128xbf16>
    %c0_i32_69 = arith.constant 0 : i32
    %116 = vector.broadcast %c0_i32_69 : i32 to vector<288x1xi32>
    %117 = arith.cmpi ne, %113, %116 : vector<288x1xi32>
    %cst_70 = arith.constant 0.000000e+00 : bf16
    %118 = vector.broadcast %cst_70 : bf16 to vector<288x128xbf16>
    %119 = vector.shape_cast %117 : vector<288x1xi1> to vector<288x1xi1>
    %120 = vector.broadcast %119 : vector<288x1xi1> to vector<288x128xi1>
    %121 = arith.select %120, %115, %118 : vector<288x128xi1>, vector<288x128xbf16>
    %122 = vector.extract_strided_slice %121 {offsets = [0, 0], sizes = [256, 128], strides = [1, 1]} : vector<288x128xbf16> to vector<256x128xbf16>
    %c0_71 = arith.constant 0 : index
    %c0_72 = arith.constant 0 : index
    %c0_73 = arith.constant 0 : index
    %c0_74 = arith.constant 0 : index
    %123 = vector.load %arg7[%c0_71, %c0_72, %c0_73, %c0_74] : memref<3x3x128x32xbf16, #tpu.memory_space<vmem>>, vector<1x1x128x32xbf16>
    %124 = vector.shape_cast %123 : vector<1x1x128x32xbf16> to vector<128x32xbf16>
    %cst_75 = arith.constant dense<0.000000e+00> : vector<256x32xf32>
    %125 = tpu.matmul %122, %124, %cst_75 {dimension_numbers = #tpu.dot_dimension_numbers<[1], [0], [0], [1], [0, 0, 1, 1], [], []>} : vector<256x128xbf16>, vector<128x32xbf16>, vector<256x32xf32> -> vector<256x32xf32>
    %126 = arith.addf %114, %125 : vector<256x32xf32>
    %127 = vector.extract_strided_slice %121 {offsets = [16, 0], sizes = [256, 128], strides = [1, 1]} : vector<288x128xbf16> to vector<256x128xbf16>
    %c1_76 = arith.constant 1 : index
    %c0_77 = arith.constant 0 : index
    %c0_78 = arith.constant 0 : index
    %c0_79 = arith.constant 0 : index
    %128 = vector.load %arg7[%c1_76, %c0_77, %c0_78, %c0_79] : memref<3x3x128x32xbf16, #tpu.memory_space<vmem>>, vector<1x1x128x32xbf16>
    %129 = vector.shape_cast %128 : vector<1x1x128x32xbf16> to vector<128x32xbf16>
    %cst_80 = arith.constant dense<0.000000e+00> : vector<256x32xf32>
    %130 = tpu.matmul %127, %129, %cst_80 {dimension_numbers = #tpu.dot_dimension_numbers<[1], [0], [0], [1], [0, 0, 1, 1], [], []>} : vector<256x128xbf16>, vector<128x32xbf16>, vector<256x32xf32> -> vector<256x32xf32>
    %131 = arith.addf %126, %130 : vector<256x32xf32>
    %132 = vector.extract_strided_slice %121 {offsets = [32, 0], sizes = [256, 128], strides = [1, 1]} : vector<288x128xbf16> to vector<256x128xbf16>
    %c2_81 = arith.constant 2 : index
    %c0_82 = arith.constant 0 : index
    %c0_83 = arith.constant 0 : index
    %c0_84 = arith.constant 0 : index
    %133 = vector.load %arg7[%c2_81, %c0_82, %c0_83, %c0_84] : memref<3x3x128x32xbf16, #tpu.memory_space<vmem>>, vector<1x1x128x32xbf16>
    %134 = vector.shape_cast %133 : vector<1x1x128x32xbf16> to vector<128x32xbf16>
    %cst_85 = arith.constant dense<0.000000e+00> : vector<256x32xf32>
    %135 = tpu.matmul %132, %134, %cst_85 {dimension_numbers = #tpu.dot_dimension_numbers<[1], [0], [0], [1], [0, 0, 1, 1], [], []>} : vector<256x128xbf16>, vector<128x32xbf16>, vector<256x32xf32> -> vector<256x32xf32>
    %136 = arith.addf %131, %135 : vector<256x32xf32>
    %137 = vector.extract_strided_slice %96 {offsets = [16, 0], sizes = [288, 128], strides = [1, 1]} : vector<320x128xbf16> to vector<288x128xbf16>
    %138 = vector.extract_strided_slice %137 {offsets = [0, 0], sizes = [256, 128], strides = [1, 1]} : vector<288x128xbf16> to vector<256x128xbf16>
    %c0_86 = arith.constant 0 : index
    %c1_87 = arith.constant 1 : index
    %c0_88 = arith.constant 0 : index
    %c0_89 = arith.constant 0 : index
    %139 = vector.load %arg7[%c0_86, %c1_87, %c0_88, %c0_89] : memref<3x3x128x32xbf16, #tpu.memory_space<vmem>>, vector<1x1x128x32xbf16>
    %140 = vector.shape_cast %139 : vector<1x1x128x32xbf16> to vector<128x32xbf16>
    %cst_90 = arith.constant dense<0.000000e+00> : vector<256x32xf32>
    %141 = tpu.matmul %138, %140, %cst_90 {dimension_numbers = #tpu.dot_dimension_numbers<[1], [0], [0], [1], [0, 0, 1, 1], [], []>} : vector<256x128xbf16>, vector<128x32xbf16>, vector<256x32xf32> -> vector<256x32xf32>
    %142 = arith.addf %136, %141 : vector<256x32xf32>
    %143 = vector.extract_strided_slice %137 {offsets = [16, 0], sizes = [256, 128], strides = [1, 1]} : vector<288x128xbf16> to vector<256x128xbf16>
    %c1_91 = arith.constant 1 : index
    %c1_92 = arith.constant 1 : index
    %c0_93 = arith.constant 0 : index
    %c0_94 = arith.constant 0 : index
    %144 = vector.load %arg7[%c1_91, %c1_92, %c0_93, %c0_94] : memref<3x3x128x32xbf16, #tpu.memory_space<vmem>>, vector<1x1x128x32xbf16>
    %145 = vector.shape_cast %144 : vector<1x1x128x32xbf16> to vector<128x32xbf16>
    %cst_95 = arith.constant dense<0.000000e+00> : vector<256x32xf32>
    %146 = tpu.matmul %143, %145, %cst_95 {dimension_numbers = #tpu.dot_dimension_numbers<[1], [0], [0], [1], [0, 0, 1, 1], [], []>} : vector<256x128xbf16>, vector<128x32xbf16>, vector<256x32xf32> -> vector<256x32xf32>
    %147 = arith.addf %142, %146 : vector<256x32xf32>
    %148 = vector.extract_strided_slice %137 {offsets = [32, 0], sizes = [256, 128], strides = [1, 1]} : vector<288x128xbf16> to vector<256x128xbf16>
    %c2_96 = arith.constant 2 : index
    %c1_97 = arith.constant 1 : index
    %c0_98 = arith.constant 0 : index
    %c0_99 = arith.constant 0 : index
    %149 = vector.load %arg7[%c2_96, %c1_97, %c0_98, %c0_99] : memref<3x3x128x32xbf16, #tpu.memory_space<vmem>>, vector<1x1x128x32xbf16>
    %150 = vector.shape_cast %149 : vector<1x1x128x32xbf16> to vector<128x32xbf16>
    %cst_100 = arith.constant dense<0.000000e+00> : vector<256x32xf32>
    %151 = tpu.matmul %148, %150, %cst_100 {dimension_numbers = #tpu.dot_dimension_numbers<[1], [0], [0], [1], [0, 0, 1, 1], [], []>} : vector<256x128xbf16>, vector<128x32xbf16>, vector<256x32xf32> -> vector<256x32xf32>
    %152 = arith.addf %147, %151 : vector<256x32xf32>
    %153 = vector.extract_strided_slice %96 {offsets = [17, 0], sizes = [288, 128], strides = [1, 1]} : vector<320x128xbf16> to vector<288x128xbf16>
    %c15_i32_101 = arith.constant 15 : i32
    %154 = vector.broadcast %c15_i32_101 : i32 to vector<288x1xi32>
    %155 = arith.cmpi ne, %113, %154 : vector<288x1xi32>
    %cst_102 = arith.constant 0.000000e+00 : bf16
    %156 = vector.broadcast %cst_102 : bf16 to vector<288x128xbf16>
    %157 = vector.shape_cast %155 : vector<288x1xi1> to vector<288x1xi1>
    %158 = vector.broadcast %157 : vector<288x1xi1> to vector<288x128xi1>
    %159 = arith.select %158, %153, %156 : vector<288x128xi1>, vector<288x128xbf16>
    %160 = vector.extract_strided_slice %159 {offsets = [0, 0], sizes = [256, 128], strides = [1, 1]} : vector<288x128xbf16> to vector<256x128xbf16>
    %c0_103 = arith.constant 0 : index
    %c2_104 = arith.constant 2 : index
    %c0_105 = arith.constant 0 : index
    %c0_106 = arith.constant 0 : index
    %161 = vector.load %arg7[%c0_103, %c2_104, %c0_105, %c0_106] : memref<3x3x128x32xbf16, #tpu.memory_space<vmem>>, vector<1x1x128x32xbf16>
    %162 = vector.shape_cast %161 : vector<1x1x128x32xbf16> to vector<128x32xbf16>
    %cst_107 = arith.constant dense<0.000000e+00> : vector<256x32xf32>
    %163 = tpu.matmul %160, %162, %cst_107 {dimension_numbers = #tpu.dot_dimension_numbers<[1], [0], [0], [1], [0, 0, 1, 1], [], []>} : vector<256x128xbf16>, vector<128x32xbf16>, vector<256x32xf32> -> vector<256x32xf32>
    %164 = arith.addf %152, %163 : vector<256x32xf32>
    %165 = vector.extract_strided_slice %159 {offsets = [16, 0], sizes = [256, 128], strides = [1, 1]} : vector<288x128xbf16> to vector<256x128xbf16>
    %c1_108 = arith.constant 1 : index
    %c2_109 = arith.constant 2 : index
    %c0_110 = arith.constant 0 : index
    %c0_111 = arith.constant 0 : index
    %166 = vector.load %arg7[%c1_108, %c2_109, %c0_110, %c0_111] : memref<3x3x128x32xbf16, #tpu.memory_space<vmem>>, vector<1x1x128x32xbf16>
    %167 = vector.shape_cast %166 : vector<1x1x128x32xbf16> to vector<128x32xbf16>
    %cst_112 = arith.constant dense<0.000000e+00> : vector<256x32xf32>
    %168 = tpu.matmul %165, %167, %cst_112 {dimension_numbers = #tpu.dot_dimension_numbers<[1], [0], [0], [1], [0, 0, 1, 1], [], []>} : vector<256x128xbf16>, vector<128x32xbf16>, vector<256x32xf32> -> vector<256x32xf32>
    %169 = arith.addf %164, %168 : vector<256x32xf32>
    %170 = vector.extract_strided_slice %159 {offsets = [32, 0], sizes = [256, 128], strides = [1, 1]} : vector<288x128xbf16> to vector<256x128xbf16>
    %c2_113 = arith.constant 2 : index
    %c2_114 = arith.constant 2 : index
    %c0_115 = arith.constant 0 : index
    %c0_116 = arith.constant 0 : index
    %171 = vector.load %arg7[%c2_113, %c2_114, %c0_115, %c0_116] : memref<3x3x128x32xbf16, #tpu.memory_space<vmem>>, vector<1x1x128x32xbf16>
    %172 = vector.shape_cast %171 : vector<1x1x128x32xbf16> to vector<128x32xbf16>
    %cst_117 = arith.constant dense<0.000000e+00> : vector<256x32xf32>
    %173 = tpu.matmul %170, %172, %cst_117 {dimension_numbers = #tpu.dot_dimension_numbers<[1], [0], [0], [1], [0, 0, 1, 1], [], []>} : vector<256x128xbf16>, vector<128x32xbf16>, vector<256x32xf32> -> vector<256x32xf32>
    %174 = arith.addf %169, %173 : vector<256x32xf32>
    %c0_118 = arith.constant 0 : index
    %c0_119 = arith.constant 0 : index
    %175 = vector.load %arg8[%c0_118, %c0_119] : memref<1x32xf32, #tpu.memory_space<vmem>>, vector<1x32xf32>
    %176 = vector.broadcast %175 : vector<1x32xf32> to vector<256x32xf32>
    %177 = arith.addf %174, %176 : vector<256x32xf32>
    %cst_120 = arith.constant 0.000000e+00 : f32
    %178 = vector.broadcast %cst_120 : f32 to vector<256x32xf32>
    %179 = arith.maximumf %177, %178 : vector<256x32xf32>
    %180 = vector.broadcast %8 : vector<256x1xf32> to vector<256x32xf32>
    %181 = arith.mulf %179, %180 : vector<256x32xf32>
    %cst_121 = arith.constant dense<0.000000e+00> : vector<32xf32>
    %182 = vector.multi_reduction <add>, %181, %cst_121 [0] : vector<256x32xf32> to vector<32xf32>
    %183 = vector.shape_cast %182 : vector<32xf32> to vector<1x32xf32>
    %cst_122 = arith.constant dense<0.000000e+00> : vector<1xf32>
    %184 = vector.multi_reduction <add>, %8, %cst_122 [0] : vector<256x1xf32> to vector<1xf32>
    %185 = vector.shape_cast %184 : vector<1xf32> to vector<1x1xf32>
    %cst_123 = arith.constant 9.99999997E-7 : f32
    %186 = vector.broadcast %cst_123 : f32 to vector<1x1xf32>
    %187 = arith.addf %185, %186 : vector<1x1xf32>
    %188 = vector.broadcast %187 : vector<1x1xf32> to vector<1x32xf32>
    %189 = arith.divf %183, %188 : vector<1x32xf32>
    %c0_124 = arith.constant 0 : index
    %c0_125 = arith.constant 0 : index
    %c0_126 = arith.constant 0 : index
    %190 = vector.load %arg14[%c0_124, %c0_125, %c0_126] : memref<1x1x32xf32, #tpu.memory_space<vmem>>, vector<1x1x32xf32>
    %191 = vector.shape_cast %190 : vector<1x1x32xf32> to vector<1x32xf32>
    %192 = vector.shape_cast %189 : vector<1x32xf32> to vector<1x1x32xf32>
    tpu.vector_store %arg14[%c0_124, %c0_125, %c0_126], %192 {strides = array<i32>} : memref<1x1x32xf32, #tpu.memory_space<vmem>>, vector<1x1x32xf32>,
    %c0_127 = arith.constant 0 : index
    %c0_128 = arith.constant 0 : index
    %c0_129 = arith.constant 0 : index
    %c0_130 = arith.constant 0 : index
    %193 = vector.load %arg1[%c0_127, %c0_128, %c0_129, %c0_130] : memref<1x16x16x4xf32, #tpu.memory_space<vmem>>, vector<1x16x16x4xf32>
    %194 = vector.shape_cast %193 : vector<1x16x16x4xf32> to vector<16x16x4xf32>
    %195 = vector.shape_cast %194 : vector<16x16x4xf32> to vector<256x4xf32>
    %c0_131 = arith.constant 0 : index
    %c0_132 = arith.constant 0 : index
    %c0_133 = arith.constant 0 : index
    %c0_134 = arith.constant 0 : index
    %196 = vector.load %arg2[%c0_131, %c0_132, %c0_133, %c0_134] : memref<1x16x16x1xf32, #tpu.memory_space<vmem>>, vector<1x16x16x1xf32>
    %197 = vector.shape_cast %196 : vector<1x16x16x1xf32> to vector<16x16x1xf32>
    %198 = vector.shape_cast %197 : vector<16x16x1xf32> to vector<256x1xf32>
    %199 = vector.broadcast %198 : vector<256x1xf32> to vector<256x32xf32>
    %200 = vector.broadcast %189 : vector<1x32xf32> to vector<256x32xf32>
    %201 = arith.mulf %199, %200 : vector<256x32xf32>
    %202 = tpu.concatenate %195, %201 in 1 : vector<256x4xf32>, vector<256x32xf32> -> vector<256x36xf32>
    %203 = arith.truncf %202 : vector<256x36xf32> to vector<256x36xbf16>
    %cst_135 = arith.constant 0.000000e+00 : bf16
    %204 = vector.broadcast %cst_135 : bf16 to vector<32x36xbf16>
    %205 = tpu.concatenate %204, %203, %204 in 0 : vector<32x36xbf16>, vector<256x36xbf16>, vector<32x36xbf16> -> vector<320x36xbf16>
    %206 = tpu.iota {dimensions = array<i32: 0>} : vector<288x1xi32>
    %c16_i32_136 = arith.constant 16 : i32
    %c0_i32_137 = arith.constant 0 : i32
    %207 = arith.cmpi eq, %c16_i32_136, %c0_i32_137 : i32
    %c1_i32_138 = arith.constant 1 : i32
    %208 = arith.select %207, %c1_i32_138, %c16_i32_136 : i32
    %209 = vector.broadcast %208 : i32 to vector<288x1xi32>
    %210 = arith.remsi %206, %209 : vector<288x1xi32>
    %c0_i32_139 = arith.constant 0 : i32
    %211 = vector.broadcast %c0_i32_139 : i32 to vector<288x1xi32>
    %212 = arith.cmpi ne, %210, %211 : vector<288x1xi32>
    %c0_i32_140 = arith.constant 0 : i32
    %213 = vector.broadcast %c0_i32_140 : i32 to vector<288x1xi32>
    %214 = arith.cmpi slt, %210, %213 : vector<288x1xi32>
    %c0_i32_141 = arith.constant 0 : i32
    %215 = arith.cmpi slt, %208, %c0_i32_141 : i32
    %216 = vector.broadcast %215 : i1 to vector<288x1xi1>
    %217 = vector.broadcast %216 : vector<288x1xi1> to vector<288x1xi1>
    %218 = arith.xori %214, %217 : vector<288x1xi1>
    %219 = arith.andi %218, %212 : vector<288x1xi1>
    %220 = vector.broadcast %208 : i32 to vector<288x1xi32>
    %221 = arith.addi %210, %220 : vector<288x1xi32>
    %222 = arith.select %219, %221, %210 : vector<288x1xi1>, vector<288x1xi32>
    %cst_142 = arith.constant 0.000000e+00 : f32
    %223 = vector.broadcast %cst_142 : f32 to vector<256x128xf32>
    %224 = vector.extract_strided_slice %205 {offsets = [15, 0], sizes = [288, 36], strides = [1, 1]} : vector<320x36xbf16> to vector<288x36xbf16>
    %c0_i32_143 = arith.constant 0 : i32
    %225 = vector.broadcast %c0_i32_143 : i32 to vector<288x1xi32>
    %226 = arith.cmpi ne, %222, %225 : vector<288x1xi32>
    %cst_144 = arith.constant 0.000000e+00 : bf16
    %227 = vector.broadcast %cst_144 : bf16 to vector<288x36xbf16>
    %228 = vector.shape_cast %226 : vector<288x1xi1> to vector<288x1xi1>
    %229 = vector.broadcast %228 : vector<288x1xi1> to vector<288x36xi1>
    %230 = arith.select %229, %224, %227 : vector<288x36xi1>, vector<288x36xbf16>
    %231 = vector.extract_strided_slice %230 {offsets = [0, 0], sizes = [256, 36], strides = [1, 1]} : vector<288x36xbf16> to vector<256x36xbf16>
    %c0_145 = arith.constant 0 : index
    %c0_146 = arith.constant 0 : index
    %c0_147 = arith.constant 0 : index
    %c0_148 = arith.constant 0 : index
    %232 = vector.load %arg9[%c0_145, %c0_146, %c0_147, %c0_148] : memref<3x3x36x128xbf16, #tpu.memory_space<vmem>>, vector<1x1x36x128xbf16>
    %233 = vector.shape_cast %232 : vector<1x1x36x128xbf16> to vector<36x128xbf16>
    %cst_149 = arith.constant dense<0.000000e+00> : vector<256x128xf32>
    %234 = tpu.matmul %231, %233, %cst_149 {dimension_numbers = #tpu.dot_dimension_numbers<[1], [0], [0], [1], [0, 0, 1, 1], [], []>} : vector<256x36xbf16>, vector<36x128xbf16>, vector<256x128xf32> -> vector<256x128xf32>
    %235 = arith.addf %223, %234 : vector<256x128xf32>
    %236 = vector.extract_strided_slice %230 {offsets = [16, 0], sizes = [256, 36], strides = [1, 1]} : vector<288x36xbf16> to vector<256x36xbf16>
    %c1_150 = arith.constant 1 : index
    %c0_151 = arith.constant 0 : index
    %c0_152 = arith.constant 0 : index
    %c0_153 = arith.constant 0 : index
    %237 = vector.load %arg9[%c1_150, %c0_151, %c0_152, %c0_153] : memref<3x3x36x128xbf16, #tpu.memory_space<vmem>>, vector<1x1x36x128xbf16>
    %238 = vector.shape_cast %237 : vector<1x1x36x128xbf16> to vector<36x128xbf16>
    %cst_154 = arith.constant dense<0.000000e+00> : vector<256x128xf32>
    %239 = tpu.matmul %236, %238, %cst_154 {dimension_numbers = #tpu.dot_dimension_numbers<[1], [0], [0], [1], [0, 0, 1, 1], [], []>} : vector<256x36xbf16>, vector<36x128xbf16>, vector<256x128xf32> -> vector<256x128xf32>
    %240 = arith.addf %235, %239 : vector<256x128xf32>
    %241 = vector.extract_strided_slice %230 {offsets = [32, 0], sizes = [256, 36], strides = [1, 1]} : vector<288x36xbf16> to vector<256x36xbf16>
    %c2_155 = arith.constant 2 : index
    %c0_156 = arith.constant 0 : index
    %c0_157 = arith.constant 0 : index
    %c0_158 = arith.constant 0 : index
    %242 = vector.load %arg9[%c2_155, %c0_156, %c0_157, %c0_158] : memref<3x3x36x128xbf16, #tpu.memory_space<vmem>>, vector<1x1x36x128xbf16>
    %243 = vector.shape_cast %242 : vector<1x1x36x128xbf16> to vector<36x128xbf16>
    %cst_159 = arith.constant dense<0.000000e+00> : vector<256x128xf32>
    %244 = tpu.matmul %241, %243, %cst_159 {dimension_numbers = #tpu.dot_dimension_numbers<[1], [0], [0], [1], [0, 0, 1, 1], [], []>} : vector<256x36xbf16>, vector<36x128xbf16>, vector<256x128xf32> -> vector<256x128xf32>
    %245 = arith.addf %240, %244 : vector<256x128xf32>
    %246 = vector.extract_strided_slice %205 {offsets = [16, 0], sizes = [288, 36], strides = [1, 1]} : vector<320x36xbf16> to vector<288x36xbf16>
    %247 = vector.extract_strided_slice %246 {offsets = [0, 0], sizes = [256, 36], strides = [1, 1]} : vector<288x36xbf16> to vector<256x36xbf16>
    %c0_160 = arith.constant 0 : index
    %c1_161 = arith.constant 1 : index
    %c0_162 = arith.constant 0 : index
    %c0_163 = arith.constant 0 : index
    %248 = vector.load %arg9[%c0_160, %c1_161, %c0_162, %c0_163] : memref<3x3x36x128xbf16, #tpu.memory_space<vmem>>, vector<1x1x36x128xbf16>
    %249 = vector.shape_cast %248 : vector<1x1x36x128xbf16> to vector<36x128xbf16>
    %cst_164 = arith.constant dense<0.000000e+00> : vector<256x128xf32>
    %250 = tpu.matmul %247, %249, %cst_164 {dimension_numbers = #tpu.dot_dimension_numbers<[1], [0], [0], [1], [0, 0, 1, 1], [], []>} : vector<256x36xbf16>, vector<36x128xbf16>, vector<256x128xf32> -> vector<256x128xf32>
    %251 = arith.addf %245, %250 : vector<256x128xf32>
    %252 = vector.extract_strided_slice %246 {offsets = [16, 0], sizes = [256, 36], strides = [1, 1]} : vector<288x36xbf16> to vector<256x36xbf16>
    %c1_165 = arith.constant 1 : index
    %c1_166 = arith.constant 1 : index
    %c0_167 = arith.constant 0 : index
    %c0_168 = arith.constant 0 : index
    %253 = vector.load %arg9[%c1_165, %c1_166, %c0_167, %c0_168] : memref<3x3x36x128xbf16, #tpu.memory_space<vmem>>, vector<1x1x36x128xbf16>
    %254 = vector.shape_cast %253 : vector<1x1x36x128xbf16> to vector<36x128xbf16>
    %cst_169 = arith.constant dense<0.000000e+00> : vector<256x128xf32>
    %255 = tpu.matmul %252, %254, %cst_169 {dimension_numbers = #tpu.dot_dimension_numbers<[1], [0], [0], [1], [0, 0, 1, 1], [], []>} : vector<256x36xbf16>, vector<36x128xbf16>, vector<256x128xf32> -> vector<256x128xf32>
    %256 = arith.addf %251, %255 : vector<256x128xf32>
    %257 = vector.extract_strided_slice %246 {offsets = [32, 0], sizes = [256, 36], strides = [1, 1]} : vector<288x36xbf16> to vector<256x36xbf16>
    %c2_170 = arith.constant 2 : index
    %c1_171 = arith.constant 1 : index
    %c0_172 = arith.constant 0 : index
    %c0_173 = arith.constant 0 : index
    %258 = vector.load %arg9[%c2_170, %c1_171, %c0_172, %c0_173] : memref<3x3x36x128xbf16, #tpu.memory_space<vmem>>, vector<1x1x36x128xbf16>
    %259 = vector.shape_cast %258 : vector<1x1x36x128xbf16> to vector<36x128xbf16>
    %cst_174 = arith.constant dense<0.000000e+00> : vector<256x128xf32>
    %260 = tpu.matmul %257, %259, %cst_174 {dimension_numbers = #tpu.dot_dimension_numbers<[1], [0], [0], [1], [0, 0, 1, 1], [], []>} : vector<256x36xbf16>, vector<36x128xbf16>, vector<256x128xf32> -> vector<256x128xf32>
    %261 = arith.addf %256, %260 : vector<256x128xf32>
    %262 = vector.extract_strided_slice %205 {offsets = [17, 0], sizes = [288, 36], strides = [1, 1]} : vector<320x36xbf16> to vector<288x36xbf16>
    %c15_i32_175 = arith.constant 15 : i32
    %263 = vector.broadcast %c15_i32_175 : i32 to vector<288x1xi32>
    %264 = arith.cmpi ne, %222, %263 : vector<288x1xi32>
    %cst_176 = arith.constant 0.000000e+00 : bf16
    %265 = vector.broadcast %cst_176 : bf16 to vector<288x36xbf16>
    %266 = vector.shape_cast %264 : vector<288x1xi1> to vector<288x1xi1>
    %267 = vector.broadcast %266 : vector<288x1xi1> to vector<288x36xi1>
    %268 = arith.select %267, %262, %265 : vector<288x36xi1>, vector<288x36xbf16>
    %269 = vector.extract_strided_slice %268 {offsets = [0, 0], sizes = [256, 36], strides = [1, 1]} : vector<288x36xbf16> to vector<256x36xbf16>
    %c0_177 = arith.constant 0 : index
    %c2_178 = arith.constant 2 : index
    %c0_179 = arith.constant 0 : index
    %c0_180 = arith.constant 0 : index
    %270 = vector.load %arg9[%c0_177, %c2_178, %c0_179, %c0_180] : memref<3x3x36x128xbf16, #tpu.memory_space<vmem>>, vector<1x1x36x128xbf16>
    %271 = vector.shape_cast %270 : vector<1x1x36x128xbf16> to vector<36x128xbf16>
    %cst_181 = arith.constant dense<0.000000e+00> : vector<256x128xf32>
    %272 = tpu.matmul %269, %271, %cst_181 {dimension_numbers = #tpu.dot_dimension_numbers<[1], [0], [0], [1], [0, 0, 1, 1], [], []>} : vector<256x36xbf16>, vector<36x128xbf16>, vector<256x128xf32> -> vector<256x128xf32>
    %273 = arith.addf %261, %272 : vector<256x128xf32>
    %274 = vector.extract_strided_slice %268 {offsets = [16, 0], sizes = [256, 36], strides = [1, 1]} : vector<288x36xbf16> to vector<256x36xbf16>
    %c1_182 = arith.constant 1 : index
    %c2_183 = arith.constant 2 : index
    %c0_184 = arith.constant 0 : index
    %c0_185 = arith.constant 0 : index
    %275 = vector.load %arg9[%c1_182, %c2_183, %c0_184, %c0_185] : memref<3x3x36x128xbf16, #tpu.memory_space<vmem>>, vector<1x1x36x128xbf16>
    %276 = vector.shape_cast %275 : vector<1x1x36x128xbf16> to vector<36x128xbf16>
    %cst_186 = arith.constant dense<0.000000e+00> : vector<256x128xf32>
    %277 = tpu.matmul %274, %276, %cst_186 {dimension_numbers = #tpu.dot_dimension_numbers<[1], [0], [0], [1], [0, 0, 1, 1], [], []>} : vector<256x36xbf16>, vector<36x128xbf16>, vector<256x128xf32> -> vector<256x128xf32>
    %278 = arith.addf %273, %277 : vector<256x128xf32>
    %279 = vector.extract_strided_slice %268 {offsets = [32, 0], sizes = [256, 36], strides = [1, 1]} : vector<288x36xbf16> to vector<256x36xbf16>
    %c2_187 = arith.constant 2 : index
    %c2_188 = arith.constant 2 : index
    %c0_189 = arith.constant 0 : index
    %c0_190 = arith.constant 0 : index
    %280 = vector.load %arg9[%c2_187, %c2_188, %c0_189, %c0_190] : memref<3x3x36x128xbf16, #tpu.memory_space<vmem>>, vector<1x1x36x128xbf16>
    %281 = vector.shape_cast %280 : vector<1x1x36x128xbf16> to vector<36x128xbf16>
    %cst_191 = arith.constant dense<0.000000e+00> : vector<256x128xf32>
    %282 = tpu.matmul %279, %281, %cst_191 {dimension_numbers = #tpu.dot_dimension_numbers<[1], [0], [0], [1], [0, 0, 1, 1], [], []>} : vector<256x36xbf16>, vector<36x128xbf16>, vector<256x128xf32> -> vector<256x128xf32>
    %283 = arith.addf %278, %282 : vector<256x128xf32>
    %c0_192 = arith.constant 0 : index
    %c0_193 = arith.constant 0 : index
    %284 = vector.load %arg10[%c0_192, %c0_193] : memref<1x128xf32, #tpu.memory_space<vmem>>, vector<1x128xf32>
    %285 = vector.broadcast %284 : vector<1x128xf32> to vector<256x128xf32>
    %286 = arith.addf %283, %285 : vector<256x128xf32>
    %cst_194 = arith.constant 0.000000e+00 : f32
    %287 = vector.broadcast %cst_194 : f32 to vector<256x128xf32>
    %288 = arith.maximumf %286, %287 : vector<256x128xf32>
    %289 = arith.truncf %288 : vector<256x128xf32> to vector<256x128xbf16>
    %cst_195 = arith.constant 0.000000e+00 : bf16
    %290 = vector.broadcast %cst_195 : bf16 to vector<32x128xbf16>
    %291 = tpu.concatenate %290, %289, %290 in 0 : vector<32x128xbf16>, vector<256x128xbf16>, vector<32x128xbf16> -> vector<320x128xbf16>
    %292 = tpu.iota {dimensions = array<i32: 0>} : vector<288x1xi32>
    %c16_i32_196 = arith.constant 16 : i32
    %c0_i32_197 = arith.constant 0 : i32
    %293 = arith.cmpi eq, %c16_i32_196, %c0_i32_197 : i32
    %c1_i32_198 = arith.constant 1 : i32
    %294 = arith.select %293, %c1_i32_198, %c16_i32_196 : i32
    %295 = vector.broadcast %294 : i32 to vector<288x1xi32>
    %296 = arith.remsi %292, %295 : vector<288x1xi32>
    %c0_i32_199 = arith.constant 0 : i32
    %297 = vector.broadcast %c0_i32_199 : i32 to vector<288x1xi32>
    %298 = arith.cmpi ne, %296, %297 : vector<288x1xi32>
    %c0_i32_200 = arith.constant 0 : i32
    %299 = vector.broadcast %c0_i32_200 : i32 to vector<288x1xi32>
    %300 = arith.cmpi slt, %296, %299 : vector<288x1xi32>
    %c0_i32_201 = arith.constant 0 : i32
    %301 = arith.cmpi slt, %294, %c0_i32_201 : i32
    %302 = vector.broadcast %301 : i1 to vector<288x1xi1>
    %303 = vector.broadcast %302 : vector<288x1xi1> to vector<288x1xi1>
    %304 = arith.xori %300, %303 : vector<288x1xi1>
    %305 = arith.andi %304, %298 : vector<288x1xi1>
    %306 = vector.broadcast %294 : i32 to vector<288x1xi32>
    %307 = arith.addi %296, %306 : vector<288x1xi32>
    %308 = arith.select %305, %307, %296 : vector<288x1xi1>, vector<288x1xi32>
    %cst_202 = arith.constant 0.000000e+00 : f32
    %309 = vector.broadcast %cst_202 : f32 to vector<256x3xf32>
    %310 = vector.extract_strided_slice %291 {offsets = [15, 0], sizes = [288, 128], strides = [1, 1]} : vector<320x128xbf16> to vector<288x128xbf16>
    %c0_i32_203 = arith.constant 0 : i32
    %311 = vector.broadcast %c0_i32_203 : i32 to vector<288x1xi32>
    %312 = arith.cmpi ne, %308, %311 : vector<288x1xi32>
    %cst_204 = arith.constant 0.000000e+00 : bf16
    %313 = vector.broadcast %cst_204 : bf16 to vector<288x128xbf16>
    %314 = vector.shape_cast %312 : vector<288x1xi1> to vector<288x1xi1>
    %315 = vector.broadcast %314 : vector<288x1xi1> to vector<288x128xi1>
    %316 = arith.select %315, %310, %313 : vector<288x128xi1>, vector<288x128xbf16>
    %317 = vector.extract_strided_slice %316 {offsets = [0, 0], sizes = [256, 128], strides = [1, 1]} : vector<288x128xbf16> to vector<256x128xbf16>
    %c0_205 = arith.constant 0 : index
    %c0_206 = arith.constant 0 : index
    %c0_207 = arith.constant 0 : index
    %c0_208 = arith.constant 0 : index
    %318 = vector.load %arg11[%c0_205, %c0_206, %c0_207, %c0_208] : memref<3x3x128x3xbf16, #tpu.memory_space<vmem>>, vector<1x1x128x3xbf16>
    %319 = vector.shape_cast %318 : vector<1x1x128x3xbf16> to vector<128x3xbf16>
    %cst_209 = arith.constant dense<0.000000e+00> : vector<256x3xf32>
    %320 = tpu.matmul %317, %319, %cst_209 {dimension_numbers = #tpu.dot_dimension_numbers<[1], [0], [0], [1], [0, 0, 1, 1], [], []>} : vector<256x128xbf16>, vector<128x3xbf16>, vector<256x3xf32> -> vector<256x3xf32>
    %321 = arith.addf %309, %320 : vector<256x3xf32>
    %322 = vector.extract_strided_slice %316 {offsets = [16, 0], sizes = [256, 128], strides = [1, 1]} : vector<288x128xbf16> to vector<256x128xbf16>
    %c1_210 = arith.constant 1 : index
    %c0_211 = arith.constant 0 : index
    %c0_212 = arith.constant 0 : index
    %c0_213 = arith.constant 0 : index
    %323 = vector.load %arg11[%c1_210, %c0_211, %c0_212, %c0_213] : memref<3x3x128x3xbf16, #tpu.memory_space<vmem>>, vector<1x1x128x3xbf16>
    %324 = vector.shape_cast %323 : vector<1x1x128x3xbf16> to vector<128x3xbf16>
    %cst_214 = arith.constant dense<0.000000e+00> : vector<256x3xf32>
    %325 = tpu.matmul %322, %324, %cst_214 {dimension_numbers = #tpu.dot_dimension_numbers<[1], [0], [0], [1], [0, 0, 1, 1], [], []>} : vector<256x128xbf16>, vector<128x3xbf16>, vector<256x3xf32> -> vector<256x3xf32>
    %326 = arith.addf %321, %325 : vector<256x3xf32>
    %327 = vector.extract_strided_slice %316 {offsets = [32, 0], sizes = [256, 128], strides = [1, 1]} : vector<288x128xbf16> to vector<256x128xbf16>
    %c2_215 = arith.constant 2 : index
    %c0_216 = arith.constant 0 : index
    %c0_217 = arith.constant 0 : index
    %c0_218 = arith.constant 0 : index
    %328 = vector.load %arg11[%c2_215, %c0_216, %c0_217, %c0_218] : memref<3x3x128x3xbf16, #tpu.memory_space<vmem>>, vector<1x1x128x3xbf16>
    %329 = vector.shape_cast %328 : vector<1x1x128x3xbf16> to vector<128x3xbf16>
    %cst_219 = arith.constant dense<0.000000e+00> : vector<256x3xf32>
    %330 = tpu.matmul %327, %329, %cst_219 {dimension_numbers = #tpu.dot_dimension_numbers<[1], [0], [0], [1], [0, 0, 1, 1], [], []>} : vector<256x128xbf16>, vector<128x3xbf16>, vector<256x3xf32> -> vector<256x3xf32>
    %331 = arith.addf %326, %330 : vector<256x3xf32>
    %332 = vector.extract_strided_slice %291 {offsets = [16, 0], sizes = [288, 128], strides = [1, 1]} : vector<320x128xbf16> to vector<288x128xbf16>
    %333 = vector.extract_strided_slice %332 {offsets = [0, 0], sizes = [256, 128], strides = [1, 1]} : vector<288x128xbf16> to vector<256x128xbf16>
    %c0_220 = arith.constant 0 : index
    %c1_221 = arith.constant 1 : index
    %c0_222 = arith.constant 0 : index
    %c0_223 = arith.constant 0 : index
    %334 = vector.load %arg11[%c0_220, %c1_221, %c0_222, %c0_223] : memref<3x3x128x3xbf16, #tpu.memory_space<vmem>>, vector<1x1x128x3xbf16>
    %335 = vector.shape_cast %334 : vector<1x1x128x3xbf16> to vector<128x3xbf16>
    %cst_224 = arith.constant dense<0.000000e+00> : vector<256x3xf32>
    %336 = tpu.matmul %333, %335, %cst_224 {dimension_numbers = #tpu.dot_dimension_numbers<[1], [0], [0], [1], [0, 0, 1, 1], [], []>} : vector<256x128xbf16>, vector<128x3xbf16>, vector<256x3xf32> -> vector<256x3xf32>
    %337 = arith.addf %331, %336 : vector<256x3xf32>
    %338 = vector.extract_strided_slice %332 {offsets = [16, 0], sizes = [256, 128], strides = [1, 1]} : vector<288x128xbf16> to vector<256x128xbf16>
    %c1_225 = arith.constant 1 : index
    %c1_226 = arith.constant 1 : index
    %c0_227 = arith.constant 0 : index
    %c0_228 = arith.constant 0 : index
    %339 = vector.load %arg11[%c1_225, %c1_226, %c0_227, %c0_228] : memref<3x3x128x3xbf16, #tpu.memory_space<vmem>>, vector<1x1x128x3xbf16>
    %340 = vector.shape_cast %339 : vector<1x1x128x3xbf16> to vector<128x3xbf16>
    %cst_229 = arith.constant dense<0.000000e+00> : vector<256x3xf32>
    %341 = tpu.matmul %338, %340, %cst_229 {dimension_numbers = #tpu.dot_dimension_numbers<[1], [0], [0], [1], [0, 0, 1, 1], [], []>} : vector<256x128xbf16>, vector<128x3xbf16>, vector<256x3xf32> -> vector<256x3xf32>
    %342 = arith.addf %337, %341 : vector<256x3xf32>
    %343 = vector.extract_strided_slice %332 {offsets = [32, 0], sizes = [256, 128], strides = [1, 1]} : vector<288x128xbf16> to vector<256x128xbf16>
    %c2_230 = arith.constant 2 : index
    %c1_231 = arith.constant 1 : index
    %c0_232 = arith.constant 0 : index
    %c0_233 = arith.constant 0 : index
    %344 = vector.load %arg11[%c2_230, %c1_231, %c0_232, %c0_233] : memref<3x3x128x3xbf16, #tpu.memory_space<vmem>>, vector<1x1x128x3xbf16>
    %345 = vector.shape_cast %344 : vector<1x1x128x3xbf16> to vector<128x3xbf16>
    %cst_234 = arith.constant dense<0.000000e+00> : vector<256x3xf32>
    %346 = tpu.matmul %343, %345, %cst_234 {dimension_numbers = #tpu.dot_dimension_numbers<[1], [0], [0], [1], [0, 0, 1, 1], [], []>} : vector<256x128xbf16>, vector<128x3xbf16>, vector<256x3xf32> -> vector<256x3xf32>
    %347 = arith.addf %342, %346 : vector<256x3xf32>
    %348 = vector.extract_strided_slice %291 {offsets = [17, 0], sizes = [288, 128], strides = [1, 1]} : vector<320x128xbf16> to vector<288x128xbf16>
    %c15_i32_235 = arith.constant 15 : i32
    %349 = vector.broadcast %c15_i32_235 : i32 to vector<288x1xi32>
    %350 = arith.cmpi ne, %308, %349 : vector<288x1xi32>
    %cst_236 = arith.constant 0.000000e+00 : bf16
    %351 = vector.broadcast %cst_236 : bf16 to vector<288x128xbf16>
    %352 = vector.shape_cast %350 : vector<288x1xi1> to vector<288x1xi1>
    %353 = vector.broadcast %352 : vector<288x1xi1> to vector<288x128xi1>
    %354 = arith.select %353, %348, %351 : vector<288x128xi1>, vector<288x128xbf16>
    %355 = vector.extract_strided_slice %354 {offsets = [0, 0], sizes = [256, 128], strides = [1, 1]} : vector<288x128xbf16> to vector<256x128xbf16>
    %c0_237 = arith.constant 0 : index
    %c2_238 = arith.constant 2 : index
    %c0_239 = arith.constant 0 : index
    %c0_240 = arith.constant 0 : index
    %356 = vector.load %arg11[%c0_237, %c2_238, %c0_239, %c0_240] : memref<3x3x128x3xbf16, #tpu.memory_space<vmem>>, vector<1x1x128x3xbf16>
    %357 = vector.shape_cast %356 : vector<1x1x128x3xbf16> to vector<128x3xbf16>
    %cst_241 = arith.constant dense<0.000000e+00> : vector<256x3xf32>
    %358 = tpu.matmul %355, %357, %cst_241 {dimension_numbers = #tpu.dot_dimension_numbers<[1], [0], [0], [1], [0, 0, 1, 1], [], []>} : vector<256x128xbf16>, vector<128x3xbf16>, vector<256x3xf32> -> vector<256x3xf32>
    %359 = arith.addf %347, %358 : vector<256x3xf32>
    %360 = vector.extract_strided_slice %354 {offsets = [16, 0], sizes = [256, 128], strides = [1, 1]} : vector<288x128xbf16> to vector<256x128xbf16>
    %c1_242 = arith.constant 1 : index
    %c2_243 = arith.constant 2 : index
    %c0_244 = arith.constant 0 : index
    %c0_245 = arith.constant 0 : index
    %361 = vector.load %arg11[%c1_242, %c2_243, %c0_244, %c0_245] : memref<3x3x128x3xbf16, #tpu.memory_space<vmem>>, vector<1x1x128x3xbf16>
    %362 = vector.shape_cast %361 : vector<1x1x128x3xbf16> to vector<128x3xbf16>
    %cst_246 = arith.constant dense<0.000000e+00> : vector<256x3xf32>
    %363 = tpu.matmul %360, %362, %cst_246 {dimension_numbers = #tpu.dot_dimension_numbers<[1], [0], [0], [1], [0, 0, 1, 1], [], []>} : vector<256x128xbf16>, vector<128x3xbf16>, vector<256x3xf32> -> vector<256x3xf32>
    %364 = arith.addf %359, %363 : vector<256x3xf32>
    %365 = vector.extract_strided_slice %354 {offsets = [32, 0], sizes = [256, 128], strides = [1, 1]} : vector<288x128xbf16> to vector<256x128xbf16>
    %c2_247 = arith.constant 2 : index
    %c2_248 = arith.constant 2 : index
    %c0_249 = arith.constant 0 : index
    %c0_250 = arith.constant 0 : index
    %366 = vector.load %arg11[%c2_247, %c2_248, %c0_249, %c0_250] : memref<3x3x128x3xbf16, #tpu.memory_space<vmem>>, vector<1x1x128x3xbf16>
    %367 = vector.shape_cast %366 : vector<1x1x128x3xbf16> to vector<128x3xbf16>
    %cst_251 = arith.constant dense<0.000000e+00> : vector<256x3xf32>
    %368 = tpu.matmul %365, %367, %cst_251 {dimension_numbers = #tpu.dot_dimension_numbers<[1], [0], [0], [1], [0, 0, 1, 1], [], []>} : vector<256x128xbf16>, vector<128x3xbf16>, vector<256x3xf32> -> vector<256x3xf32>
    %369 = arith.addf %364, %368 : vector<256x3xf32>
    %c0_252 = arith.constant 0 : index
    %c0_253 = arith.constant 0 : index
    %370 = vector.load %arg12[%c0_252, %c0_253] : memref<1x3xf32, #tpu.memory_space<vmem>>, vector<1x3xf32>
    %371 = vector.broadcast %370 : vector<1x3xf32> to vector<256x3xf32>
    %372 = arith.addf %369, %371 : vector<256x3xf32>
    %373 = math.tanh %372 : vector<256x3xf32>
    %374 = vector.shape_cast %373 : vector<256x3xf32> to vector<16x16x3xf32>
    %c0_254 = arith.constant 0 : index
    %c0_255 = arith.constant 0 : index
    %c0_256 = arith.constant 0 : index
    %c0_257 = arith.constant 0 : index
    %375 = vector.load %arg13[%c0_254, %c0_255, %c0_256, %c0_257] : memref<1x16x16x3xf32, #tpu.memory_space<vmem>>, vector<1x16x16x3xf32>
    %376 = vector.shape_cast %375 : vector<1x16x16x3xf32> to vector<16x16x3xf32>
    %377 = vector.shape_cast %374 : vector<16x16x3xf32> to vector<1x16x16x3xf32>
    tpu.vector_store %arg13[%c0_254, %c0_255, %c0_256, %c0_257], %377 {strides = array<i32>} : memref<1x16x16x3xf32, #tpu.memory_space<vmem>>, vector<1x16x16x3xf32>,
    %378 = arith.truncf %373 : vector<256x3xf32> to vector<256x3xbf16>
    %cst_258 = arith.constant 0.000000e+00 : bf16
    %379 = vector.broadcast %cst_258 : bf16 to vector<32x3xbf16>
    %380 = tpu.concatenate %379, %378, %379 in 0 : vector<32x3xbf16>, vector<256x3xbf16>, vector<32x3xbf16> -> vector<320x3xbf16>
    %381 = tpu.iota {dimensions = array<i32: 0>} : vector<288x1xi32>
    %c16_i32_259 = arith.constant 16 : i32
    %c0_i32_260 = arith.constant 0 : i32
    %382 = arith.cmpi eq, %c16_i32_259, %c0_i32_260 : i32
    %c1_i32_261 = arith.constant 1 : i32
    %383 = arith.select %382, %c1_i32_261, %c16_i32_259 : i32
    %384 = vector.broadcast %383 : i32 to vector<288x1xi32>
    %385 = arith.remsi %381, %384 : vector<288x1xi32>
    %c0_i32_262 = arith.constant 0 : i32
    %386 = vector.broadcast %c0_i32_262 : i32 to vector<288x1xi32>
    %387 = arith.cmpi ne, %385, %386 : vector<288x1xi32>
    %c0_i32_263 = arith.constant 0 : i32
    %388 = vector.broadcast %c0_i32_263 : i32 to vector<288x1xi32>
    %389 = arith.cmpi slt, %385, %388 : vector<288x1xi32>
    %c0_i32_264 = arith.constant 0 : i32
    %390 = arith.cmpi slt, %383, %c0_i32_264 : i32
    %391 = vector.broadcast %390 : i1 to vector<288x1xi1>
    %392 = vector.broadcast %391 : vector<288x1xi1> to vector<288x1xi1>
    %393 = arith.xori %389, %392 : vector<288x1xi1>
    %394 = arith.andi %393, %387 : vector<288x1xi1>
    %395 = vector.broadcast %383 : i32 to vector<288x1xi32>
    %396 = arith.addi %385, %395 : vector<288x1xi32>
    %397 = arith.select %394, %396, %385 : vector<288x1xi1>, vector<288x1xi32>
    %cst_265 = arith.constant 0.000000e+00 : f32
    %398 = vector.broadcast %cst_265 : f32 to vector<256x128xf32>
    %399 = vector.extract_strided_slice %380 {offsets = [15, 0], sizes = [288, 3], strides = [1, 1]} : vector<320x3xbf16> to vector<288x3xbf16>
    %c0_i32_266 = arith.constant 0 : i32
    %400 = vector.broadcast %c0_i32_266 : i32 to vector<288x1xi32>
    %401 = arith.cmpi ne, %397, %400 : vector<288x1xi32>
    %cst_267 = arith.constant 0.000000e+00 : bf16
    %402 = vector.broadcast %cst_267 : bf16 to vector<288x3xbf16>
    %403 = vector.shape_cast %401 : vector<288x1xi1> to vector<288x1xi1>
    %404 = vector.broadcast %403 : vector<288x1xi1> to vector<288x3xi1>
    %405 = arith.select %404, %399, %402 : vector<288x3xi1>, vector<288x3xbf16>
    %406 = vector.extract_strided_slice %405 {offsets = [0, 0], sizes = [256, 3], strides = [1, 1]} : vector<288x3xbf16> to vector<256x3xbf16>
    %c0_268 = arith.constant 0 : index
    %c0_269 = arith.constant 0 : index
    %c0_270 = arith.constant 0 : index
    %c0_271 = arith.constant 0 : index
    %407 = vector.load %arg5[%c0_268, %c0_269, %c0_270, %c0_271] : memref<3x3x3x128xbf16, #tpu.memory_space<vmem>>, vector<1x1x3x128xbf16>
    %408 = vector.shape_cast %407 : vector<1x1x3x128xbf16> to vector<3x128xbf16>
    %cst_272 = arith.constant dense<0.000000e+00> : vector<256x128xf32>
    %409 = tpu.matmul %406, %408, %cst_272 {dimension_numbers = #tpu.dot_dimension_numbers<[1], [0], [0], [1], [0, 0, 1, 1], [], []>} : vector<256x3xbf16>, vector<3x128xbf16>, vector<256x128xf32> -> vector<256x128xf32>
    %410 = arith.addf %398, %409 : vector<256x128xf32>
    %411 = vector.extract_strided_slice %405 {offsets = [16, 0], sizes = [256, 3], strides = [1, 1]} : vector<288x3xbf16> to vector<256x3xbf16>
    %c1_273 = arith.constant 1 : index
    %c0_274 = arith.constant 0 : index
    %c0_275 = arith.constant 0 : index
    %c0_276 = arith.constant 0 : index
    %412 = vector.load %arg5[%c1_273, %c0_274, %c0_275, %c0_276] : memref<3x3x3x128xbf16, #tpu.memory_space<vmem>>, vector<1x1x3x128xbf16>
    %413 = vector.shape_cast %412 : vector<1x1x3x128xbf16> to vector<3x128xbf16>
    %cst_277 = arith.constant dense<0.000000e+00> : vector<256x128xf32>
    %414 = tpu.matmul %411, %413, %cst_277 {dimension_numbers = #tpu.dot_dimension_numbers<[1], [0], [0], [1], [0, 0, 1, 1], [], []>} : vector<256x3xbf16>, vector<3x128xbf16>, vector<256x128xf32> -> vector<256x128xf32>
    %415 = arith.addf %410, %414 : vector<256x128xf32>
    %416 = vector.extract_strided_slice %405 {offsets = [32, 0], sizes = [256, 3], strides = [1, 1]} : vector<288x3xbf16> to vector<256x3xbf16>
    %c2_278 = arith.constant 2 : index
    %c0_279 = arith.constant 0 : index
    %c0_280 = arith.constant 0 : index
    %c0_281 = arith.constant 0 : index
    %417 = vector.load %arg5[%c2_278, %c0_279, %c0_280, %c0_281] : memref<3x3x3x128xbf16, #tpu.memory_space<vmem>>, vector<1x1x3x128xbf16>
    %418 = vector.shape_cast %417 : vector<1x1x3x128xbf16> to vector<3x128xbf16>
    %cst_282 = arith.constant dense<0.000000e+00> : vector<256x128xf32>
    %419 = tpu.matmul %416, %418, %cst_282 {dimension_numbers = #tpu.dot_dimension_numbers<[1], [0], [0], [1], [0, 0, 1, 1], [], []>} : vector<256x3xbf16>, vector<3x128xbf16>, vector<256x128xf32> -> vector<256x128xf32>
    %420 = arith.addf %415, %419 : vector<256x128xf32>
    %421 = vector.extract_strided_slice %380 {offsets = [16, 0], sizes = [288, 3], strides = [1, 1]} : vector<320x3xbf16> to vector<288x3xbf16>
    %422 = vector.extract_strided_slice %421 {offsets = [0, 0], sizes = [256, 3], strides = [1, 1]} : vector<288x3xbf16> to vector<256x3xbf16>
    %c0_283 = arith.constant 0 : index
    %c1_284 = arith.constant 1 : index
    %c0_285 = arith.constant 0 : index
    %c0_286 = arith.constant 0 : index
    %423 = vector.load %arg5[%c0_283, %c1_284, %c0_285, %c0_286] : memref<3x3x3x128xbf16, #tpu.memory_space<vmem>>, vector<1x1x3x128xbf16>
    %424 = vector.shape_cast %423 : vector<1x1x3x128xbf16> to vector<3x128xbf16>
    %cst_287 = arith.constant dense<0.000000e+00> : vector<256x128xf32>
    %425 = tpu.matmul %422, %424, %cst_287 {dimension_numbers = #tpu.dot_dimension_numbers<[1], [0], [0], [1], [0, 0, 1, 1], [], []>} : vector<256x3xbf16>, vector<3x128xbf16>, vector<256x128xf32> -> vector<256x128xf32>
    %426 = arith.addf %420, %425 : vector<256x128xf32>
    %427 = vector.extract_strided_slice %421 {offsets = [16, 0], sizes = [256, 3], strides = [1, 1]} : vector<288x3xbf16> to vector<256x3xbf16>
    %c1_288 = arith.constant 1 : index
    %c1_289 = arith.constant 1 : index
    %c0_290 = arith.constant 0 : index
    %c0_291 = arith.constant 0 : index
    %428 = vector.load %arg5[%c1_288, %c1_289, %c0_290, %c0_291] : memref<3x3x3x128xbf16, #tpu.memory_space<vmem>>, vector<1x1x3x128xbf16>
    %429 = vector.shape_cast %428 : vector<1x1x3x128xbf16> to vector<3x128xbf16>
    %cst_292 = arith.constant dense<0.000000e+00> : vector<256x128xf32>
    %430 = tpu.matmul %427, %429, %cst_292 {dimension_numbers = #tpu.dot_dimension_numbers<[1], [0], [0], [1], [0, 0, 1, 1], [], []>} : vector<256x3xbf16>, vector<3x128xbf16>, vector<256x128xf32> -> vector<256x128xf32>
    %431 = arith.addf %426, %430 : vector<256x128xf32>
    %432 = vector.extract_strided_slice %421 {offsets = [32, 0], sizes = [256, 3], strides = [1, 1]} : vector<288x3xbf16> to vector<256x3xbf16>
    %c2_293 = arith.constant 2 : index
    %c1_294 = arith.constant 1 : index
    %c0_295 = arith.constant 0 : index
    %c0_296 = arith.constant 0 : index
    %433 = vector.load %arg5[%c2_293, %c1_294, %c0_295, %c0_296] : memref<3x3x3x128xbf16, #tpu.memory_space<vmem>>, vector<1x1x3x128xbf16>
    %434 = vector.shape_cast %433 : vector<1x1x3x128xbf16> to vector<3x128xbf16>
    %cst_297 = arith.constant dense<0.000000e+00> : vector<256x128xf32>
    %435 = tpu.matmul %432, %434, %cst_297 {dimension_numbers = #tpu.dot_dimension_numbers<[1], [0], [0], [1], [0, 0, 1, 1], [], []>} : vector<256x3xbf16>, vector<3x128xbf16>, vector<256x128xf32> -> vector<256x128xf32>
    %436 = arith.addf %431, %435 : vector<256x128xf32>
    %437 = vector.extract_strided_slice %380 {offsets = [17, 0], sizes = [288, 3], strides = [1, 1]} : vector<320x3xbf16> to vector<288x3xbf16>
    %c15_i32_298 = arith.constant 15 : i32
    %438 = vector.broadcast %c15_i32_298 : i32 to vector<288x1xi32>
    %439 = arith.cmpi ne, %397, %438 : vector<288x1xi32>
    %cst_299 = arith.constant 0.000000e+00 : bf16
    %440 = vector.broadcast %cst_299 : bf16 to vector<288x3xbf16>
    %441 = vector.shape_cast %439 : vector<288x1xi1> to vector<288x1xi1>
    %442 = vector.broadcast %441 : vector<288x1xi1> to vector<288x3xi1>
    %443 = arith.select %442, %437, %440 : vector<288x3xi1>, vector<288x3xbf16>
    %444 = vector.extract_strided_slice %443 {offsets = [0, 0], sizes = [256, 3], strides = [1, 1]} : vector<288x3xbf16> to vector<256x3xbf16>
    %c0_300 = arith.constant 0 : index
    %c2_301 = arith.constant 2 : index
    %c0_302 = arith.constant 0 : index
    %c0_303 = arith.constant 0 : index
    %445 = vector.load %arg5[%c0_300, %c2_301, %c0_302, %c0_303] : memref<3x3x3x128xbf16, #tpu.memory_space<vmem>>, vector<1x1x3x128xbf16>
    %446 = vector.shape_cast %445 : vector<1x1x3x128xbf16> to vector<3x128xbf16>
    %cst_304 = arith.constant dense<0.000000e+00> : vector<256x128xf32>
    %447 = tpu.matmul %444, %446, %cst_304 {dimension_numbers = #tpu.dot_dimension_numbers<[1], [0], [0], [1], [0, 0, 1, 1], [], []>} : vector<256x3xbf16>, vector<3x128xbf16>, vector<256x128xf32> -> vector<256x128xf32>
    %448 = arith.addf %436, %447 : vector<256x128xf32>
    %449 = vector.extract_strided_slice %443 {offsets = [16, 0], sizes = [256, 3], strides = [1, 1]} : vector<288x3xbf16> to vector<256x3xbf16>
    %c1_305 = arith.constant 1 : index
    %c2_306 = arith.constant 2 : index
    %c0_307 = arith.constant 0 : index
    %c0_308 = arith.constant 0 : index
    %450 = vector.load %arg5[%c1_305, %c2_306, %c0_307, %c0_308] : memref<3x3x3x128xbf16, #tpu.memory_space<vmem>>, vector<1x1x3x128xbf16>
    %451 = vector.shape_cast %450 : vector<1x1x3x128xbf16> to vector<3x128xbf16>
    %cst_309 = arith.constant dense<0.000000e+00> : vector<256x128xf32>
    %452 = tpu.matmul %449, %451, %cst_309 {dimension_numbers = #tpu.dot_dimension_numbers<[1], [0], [0], [1], [0, 0, 1, 1], [], []>} : vector<256x3xbf16>, vector<3x128xbf16>, vector<256x128xf32> -> vector<256x128xf32>
    %453 = arith.addf %448, %452 : vector<256x128xf32>
    %454 = vector.extract_strided_slice %443 {offsets = [32, 0], sizes = [256, 3], strides = [1, 1]} : vector<288x3xbf16> to vector<256x3xbf16>
    %c2_310 = arith.constant 2 : index
    %c2_311 = arith.constant 2 : index
    %c0_312 = arith.constant 0 : index
    %c0_313 = arith.constant 0 : index
    %455 = vector.load %arg5[%c2_310, %c2_311, %c0_312, %c0_313] : memref<3x3x3x128xbf16, #tpu.memory_space<vmem>>, vector<1x1x3x128xbf16>
    %456 = vector.shape_cast %455 : vector<1x1x3x128xbf16> to vector<3x128xbf16>
    %cst_314 = arith.constant dense<0.000000e+00> : vector<256x128xf32>
    %457 = tpu.matmul %454, %456, %cst_314 {dimension_numbers = #tpu.dot_dimension_numbers<[1], [0], [0], [1], [0, 0, 1, 1], [], []>} : vector<256x3xbf16>, vector<3x128xbf16>, vector<256x128xf32> -> vector<256x128xf32>
    %458 = arith.addf %453, %457 : vector<256x128xf32>
    %c0_315 = arith.constant 0 : index
    %c0_316 = arith.constant 0 : index
    %459 = vector.load %arg6[%c0_315, %c0_316] : memref<1x128xf32, #tpu.memory_space<vmem>>, vector<1x128xf32>
    %460 = vector.broadcast %459 : vector<1x128xf32> to vector<256x128xf32>
    %461 = arith.addf %458, %460 : vector<256x128xf32>
    %cst_317 = arith.constant 0.000000e+00 : f32
    %462 = vector.broadcast %cst_317 : f32 to vector<256x128xf32>
    %463 = arith.maximumf %461, %462 : vector<256x128xf32>
    %464 = arith.truncf %463 : vector<256x128xf32> to vector<256x128xbf16>
    %cst_318 = arith.constant 0.000000e+00 : bf16
    %465 = vector.broadcast %cst_318 : bf16 to vector<32x128xbf16>
    %466 = tpu.concatenate %465, %464, %465 in 0 : vector<32x128xbf16>, vector<256x128xbf16>, vector<32x128xbf16> -> vector<320x128xbf16>
    %467 = tpu.iota {dimensions = array<i32: 0>} : vector<288x1xi32>
    %c16_i32_319 = arith.constant 16 : i32
    %c0_i32_320 = arith.constant 0 : i32
    %468 = arith.cmpi eq, %c16_i32_319, %c0_i32_320 : i32
    %c1_i32_321 = arith.constant 1 : i32
    %469 = arith.select %468, %c1_i32_321, %c16_i32_319 : i32
    %470 = vector.broadcast %469 : i32 to vector<288x1xi32>
    %471 = arith.remsi %467, %470 : vector<288x1xi32>
    %c0_i32_322 = arith.constant 0 : i32
    %472 = vector.broadcast %c0_i32_322 : i32 to vector<288x1xi32>
    %473 = arith.cmpi ne, %471, %472 : vector<288x1xi32>
    %c0_i32_323 = arith.constant 0 : i32
    %474 = vector.broadcast %c0_i32_323 : i32 to vector<288x1xi32>
    %475 = arith.cmpi slt, %471, %474 : vector<288x1xi32>
    %c0_i32_324 = arith.constant 0 : i32
    %476 = arith.cmpi slt, %469, %c0_i32_324 : i32
    %477 = vector.broadcast %476 : i1 to vector<288x1xi1>
    %478 = vector.broadcast %477 : vector<288x1xi1> to vector<288x1xi1>
    %479 = arith.xori %475, %478 : vector<288x1xi1>
    %480 = arith.andi %479, %473 : vector<288x1xi1>
    %481 = vector.broadcast %469 : i32 to vector<288x1xi32>
    %482 = arith.addi %471, %481 : vector<288x1xi32>
    %483 = arith.select %480, %482, %471 : vector<288x1xi1>, vector<288x1xi32>
    %cst_325 = arith.constant 0.000000e+00 : f32
    %484 = vector.broadcast %cst_325 : f32 to vector<256x32xf32>
    %485 = vector.extract_strided_slice %466 {offsets = [15, 0], sizes = [288, 128], strides = [1, 1]} : vector<320x128xbf16> to vector<288x128xbf16>
    %c0_i32_326 = arith.constant 0 : i32
    %486 = vector.broadcast %c0_i32_326 : i32 to vector<288x1xi32>
    %487 = arith.cmpi ne, %483, %486 : vector<288x1xi32>
    %cst_327 = arith.constant 0.000000e+00 : bf16
    %488 = vector.broadcast %cst_327 : bf16 to vector<288x128xbf16>
    %489 = vector.shape_cast %487 : vector<288x1xi1> to vector<288x1xi1>
    %490 = vector.broadcast %489 : vector<288x1xi1> to vector<288x128xi1>
    %491 = arith.select %490, %485, %488 : vector<288x128xi1>, vector<288x128xbf16>
    %492 = vector.extract_strided_slice %491 {offsets = [0, 0], sizes = [256, 128], strides = [1, 1]} : vector<288x128xbf16> to vector<256x128xbf16>
    %c0_328 = arith.constant 0 : index
    %c0_329 = arith.constant 0 : index
    %c0_330 = arith.constant 0 : index
    %c0_331 = arith.constant 0 : index
    %493 = vector.load %arg7[%c0_328, %c0_329, %c0_330, %c0_331] : memref<3x3x128x32xbf16, #tpu.memory_space<vmem>>, vector<1x1x128x32xbf16>
    %494 = vector.shape_cast %493 : vector<1x1x128x32xbf16> to vector<128x32xbf16>
    %cst_332 = arith.constant dense<0.000000e+00> : vector<256x32xf32>
    %495 = tpu.matmul %492, %494, %cst_332 {dimension_numbers = #tpu.dot_dimension_numbers<[1], [0], [0], [1], [0, 0, 1, 1], [], []>} : vector<256x128xbf16>, vector<128x32xbf16>, vector<256x32xf32> -> vector<256x32xf32>
    %496 = arith.addf %484, %495 : vector<256x32xf32>
    %497 = vector.extract_strided_slice %491 {offsets = [16, 0], sizes = [256, 128], strides = [1, 1]} : vector<288x128xbf16> to vector<256x128xbf16>
    %c1_333 = arith.constant 1 : index
    %c0_334 = arith.constant 0 : index
    %c0_335 = arith.constant 0 : index
    %c0_336 = arith.constant 0 : index
    %498 = vector.load %arg7[%c1_333, %c0_334, %c0_335, %c0_336] : memref<3x3x128x32xbf16, #tpu.memory_space<vmem>>, vector<1x1x128x32xbf16>
    %499 = vector.shape_cast %498 : vector<1x1x128x32xbf16> to vector<128x32xbf16>
    %cst_337 = arith.constant dense<0.000000e+00> : vector<256x32xf32>
    %500 = tpu.matmul %497, %499, %cst_337 {dimension_numbers = #tpu.dot_dimension_numbers<[1], [0], [0], [1], [0, 0, 1, 1], [], []>} : vector<256x128xbf16>, vector<128x32xbf16>, vector<256x32xf32> -> vector<256x32xf32>
    %501 = arith.addf %496, %500 : vector<256x32xf32>
    %502 = vector.extract_strided_slice %491 {offsets = [32, 0], sizes = [256, 128], strides = [1, 1]} : vector<288x128xbf16> to vector<256x128xbf16>
    %c2_338 = arith.constant 2 : index
    %c0_339 = arith.constant 0 : index
    %c0_340 = arith.constant 0 : index
    %c0_341 = arith.constant 0 : index
    %503 = vector.load %arg7[%c2_338, %c0_339, %c0_340, %c0_341] : memref<3x3x128x32xbf16, #tpu.memory_space<vmem>>, vector<1x1x128x32xbf16>
    %504 = vector.shape_cast %503 : vector<1x1x128x32xbf16> to vector<128x32xbf16>
    %cst_342 = arith.constant dense<0.000000e+00> : vector<256x32xf32>
    %505 = tpu.matmul %502, %504, %cst_342 {dimension_numbers = #tpu.dot_dimension_numbers<[1], [0], [0], [1], [0, 0, 1, 1], [], []>} : vector<256x128xbf16>, vector<128x32xbf16>, vector<256x32xf32> -> vector<256x32xf32>
    %506 = arith.addf %501, %505 : vector<256x32xf32>
    %507 = vector.extract_strided_slice %466 {offsets = [16, 0], sizes = [288, 128], strides = [1, 1]} : vector<320x128xbf16> to vector<288x128xbf16>
    %508 = vector.extract_strided_slice %507 {offsets = [0, 0], sizes = [256, 128], strides = [1, 1]} : vector<288x128xbf16> to vector<256x128xbf16>
    %c0_343 = arith.constant 0 : index
    %c1_344 = arith.constant 1 : index
    %c0_345 = arith.constant 0 : index
    %c0_346 = arith.constant 0 : index
    %509 = vector.load %arg7[%c0_343, %c1_344, %c0_345, %c0_346] : memref<3x3x128x32xbf16, #tpu.memory_space<vmem>>, vector<1x1x128x32xbf16>
    %510 = vector.shape_cast %509 : vector<1x1x128x32xbf16> to vector<128x32xbf16>
    %cst_347 = arith.constant dense<0.000000e+00> : vector<256x32xf32>
    %511 = tpu.matmul %508, %510, %cst_347 {dimension_numbers = #tpu.dot_dimension_numbers<[1], [0], [0], [1], [0, 0, 1, 1], [], []>} : vector<256x128xbf16>, vector<128x32xbf16>, vector<256x32xf32> -> vector<256x32xf32>
    %512 = arith.addf %506, %511 : vector<256x32xf32>
    %513 = vector.extract_strided_slice %507 {offsets = [16, 0], sizes = [256, 128], strides = [1, 1]} : vector<288x128xbf16> to vector<256x128xbf16>
    %c1_348 = arith.constant 1 : index
    %c1_349 = arith.constant 1 : index
    %c0_350 = arith.constant 0 : index
    %c0_351 = arith.constant 0 : index
    %514 = vector.load %arg7[%c1_348, %c1_349, %c0_350, %c0_351] : memref<3x3x128x32xbf16, #tpu.memory_space<vmem>>, vector<1x1x128x32xbf16>
    %515 = vector.shape_cast %514 : vector<1x1x128x32xbf16> to vector<128x32xbf16>
    %cst_352 = arith.constant dense<0.000000e+00> : vector<256x32xf32>
    %516 = tpu.matmul %513, %515, %cst_352 {dimension_numbers = #tpu.dot_dimension_numbers<[1], [0], [0], [1], [0, 0, 1, 1], [], []>} : vector<256x128xbf16>, vector<128x32xbf16>, vector<256x32xf32> -> vector<256x32xf32>
    %517 = arith.addf %512, %516 : vector<256x32xf32>
    %518 = vector.extract_strided_slice %507 {offsets = [32, 0], sizes = [256, 128], strides = [1, 1]} : vector<288x128xbf16> to vector<256x128xbf16>
    %c2_353 = arith.constant 2 : index
    %c1_354 = arith.constant 1 : index
    %c0_355 = arith.constant 0 : index
    %c0_356 = arith.constant 0 : index
    %519 = vector.load %arg7[%c2_353, %c1_354, %c0_355, %c0_356] : memref<3x3x128x32xbf16, #tpu.memory_space<vmem>>, vector<1x1x128x32xbf16>
    %520 = vector.shape_cast %519 : vector<1x1x128x32xbf16> to vector<128x32xbf16>
    %cst_357 = arith.constant dense<0.000000e+00> : vector<256x32xf32>
    %521 = tpu.matmul %518, %520, %cst_357 {dimension_numbers = #tpu.dot_dimension_numbers<[1], [0], [0], [1], [0, 0, 1, 1], [], []>} : vector<256x128xbf16>, vector<128x32xbf16>, vector<256x32xf32> -> vector<256x32xf32>
    %522 = arith.addf %517, %521 : vector<256x32xf32>
    %523 = vector.extract_strided_slice %466 {offsets = [17, 0], sizes = [288, 128], strides = [1, 1]} : vector<320x128xbf16> to vector<288x128xbf16>
    %c15_i32_358 = arith.constant 15 : i32
    %524 = vector.broadcast %c15_i32_358 : i32 to vector<288x1xi32>
    %525 = arith.cmpi ne, %483, %524 : vector<288x1xi32>
    %cst_359 = arith.constant 0.000000e+00 : bf16
    %526 = vector.broadcast %cst_359 : bf16 to vector<288x128xbf16>
    %527 = vector.shape_cast %525 : vector<288x1xi1> to vector<288x1xi1>
    %528 = vector.broadcast %527 : vector<288x1xi1> to vector<288x128xi1>
    %529 = arith.select %528, %523, %526 : vector<288x128xi1>, vector<288x128xbf16>
    %530 = vector.extract_strided_slice %529 {offsets = [0, 0], sizes = [256, 128], strides = [1, 1]} : vector<288x128xbf16> to vector<256x128xbf16>
    %c0_360 = arith.constant 0 : index
    %c2_361 = arith.constant 2 : index
    %c0_362 = arith.constant 0 : index
    %c0_363 = arith.constant 0 : index
    %531 = vector.load %arg7[%c0_360, %c2_361, %c0_362, %c0_363] : memref<3x3x128x32xbf16, #tpu.memory_space<vmem>>, vector<1x1x128x32xbf16>
    %532 = vector.shape_cast %531 : vector<1x1x128x32xbf16> to vector<128x32xbf16>
    %cst_364 = arith.constant dense<0.000000e+00> : vector<256x32xf32>
    %533 = tpu.matmul %530, %532, %cst_364 {dimension_numbers = #tpu.dot_dimension_numbers<[1], [0], [0], [1], [0, 0, 1, 1], [], []>} : vector<256x128xbf16>, vector<128x32xbf16>, vector<256x32xf32> -> vector<256x32xf32>
    %534 = arith.addf %522, %533 : vector<256x32xf32>
    %535 = vector.extract_strided_slice %529 {offsets = [16, 0], sizes = [256, 128], strides = [1, 1]} : vector<288x128xbf16> to vector<256x128xbf16>
    %c1_365 = arith.constant 1 : index
    %c2_366 = arith.constant 2 : index
    %c0_367 = arith.constant 0 : index
    %c0_368 = arith.constant 0 : index
    %536 = vector.load %arg7[%c1_365, %c2_366, %c0_367, %c0_368] : memref<3x3x128x32xbf16, #tpu.memory_space<vmem>>, vector<1x1x128x32xbf16>
    %537 = vector.shape_cast %536 : vector<1x1x128x32xbf16> to vector<128x32xbf16>
    %cst_369 = arith.constant dense<0.000000e+00> : vector<256x32xf32>
    %538 = tpu.matmul %535, %537, %cst_369 {dimension_numbers = #tpu.dot_dimension_numbers<[1], [0], [0], [1], [0, 0, 1, 1], [], []>} : vector<256x128xbf16>, vector<128x32xbf16>, vector<256x32xf32> -> vector<256x32xf32>
    %539 = arith.addf %534, %538 : vector<256x32xf32>
    %540 = vector.extract_strided_slice %529 {offsets = [32, 0], sizes = [256, 128], strides = [1, 1]} : vector<288x128xbf16> to vector<256x128xbf16>
    %c2_370 = arith.constant 2 : index
    %c2_371 = arith.constant 2 : index
    %c0_372 = arith.constant 0 : index
    %c0_373 = arith.constant 0 : index
    %541 = vector.load %arg7[%c2_370, %c2_371, %c0_372, %c0_373] : memref<3x3x128x32xbf16, #tpu.memory_space<vmem>>, vector<1x1x128x32xbf16>
    %542 = vector.shape_cast %541 : vector<1x1x128x32xbf16> to vector<128x32xbf16>
    %cst_374 = arith.constant dense<0.000000e+00> : vector<256x32xf32>
    %543 = tpu.matmul %540, %542, %cst_374 {dimension_numbers = #tpu.dot_dimension_numbers<[1], [0], [0], [1], [0, 0, 1, 1], [], []>} : vector<256x128xbf16>, vector<128x32xbf16>, vector<256x32xf32> -> vector<256x32xf32>
    %544 = arith.addf %539, %543 : vector<256x32xf32>
    %c0_375 = arith.constant 0 : index
    %c0_376 = arith.constant 0 : index
    %545 = vector.load %arg8[%c0_375, %c0_376] : memref<1x32xf32, #tpu.memory_space<vmem>>, vector<1x32xf32>
    %546 = vector.broadcast %545 : vector<1x32xf32> to vector<256x32xf32>
    %547 = arith.addf %544, %546 : vector<256x32xf32>
    %cst_377 = arith.constant 0.000000e+00 : f32
    %548 = vector.broadcast %cst_377 : f32 to vector<256x32xf32>
    %549 = arith.maximumf %547, %548 : vector<256x32xf32>
    %550 = vector.broadcast %198 : vector<256x1xf32> to vector<256x32xf32>
    %551 = arith.mulf %549, %550 : vector<256x32xf32>
    %cst_378 = arith.constant dense<0.000000e+00> : vector<32xf32>
    %552 = vector.multi_reduction <add>, %551, %cst_378 [0] : vector<256x32xf32> to vector<32xf32>
    %553 = vector.shape_cast %552 : vector<32xf32> to vector<1x32xf32>
    %cst_379 = arith.constant dense<0.000000e+00> : vector<1xf32>
    %554 = vector.multi_reduction <add>, %198, %cst_379 [0] : vector<256x1xf32> to vector<1xf32>
    %555 = vector.shape_cast %554 : vector<1xf32> to vector<1x1xf32>
    %cst_380 = arith.constant 9.99999997E-7 : f32
    %556 = vector.broadcast %cst_380 : f32 to vector<1x1xf32>
    %557 = arith.addf %555, %556 : vector<1x1xf32>
    %558 = vector.broadcast %557 : vector<1x1xf32> to vector<1x32xf32>
    %559 = arith.divf %553, %558 : vector<1x32xf32>
    %c0_381 = arith.constant 0 : index
    %c0_382 = arith.constant 0 : index
    %c0_383 = arith.constant 0 : index
    %560 = vector.load %arg15[%c0_381, %c0_382, %c0_383] : memref<1x1x32xf32, #tpu.memory_space<vmem>>, vector<1x1x32xf32>
    %561 = vector.shape_cast %560 : vector<1x1x32xf32> to vector<1x32xf32>
    %562 = vector.shape_cast %559 : vector<1x32xf32> to vector<1x1x32xf32>
    tpu.vector_store %arg15[%c0_381, %c0_382, %c0_383], %562 {strides = array<i32>} : memref<1x1x32xf32, #tpu.memory_space<vmem>>, vector<1x1x32xf32>,
    return
  }
  func.func @transform_0(%arg0: i32) -> (i32, i32, i32, i32) {
    %c0_i32 = arith.constant 0 : i32
    %c0_i32_0 = arith.constant 0 : i32
    %c0_i32_1 = arith.constant 0 : i32
    %c0_i32_2 = arith.constant 0 : i32
    return %arg0, %c0_i32, %c0_i32_0, %c0_i32_1 : i32, i32, i32, i32
  }
  func.func @transform_1(%arg0: i32) -> (i32, i32, i32, i32) {
    %c0_i32 = arith.constant 0 : i32
    %c0_i32_0 = arith.constant 0 : i32
    %c0_i32_1 = arith.constant 0 : i32
    %c0_i32_2 = arith.constant 0 : i32
    return %arg0, %c0_i32, %c0_i32_0, %c0_i32_1 : i32, i32, i32, i32
  }
  func.func @transform_2(%arg0: i32) -> (i32, i32, i32, i32) {
    %c0_i32 = arith.constant 0 : i32
    %c0_i32_0 = arith.constant 0 : i32
    %c0_i32_1 = arith.constant 0 : i32
    %c0_i32_2 = arith.constant 0 : i32
    return %arg0, %c0_i32, %c0_i32_0, %c0_i32_1 : i32, i32, i32, i32
  }
  func.func @transform_3(%arg0: i32) -> (i32, i32, i32, i32) {
    %c0_i32 = arith.constant 0 : i32
    %c0_i32_0 = arith.constant 0 : i32
    %c0_i32_1 = arith.constant 0 : i32
    %c0_i32_2 = arith.constant 0 : i32
    return %arg0, %c0_i32, %c0_i32_0, %c0_i32_1 : i32, i32, i32, i32
  }
  func.func @transform_4(%arg0: i32) -> (i32, i32, i32, i32) {
    %c0_i32 = arith.constant 0 : i32
    %c0_i32_0 = arith.constant 0 : i32
    %c0_i32_1 = arith.constant 0 : i32
    %c0_i32_2 = arith.constant 0 : i32
    %c0_i32_3 = arith.constant 0 : i32
    return %c0_i32, %c0_i32_0, %c0_i32_1, %c0_i32_2 : i32, i32, i32, i32
  }
  func.func @transform_5(%arg0: i32) -> (i32, i32) {
    %c0_i32 = arith.constant 0 : i32
    %c0_i32_0 = arith.constant 0 : i32
    %c0_i32_1 = arith.constant 0 : i32
    return %c0_i32, %c0_i32_0 : i32, i32
  }
  func.func @transform_6(%arg0: i32) -> (i32, i32, i32, i32) {
    %c0_i32 = arith.constant 0 : i32
    %c0_i32_0 = arith.constant 0 : i32
    %c0_i32_1 = arith.constant 0 : i32
    %c0_i32_2 = arith.constant 0 : i32
    %c0_i32_3 = arith.constant 0 : i32
    return %c0_i32, %c0_i32_0, %c0_i32_1, %c0_i32_2 : i32, i32, i32, i32
  }
  func.func @transform_7(%arg0: i32) -> (i32, i32) {
    %c0_i32 = arith.constant 0 : i32
    %c0_i32_0 = arith.constant 0 : i32
    %c0_i32_1 = arith.constant 0 : i32
    return %c0_i32, %c0_i32_0 : i32, i32
  }
  func.func @transform_8(%arg0: i32) -> (i32, i32, i32, i32) {
    %c0_i32 = arith.constant 0 : i32
    %c0_i32_0 = arith.constant 0 : i32
    %c0_i32_1 = arith.constant 0 : i32
    %c0_i32_2 = arith.constant 0 : i32
    %c0_i32_3 = arith.constant 0 : i32
    return %c0_i32, %c0_i32_0, %c0_i32_1, %c0_i32_2 : i32, i32, i32, i32
  }
  func.func @transform_9(%arg0: i32) -> (i32, i32) {
    %c0_i32 = arith.constant 0 : i32
    %c0_i32_0 = arith.constant 0 : i32
    %c0_i32_1 = arith.constant 0 : i32
    return %c0_i32, %c0_i32_0 : i32, i32
  }
  func.func @transform_10(%arg0: i32) -> (i32, i32, i32, i32) {
    %c0_i32 = arith.constant 0 : i32
    %c0_i32_0 = arith.constant 0 : i32
    %c0_i32_1 = arith.constant 0 : i32
    %c0_i32_2 = arith.constant 0 : i32
    %c0_i32_3 = arith.constant 0 : i32
    return %c0_i32, %c0_i32_0, %c0_i32_1, %c0_i32_2 : i32, i32, i32, i32
  }
  func.func @transform_11(%arg0: i32) -> (i32, i32) {
    %c0_i32 = arith.constant 0 : i32
    %c0_i32_0 = arith.constant 0 : i32
    %c0_i32_1 = arith.constant 0 : i32
    return %c0_i32, %c0_i32_0 : i32, i32
  }
  func.func @transform_12(%arg0: i32) -> (i32, i32, i32, i32) {
    %c0_i32 = arith.constant 0 : i32
    %c0_i32_0 = arith.constant 0 : i32
    %c0_i32_1 = arith.constant 0 : i32
    %c0_i32_2 = arith.constant 0 : i32
    return %arg0, %c0_i32, %c0_i32_0, %c0_i32_1 : i32, i32, i32, i32
  }
  func.func @transform_13(%arg0: i32) -> (i32, i32, i32) {
    %c0_i32 = arith.constant 0 : i32
    %c0_i32_0 = arith.constant 0 : i32
    %c0_i32_1 = arith.constant 0 : i32
    return %arg0, %c0_i32, %c0_i32_0 : i32, i32, i32
  }
  func.func @transform_14(%arg0: i32) -> (i32, i32, i32) {
    %c0_i32 = arith.constant 0 : i32
    %c0_i32_0 = arith.constant 0 : i32
    %c0_i32_1 = arith.constant 0 : i32
    return %arg0, %c0_i32, %c0_i32_0 : i32, i32, i32
  }
}

</mosaic_0001>

<bundles_post_ra>
// kernel: generator_forward.1
= control target key start
LH: loop header
LB: loop body
LE: loop exit
PB: predicated region body
PF: predicated region fallthrough
CT: control target
= control target key end

     0   :  { %s29533_s0 = inlined_call_operand.vmem [shape: f32[2,16,16,4], index: 0, kind: input, shape index: {}]   ;;  %s29534_s1 = inlined_call_operand.vmem [shape: f32[2,16,16,1], index: 1, kind: input, shape index: {}]   ;;  %s29535_s2 = inlined_call_operand.vmem [shape: f32[2,16,16,3], index: 2, kind: input, shape index: {}]   ;;  %s29536_s3 = inlined_call_operand.vmem [shape: f32[2,16,16,4], index: 3, kind: input, shape index: {}]   ;;  %s29537_s4 = inlined_call_operand.vmem [shape: bf16[3,3,3,128], index: 4, kind: input, shape index: {}]   ;;  %s29538_s5 = inlined_call_operand.vmem [shape: f32[1,128], index: 5, kind: input, shape index: {}]   ;;  %s29539_s6 = inlined_call_operand.vmem [shape: bf16[3,3,128,32], index: 6, kind: input, shape index: {}]   ;;  %s29540_s7 = inlined_call_operand.vmem [shape: f32[1,32], index: 7, kind: input, shape index: {}]   ;;  %s29541_s8 = inlined_call_operand.vmem [shape: bf16[3,3,36,128], index: 8, kind: input, shape index: {}]   ;;  %s29542_s9 = inlined_call_operand.vmem [shape: f32[1,128], index: 9, kind: input, shape index: {}]   ;;  %s29543_s10 = inlined_call_operand.vmem [shape: bf16[3,3,128,3], index: 10, kind: input, shape index: {}]   ;;  %s29544_s11 = inlined_call_operand.vmem [shape: f32[1,3], index: 11, kind: input, shape index: {}]   ;;  %s29545_s12 = inlined_call_operand.vmem [shape: f32[2,16,16,3], index: 12, kind: output, shape index: {0}]   ;;  %s29546_s13 = inlined_call_operand.hbm [shape: f32[2,1,32], index: 13, kind: output, shape index: {1}]   ;;  %s29547_s14 = inlined_call_operand.hbm [shape: f32[2,1,32], index: 14, kind: output, shape index: {2}]  }
   0x1   :  { %29706 = sst [smem:[#allocation75_spill]] %s29533_s0 }
   0x2   :  { %29707 = sst [smem:[#allocation76_spill]] %s29534_s1 }
   0x3   :  { %29708 = sst [smem:[#allocation77_spill]] %s29535_s2 }
   0x4   :  { %29709 = sst [smem:[#allocation78_spill]] %s29536_s3 }
   0x5   :  { %29710 = sst [smem:[#allocation79_spill]] %s29537_s4 }
   0x6   :  { %20 = vsyncpa [#allocation3], 0 }
   0x7   :  { %22 = vsyncpa [#allocation3 + $0x1], 0 }
   0x8   :  { %23 = vsyncpa [#allocation5], 0 }
   0x9   :  { %25 = vsyncpa [#allocation5 + $0x1], 0  ;;  %s24524_s29 = smov 0   ;;  %s24526_s30 = smov 0  }
   0xa   :  { %s24528_s15 = smov 0   ;;  %s24530_s16 = smov 0  }
   0xb LB: > { %s24545_s17 = sadd.s32 4294967295, %s24441_s16   ;;  %s17798_s18 = sadd.s32 4294967294, %s24441_s16   ;;  %s24441_s16 = sphi %s24530_s16, %s30272_s16   ;;  %s24437_s15 = sphi %s24528_s15, %s30271_s15   ;;  %s24433_s30 = sphi %s24526_s30, %s30270_s30   ;;  %s24429_s29 = sphi %s24524_s29, %s30269_s29  }
   0xc   : > { %s24549_s19 = sadd.s32 1, %s24441_s16   ;;  %s336_s20 = sadd.s32 1, %s24437_s15 }
   0xd   : > { %s333_s21 = ssub.s32 %s24441_s16, %s24549_s19  ;;  %p346_p0 = scmp.ne.s32.totalorder %s24437_s15, %s24433_s30 }
   0xe   : > { %p334_p1 = scmp.eq.s32.totalorder %s333_s21, 0  ;;  %p347_p2 = scmp.eq.s32.totalorder %s24545_s17, 1 }
   0xf   : > { %p352_p3 = scmp.ne.s32.totalorder %s24433_s30, %s24429_s29  ;;  %p353_p4 = scmp.eq.s32.totalorder %s17798_s18, 1 }
  0x10   : > { %s24560_s22 = scalar_select %p334_p1, %s24437_s15, %s336_s20  }
  0x11   : > { %p24562_p5 = por %p347_p2, %p346_p0  ;;  %p24566_p6 = por %p353_p4, %p352_p3 }
  0x12   : > { %p17801_p7 = scmp.ge.s32.totalorder %s24441_s16, 1  ;;  %p453_p8 = scmp.lt.s32.totalorder %s24441_s16, 3 }
  0x14   : > { %p454_p9 = pnand %p17801_p7, %p453_p8 }
  0x16   : > { %457 = sbr.rel (%p454_p9) target bundleno = 4814 (0x12ce), region = 68 }
  0x1d   : > { %s29713_s4 = sld [smem:[#allocation79_spill]]  ;;  %vm1767_vm0 = vcmask 1040384   ;;  %vm29548_vm1 = vcmask 1041408   ;;  %p522_p10 = scmp.lt.s32.totalorder %s24545_s17, 1  ;;  %v727_v1 = vlaneseq  ;;  %v24443_v2 = vmov 65535  }
  0x1e   : > { %v1769_v3 = vsel %vm1767_vm0, 4294967295, %v24443_v2  ;;  %vm24444_vm2 = vmmov 1   ;;  %v29553_v6 = vmov 0   ;;  %s29716_s2 = sld [smem:[#allocation77_spill]]  ;;  %vm1417_vm6 = vsmask.f32 7424 }
  0x1f   : > { %v24577_v4 = vsel %vm29548_vm1, %v1769_v3, 0  ;;  %s523_s27 = scalar_select %p522_p10, %s24545_s17, 1  ;;  %v24580_v5 = vshrl.u32 %v727_v1, 7  ;;  %vm1299_vm3 = vmpackc.low %vm24444_vm2, %vm24444_vm2  ;;  %23955 = vset.pattern.permute.xlu1 %v29553_v6  ;;  %23954 = vset.pattern.permute.xlu0 %v29553_v6  ;;  %v24589_v9 = vrot.slane %v29553_v6, 7 }
  0x20   : > { %29714 = vst [vmem:[#allocation8_spill] sm:$0xff] %v24577_v4  ;;  %v24586_v8 = vsel %vm1299_vm3, 65537, %v29553_v6  ;;  %s29814_s3 = sld [smem:[#allocation78_spill]]  ;;  %s29824_s1 = sld [smem:[#allocation76_spill]] }
  0x21   : > { %29715 = vst [vmem:[#allocation9_spill] sm:$0xff] %v24589_v9  ;;  %s24597_s25 = sshll.u32 %s523_s27, 8  ;;  %v730_v12 = vadd.s32 16, %v24580_v5  ;;  %v732_v13 = vadd.s32 32, %v24580_v5  ;;  %v734_v15 = vadd.s32 48, %v24580_v5  ;;  %v736_v16 = vadd.s32 64, %v24580_v5 }
  0x22   : > { %v738_v17 = vadd.s32 80, %v24580_v5  ;;  %v740_v18 = vadd.s32 96, %v24580_v5  ;;  %v742_v19 = vadd.s32 112, %v24580_v5  ;;  %v24689_v58 = vadd.s32 128, %v24580_v5  ;;  %s29859_s0 = sld [smem:[#allocation75_spill]] }
  0x23   : > { %v17829_v0 = vld [vmem:[%s29713_s4 + $0x6] sm:$0x3]  ;;  %v1582_v10 = vld [vmem:[%s29713_s4] sm:$0x3]  ;;  %v17862_v11 = vld [vmem:[%s29713_s4 + $0xc] sm:$0x3] }
  0x24   : > { %v1772_v7 = vand.u32 %v17829_v0, %v24577_v4  ;;  %v24602_v14 = vand.u32 %v24577_v4, %v1582_v10  ;;  %s24609_s18 = scalar_lea.vmem %s29716_s2, %s24597_s25  ;;  %v782_v22 = vand.u32 15, %v730_v12  ;;  %v796_v23 = vand.u32 15, %v732_v13  ;;  %s29705_s2 = sshll.u32 %s24545_s17, 4 }
  0x25   : > { %v550_v20 = vld [vmem:[%s24609_s18] sm:$0xff]  ;;  %v551_v21 = vld [vmem:[%s24609_s18 + $0x8] sm:$0xff]  ;;  %v552_v24 = vld [vmem:[%s24609_s18 + $0x10] sm:$0xff]  ;;  %v810_v25 = vand.u32 15, %v734_v15  ;;  %v824_v29 = vand.u32 15, %v736_v16  ;;  %v838_v30 = vand.u32 15, %v738_v17  ;;  %v24623_v32 = vand.u32 %v17862_v11, %v24577_v4 }
  0x26   : > { %20095 = vmatprep.subr.bf16.mxu0 %v1772_v7  ;;  %v553_v26 = vld [vmem:[%s24609_s18 + $0x18] sm:$0xff]  ;;  %v554_v27 = vld [vmem:[%s24609_s18 + $0x20] sm:$0xff]  ;;  %v555_v28 = vld [vmem:[%s24609_s18 + $0x28] sm:$0xff]  ;;  %v852_v31 = vand.u32 15, %v740_v18  ;;  %v24625_v33 = vpack.c.bf16 %v551_v21, %v550_v20  ;;  %vm24627_vm4 = vcmp.ne.s32.totalorder %v782_v22, 0  ;;  %vm24631_vm5 = vcmp.ne.s32.totalorder %v796_v23, 0  ;;  %s26040_s27 = scalar_lea.vmem %s29814_s3, %s24597_s25  ;;  %s26202_s21 = scalar_lea.vmem %s29824_s1, %s24597_s25 }
  0x27   : > { %20096 = vmatpush3.bf16.msra.mxu0 %v1772_v7  ;;  %vm24635_vm7 = vcmp.ne.s32.totalorder %v810_v25, 0  ;;  %v556_v37 = vld [vmem:[%s24609_s18 + $0x30] sm:$0xff]  ;;  %v557_v38 = vld [vmem:[%s24609_s18 + $0x38] sm:$0xff]  ;;  %v558_v39 = vld [vmem:[%s24609_s18 + $0x40] sm:$0xff]  ;;  %v24645_v40 = vpack.c.bf16 %v553_v26, %v552_v24  ;;  %v24647_v41 = vpack.c.bf16 %v555_v28, %v554_v27  ;;  %vm24649_vm9 = vcmp.ne.s32.totalorder %v824_v29, 0  ;;  %s24447_s1 = smov [#allocation2]  }
  0x28   : > { %20129 = vmatprep.subr.bf16.mxu0 %v24602_v14  ;;  %vm1298_vm8 = vmpackc.low %vm24627_vm4, %vm24627_vm4  ;;  %v24653_v43 = vpack.c.bf16 %v557_v38, %v556_v37  ;;  %v559_v44 = vld [vmem:[%s24609_s18 + $0x48] sm:$0xff]  ;;  %v560_v45 = vld [vmem:[%s24609_s18 + $0x50] sm:$0xff]  ;;  %vm24661_vm11 = vcmp.ne.s32.totalorder %v838_v30, 0  ;;  %v866_v50 = vand.u32 15, %v742_v19  ;;  %vm24673_vm13 = vcmp.ne.s32.totalorder %v852_v31, 0  ;;  %s26834_s20 = scalar_lea.vmem %s29859_s0, %s24597_s25  ;;  %s24351_s3 = sshll.u32 %s24447_s1, 4  ;;  %s24352_s3 = int_to_ptr.vmem [resolvable:$false] %s24351_s3 }
  0x29   : > { %vm1300_vm10 = vmpackc.low %vm24631_vm5, %vm24631_vm5  ;;  %v1332_v46 = vsel %vm1298_vm8, 65537, %v29553_v6  ;;  %v24665_v48 = vpack.c.bf16 %v559_v44, %v558_v39  ;;  %v561_v49 = vld [vmem:[%s24609_s18 + $0x58] sm:$0xff]  ;;  %vm1585_vm4 = vsmask.f32 256  ;;  %vm29588_vm5 = vcmask 23552  }
  0x2a   : > { %v1334_v51 = vsel %vm1300_vm10, 65537, %v29553_v6  ;;  %v17812_v52 = vcombine.low %v1332_v46, %v24586_v8  ;;  %vm1302_vm12 = vmpackc.low %vm24635_vm7, %vm24635_vm7  ;;  %v24677_v54 = vpack.c.bf16 %v561_v49, %v560_v45  ;;  %vm24684_vm15 = vcmp.ne.s32.totalorder %v866_v50, 0 }
  0x2b   : > { %v17813_v55 = vcombine.low %v1334_v51, %v24586_v8  ;;  %v1336_v56 = vsel %vm1302_vm12, 65537, %v29553_v6  ;;  %vm1304_vm14 = vmpackc.low %vm24649_vm9, %vm24649_vm9 }
  0x2c   : > { %v1419_v59 = vshrl.u32 %v17812_v52, 16  ;;  %v1421_v60 = vshll.u32 %v17812_v52, 16  ;;  %v17814_v61 = vcombine.low %v1336_v56, %v24586_v8  ;;  %v1338_v62 = vsel %vm1304_vm14, 65537, %v29553_v6  ;;  %vm1306_vm0 = vmpackc.low %vm24661_vm11, %vm24661_vm11 }
  0x2d   : > { %v1426_v63 = vshll.u32 %v17813_v55, 16  ;;  %v1430_v0 = vshrl.u32 %v17813_v55, 16  ;;  %v17815_v1 = vcombine.low %v1338_v62, %v24586_v8  ;;  %v1340_v2 = vsel %vm1306_vm0, 65537, %v29553_v6  ;;  %vm1308_vm2 = vmpackc.low %vm24673_vm13, %vm24673_vm13 }
  0x2e   : > { %v1423_v3 = vrot.slane %v1421_v60, 1  ;;  %v1434_v7 = vshll.u32 %v17814_v61, 16  ;;  %v1438_v10 = vshrl.u32 %v17814_v61, 16  ;;  %v17816_v11 = vcombine.low %v1340_v2, %v24586_v8  ;;  %vm1310_vm3 = vmpackc.low %vm24684_vm15, %vm24684_vm15  ;;  %v563_v2 = vld [vmem:[%s24609_s18 + $0x68] sm:$0xff] }
  0x2f   : > { %v1428_v12 = vrot.slane %v1426_v63, 1  ;;  %v1442_v13 = vshll.u32 %v17815_v1, 16  ;;  %v1446_v15 = vshrl.u32 %v17815_v1, 16  ;;  %v1342_v16 = vsel %vm1308_vm2, 65537, %v29553_v6  ;;  %v562_v1 = vld [vmem:[%s24609_s18 + $0x60] sm:$0xff] }
  0x30   : > { %v1424_v17 = vor.u32 %v1423_v3, %v1419_v59  ;;  %v1436_v18 = vrot.slane %v1434_v7, 1  ;;  %v1450_v19 = vshll.u32 %v17816_v11, 16  ;;  %v17817_v20 = vcombine.low %v1342_v16, %v24586_v8 }
  0x31   : > { %v1432_v21 = vor.u32 %v1430_v0, %v1428_v12  ;;  %v1444_v22 = vrot.slane %v1442_v13, 1  ;;  %v1454_v23 = vshrl.u32 %v17816_v11, 16  ;;  %v1344_v24 = vsel %vm1310_vm3, 65537, %v29553_v6  ;;  %v564_v11 = vld [vmem:[%s24609_s18 + $0x70] sm:$0xff] }
  0x32   : > { %v24709_v25 = vsel %vm1417_vm6, %v1424_v17, %v1428_v12  ;;  %v1440_v26 = vor.u32 %v1438_v10, %v1436_v18  ;;  %v1452_v27 = vrot.slane %v1450_v19, 1  ;;  %v1458_v28 = vshll.u32 %v17817_v20, 16  ;;  %v565_v17 = vld [vmem:[%s24609_s18 + $0x78] sm:$0xff] }
  0x33   : > { %29731 = vst [vmem:[#allocation10_spill] sm:$0xff] %v24709_v25  ;;  %vm29696_vm7 = vcmp.ne.s16.totalorder %v24709_v25, 0  ;;  %v24713_v29 = vsel %vm1417_vm6, %v1432_v21, %v1436_v18  ;;  %v1448_v30 = vor.u32 %v1446_v15, %v1444_v22  ;;  %v24716_v31 = vcombine.low %v1344_v24, %v24586_v8 }
  0x34   : > { %29732 = vst [vmem:[#allocation11_spill] sm:$0xff] %v24713_v29  ;;  %v1566_v34 = vsel %vm29696_vm7, %v24625_v33, 0  ;;  %vm29697_vm8 = vcmp.ne.s16.totalorder %v24713_v29, 0  ;;  %v24723_v35 = vsel %vm1417_vm6, %v1440_v26, %v1444_v22  ;;  %v1456_v36 = vor.u32 %v1454_v23, %v1452_v27 }
  0x35   : > { %29733 = vst [vmem:[#allocation12_spill] sm:$0xff] %v24723_v35  ;;  %v1591_v37 = vshrl.u32 %v1566_v34, 16  ;;  %v1594_v38 = vshll.u32 %v1566_v34, 16  ;;  %v1567_v39 = vsel %vm29697_vm8, %v24645_v40, 0  ;;  %vm29665_vm9 = vcmp.ne.s16.totalorder %v24723_v35, 0 }
  0x36   : > { %v1599_v42 = vshrl.u32 %v1567_v39, 16  ;;  %v1602_v44 = vshll.u32 %v1567_v39, 16  ;;  %v1568_v45 = vsel %vm29665_vm9, %v24647_v41, 0  ;;  %v24733_v46 = vsel %vm1417_vm6, %v1448_v30, %v1452_v27  ;;  %v567_v27 = vld [vmem:[%s24609_s18 + $0x88] sm:$0xff] }
  0x37   : > { %29734 = vst [vmem:[#allocation13_spill] sm:$0xff] %v24733_v46  ;;  %v1593_v47 = vrot.slane %v1591_v37, 7  ;;  %v1607_v49 = vshrl.u32 %v1568_v45, 16  ;;  %v1610_v50 = vshll.u32 %v1568_v45, 16  ;;  %vm29695_vm10 = vcmp.ne.s16.totalorder %v24733_v46, 0 }
  0x38   : > { %v1601_v51 = vrot.slane %v1599_v42, 7  ;;  %v1569_v52 = vsel %vm29695_vm10, %v24653_v43, 0  ;;  %v1460_v53 = vrot.slane %v1458_v28, 1  ;;  %v1462_v55 = vshrl.u32 %v17817_v20, 16 }
  0x39   : > { %v1596_v56 = vor.u32 %v1594_v38, %v1593_v47  ;;  %v1609_v57 = vrot.slane %v1607_v49, 7  ;;  %v1615_v59 = vshrl.u32 %v1569_v52, 16  ;;  %v1618_v60 = vshll.u32 %v1569_v52, 16  ;;  %v569_v49 = vld [vmem:[%s24609_s18 + $0x98] sm:$0xff] }
  0x3a   : > { %v1604_v61 = vor.u32 %v1602_v44, %v1601_v51  ;;  %v24740_v62 = vsel %vm1417_vm6, %v1456_v36, %v1460_v53  ;;  %v1464_v63 = vor.u32 %v1462_v55, %v1460_v53  ;;  %v1466_v0 = vshll.u32 %v24716_v31, 16  ;;  %v568_v36 = vld [vmem:[%s24609_s18 + $0x90] sm:$0xff] }
  0x3b   : > { %29735 = vst [vmem:[#allocation14_spill] sm:$0xff] %v24740_v62  ;;  %v24747_v3 = vsel %vm1585_vm4, %v24589_v9, %v1596_v56  ;;  %v1612_v7 = vor.u32 %v1610_v50, %v1609_v57  ;;  %v1617_v10 = vrot.slane %v1615_v59, 7  ;;  %vm29653_vm11 = vcmp.ne.s16.totalorder %v24740_v62, 0 }
  0x3c   : > { %20097 = vmatprep.mubr.msk.bf16.mxu0 %vm29588_vm5, %v24747_v3  ;;  %v24754_v12 = vsel %vm1585_vm4, %v1593_v47, %v1604_v61  ;;  %v1570_v13 = vsel %vm29653_vm11, %v24665_v48, 0  ;;  %v1468_v15 = vrot.slane %v1466_v0, 1  ;;  %v880_v16 = vand.u32 15, %v24689_v58 }
  0x3d   : > { %20098 = vmatmul.mubr.msk.bf16.vlgmr.msra.gmra.mrb[0].mxu0 %vm29588_vm5, %v24754_v12  ;;  %v24764_v18 = vsel %vm1585_vm4, %v1601_v51, %v1612_v7  ;;  %v1620_v19 = vor.u32 %v1618_v60, %v1617_v10  ;;  %v1623_v20 = vshrl.u32 %v1570_v13, 16  ;;  %v1626_v21 = vshll.u32 %v1570_v13, 16 }
  0x3e   : > { %20130 = vmatpush3.bf16.msra.mxu0 %v24602_v14  ;;  %20101 = vmatprep.mubr.msk.bf16.mxu0 %vm29588_vm5, %v24764_v18  ;;  %v24770_v58 = vsel %vm1417_vm6, %v1464_v63, %v1468_v15  ;;  %vm1210_vm12 = vcmp.ne.s32.totalorder %v880_v16, 0  ;;  %v1470_v22 = vshrl.u32 %v24716_v31, 16  ;;  %v24774_v24 = vpack.c.bf16 %v563_v2, %v562_v1  ;;  %v566_v14 = vld [vmem:[%s24609_s18 + $0x80] sm:$0xff] }
  0x3f   : > { %29736 = vst [vmem:[#allocation15_spill] sm:$0xff] %v24770_v58  ;;  %v1625_v23 = vrot.slane %v1623_v20, 7  ;;  %vm29589_vm13 = vcmp.ne.s16.totalorder %v24770_v58, 0  ;;  %vm1312_vm14 = vmpackc.low %vm1210_vm12, %vm1210_vm12  ;;  %v746_v26 = vadd.s32 144, %v24580_v5  ;;  %20163 = vmatprep.subr.bf16.mxu0 %v24623_v32  ;;  %v24781_v28 = vsel %vm1585_vm4, %v1609_v57, %v1620_v19  ;;  %v570_v16 = vld [vmem:[%s24609_s18 + $0xa0] sm:$0xff] }
  0x40   : > { %v1571_v30 = vsel %vm29589_vm13, %v24677_v54, 0  ;;  %v1346_v31 = vsel %vm1312_vm14, 65537, %v29553_v6  ;;  %v24787_v34 = vpack.c.bf16 %v565_v17, %v564_v11  ;;  %v1472_v44 = vor.u32 %v1470_v22, %v1468_v15 }
  0x41   : > { %v1628_v37 = vor.u32 %v1626_v21, %v1625_v23  ;;  %v1631_v38 = vshrl.u32 %v1571_v30, 16  ;;  %v1634_v39 = vshll.u32 %v1571_v30, 16  ;;  %v17819_v42 = vcombine.low %v1346_v31, %v24586_v8 }
  0x42   : > { %v894_v45 = vand.u32 15, %v746_v26  ;;  %v748_v47 = vadd.s32 160, %v24580_v5  ;;  %v750_v50 = vadd.s32 176, %v24580_v5  ;;  %v24797_v56 = vpack.c.bf16 %v567_v27, %v566_v14  ;;  %v571_v14 = vld [vmem:[%s24609_s18 + $0xa8] sm:$0xff] }
  0x43   : > { %v24795_v51 = vsel %vm1585_vm4, %v1617_v10, %v1628_v37  ;;  %v1633_v52 = vrot.slane %v1631_v38, 7  ;;  %v1474_v53 = vshll.u32 %v17819_v42, 16  ;;  %v1478_v55 = vshrl.u32 %v17819_v42, 16 }
  0x44   : > { %vm1212_vm15 = vcmp.ne.s32.totalorder %v894_v45, 0  ;;  %v908_v57 = vand.u32 15, %v748_v47  ;;  %v922_v59 = vand.u32 15, %v750_v50  ;;  %v24801_v63 = vpack.c.bf16 %v569_v49, %v568_v36 }
  0x45   : > { %20102 = vmatmul.mubr.msk.bf16.gmra.mrb[4].mxu0 %vm29588_vm5, %v24781_v28  ;;  %v1636_v60 = vor.u32 %v1634_v39, %v1633_v52  ;;  %v1476_v61 = vrot.slane %v1474_v53, 1  ;;  %vm1314_vm0 = vmpackc.low %vm1212_vm15, %vm1212_vm15  ;;  %v752_v0 = vadd.s32 192, %v24580_v5  ;;  %v754_v7 = vadd.s32 208, %v24580_v5 }
  0x46   : > { %20105 = vmatprep.mubr.msk.bf16.mxu0 %vm29588_vm5, %v24795_v51  ;;  %v1348_v1 = vsel %vm1314_vm0, 65537, %v29553_v6  ;;  %vm1214_vm2 = vcmp.ne.s32.totalorder %v908_v57, 0  ;;  %vm24807_vm3 = vcmp.ne.s32.totalorder %v922_v59, 0 }
  0x47   : > { %v24813_v10 = vsel %vm1585_vm4, %v1625_v23, %v1636_v60  ;;  %v24816_v11 = vsel %vm1417_vm6, %v1472_v44, %v1476_v61  ;;  %v17820_v13 = vcombine.low %v1348_v1, %v24586_v8  ;;  %v1480_v15 = vor.u32 %v1478_v55, %v1476_v61  ;;  %vm1316_vm12 = vmpackc.low %vm1214_vm2, %vm1214_vm2 }
  0x48   : > { %29739 = vst [vmem:[#allocation16_spill] sm:$0xff] %v24816_v11  ;;  %vm29565_vm14 = vcmp.ne.s16.totalorder %v24816_v11, 0  ;;  %v1350_v17 = vsel %vm1316_vm12, 65537, %v29553_v6  ;;  %vm1318_vm15 = vmpackc.low %vm24807_vm3, %vm24807_vm3  ;;  %v936_v19 = vand.u32 15, %v752_v0  ;;  %v950_v20 = vand.u32 15, %v754_v7 }
  0x49   : > { %v1572_v21 = vsel %vm29565_vm14, %v24774_v24, 0  ;;  %v1482_v22 = vshll.u32 %v17820_v13, 16  ;;  %v17821_v23 = vcombine.low %v1350_v17, %v24586_v8  ;;  %v1486_v26 = vshrl.u32 %v17820_v13, 16  ;;  %v573_v17 = vld [vmem:[%s24609_s18 + $0xb8] sm:$0xff] }
  0x4a   : > { %v1639_v27 = vshrl.u32 %v1572_v21, 16  ;;  %v1642_v30 = vshll.u32 %v1572_v21, 16  ;;  %v1352_v31 = vsel %vm1318_vm15, 65537, %v29553_v6  ;;  %vm1218_vm0 = vcmp.ne.s32.totalorder %v936_v19, 0 }
  0x4b   : > { %v1484_v36 = vrot.slane %v1482_v22, 1  ;;  %v1490_v37 = vshll.u32 %v17821_v23, 16  ;;  %v17822_v38 = vcombine.low %v1352_v31, %v24586_v8  ;;  %v1494_v39 = vshrl.u32 %v17821_v23, 16  ;;  %vm1320_vm2 = vmpackc.low %vm1218_vm0, %vm1218_vm0 }
  0x4c   : > { %v1641_v42 = vrot.slane %v1639_v27, 7  ;;  %v24832_v44 = vpack.c.bf16 %v571_v14, %v570_v16  ;;  %v1354_v45 = vsel %vm1320_vm2, 65537, %v29553_v6  ;;  %vm24835_vm3 = vcmp.ne.s32.totalorder %v950_v20, 0  ;;  %v572_v16 = vld [vmem:[%s24609_s18 + $0xb0] sm:$0xff] }
  0x4d   : > { %20106 = vmatmul.mubr.msk.bf16.gmra.mrb[8].mxu0 %vm29588_vm5, %v24813_v10  ;;  %v24842_v49 = vsel %vm1417_vm6, %v1480_v15, %v1484_v36  ;;  %v1488_v50 = vor.u32 %v1486_v26, %v1484_v36  ;;  %v1492_v53 = vrot.slane %v1490_v37, 1  ;;  %v1498_v55 = vshll.u32 %v17822_v38, 16  ;;  %vm1322_vm0 = vmpackc.low %vm24835_vm3, %vm24835_vm3 }
  0x4e   : > { %29742 = vst [vmem:[#allocation17_spill] sm:$0xff] %v24842_v49  ;;  %v1644_v57 = vor.u32 %v1642_v30, %v1641_v42  ;;  %vm29566_vm12 = vcmp.ne.s16.totalorder %v24842_v49, 0  ;;  %v17823_v59 = vcombine.low %v1354_v45, %v24586_v8  ;;  %v1502_v60 = vshrl.u32 %v17822_v38, 16 }
  0x4f   : > { %v1573_v61 = vsel %vm29566_vm12, %v24787_v34, 0  ;;  %v24850_v0 = vsel %vm1417_vm6, %v1488_v50, %v1492_v53  ;;  %v1496_v1 = vor.u32 %v1494_v39, %v1492_v53  ;;  %v1500_v2 = vrot.slane %v1498_v55, 1 }
  0x50   : > { %29743 = vst [vmem:[#allocation18_spill] sm:$0xff] %v24850_v0  ;;  %v24853_v7 = vsel %vm1585_vm4, %v1633_v52, %v1644_v57  ;;  %v1647_v13 = vshrl.u32 %v1573_v61, 16  ;;  %v1650_v15 = vshll.u32 %v1573_v61, 16  ;;  %vm29551_vm15 = vcmp.ne.s16.totalorder %v24850_v0, 0 }
  0x51   : > { %20109 = vmatprep.mubr.msk.bf16.mxu0 %vm29588_vm5, %v24853_v7  ;;  %v1574_v19 = vsel %vm29551_vm15, %v24797_v56, 0  ;;  %v24867_v52 = vsel %vm1417_vm6, %v1496_v1, %v1500_v2  ;;  %v1504_v20 = vor.u32 %v1502_v60, %v1500_v2  ;;  %v1506_v21 = vshll.u32 %v17823_v59, 16 }
  0x52   : > { %29744 = vst [vmem:[#allocation19_spill] sm:$0xff] %v24867_v52  ;;  %v1649_v22 = vrot.slane %v1647_v13, 7  ;;  %v1655_v23 = vshrl.u32 %v1574_v19, 16  ;;  %v1658_v26 = vshll.u32 %v1574_v19, 16  ;;  %vm29552_vm2 = vcmp.ne.s16.totalorder %v24867_v52, 0 }
  0x53   : > { %v1575_v14 = vsel %vm29552_vm2, %v24801_v63, 0  ;;  %v1508_v27 = vrot.slane %v1506_v21, 1  ;;  %v1356_v30 = vsel %vm1322_vm0, 65537, %v29553_v6  ;;  %v1510_v31 = vshrl.u32 %v17823_v59, 16 }
  0x54   : > { %v1652_v36 = vor.u32 %v1650_v15, %v1649_v22  ;;  %v1657_v37 = vrot.slane %v1655_v23, 7  ;;  %v1663_v38 = vshrl.u32 %v1575_v14, 16  ;;  %v1666_v39 = vshll.u32 %v1575_v14, 16  ;;  %v574_v14 = vld [vmem:[%s24609_s18 + $0xc0] sm:$0xff] }
  0x55   : > { %v24875_v45 = vsel %vm1417_vm6, %v1504_v20, %v1508_v27  ;;  %v24877_v47 = vpack.c.bf16 %v573_v17, %v572_v16  ;;  %v17824_v50 = vcombine.low %v1356_v30, %v24586_v8  ;;  %v756_v53 = vadd.s32 224, %v24580_v5 }
  0x56   : > { %29745 = vst [vmem:[#allocation20_spill] sm:$0xff] %v24875_v45  ;;  %v24882_v55 = vsel %vm1585_vm4, %v1641_v42, %v1652_v36  ;;  %v1660_v57 = vor.u32 %v1658_v26, %v1657_v37  ;;  %v1665_v60 = vrot.slane %v1663_v38, 7  ;;  %vm29549_vm3 = vcmp.ne.s16.totalorder %v24875_v45, 0 }
  0x57   : > { %20110 = vmatmul.mubr.msk.bf16.gmra.mrb[12].mxu0 %vm29588_vm5, %v24882_v55  ;;  %v1576_v59 = vsel %vm29549_vm3, %v24832_v44, 0  ;;  %v1512_v61 = vor.u32 %v1510_v31, %v1508_v27  ;;  %v1514_v1 = vshll.u32 %v17824_v50, 16  ;;  %v964_v2 = vand.u32 15, %v756_v53  ;;  %v575_v27 = vld [vmem:[%s24609_s18 + $0xc8] sm:$0xff]  ;;  %v576_v53 = vld [vmem:[%s24609_s18 + $0xd0] sm:$0xff] }
  0x58   : > { %v24891_v13 = vsel %vm1585_vm4, %v1649_v22, %v1660_v57  ;;  %v1668_v42 = vor.u32 %v1666_v39, %v1665_v60  ;;  %v1671_v15 = vshrl.u32 %v1576_v59, 16  ;;  %v1674_v16 = vshll.u32 %v1576_v59, 16 }
  0x59   : > { %20113 = vmatprep.mubr.msk.bf16.mxu0 %vm29588_vm5, %v24891_v13  ;;  %v1516_v17 = vrot.slane %v1514_v1, 1  ;;  %vm1222_vm0 = vcmp.ne.s32.totalorder %v964_v2, 0  ;;  %v1518_v19 = vshrl.u32 %v17824_v50, 16  ;;  %v758_v20 = vadd.s32 240, %v24580_v5 }
  0x5a   : > { %v1673_v21 = vrot.slane %v1671_v15, 7  ;;  %vm1324_vm1 = vmpackc.low %vm1222_vm0, %vm1222_vm0  ;;  %v760_v23 = vadd.s32 256, %v24580_v5  ;;  %v24898_v26 = vsel %vm1585_vm4, %v1657_v37, %v1668_v42  ;;  %v762_v57 = vadd.s32 272, %v24580_v5  ;;  %v577_v42 = vld [vmem:[%s24609_s18 + $0xd8] sm:$0xff] }
  0x5b   : > { %v24901_v22 = vsel %vm1417_vm6, %v1512_v61, %v1516_v17  ;;  %v1358_v30 = vsel %vm1324_vm1, 65537, %v29553_v6  ;;  %v978_v31 = vand.u32 15, %v758_v20  ;;  %v1520_v50 = vor.u32 %v1518_v19, %v1516_v17 }
  0x5c   : > { %29746 = vst [vmem:[#allocation21_spill] sm:$0xff] %v24901_v22  ;;  %v1676_v36 = vor.u32 %v1674_v16, %v1673_v21  ;;  %vm29550_vm3 = vcmp.ne.s16.totalorder %v24901_v22, 0  ;;  %v17825_v38 = vcombine.low %v1358_v30, %v24586_v8  ;;  %v992_v39 = vand.u32 15, %v760_v23 }
  0x5d   : > { %v1577_v37 = vsel %vm29550_vm3, %v24877_v47, 0  ;;  %vm1224_vm0 = vcmp.ne.s32.totalorder %v978_v31, 0  ;;  %v1006_v17 = vand.u32 15, %v762_v57  ;;  %v24922_v19 = vpack.c.bf16 %v575_v27, %v574_v14  ;;  %v578_v57 = vld [vmem:[%s24609_s18 + $0xe0] sm:$0xff]  ;;  %v579_v14 = vld [vmem:[%s24609_s18 + $0xe8] sm:$0xff] }
  0x5e   : > { %v24914_v59 = vsel %vm1585_vm4, %v1665_v60, %v1676_v36  ;;  %v1679_v61 = vshrl.u32 %v1577_v37, 16  ;;  %v1682_v1 = vshll.u32 %v1577_v37, 16  ;;  %v1522_v2 = vshll.u32 %v17825_v38, 16  ;;  %vm1326_vm1 = vmpackc.low %vm1224_vm0, %vm1224_vm0 }
  0x5f   : > { %20114 = vmatmul.mubr.msk.bf16.gmra.mrb[16].mxu0 %vm29588_vm5, %v24898_v26  ;;  %v1360_v15 = vsel %vm1326_vm1, 65537, %v29553_v6  ;;  %v1526_v16 = vshrl.u32 %v17825_v38, 16  ;;  %vm1226_vm3 = vcmp.ne.s32.totalorder %v992_v39, 0  ;;  %v24925_v30 = vpack.c.bf16 %v577_v42, %v576_v53 }
  0x60   : > { %20117 = vmatprep.mubr.msk.bf16.mxu0 %vm29588_vm5, %v24914_v59  ;;  %v1681_v60 = vrot.slane %v1679_v61, 7  ;;  %v1524_v20 = vrot.slane %v1522_v2, 1  ;;  %v17826_v23 = vcombine.low %v1360_v15, %v24586_v8  ;;  %vm1328_vm0 = vmpackc.low %vm1226_vm3, %vm1226_vm3  ;;  %vm1228_vm1 = vcmp.ne.s32.totalorder %v1006_v17, 0 }
  0x61   : > { %v1362_v31 = vsel %vm1328_vm0, 65537, %v29553_v6  ;;  %vm1330_vm15 = vmpackc.low %vm1228_vm1, %vm1228_vm1 }
  0x62   : > { %v1684_v36 = vor.u32 %v1682_v1, %v1681_v60  ;;  %v24929_v38 = vsel %vm1417_vm6, %v1520_v50, %v1524_v20  ;;  %v1528_v39 = vor.u32 %v1526_v16, %v1524_v20  ;;  %v1530_v37 = vshll.u32 %v17826_v23, 16  ;;  %v580_v20 = vld [vmem:[%s24609_s18 + $0xf0] sm:$0xff] }
  0x63   : > { %29747 = vst [vmem:[#allocation22_spill] sm:$0xff] %v24929_v38  ;;  %vm29563_vm2 = vcmp.ne.s16.totalorder %v24929_v38, 0  ;;  %v17827_v27 = vcombine.low %v1362_v31, %v24586_v8  ;;  %v1534_v61 = vshrl.u32 %v17826_v23, 16  ;;  %v1364_v53 = vsel %vm1330_vm15, 65537, %v29553_v6 }
  0x64   : > { %v24937_v2 = vsel %vm1585_vm4, %v1673_v21, %v1684_v36  ;;  %v1578_v50 = vsel %vm29563_vm2, %v24922_v19, 0  ;;  %v1532_v1 = vrot.slane %v1530_v37, 1  ;;  %v17828_v42 = vcombine.low %v1364_v53, %v24586_v8  ;;  %v581_v53 = vld [vmem:[%s24609_s18 + $0xf8] sm:$0xff]  ;;  %s26694_s18 = sand.u32 1, %s24433_s30  }
  0x65   : > { %v1687_v15 = vshrl.u32 %v1578_v50, 16  ;;  %v1690_v16 = vshll.u32 %v1578_v50, 16  ;;  %v1538_v17 = vshll.u32 %v17827_v27, 16  ;;  %v1542_v6 = vshrl.u32 %v17827_v27, 16  ;;  %s29680_s28 = scalar_lea.vmem [#allocation2], %s26694_s18  ;;  %s30203_s26 = scalar_lea.vmem [#allocation2], %s26694_s18 }
  0x66   : > { %v24945_v31 = vsel %vm1417_vm6, %v1528_v39, %v1532_v1  ;;  %v1536_v23 = vor.u32 %v1534_v61, %v1532_v1  ;;  %v1546_v45 = vshll.u32 %v17828_v42, 16  ;;  %v24950_v36 = vpack.c.bf16 %v579_v14, %v578_v57  ;;  %s17622_s0 = scalar_lea.sflag [#allocation3], %s26694_s18 }
  0x67   : > { %29748 = vst [vmem:[#allocation23_spill] sm:$0xff] %v24945_v31  ;;  %20118 = vmatmul.mubr.msk.bf16.gmra.mrb[20].mxu0 %vm29588_vm5, %v24937_v2  ;;  %v1689_v21 = vrot.slane %v1687_v15, 7  ;;  %vm29564_vm15 = vcmp.ne.s16.totalorder %v24945_v31, 0  ;;  %v1540_v37 = vrot.slane %v1538_v17, 1  ;;  %v24960_v1 = vpack.c.bf16 %v581_v53, %v580_v20 }
  0x68   : > { %v1579_v50 = vsel %vm29564_vm15, %v24925_v30, 0  ;;  %v1548_v38 = vrot.slane %v1546_v45, 1 }
  0x69   : > { %v1692_v39 = vor.u32 %v1690_v16, %v1689_v21  ;;  %v1695_v22 = vshrl.u32 %v1579_v50, 16  ;;  %v1698_v61 = vshll.u32 %v1579_v50, 16  ;;  %v24957_v27 = vsel %vm1417_vm6, %v1536_v23, %v1540_v37 }
  0x6a   : > { %29749 = vst [vmem:[#allocation24_spill] sm:$0xff] %v24957_v27  ;;  %vm29561_vm3 = vcmp.ne.s16.totalorder %v24957_v27, 0  ;;  %v1544_v42 = vor.u32 %v1542_v6, %v1540_v37 }
  0x6b   : > { %v1693_v57 = vsel %vm1585_vm4, %v1681_v60, %v1692_v39  ;;  %v1697_v14 = vrot.slane %v1695_v22, 7  ;;  %v1580_v15 = vsel %vm29561_vm3, %v24950_v36, 0 }
  0x6c   : > { %20121 = vmatprep.mubr.msk.bf16.mxu0 %vm29588_vm5, %v1693_v57  ;;  %v1703_v45 = vshrl.u32 %v1580_v15, 16  ;;  %v1706_v16 = vshll.u32 %v1580_v15, 16  ;;  %v24968_v17 = vsel %vm1417_vm6, %v1544_v42, %v1548_v38 }
  0x6d   : > { %29750 = vst [vmem:[#allocation25_spill] sm:$0xff] %v24968_v17  ;;  %v1700_v23 = vor.u32 %v1698_v61, %v1697_v14  ;;  %vm29562_vm0 = vcmp.ne.s16.totalorder %v24968_v17, 0 }
  0x6e   : > { %v1705_v20 = vrot.slane %v1703_v45, 7  ;;  %v1581_v6 = vsel %vm29562_vm0, %v24960_v1, 0  ;;  %v735_v45 = vadd.s32 56, %v24580_v5 }
  0x6f   : > { %v1701_v22 = vsel %vm1585_vm4, %v1689_v21, %v1700_v23  ;;  %v1711_v60 = vshrl.u32 %v1581_v6, 16  ;;  %v1714_v37 = vshll.u32 %v1581_v6, 16  ;;  %v17879_v21 = vld [vmem:[%s29713_s4 + $0x2] sm:$0x3] }
  0x70   : > { %20122 = vmatmul.mubr.msk.bf16.gmra.mrb[24].mxu0 %vm29588_vm5, %v1701_v22  ;;  %v1708_v53 = vor.u32 %v1706_v16, %v1705_v20  ;;  %v2358_v42 = vand.u32 %v17879_v21, %v24577_v4  ;;  %v817_v23 = vand.u32 15, %v735_v45 }
  0x71   : > { %v1713_v50 = vrot.slane %v1711_v60, 7 }
  0x72   : > { %v1709_v39 = vsel %vm1585_vm4, %v1697_v14, %v1708_v53  ;;  %vm2959_vm12 = vcmp.ne.s32.totalorder %v817_v23, 15 }
  0x73   : > { %20125 = vmatprep.mubr.msk.bf16.mxu0 %vm29588_vm5, %v1709_v39  ;;  %v1716_v38 = vor.u32 %v1714_v37, %v1713_v50 }
  0x75   : > { %v1717_v61 = vsel %vm1585_vm4, %v1705_v20, %v1716_v38  ;;  %v737_v20 = vadd.s32 72, %v24580_v5 }
  0x77   : > { %v831_v53 = vand.u32 15, %v737_v20 }
  0x78   : > { %20126 = vmatmul.mubr.msk.bf16.gmra.mrb[28].mxu0 %vm29588_vm5, %v1717_v61 }
  0x79   : > { %20131 = vmatprep.mubr.msk.bf16.mxu0 %vm29588_vm5, %v24589_v9 }
  0x80   : > { %20132 = vmatmul.mubr.msk.bf16.vlgmr.msra.gmra.mrb[0].mxu0 %vm29588_vm5, %v24747_v3 }
  0x81   : > { %20164 = vmatpush3.bf16.msra.mxu0 %v24623_v32  ;;  %20135 = vmatprep.mubr.msk.bf16.mxu0 %vm29588_vm5, %v24754_v12  ;;  %v17895_v32 = vld [vmem:[%s29713_s4 + $0x8] sm:$0x3] }
  0x82   : > { %20197 = vmatprep.subr.bf16.mxu0 %v2358_v42  ;;  %v2559_v3 = vand.u32 %v17895_v32, %v24577_v4 }
  0x88   : > { %20136 = vmatmul.mubr.msk.bf16.gmra.mrb[4].mxu0 %vm29588_vm5, %v24764_v18 }
  0x89   : > { %20139 = vmatprep.mubr.msk.bf16.mxu0 %vm29588_vm5, %v24781_v28 }
  0x90   : > { %20140 = vmatmul.mubr.msk.bf16.gmra.mrb[8].mxu0 %vm29588_vm5, %v24795_v51 }
  0x91   : > { %20143 = vmatprep.mubr.msk.bf16.mxu0 %vm29588_vm5, %v24813_v10 }
  0x98   : > { %20144 = vmatmul.mubr.msk.bf16.gmra.mrb[12].mxu0 %vm29588_vm5, %v24853_v7 }
  0x99   : > { %20147 = vmatprep.mubr.msk.bf16.mxu0 %vm29588_vm5, %v24882_v55 }
  0xa0   : > { %20148 = vmatmul.mubr.msk.bf16.gmra.mrb[16].mxu0 %vm29588_vm5, %v24891_v13 }
  0xa1   : > { %20151 = vmatprep.mubr.msk.bf16.mxu0 %vm29588_vm5, %v24898_v26 }
  0xa8   : > { %20152 = vmatmul.mubr.msk.bf16.gmra.mrb[20].mxu0 %vm29588_vm5, %v24914_v59 }
  0xa9   : > { %20155 = vmatprep.mubr.msk.bf16.mxu0 %vm29588_vm5, %v24937_v2 }
  0xb0   : > { %20156 = vmatmul.mubr.msk.bf16.gmra.mrb[24].mxu0 %vm29588_vm5, %v1693_v57 }
  0xb1   : > { %20159 = vmatprep.mubr.msk.bf16.mxu0 %vm29588_vm5, %v1701_v22 }
  0xb8   : > { %20160 = vmatmul.mubr.msk.bf16.gmra.mrb[28].mxu0 %vm29588_vm5, %v1709_v39 }
  0xb9   : > { %20165 = vmatprep.mubr.msk.bf16.mxu0 %vm29588_vm5, %v24754_v12  ;;  %v2108_v12 = vsel %vm1585_vm4, %v1713_v50, %v24589_v9  ;;  %v739_v50 = vadd.s32 88, %v24580_v5 }
  0xbb   : > { %v845_v32 = vand.u32 15, %v739_v50 }
  0xc0   : > { %20166 = vmatmul.mubr.msk.bf16.vlgmr.msra.gmra.mrb[0].mxu0 %vm29588_vm5, %v24764_v18  ;;  %v29751_v18 = vmov 0  }
  0xc1   : > { %20198 = vmatpush3.bf16.msra.mxu0 %v2358_v42  ;;  %20169 = vmatprep.mubr.msk.bf16.mxu0 %vm29588_vm5, %v24781_v28  ;;  %v17912_v28 = vld [vmem:[%s29713_s4 + $0xe] sm:$0x3] }
  0xc2   : > { %20231 = vmatprep.subr.bf16.mxu0 %v2559_v3 }
  0xc8   : > { %20170 = vmatmul.mubr.msk.bf16.gmra.mrb[4].mxu0 %vm29588_vm5, %v24795_v51  ;;  %v2757_v51 = vand.u32 %v17912_v28, %v24577_v4 }
  0xc9   : > { %20173 = vmatprep.mubr.msk.bf16.mxu0 %vm29588_vm5, %v24813_v10  ;;  %v17945_v10 = vld [vmem:[%s29713_s4 + $0x4] sm:$0x3] }
  0xd0   : > { %20174 = vmatmul.mubr.msk.bf16.gmra.mrb[8].mxu0 %vm29588_vm5, %v24853_v7  ;;  %v3515_v7 = vand.u32 %v17945_v10, %v24577_v4 }
  0xd1   : > { %20177 = vmatprep.mubr.msk.bf16.mxu0 %vm29588_vm5, %v24882_v55  ;;  %v17962_v55 = vld [vmem:[%s29713_s4 + $0xa] sm:$0x3] }
  0xd8   : > { %20178 = vmatmul.mubr.msk.bf16.gmra.mrb[12].mxu0 %vm29588_vm5, %v24891_v13  ;;  %v731_v13 = vadd.s32 24, %v24580_v5 }
  0xd9   : > { %20181 = vmatprep.mubr.msk.bf16.mxu0 %vm29588_vm5, %v24898_v26  ;;  %v25125_v26 = vand.u32 %v17962_v55, %v24577_v4 }
  0xe0   : > { %20182 = vmatmul.mubr.msk.bf16.gmra.mrb[16].mxu0 %vm29588_vm5, %v24914_v59  ;;  %v729_v59 = vadd.s32 8, %v24580_v5 }
  0xe1   : > { %20185 = vmatprep.mubr.msk.bf16.mxu0 %vm29588_vm5, %v24937_v2  ;;  %v789_v2 = vand.u32 15, %v731_v13 }
  0xe2   : > { %v775_v14 = vand.u32 15, %v729_v59 }
  0xe3   : > { %vm2955_vm1 = vcmp.ne.s32.totalorder %v789_v2, 15 }
  0xe4   : > { %vm2953_vm3 = vcmp.ne.s32.totalorder %v775_v14, 15  ;;  %vm3057_vm0 = vmpackc.low %vm2955_vm1, %vm2955_vm1  ;;  %v743_v14 = vadd.s32 120, %v24580_v5 }
  0xe5   : > { %vm3055_vm15 = vmpackc.low %vm2953_vm3, %vm2953_vm3  ;;  %v3091_v16 = vsel %vm3057_vm0, 65537, %v29751_v18 }
  0xe6   : > { %v3089_v6 = vsel %vm3055_vm15, 65537, %v29751_v18  ;;  %vm25152_vm15 = vcmp.ne.s32.totalorder %v831_v53, 15  ;;  %v745_v53 = vadd.s32 136, %v24580_v5 }
  0xe7   : > { %v17928_v37 = vcombine.low %v24586_v8, %v3089_v6 }
  0xe8   : > { %20186 = vmatmul.mubr.msk.bf16.gmra.mrb[20].mxu0 %vm29588_vm5, %v1693_v57  ;;  %v733_v57 = vadd.s32 40, %v24580_v5 }
  0xe9   : > { %20189 = vmatprep.mubr.msk.bf16.mxu0 %vm29588_vm5, %v1701_v22  ;;  %v17929_v22 = vcombine.low %v24586_v8, %v3091_v16 }
  0xea   : > { %v803_v15 = vand.u32 15, %v733_v57 }
  0xec   : > { %vm2957_vm2 = vcmp.ne.s32.totalorder %v803_v15, 15 }
  0xed   : > { %vm3059_vm14 = vmpackc.low %vm2957_vm2, %vm2957_vm2 }
  0xee   : > { %v3093_v60 = vsel %vm3059_vm14, 65537, %v29751_v18  ;;  %vm3061_vm2 = vmpackc.low %vm2959_vm12, %vm2959_vm12  ;;  %vm2963_vm12 = vcmp.ne.s32.totalorder %v845_v32, 15 }
  0xef   : > { %v17930_v38 = vcombine.low %v24586_v8, %v3093_v60  ;;  %v3095_v21 = vsel %vm3061_vm2, 65537, %v29751_v18  ;;  %vm3063_vm14 = vmpackc.low %vm25152_vm15, %vm25152_vm15 }
  0xf0   : > { %20190 = vmatmul.mubr.msk.bf16.gmra.mrb[24].mxu0 %vm29588_vm5, %v1709_v39  ;;  %v3178_v39 = vshrl.u32 %v17929_v22, 16  ;;  %v17931_v10 = vcombine.low %v24586_v8, %v3095_v21  ;;  %v3097_v57 = vsel %vm3063_vm14, 65537, %v29751_v18  ;;  %vm3065_vm3 = vmpackc.low %vm2963_vm12, %vm2963_vm12 }
  0xf1   : > { %20193 = vmatprep.mubr.msk.bf16.mxu0 %vm29588_vm5, %v1717_v61  ;;  %v3174_v61 = vshrl.u32 %v17928_v37, 16  ;;  %v3186_v28 = vshrl.u32 %v17930_v38, 16  ;;  %v3189_v59 = vshll.u32 %v17930_v38, 16  ;;  %v17932_v23 = vcombine.low %v24586_v8, %v3097_v57 }
  0xf2   : > { %v3194_v15 = vshrl.u32 %v17931_v10, 16  ;;  %v3099_v6 = vsel %vm3065_vm3, 65537, %v29751_v18  ;;  %v3197_v37 = vshll.u32 %v17931_v10, 16 }
  0xf3   : > { %v3188_v13 = vrot.slane %v3186_v28, 7  ;;  %v17933_v38 = vcombine.low %v24586_v8, %v3099_v6 }
  0xf4   : > { %v3196_v60 = vrot.slane %v3194_v15, 7 }
  0xf5   : > { %v3191_v16 = vor.u32 %v3189_v59, %v3188_v13  ;;  %v3210_v10 = vshrl.u32 %v17933_v38, 16  ;;  %v749_v59 = vadd.s32 168, %v24580_v5  ;;  %v3213_v20 = vshll.u32 %v17933_v38, 16 }
  0xf6   : > { %v3199_v42 = vor.u32 %v3197_v37, %v3196_v60 }
  0xf7   : > { %v915_v37 = vand.u32 15, %v749_v59 }
  0xf8   : > { %20194 = vmatmul.mubr.msk.bf16.gmra.mrb[28].mxu0 %vm29588_vm5, %v2108_v12  ;;  %v3181_v12 = vshll.u32 %v17929_v22, 16  ;;  %v873_v22 = vand.u32 15, %v743_v14 }
  0xf9   : > { %20199 = vmatprep.mubr.bf16.mxu0 %v29751_v18 }
  0xfa   : > { %vm25190_vm15 = vcmp.ne.s32.totalorder %v873_v22, 15  ;;  %v751_v22 = vadd.s32 184, %v24580_v5 }
  0xfb   : > { %vm3069_vm12 = vmpackc.low %vm25190_vm15, %vm25190_vm15 }
  0xfc   : > { %v3103_v14 = vsel %vm3069_vm12, 65537, %v29751_v18 }
 0x100   : > { %20200 = vmatmul.mubr.msk.bf16.vlgmr.msra.gmra.mrb[0].mxu0 %vm29588_vm5, %v24625_v33 }
 0x101   : > { %20232 = vmatpush3.bf16.msra.mxu0 %v2559_v3  ;;  %20203 = vmatprep.mubr.msk.bf16.mxu0 %vm29588_vm5, %v24645_v40  ;;  %v3180_v3 = vrot.slane %v3178_v39, 7  ;;  %v3202_v39 = vshrl.u32 %v17932_v23, 16 }
 0x102   : > { %20265 = vmatprep.subr.bf16.mxu0 %v2757_v51 }
 0x103   : > { %v3183_v55 = vor.u32 %v3181_v12, %v3180_v3  ;;  %v25186_v50 = vsel %vm1585_vm4, %v3180_v3, %v3191_v16  ;;  %v887_v3 = vand.u32 15, %v745_v53  ;;  %v3204_v28 = vrot.slane %v3202_v39, 7 }
 0x104   : > { %29757 = vst [vmem:[#allocation27_spill] sm:$0xff] %v25186_v50  ;;  %vm29580_vm14 = vcmp.ne.s16.totalorder %v25186_v50, 0 }
 0x105   : > { %v3322_v57 = vsel %vm29580_vm14, %v24645_v40, 0  ;;  %vm25215_vm3 = vcmp.ne.s32.totalorder %v887_v3, 15 }
 0x106   : > { %vm3071_vm15 = vmpackc.low %vm25215_vm3, %vm25215_vm3  ;;  %vm25249_vm3 = vcmp.ne.s32.totalorder %v915_v37, 15 }
 0x108   : > { %20204 = vmatmul.mubr.msk.bf16.gmra.mrb[4].mxu0 %vm29588_vm5, %v24647_v41 }
 0x109   : > { %20207 = vmatprep.mubr.msk.bf16.mxu0 %vm29588_vm5, %v24653_v43 }
 0x110   : > { %20208 = vmatmul.mubr.msk.bf16.gmra.mrb[8].mxu0 %vm29588_vm5, %v24665_v48 }
 0x111   : > { %20211 = vmatprep.mubr.msk.bf16.mxu0 %vm29588_vm5, %v24677_v54 }
 0x118   : > { %20212 = vmatmul.mubr.msk.bf16.gmra.mrb[12].mxu0 %vm29588_vm5, %v24774_v24 }
 0x119   : > { %20215 = vmatprep.mubr.msk.bf16.mxu0 %vm29588_vm5, %v24787_v34 }
 0x120   : > { %20216 = vmatmul.mubr.msk.bf16.gmra.mrb[16].mxu0 %vm29588_vm5, %v24797_v56 }
 0x121   : > { %20219 = vmatprep.mubr.msk.bf16.mxu0 %vm29588_vm5, %v24801_v63 }
 0x128   : > { %20220 = vmatmul.mubr.msk.bf16.gmra.mrb[20].mxu0 %vm29588_vm5, %v24832_v44 }
 0x129   : > { %20223 = vmatprep.mubr.msk.bf16.mxu0 %vm29588_vm5, %v24877_v47 }
 0x130   : > { %20224 = vmatmul.mubr.msk.bf16.gmra.mrb[24].mxu0 %vm29588_vm5, %v24922_v19 }
 0x131   : > { %20227 = vmatprep.mubr.msk.bf16.mxu0 %vm29588_vm5, %v24925_v30 }
 0x138   : > { %20228 = vmatmul.mubr.msk.bf16.gmra.mrb[28].mxu0 %vm29588_vm5, %v24950_v36 }
 0x139   : > { %20233 = vmatprep.mubr.msk.bf16.mxu0 %vm29588_vm5, %v24625_v33 }
 0x140   : > { %20234 = vmatmul.mubr.msk.bf16.vlgmr.msra.gmra.mrb[0].mxu0 %vm29588_vm5, %v24645_v40 }
 0x141   : > { %20266 = vmatpush3.bf16.msra.mxu0 %v2757_v51  ;;  %20237 = vmatprep.mubr.msk.bf16.mxu0 %vm29588_vm5, %v24647_v41  ;;  %v741_v51 = vadd.s32 104, %v24580_v5 }
 0x142   : > { %20299 = vmatprep.subr.bf16.mxu0 %v3515_v7 }
 0x143   : > { %v859_v2 = vand.u32 15, %v741_v51  ;;  %v3205_v51 = vshll.u32 %v17932_v23, 16  ;;  %v3212_v23 = vrot.slane %v3210_v10, 7  ;;  %v25246_v10 = vrot.slane %v29751_v18, 1 }
 0x145   : > { %vm25171_vm0 = vcmp.ne.s32.totalorder %v859_v2, 15  ;;  %v3207_v16 = vor.u32 %v3205_v51, %v3204_v28  ;;  %v929_v51 = vand.u32 15, %v751_v22  ;;  %29766 = vst [vmem:[#allocation30_spill] sm:$0xff] %v25246_v10  ;;  %v755_v22 = vadd.s32 216, %v24580_v5 }
 0x146   : > { %vm3067_vm2 = vmpackc.low %vm25171_vm0, %vm25171_vm0 }
 0x147   : > { %v3101_v32 = vsel %vm3067_vm2, 65537, %v29751_v18  ;;  %v25238_v21 = vsel %vm1585_vm4, %v3196_v60, %v3207_v16 }
 0x148   : > { %20238 = vmatmul.mubr.msk.bf16.gmra.mrb[4].mxu0 %vm29588_vm5, %v24653_v43  ;;  %29765 = vst [vmem:[#allocation29_spill] sm:$0xff] %v25238_v21 }
 0x149   : > { %20241 = vmatprep.mubr.msk.bf16.mxu0 %vm29588_vm5, %v24665_v48 }
 0x150   : > { %20242 = vmatmul.mubr.msk.bf16.gmra.mrb[8].mxu0 %vm29588_vm5, %v24677_v54 }
 0x151   : > { %20245 = vmatprep.mubr.msk.bf16.mxu0 %vm29588_vm5, %v24774_v24 }
 0x158   : > { %20246 = vmatmul.mubr.msk.bf16.gmra.mrb[12].mxu0 %vm29588_vm5, %v24787_v34 }
 0x159   : > { %20249 = vmatprep.mubr.msk.bf16.mxu0 %vm29588_vm5, %v24797_v56 }
 0x160   : > { %20250 = vmatmul.mubr.msk.bf16.gmra.mrb[16].mxu0 %vm29588_vm5, %v24801_v63 }
 0x161   : > { %20253 = vmatprep.mubr.msk.bf16.mxu0 %vm29588_vm5, %v24832_v44 }
 0x168   : > { %20254 = vmatmul.mubr.msk.bf16.gmra.mrb[20].mxu0 %vm29588_vm5, %v24877_v47 }
 0x169   : > { %20257 = vmatprep.mubr.msk.bf16.mxu0 %vm29588_vm5, %v24922_v19 }
 0x170   : > { %20258 = vmatmul.mubr.msk.bf16.gmra.mrb[24].mxu0 %vm29588_vm5, %v24925_v30 }
 0x171   : > { %20261 = vmatprep.mubr.msk.bf16.mxu0 %vm29588_vm5, %v24950_v36 }
 0x178   : > { %20262 = vmatmul.mubr.msk.bf16.gmra.mrb[28].mxu0 %vm29588_vm5, %v24960_v1 }
 0x179   : > { %20267 = vmatprep.mubr.msk.bf16.mxu0 %vm29588_vm5, %v24645_v40  ;;  %v17935_v40 = vcombine.low %v24586_v8, %v3103_v14  ;;  %v3354_v14 = vshrl.u32 %v3322_v57, 16 }
 0x180   : > { %20268 = vmatmul.mubr.msk.bf16.vlgmr.msra.gmra.mrb[0].mxu0 %vm29588_vm5, %v24647_v41 }
 0x181   : > { %20300 = vmatpush3.bf16.msra.mxu0 %v3515_v7  ;;  %20271 = vmatprep.mubr.msk.bf16.mxu0 %vm29588_vm5, %v24653_v43  ;;  %v3176_v7 = vrot.slane %v3174_v61, 7  ;;  %v747_v61 = vadd.s32 152, %v24580_v5 }
 0x182   : > { %20333 = vmatprep.subr.bf16.mxu0 %v25125_v26 }
 0x183   : > { %v25168_v45 = vsel %vm1585_vm4, %v3176_v7, %v3183_v55  ;;  %v901_v7 = vand.u32 15, %v747_v61  ;;  %v17934_v55 = vcombine.low %v24586_v8, %v3101_v32  ;;  %v3350_v61 = vshll.u32 %v3322_v57, 16 }
 0x184   : > { %29754 = vst [vmem:[#allocation26_spill] sm:$0xff] %v25168_v45  ;;  %vm29618_vm1 = vcmp.ne.s16.totalorder %v25168_v45, 0 }
 0x185   : > { %v3321_v12 = vsel %vm29618_vm1, %v24625_v33, 0  ;;  %v25208_v33 = vsel %vm1585_vm4, %v3188_v13, %v3199_v42  ;;  %vm25219_vm0 = vcmp.ne.s32.totalorder %v901_v7, 15  ;;  %v3218_v13 = vshrl.u32 %v17934_v55, 16 }
 0x186   : > { %29760 = vst [vmem:[#allocation28_spill] sm:$0xff] %v25208_v33  ;;  %v3342_v2 = vshll.u32 %v3321_v12, 16  ;;  %vm29567_vm2 = vcmp.ne.s16.totalorder %v25208_v33, 0  ;;  %v3346_v39 = vshrl.u32 %v3321_v12, 16  ;;  %vm3073_vm12 = vmpackc.low %vm25219_vm0, %vm25219_vm0  ;;  %v3215_v42 = vor.u32 %v3213_v20, %v3212_v23 }
 0x187   : > { %v25235_v38 = vsel %vm29567_vm2, %v24647_v41, 0  ;;  %v3220_v32 = vrot.slane %v3218_v13, 7  ;;  %v3221_v3 = vshll.u32 %v17934_v55, 16  ;;  %v3105_v12 = vsel %vm3071_vm15, 65537, %v29751_v18  ;;  %vm3075_vm15 = vmpackc.low %vm25249_vm3, %vm25249_vm3 }
 0x188   : > { %20272 = vmatmul.mubr.msk.bf16.gmra.mrb[4].mxu0 %vm29588_vm5, %v24665_v48  ;;  %v3344_v53 = vrot.slane %v3342_v2, 1  ;;  %v3226_v41 = vshrl.u32 %v17935_v40, 16  ;;  %v3107_v7 = vsel %vm3073_vm12, 65537, %v29751_v18  ;;  %v3352_v2 = vrot.slane %v3350_v61, 1 }
 0x189   : > { %20275 = vmatprep.mubr.msk.bf16.mxu0 %vm29588_vm5, %v24677_v54  ;;  %v753_v55 = vadd.s32 200, %v24580_v5  ;;  %v3358_v15 = vshll.u32 %v25235_v38, 16  ;;  %vm29577_vm0 = vcmp.ne.s16.totalorder %v25238_v21, 0  ;;  %v25257_v16 = vsel %vm1585_vm4, %v3204_v28, %v3215_v42 }
 0x18a   : > { %v3348_v59 = vor.u32 %v3346_v39, %v3344_v53  ;;  %29769 = vst [vmem:[#allocation31_spill] sm:$0xff] %v25257_v16  ;;  %v17936_v20 = vcombine.low %v24586_v8, %v3105_v12  ;;  %v3223_v6 = vor.u32 %v3221_v3, %v3220_v32  ;;  %v17937_v13 = vcombine.low %v24586_v8, %v3107_v7 }
 0x18b   : > { %vm25264_vm12 = vcmp.ne.s32.totalorder %v929_v51, 15  ;;  %v25269_v37 = vrot.slane %v3226_v41, 7  ;;  %v3229_v39 = vshll.u32 %v17935_v40, 16  ;;  %v3345_v28 = vsel %vm1417_vm6, %v25246_v10, %v3344_v53 }
 0x18c   : > { %v3324_v61 = vsel %vm29577_vm0, %v24653_v43, 0  ;;  %vm29572_vm2 = vcmp.ne.s16.totalorder %v25257_v16, 0  ;;  %v943_v42 = vand.u32 15, %v753_v55  ;;  %v3356_v3 = vor.u32 %v3354_v14, %v3352_v2  ;;  %vm3077_vm3 = vmpackc.low %vm25264_vm12, %vm25264_vm12 }
 0x18d   : > { %v3360_v12 = vrot.slane %v3358_v15, 1  ;;  %v3234_v51 = vshrl.u32 %v17936_v20, 16  ;;  %v3109_v7 = vsel %vm3075_vm15, 65537, %v29751_v18  ;;  %v25283_v40 = vsel %vm1417_vm6, %v3348_v59, %v3352_v2 }
 0x18e   : > { %v25286_v53 = vsel %vm1585_vm4, %v3212_v23, %v3223_v6  ;;  %v3242_v43 = vshrl.u32 %v17937_v13, 16  ;;  %v957_v41 = vand.u32 15, %v755_v22  ;;  %v3362_v60 = vshrl.u32 %v25235_v38, 16  ;;  %v17979_v22 = vld [vmem:[%s29713_s4 + $0x10] sm:$0x3] }
 0x18f   : > { %29772 = vst [vmem:[#allocation32_spill] sm:$0xff] %v25286_v53  ;;  %v3366_v14 = vshll.u32 %v3324_v61, 16  ;;  %v25293_v55 = vsel %vm29572_vm2, %v24665_v48, 0  ;;  %v3231_v15 = vor.u32 %v3229_v39, %v25269_v37  ;;  %v17938_v59 = vcombine.low %v24586_v8, %v3109_v7 }
 0x190   : > { %20276 = vmatmul.mubr.msk.bf16.gmra.mrb[8].mxu0 %vm29588_vm5, %v24774_v24  ;;  %v3111_v2 = vsel %vm3077_vm3, 65537, %v29751_v18  ;;  %vm25298_vm15 = vcmp.ne.s32.totalorder %v943_v42, 15  ;;  %v757_v6 = vadd.s32 232, %v24580_v5  ;;  %v25304_v38 = vsel %vm1417_vm6, %v3356_v3, %v3360_v12 }
 0x191   : > { %20279 = vmatprep.mubr.msk.bf16.mxu0 %vm29588_vm5, %v24787_v34  ;;  %vm29579_vm12 = vcmp.ne.s16.totalorder %v25286_v53, 0  ;;  %v3236_v57 = vrot.slane %v3234_v51, 7  ;;  %v3237_v48 = vshll.u32 %v17936_v20, 16  ;;  %v25310_v39 = vrot.slane %v3242_v43, 7  ;;  %vm3079_vm2 = vmpackc.low %vm25298_vm15, %vm25298_vm15 }
 0x192   : > { %vm25312_vm3 = vcmp.ne.s32.totalorder %v957_v41, 15  ;;  %v759_v7 = vadd.s32 248, %v24580_v5  ;;  %v3370_v16 = vshrl.u32 %v3324_v61, 16  ;;  %v3374_v3 = vshll.u32 %v25293_v55, 16 }
 0x193   : > { %v25319_v21 = vsel %vm1585_vm4, %v3220_v32, %v3231_v15  ;;  %v17939_v20 = vcombine.low %v24586_v8, %v3111_v2  ;;  %v3250_v51 = vshrl.u32 %v17938_v59, 16  ;;  %v971_v43 = vand.u32 15, %v757_v6  ;;  %vm3081_vm0 = vmpackc.low %vm25312_vm3, %vm25312_vm3 }
 0x194   : > { %29777 = vst [vmem:[#allocation33_spill] sm:$0xff] %v25319_v21  ;;  %v25329_v41 = vand.u32 %v17979_v22, %v24577_v4  ;;  %v3364_v61 = vor.u32 %v3362_v60, %v3360_v12  ;;  %v3368_v33 = vrot.slane %v3366_v14, 1  ;;  %v3239_v50 = vor.u32 %v3237_v48, %v3236_v57 }
 0x195   : > { %vm29578_vm15 = vcmp.ne.s16.totalorder %v25319_v21, 0  ;;  %v985_v15 = vand.u32 15, %v759_v7  ;;  %v3376_v60 = vrot.slane %v3374_v3, 1  ;;  %v3258_v2 = vshrl.u32 %v17939_v20, 16 }
 0x196   : > { %v3372_v12 = vor.u32 %v3370_v16, %v3368_v33  ;;  %v3252_v23 = vrot.slane %v3250_v51, 7  ;;  %v3253_v6 = vshll.u32 %v17938_v59, 16  ;;  %v3115_v48 = vsel %vm3081_vm0, 65537, %v29751_v18 }
 0x197   : > { %vm25343_vm3 = vcmp.ne.s32.totalorder %v971_v43, 15  ;;  %v25353_v16 = vsel %vm1585_vm4, %v25269_v37, %v3239_v50  ;;  %v761_v59 = vadd.s32 264, %v24580_v5  ;;  %v25358_v42 = vsel %vm1417_vm6, %v3364_v61, %v3368_v33 }
 0x198   : > { %20280 = vmatmul.mubr.msk.bf16.gmra.mrb[12].mxu0 %vm29588_vm5, %v24797_v56  ;;  %29780 = vst [vmem:[#allocation34_spill] sm:$0xff] %v25353_v16  ;;  %v3378_v7 = vshrl.u32 %v25293_v55, 16  ;;  %v3260_v43 = vrot.slane %v3258_v2, 7  ;;  %v3261_v50 = vshll.u32 %v17939_v20, 16  ;;  %v17941_v37 = vcombine.low %v24586_v8, %v3115_v48  ;;  %vm3083_vm0 = vmpackc.low %vm25343_vm3, %vm25343_vm3 }
 0x199   : > { %20283 = vmatprep.mubr.msk.bf16.mxu0 %vm29588_vm5, %v24801_v63  ;;  %v25373_v5 = vsel %vm1417_vm6, %v3372_v12, %v3376_v60  ;;  %v3255_v55 = vor.u32 %v3253_v6, %v3252_v23  ;;  %v999_v20 = vand.u32 15, %v761_v59 }
 0x19a   : > { %v3263_v12 = vor.u32 %v3261_v50, %v3260_v43 }
 0x19b   : > { %vm25397_vm3 = vcmp.ne.s32.totalorder %v999_v20, 15 }
 0x1a0   : > { %20284 = vmatmul.mubr.msk.bf16.gmra.mrb[16].mxu0 %vm29588_vm5, %v24832_v44 }
 0x1a1   : > { %20287 = vmatprep.mubr.msk.bf16.mxu0 %vm29588_vm5, %v24877_v47 }
 0x1a8   : > { %20288 = vmatmul.mubr.msk.bf16.gmra.mrb[20].mxu0 %vm29588_vm5, %v24922_v19 }
 0x1a9   : > { %20291 = vmatprep.mubr.msk.bf16.mxu0 %vm29588_vm5, %v24925_v30 }
 0x1b0   : > { %20292 = vmatmul.mubr.msk.bf16.gmra.mrb[24].mxu0 %vm29588_vm5, %v24950_v36 }
 0x1b1   : > { %20295 = vmatprep.mubr.msk.bf16.mxu0 %vm29588_vm5, %v24960_v1 }
 0x1b8   : > { %20296 = vmatmul.mubr.bf16.gmra.mrb[28].mxu0 %v29751_v18 }
 0x1b9   : > { %20301 = vmatprep.mubr.msk.bf16.mxu0 %vm29588_vm5, %v3345_v28  ;;  %v3245_v28 = vshll.u32 %v17937_v13, 16  ;;  %v3326_v13 = vsel %vm29579_vm12, %v24677_v54, 0  ;;  %v3113_v54 = vsel %vm3079_vm2, 65537, %v29751_v18  ;;  %vm25364_vm2 = vcmp.ne.s32.totalorder %v985_v15, 15 }
 0x1ba   : > { %v3382_v14 = vshll.u32 %v3326_v13, 16  ;;  %vm3085_vm14 = vmpackc.low %vm25364_vm2, %vm25364_vm2 }
 0x1bb   : > { %v3247_v32 = vor.u32 %v3245_v28, %v25310_v39  ;;  %v17940_v28 = vcombine.low %v24586_v8, %v3113_v54  ;;  %v3119_v48 = vsel %vm3085_vm14, 65537, %v29751_v18  ;;  %vm3087_vm2 = vmpackc.low %vm25397_vm3, %vm25397_vm3 }
 0x1bd   : > { %v25362_v3 = vsel %vm1585_vm4, %v3236_v57, %v3247_v32  ;;  %v3384_v57 = vrot.slane %v3382_v14, 1  ;;  %v3266_v61 = vshrl.u32 %v17940_v28, 16  ;;  %v3117_v32 = vsel %vm3083_vm0, 65537, %v29751_v18 }
 0x1be   : > { %29781 = vst [vmem:[#allocation35_spill] sm:$0xff] %v25362_v3  ;;  %vm3313_vm12 = vcmp.ne.s16.totalorder %v25362_v3, 0  ;;  %v3274_v14 = vshrl.u32 %v17941_v37, 16  ;;  %v3269_v59 = vshll.u32 %v17940_v28, 16 }
 0x1bf   : > { %v3329_v6 = vsel %vm3313_vm12, %v24797_v56, 0  ;;  %v3268_v22 = vrot.slane %v3266_v61, 7  ;;  %v25405_v56 = vsel %vm1585_vm4, %v3252_v23, %v3263_v12 }
 0x1c0   : > { %20302 = vmatmul.mubr.msk.bf16.vlgmr.msra.gmra.mrb[0].mxu0 %vm29588_vm5, %v25283_v40  ;;  %29787 = vst [vmem:[#allocation37_spill] sm:$0xff] %v25405_v56  ;;  %v3406_v20 = vshll.u32 %v3329_v6, 16  ;;  %vm3315_vm0 = vcmp.ne.s16.totalorder %v25405_v56, 0 }
 0x1c1   : > { %20334 = vmatpush3.bf16.msra.mxu0 %v25125_v26  ;;  %20305 = vmatprep.mubr.msk.bf16.mxu0 %vm29588_vm5, %v25304_v38  ;;  %v3327_v26 = vsel %vm29578_vm15, %v24774_v24, 0  ;;  %v3386_v24 = vshrl.u32 %v3326_v13, 16  ;;  %vm3312_vm15 = vcmp.ne.s16.totalorder %v25353_v16, 0  ;;  %v3380_v13 = vor.u32 %v3378_v7, %v3376_v60 }
 0x1c2   : > { %20367 = vmatprep.subr.bf16.mxu0 %v25329_v41  ;;  %v3390_v33 = vshll.u32 %v3327_v26, 16  ;;  %v3328_v15 = vsel %vm3312_vm15, %v24787_v34, 0  ;;  %v25393_v60 = vsel %vm1585_vm4, %v25310_v39, %v3255_v55  ;;  %v17942_v7 = vcombine.low %v24586_v8, %v3117_v32 }
 0x1c3   : > { %v3388_v54 = vor.u32 %v3386_v24, %v3384_v57  ;;  %29784 = vst [vmem:[#allocation36_spill] sm:$0xff] %v25393_v60  ;;  %v25402_v34 = vsel %vm1417_vm6, %v3380_v13, %v3384_v57  ;;  %v3394_v24 = vshrl.u32 %v3327_v26, 16  ;;  %v3398_v50 = vshll.u32 %v3328_v15, 16 }
 0x1c4   : > { %v3392_v2 = vrot.slane %v3390_v33, 1  ;;  %v3276_v39 = vrot.slane %v3274_v14, 7  ;;  %v3277_v33 = vshll.u32 %v17941_v37, 16  ;;  %v17943_v55 = vcombine.low %v24586_v8, %v3119_v48 }
 0x1c5   : > { %v3402_v61 = vshrl.u32 %v3328_v15, 16  ;;  %vm3314_vm14 = vcmp.ne.s16.totalorder %v25393_v60, 0  ;;  %v3271_v26 = vor.u32 %v3269_v59, %v3268_v22  ;;  %v3282_v57 = vshrl.u32 %v17942_v7, 16 }
 0x1c6   : > { %v25409_v28 = vsel %vm1417_vm6, %v3388_v54, %v3392_v2  ;;  %v3396_v23 = vor.u32 %v3394_v24, %v3392_v2  ;;  %v3400_v37 = vrot.slane %v3398_v50, 1  ;;  %v3330_v13 = vsel %vm3314_vm14, %v24801_v63, 0 }
 0x1c7   : > { %v3279_v32 = vor.u32 %v3277_v33, %v3276_v39  ;;  %v3290_v54 = vshrl.u32 %v17943_v55, 16  ;;  %v3121_v15 = vsel %vm3087_vm2, 65537, %v29751_v18  ;;  %v3408_v14 = vrot.slane %v3406_v20, 1 }
 0x1c8   : > { %20306 = vmatmul.mubr.msk.bf16.gmra.mrb[4].mxu0 %vm29588_vm5, %v25358_v42  ;;  %v3404_v12 = vor.u32 %v3402_v61, %v3400_v37  ;;  %v3331_v2 = vsel %vm3315_vm0, %v24832_v44, 0  ;;  %v25428_v48 = vsel %vm1585_vm4, %v3260_v43, %v3271_v26  ;;  %v3284_v59 = vrot.slane %v3282_v57, 7 }
 0x1c9   : > { %20309 = vmatprep.mubr.msk.bf16.mxu0 %vm29588_vm5, %v25373_v5  ;;  %29788 = vst [vmem:[#allocation38_spill] sm:$0xff] %v25428_v48  ;;  %v3285_v51 = vshll.u32 %v17942_v7, 16  ;;  %v3410_v24 = vshrl.u32 %v3329_v6, 16  ;;  %v3414_v50 = vshll.u32 %v3330_v13, 16  ;;  %v17944_v4 = vcombine.low %v24586_v8, %v3121_v15 }
 0x1ca   : > { %v25432_v63 = vsel %vm1417_vm6, %v3396_v23, %v3400_v37  ;;  %v25435_v33 = vsel %vm1585_vm4, %v3268_v22, %v3279_v32  ;;  %v3292_v61 = vrot.slane %v3290_v54, 7  ;;  %v3293_v20 = vshll.u32 %v17943_v55, 16 }
 0x1cb   : > { %29789 = vst [vmem:[#allocation39_spill] sm:$0xff] %v25435_v33  ;;  %v25438_v56 = vsel %vm1417_vm6, %v3404_v12, %v3408_v14  ;;  %v3418_v44 = vshrl.u32 %v3330_v13, 16  ;;  %v3422_v43 = vshll.u32 %v3331_v2, 16  ;;  %vm29586_vm3 = vcmp.ne.s16.totalorder %v25428_v48, 0 }
 0x1cc   : > { %v3287_v7 = vor.u32 %v3285_v51, %v3284_v59  ;;  %v3416_v8 = vrot.slane %v3414_v50, 1  ;;  %vm29585_vm2 = vcmp.ne.s16.totalorder %v25435_v33, 0  ;;  %v3298_v6 = vshrl.u32 %v17944_v4, 16 }
 0x1cd   : > { %v3412_v22 = vor.u32 %v3410_v24, %v3408_v14  ;;  %v3332_v55 = vsel %vm29586_vm3, %v24877_v47, 0  ;;  %v3295_v26 = vor.u32 %v3293_v20, %v3292_v61  ;;  %v3424_v23 = vrot.slane %v3422_v43, 1 }
 0x1ce   : > { %v3420_v57 = vor.u32 %v3418_v44, %v3416_v8  ;;  %v3333_v37 = vsel %vm29585_vm2, %v24922_v19, 0  ;;  %v25453_v13 = vsel %vm1585_vm4, %v3276_v39, %v3287_v7  ;;  %v3430_v32 = vshll.u32 %v3332_v55, 16 }
 0x1cf   : > { %29790 = vst [vmem:[#allocation40_spill] sm:$0xff] %v25453_v13  ;;  %v3300_v54 = vrot.slane %v3298_v6, 7  ;;  %v3301_v15 = vshll.u32 %v17944_v4, 16  ;;  %v25456_v12 = vsel %vm1417_vm6, %v3412_v22, %v3416_v8  ;;  %v3426_v14 = vshrl.u32 %v3331_v2, 16 }
 0x1d0   : > { %20310 = vmatmul.mubr.msk.bf16.gmra.mrb[8].mxu0 %vm29588_vm5, %v25402_v34  ;;  %v25459_v51 = vsel %vm1585_vm4, %v3284_v59, %v3295_v26  ;;  %v25462_v47 = vsel %vm1417_vm6, %v3420_v57, %v3424_v23  ;;  %v3434_v24 = vshrl.u32 %v3332_v55, 16  ;;  %v3438_v50 = vshll.u32 %v3333_v37, 16 }
 0x1d1   : > { %20313 = vmatprep.mubr.msk.bf16.mxu0 %vm29588_vm5, %v25409_v28  ;;  %29791 = vst [vmem:[#allocation41_spill] sm:$0xff] %v25459_v51  ;;  %vm29587_vm2 = vcmp.ne.s16.totalorder %v25453_v13, 0  ;;  %v3432_v19 = vrot.slane %v3430_v32, 1  ;;  %vm3319_vm3 = vcmp.ne.s16.totalorder %v25459_v51, 0  ;;  %v3303_v4 = vor.u32 %v3301_v15, %v3300_v54 }
 0x1d2   : > { %v3428_v39 = vor.u32 %v3426_v14, %v3424_v23  ;;  %v3334_v2 = vsel %vm29587_vm2, %v24925_v30, 0  ;;  %v3440_v20 = vrot.slane %v3438_v50, 1  ;;  %v3335_v44 = vsel %vm3319_vm3, %v24950_v36, 0 }
 0x1d3   : > { %v3436_v59 = vor.u32 %v3434_v24, %v3432_v19  ;;  %v3446_v43 = vshll.u32 %v3334_v2, 16  ;;  %v25477_v7 = vsel %vm1585_vm4, %v3292_v61, %v3303_v4  ;;  %v3442_v6 = vshrl.u32 %v3333_v37, 16  ;;  %v24038_v4 = vld [vmem:[%s29539_s6 + $0xd0] sm:$0xff]  }
 0x1d4   : > { %29792 = vst [vmem:[#allocation42_spill] sm:$0xff] %v25477_v7  ;;  %v25480_v8 = vsel %vm1417_vm6, %v3428_v39, %v3432_v19  ;;  %v3450_v55 = vshrl.u32 %v3334_v2, 16  ;;  %v3454_v26 = vshll.u32 %v3335_v44, 16  ;;  %vm29698_vm2 = vcmp.ne.s16.totalorder %v25477_v7, 0  ;;  %v24037_v19 = vld [vmem:[%s29539_s6 + $0xc8] sm:$0xff]  }
 0x1d5   : > { %v25483_v22 = vsel %vm1417_vm6, %v3436_v59, %v3440_v20  ;;  %v3448_v30 = vrot.slane %v3446_v43, 1  ;;  %v3444_v36 = vor.u32 %v3442_v6, %v3440_v20  ;;  %v3336_v23 = vsel %vm29698_vm2, %v24960_v1, 0  ;;  %v24036_v1 = vld [vmem:[%s29539_s6 + $0xc0] sm:$0xff]  }
 0x1d6   : > { %v3456_v57 = vrot.slane %v3454_v26, 1  ;;  %v3458_v32 = vshrl.u32 %v3335_v44, 16  ;;  %v3462_v54 = vshll.u32 %v3336_v23, 16  ;;  %22345 = vmatprep.subr.bf16.mxu1 %v24036_v1 }
 0x1d7   : > { %v3452_v61 = vor.u32 %v3450_v55, %v3448_v30  ;;  %v3449_v37 = vsel %vm1417_vm6, %v3444_v36, %v3448_v30  ;;  %22353 = vmatpush3.bf16.msra.mxu1 %v24036_v1 }
 0x1d8   : > { %20314 = vmatmul.mubr.msk.bf16.gmra.mrb[12].mxu0 %vm29588_vm5, %v25432_v63  ;;  %v3460_v14 = vor.u32 %v3458_v32, %v3456_v57  ;;  %v3464_v24 = vrot.slane %v3462_v54, 1  ;;  %22346 = vmatprep.subr.bf16.mxu1 %v24037_v19 }
 0x1d9   : > { %20317 = vmatprep.mubr.msk.bf16.mxu0 %vm29588_vm5, %v25438_v56  ;;  %v3457_v15 = vsel %vm1417_vm6, %v3452_v61, %v3456_v57 }
 0x1da   : > { %v3465_v50 = vsel %vm1417_vm6, %v3460_v14, %v3464_v24 }
 0x1db   : > { %22354 = vmatpush3.bf16.msra.mxu1 %v24037_v19 }
 0x1dc   : > { %22347 = vmatprep.subr.bf16.mxu1 %v24038_v4 }
 0x1df   : > { %22355 = vmatpush3.bf16.msra.mxu1 %v24038_v4 }
 0x1e0   : > { %20318 = vmatmul.mubr.msk.bf16.gmra.mrb[16].mxu0 %vm29588_vm5, %v25456_v12 }
 0x1e1   : > { %20321 = vmatprep.mubr.msk.bf16.mxu0 %vm29588_vm5, %v25462_v47 }
 0x1e8   : > { %20322 = vmatmul.mubr.msk.bf16.gmra.mrb[20].mxu0 %vm29588_vm5, %v25480_v8 }
 0x1e9   : > { %20325 = vmatprep.mubr.msk.bf16.mxu0 %vm29588_vm5, %v25483_v22 }
 0x1f0   : > { %20326 = vmatmul.mubr.msk.bf16.gmra.mrb[24].mxu0 %vm29588_vm5, %v3449_v37 }
 0x1f1   : > { %20329 = vmatprep.mubr.msk.bf16.mxu0 %vm29588_vm5, %v3457_v15 }
 0x1f8   : > { %20330 = vmatmul.mubr.msk.bf16.gmra.mrb[28].mxu0 %vm29588_vm5, %v3465_v50 }
 0x1f9   : > { %20335 = vmatprep.mubr.msk.bf16.mxu0 %vm29588_vm5, %v25283_v40  ;;  %v24039_v40 = vld [vmem:[%s29539_s6 + $0xd8] sm:$0xff]  }
 0x1fa   : > { %22348 = vmatprep.subr.bf16.mxu1 %v24039_v40 }
 0x1fb   : > { %22356 = vmatpush3.bf16.msra.mxu1 %v24039_v40 }
 0x200   : > { %20336 = vmatmul.mubr.msk.bf16.vlgmr.msra.gmra.mrb[0].mxu0 %vm29588_vm5, %v25304_v38 }
 0x201   : > { %20368 = vmatpush3.bf16.msra.mxu0 %v25329_v41  ;;  %20339 = vmatprep.mubr.msk.bf16.mxu0 %vm29588_vm5, %v25358_v42  ;;  %v3712_v41 = vshrl.u32 %v3336_v23, 16 }
 0x202   : > { %20401 = vmatprep.subr.bf16.mxu0 %v24036_v1 }
 0x203   : > { %v3714_v39 = vor.u32 %v3712_v41, %v3464_v24 }
 0x205   : > { %v3715_v2 = vsel %vm1417_vm6, %v3714_v39, %v25246_v10 }
 0x208   : > { %20340 = vmatmul.mubr.msk.bf16.gmra.mrb[4].mxu0 %vm29588_vm5, %v25373_v5 }
 0x209   : > { %20343 = vmatprep.mubr.msk.bf16.mxu0 %vm29588_vm5, %v25402_v34 }
 0x210   : > { %20344 = vmatmul.mubr.msk.bf16.gmra.mrb[8].mxu0 %vm29588_vm5, %v25409_v28 }
 0x211   : > { %20347 = vmatprep.mubr.msk.bf16.mxu0 %vm29588_vm5, %v25432_v63 }
 0x218   : > { %20348 = vmatmul.mubr.msk.bf16.gmra.mrb[12].mxu0 %vm29588_vm5, %v25438_v56 }
 0x219   : > { %20351 = vmatprep.mubr.msk.bf16.mxu0 %vm29588_vm5, %v25456_v12 }
 0x220   : > { %20352 = vmatmul.mubr.msk.bf16.gmra.mrb[16].mxu0 %vm29588_vm5, %v25462_v47 }
 0x221   : > { %20355 = vmatprep.mubr.msk.bf16.mxu0 %vm29588_vm5, %v25480_v8 }
 0x228   : > { %20356 = vmatmul.mubr.msk.bf16.gmra.mrb[20].mxu0 %vm29588_vm5, %v25483_v22 }
 0x229   : > { %20359 = vmatprep.mubr.msk.bf16.mxu0 %vm29588_vm5, %v3449_v37 }
 0x230   : > { %20360 = vmatmul.mubr.msk.bf16.gmra.mrb[24].mxu0 %vm29588_vm5, %v3457_v15 }
 0x231   : > { %20363 = vmatprep.mubr.msk.bf16.mxu0 %vm29588_vm5, %v3465_v50 }
 0x238   : > { %20364 = vmatmul.mubr.msk.bf16.gmra.mrb[28].mxu0 %vm29588_vm5, %v3715_v2 }
 0x239   : > { %20369 = vmatprep.mubr.msk.bf16.mxu0 %vm29588_vm5, %v25304_v38  ;;  %v24040_v38 = vld [vmem:[%s29539_s6 + $0xe0] sm:$0xff]  }
 0x23a   : > { %22349 = vmatprep.subr.bf16.mxu1 %v24040_v38 }
 0x23b   : > { %22357 = vmatpush3.bf16.msra.mxu1 %v24040_v38 }
 0x240   : > { %20370 = vmatmul.mubr.msk.bf16.vlgmr.msra.gmra.mrb[0].mxu0 %vm29588_vm5, %v25358_v42  ;;  %v24041_v42 = vld [vmem:[%s29539_s6 + $0xe8] sm:$0xff]  }
 0x241   : > { %20373 = vmatprep.mubr.msk.bf16.mxu0 %vm29588_vm5, %v25373_v5  ;;  %20402 = vmatpush3.bf16.msra.mxu0 %v24036_v1  ;;  %v24042_v5 = vld [vmem:[%s29539_s6 + $0xf0] sm:$0xff]  }
 0x242   : > { %20403 = vmatprep.subr.bf16.mxu0 %v24037_v19  ;;  %22350 = vmatprep.subr.bf16.mxu1 %v24041_v42 }
 0x243   : > { %22358 = vmatpush3.bf16.msra.mxu1 %v24041_v42 }
 0x244   : > { %22351 = vmatprep.subr.bf16.mxu1 %v24042_v5 }
 0x245   : > { %20404 = vmatpush3.bf16.msra.mxu0 %v24037_v19 }
 0x246   : > { %20405 = vmatprep.subr.bf16.mxu0 %v24038_v4 }
 0x247   : > { %22359 = vmatpush3.bf16.msra.mxu1 %v24042_v5 }
 0x248   : > { %20374 = vmatmul.mubr.msk.bf16.gmra.mrb[4].mxu0 %vm29588_vm5, %v25402_v34  ;;  %v24043_v34 = vld [vmem:[%s29539_s6 + $0xf8] sm:$0xff]  }
 0x249   : > { %20377 = vmatprep.mubr.msk.bf16.mxu0 %vm29588_vm5, %v25409_v28  ;;  %20406 = vmatpush3.bf16.msra.mxu0 %v24038_v4  ;;  %v25591_v28 = vld [vmem:[%s29538_s5] ss:$0 sm:$0xff] }
 0x24a   : > { %20407 = vmatprep.subr.bf16.mxu0 %v24039_v40  ;;  %22352 = vmatprep.subr.bf16.mxu1 %v24043_v34 }
 0x24b   : > { %22360 = vmatpush3.bf16.msra.mxu1 %v24043_v34 }
 0x24d   : > { %20408 = vmatpush3.bf16.msra.mxu0 %v24039_v40 }
 0x24e   : > { %20409 = vmatprep.subr.bf16.mxu0 %v24040_v38 }
 0x250   : > { %20378 = vmatmul.mubr.msk.bf16.gmra.mrb[8].mxu0 %vm29588_vm5, %v25432_v63 }
 0x251   : > { %20381 = vmatprep.mubr.msk.bf16.mxu0 %vm29588_vm5, %v25438_v56  ;;  %20410 = vmatpush3.bf16.msra.mxu0 %v24040_v38  ;;  %v25585_v56 = vld [vmem:[%s29539_s6] sm:$0xff]  }
 0x252   : > { %20411 = vmatprep.subr.bf16.mxu0 %v24041_v42  ;;  %20449 = vmatprep.subr.bf16.mxu1 %v25585_v56 }
 0x255   : > { %20412 = vmatpush3.bf16.msra.mxu0 %v24041_v42 }
 0x256   : > { %20413 = vmatprep.subr.bf16.mxu0 %v24042_v5 }
 0x258   : > { %20382 = vmatmul.mubr.msk.bf16.gmra.mrb[12].mxu0 %vm29588_vm5, %v25456_v12 }
 0x259   : > { %20385 = vmatprep.mubr.msk.bf16.mxu0 %vm29588_vm5, %v25462_v47  ;;  %20414 = vmatpush3.bf16.msra.mxu0 %v24042_v5 }
 0x25a   : > { %20415 = vmatprep.subr.bf16.mxu0 %v24043_v34 }
 0x25d   : > { %20416 = vmatpush3.bf16.msra.mxu0 %v24043_v34 }
 0x260   : > { %20386 = vmatmul.mubr.msk.bf16.gmra.mrb[16].mxu0 %vm29588_vm5, %v25480_v8 }
 0x261   : > { %20389 = vmatprep.mubr.msk.bf16.mxu0 %vm29588_vm5, %v25483_v22 }
 0x268   : > { %20390 = vmatmul.mubr.msk.bf16.gmra.mrb[20].mxu0 %vm29588_vm5, %v3449_v37 }
 0x269   : > { %20393 = vmatprep.mubr.msk.bf16.mxu0 %vm29588_vm5, %v3457_v15 }
 0x270   : > { %20394 = vmatmul.mubr.msk.bf16.gmra.mrb[24].mxu0 %vm29588_vm5, %v3465_v50 }
 0x271   : > { %20397 = vmatprep.mubr.msk.bf16.mxu0 %vm29588_vm5, %v3715_v2 }
 0x278   : > { %20398 = vmatmul.mubr.msk.bf16.gmra.mrb[28].mxu0 %vm29588_vm5, %v25246_v10  ;;  %vm29793_vm5 = vcmp.ne.s16.totalorder %v24842_v49, 0 }
 0x313   : > { %v20371_v63 = vpop.f32.mrb[0].mxu0 }
 0x314   : > { %v4126_v12 = vadd.f32 %v20371_v63, %v25591_v28  ;;  %v3958_v47 = vpop.f32.mrb[1].mxu0 }
 0x315   : > { %v4124_v59 = vadd.f32 %v25591_v28, %v3958_v47  ;;  %v20372_v20 = vpop.f32.mrb[2].mxu0 }
 0x316   : > { %v4127_v44 = vadd.f32 %v20372_v20, %v25591_v28  ;;  %v3961_v43 = vpop.f32.mrb[3].mxu0  ;;  %v4158_v6 = vmax.f32 %v4126_v12, 0.0 }
 0x317   : > { %v4125_v8 = vadd.f32 %v25591_v28, %v3961_v43  ;;  %v4156_v55 = vmax.f32 %v4124_v59, 0.0 }
 0x318   : > { %v4159_v22 = vmax.f32 %v4127_v44, 0.0 }
 0x319   : > { %v4157_v26 = vmax.f32 %v4125_v8, 0.0 }
 0x31a   : > { %v25597_v30 = vpack.c.bf16 %v4159_v22, %v4158_v6 }
 0x31b   : > { %v25599_v36 = vpack.c.bf16 %v4157_v26, %v4156_v55  ;;  %v20375_v61 = vpop.f32.mrb[4].mxu0 }
 0x31c   : > { %v4130_v57 = vadd.f32 %v20375_v61, %v25591_v28  ;;  %v3974_v23 = vpop.f32.mrb[5].mxu0  ;;  %v4205_v37 = vsel %vm29697_vm8, %v25597_v30, 0 }
 0x31d   : > { %v4128_v32 = vadd.f32 %v25591_v28, %v3974_v23  ;;  %v20376_v54 = vpop.f32.mrb[6].mxu0  ;;  %v4204_v15 = vsel %vm29696_vm7, %v25599_v36, 0  ;;  %v4262_v14 = vshrl.u32 %v4205_v37, 16  ;;  %v4265_v40 = vshll.u32 %v4205_v37, 16 }
 0x31e   : > { %v4131_v24 = vadd.f32 %v20376_v54, %v25591_v28  ;;  %v3977_v50 = vpop.f32.mrb[7].mxu0  ;;  %v4254_v1 = vshrl.u32 %v4204_v15, 16  ;;  %v4162_v41 = vmax.f32 %v4130_v57, 0.0  ;;  %v4257_v38 = vshll.u32 %v4204_v15, 16 }
 0x31f   : > { %v4129_v19 = vadd.f32 %v25591_v28, %v3977_v50  ;;  %v4264_v4 = vrot.slane %v4262_v14, 7  ;;  %v4160_v42 = vmax.f32 %v4128_v32, 0.0 }
 0x320   : > { %v4163_v39 = vmax.f32 %v4131_v24, 0.0  ;;  %v4256_v2 = vrot.slane %v4254_v1, 7 }
 0x321   : > { %v4161_v5 = vmax.f32 %v4129_v19, 0.0  ;;  %v4267_v34 = vor.u32 %v4265_v40, %v4264_v4 }
 0x322   : > { %v25611_v63 = vpack.c.bf16 %v4163_v39, %v4162_v41  ;;  %v4259_v12 = vor.u32 %v4257_v38, %v4256_v2 }
 0x323   : > { %v25613_v47 = vpack.c.bf16 %v4161_v5, %v4160_v42  ;;  %v20379_v59 = vpop.f32.mrb[8].mxu0  ;;  %v25626_v55 = vsel %vm1585_vm4, %v4256_v2, %v4267_v34 }
 0x324   : > { %v4134_v20 = vadd.f32 %v20379_v59, %v25591_v28  ;;  %v3990_v44 = vpop.f32.mrb[9].mxu0  ;;  %v25618_v43 = vsel %vm1585_vm4, %v24589_v9, %v4259_v12  ;;  %v4207_v8 = vsel %vm29695_vm10, %v25611_v63, 0  ;;  %v24045_v59 = vld [vmem:[%s29539_s6 + $0x8] sm:$0xff]  }
 0x325   : > { %v4132_v6 = vadd.f32 %v25591_v28, %v3990_v44  ;;  %v20380_v22 = vpop.f32.mrb[10].mxu0  ;;  %20417 = vmatprep.mubr.bf16.mxu0 %v25618_v43  ;;  %v4206_v26 = vsel %vm29665_vm9, %v25613_v47, 0  ;;  %v4278_v61 = vshrl.u32 %v4207_v8, 16  ;;  %v4281_v15 = vshll.u32 %v4207_v8, 16 }
 0x326   : > { %v4135_v57 = vadd.f32 %v20380_v22, %v25591_v28  ;;  %v3993_v23 = vpop.f32.mrb[11].mxu0  ;;  %20418 = vmatmul.mubr.bf16.vlgmr.msra.gmra.mrb[32].mxu0 %v25626_v55  ;;  %v4270_v37 = vshrl.u32 %v4206_v26, 16  ;;  %v4166_v14 = vmax.f32 %v4134_v20, 0.0  ;;  %v4273_v1 = vshll.u32 %v4206_v26, 16 }
 0x327   : > { %v4133_v32 = vadd.f32 %v25591_v28, %v3993_v23  ;;  %v4280_v54 = vrot.slane %v4278_v61, 7  ;;  %v4164_v19 = vmax.f32 %v4132_v6, 0.0 }
 0x328   : > { %v4167_v24 = vmax.f32 %v4135_v57, 0.0  ;;  %v4272_v50 = vrot.slane %v4270_v37, 7 }
 0x329   : > { %v4165_v40 = vmax.f32 %v4133_v32, 0.0  ;;  %v4283_v41 = vor.u32 %v4281_v15, %v4280_v54 }
 0x32a   : > { %v25634_v39 = vpack.c.bf16 %v4167_v24, %v4166_v14  ;;  %v4275_v2 = vor.u32 %v4273_v1, %v4272_v50  ;;  %v24046_v1 = vld [vmem:[%s29539_s6 + $0x10] sm:$0xff]  }
 0x32b   : > { %v25636_v38 = vpack.c.bf16 %v4165_v40, %v4164_v19  ;;  %v20383_v42 = vpop.f32.mrb[12].mxu0  ;;  %v25651_v6 = vsel %vm1585_vm4, %v4272_v50, %v4283_v41 }
 0x32c   : > { %v4138_v5 = vadd.f32 %v20383_v42, %v25591_v28  ;;  %v4006_v34 = vpop.f32.mrb[13].mxu0  ;;  %v25640_v12 = vsel %vm1585_vm4, %v4264_v4, %v4275_v2  ;;  %v4209_v20 = vsel %vm29589_vm13, %v25634_v39, 0  ;;  %vm29794_vm13 = vcmp.ne.s16.totalorder %v24816_v11, 0 }
 0x32d   : > { %v4136_v44 = vadd.f32 %v25591_v28, %v4006_v34  ;;  %v20384_v8 = vpop.f32.mrb[14].mxu0  ;;  %20421 = vmatprep.mubr.bf16.mxu1 %v25640_v12  ;;  %v4208_v4 = vsel %vm29653_vm11, %v25636_v38, 0  ;;  %v4294_v22 = vshrl.u32 %v4209_v20, 16  ;;  %v4297_v32 = vshll.u32 %v4209_v20, 16 }
 0x32e   : > { %v4139_v26 = vadd.f32 %v20384_v8, %v25591_v28  ;;  %v4009_v61 = vpop.f32.mrb[15].mxu0  ;;  %20422 = vmatmul.mubr.bf16.vlgmr.msra.gmra.mrb[0].mxu1 %v25651_v6  ;;  %v4286_v57 = vshrl.u32 %v4208_v4, 16  ;;  %v4170_v15 = vmax.f32 %v4138_v5, 0.0  ;;  %v4289_v50 = vshll.u32 %v4208_v4, 16  ;;  %v24047_v4 = vld [vmem:[%s29539_s6 + $0x18] sm:$0xff]  }
 0x32f   : > { %v4137_v23 = vadd.f32 %v25591_v28, %v4009_v61  ;;  %20450 = vmatpush3.bf16.msra.mxu1 %v25585_v56  ;;  %v4296_v37 = vrot.slane %v4294_v22, 7  ;;  %v4168_v19 = vmax.f32 %v4136_v44, 0.0 }
 0x330   : > { %v4171_v14 = vmax.f32 %v4139_v26, 0.0  ;;  %20451 = vmatprep.subr.bf16.mxu1 %v24045_v59  ;;  %v4288_v24 = vrot.slane %v4286_v57, 7 }
 0x331   : > { %v4169_v40 = vmax.f32 %v4137_v23, 0.0  ;;  %v4299_v41 = vor.u32 %v4297_v32, %v4296_v37 }
 0x332   : > { %v25663_v2 = vpack.c.bf16 %v4171_v14, %v4170_v15  ;;  %v4291_v42 = vor.u32 %v4289_v50, %v4288_v24 }
 0x333   : > { %v25665_v34 = vpack.c.bf16 %v4169_v40, %v4168_v19  ;;  %v20387_v56 = vpop.f32.mrb[16].mxu0  ;;  %20452 = vmatpush3.bf16.msra.mxu1 %v24045_v59  ;;  %v25680_v59 = vsel %vm1585_vm4, %v4288_v24, %v4299_v41 }
 0x334   : > { %v4142_v5 = vadd.f32 %v20387_v56, %v25591_v28  ;;  %v4022_v20 = vpop.f32.mrb[17].mxu0  ;;  %v25669_v8 = vsel %vm1585_vm4, %v4280_v54, %v4291_v42  ;;  %20453 = vmatprep.subr.bf16.mxu1 %v24046_v1  ;;  %v4211_v44 = vsel %vm29793_vm5, %v25663_v2, 0  ;;  %v24048_v42 = vld [vmem:[%s29539_s6 + $0x20] sm:$0xff]   ;;  %vm29795_vm5 = vcmp.ne.s16.totalorder %v24867_v52, 0 }
 0x335   : > { %v4140_v22 = vadd.f32 %v25591_v28, %v4022_v20  ;;  %v20388_v26 = vpop.f32.mrb[18].mxu0  ;;  %20425 = vmatprep.mubr.bf16.mxu1 %v25669_v8  ;;  %v4210_v54 = vsel %vm29794_vm13, %v25665_v34, 0  ;;  %v4310_v61 = vshrl.u32 %v4211_v44, 16  ;;  %v4313_v50 = vshll.u32 %v4211_v44, 16 }
 0x336   : > { %v4143_v57 = vadd.f32 %v20388_v26, %v25591_v28  ;;  %v4025_v23 = vpop.f32.mrb[19].mxu0  ;;  %20426 = vmatmul.mubr.bf16.gmra.mrb[4].mxu1 %v25680_v59  ;;  %v4302_v32 = vshrl.u32 %v4210_v54, 16  ;;  %v4174_v19 = vmax.f32 %v4142_v5, 0.0  ;;  %v4305_v41 = vshll.u32 %v4210_v54, 16 }
 0x337   : > { %v4141_v15 = vadd.f32 %v25591_v28, %v4025_v23  ;;  %20454 = vmatpush3.bf16.msra.mxu1 %v24046_v1  ;;  %v4312_v14 = vrot.slane %v4310_v61, 7  ;;  %v4172_v56 = vmax.f32 %v4140_v22, 0.0  ;;  %v24049_v22 = vld [vmem:[%s29539_s6 + $0x28] sm:$0xff]   ;;  %vm29796_vm13 = vcmp.ne.s16.totalorder %v24850_v0, 0 }
 0x338   : > { %v4175_v40 = vmax.f32 %v4143_v57, 0.0  ;;  %v4304_v24 = vrot.slane %v4302_v32, 7  ;;  %20455 = vmatprep.subr.bf16.mxu1 %v24047_v4 }
 0x339   : > { %v4173_v20 = vmax.f32 %v4141_v15, 0.0  ;;  %v4315_v26 = vor.u32 %v4313_v50, %v4312_v14 }
 0x33a   : > { %v25691_v49 = vpack.c.bf16 %v4175_v40, %v4174_v19  ;;  %v4307_v11 = vor.u32 %v4305_v41, %v4304_v24 }
 0x33b   : > { %v25693_v58 = vpack.c.bf16 %v4173_v20, %v4172_v56  ;;  %v20391_v1 = vpop.f32.mrb[20].mxu0  ;;  %20456 = vmatpush3.bf16.msra.mxu1 %v24047_v4  ;;  %v25708_v4 = vsel %vm1585_vm4, %v4304_v24, %v4315_v26 }
 0x33c   : > { %v4146_v5 = vadd.f32 %v20391_v1, %v25591_v28  ;;  %v4038_v44 = vpop.f32.mrb[21].mxu0  ;;  %v25697_v54 = vsel %vm1585_vm4, %v4296_v37, %v4307_v11  ;;  %v4213_v61 = vsel %vm29795_vm5, %v25691_v49, 0  ;;  %20457 = vmatprep.subr.bf16.mxu1 %v24048_v42  ;;  %v24050_v1 = vld [vmem:[%s29539_s6 + $0x30] sm:$0xff]  }
 0x33d   : > { %v4144_v57 = vadd.f32 %v25591_v28, %v4038_v44  ;;  %v20392_v23 = vpop.f32.mrb[22].mxu0  ;;  %20429 = vmatprep.mubr.bf16.mxu1 %v25697_v54  ;;  %v4212_v11 = vsel %vm29796_vm13, %v25693_v58, 0  ;;  %v4326_v37 = vshrl.u32 %v4213_v61, 16  ;;  %v4329_v41 = vshll.u32 %v4213_v61, 16 }
 0x33e   : > { %v4147_v32 = vadd.f32 %v20392_v23, %v25591_v28  ;;  %v4041_v15 = vpop.f32.mrb[23].mxu0  ;;  %20430 = vmatmul.mubr.bf16.gmra.mrb[8].mxu1 %v25708_v4  ;;  %v4318_v50 = vshrl.u32 %v4212_v11, 16  ;;  %v4178_v56 = vmax.f32 %v4146_v5, 0.0  ;;  %v4321_v26 = vshll.u32 %v4212_v11, 16  ;;  %v29797_v11 = vld [vmem:[#allocation21_spill] sm:$0xff] }
 0x33f   : > { %v4145_v19 = vadd.f32 %v25591_v28, %v4041_v15  ;;  %v4328_v40 = vrot.slane %v4326_v37, 7  ;;  %20458 = vmatpush3.bf16.msra.mxu1 %v24048_v42  ;;  %v4176_v44 = vmax.f32 %v4144_v57, 0.0  ;;  %vm29798_vm5 = vcmp.ne.s16.totalorder %v29797_v11, 0  ;;  %v24051_v57 = vld [vmem:[%s29539_s6 + $0x38] sm:$0xff]   ;;  %v24052_v11 = vld [vmem:[%s29539_s6 + $0x180] sm:$0xff]  }
 0x340   : > { %v4179_v20 = vmax.f32 %v4147_v32, 0.0  ;;  %v4320_v24 = vrot.slane %v4318_v50, 7  ;;  %20459 = vmatprep.subr.bf16.mxu1 %v24049_v22 }
 0x341   : > { %v4177_v23 = vmax.f32 %v4145_v19, 0.0  ;;  %v4331_v52 = vor.u32 %v4329_v41, %v4328_v40 }
 0x342   : > { %v25719_v0 = vpack.c.bf16 %v4179_v20, %v4178_v56  ;;  %v4323_v62 = vor.u32 %v4321_v26, %v4320_v24 }
 0x343   : > { %v25721_v46 = vpack.c.bf16 %v4177_v23, %v4176_v44  ;;  %v20395_v37 = vpop.f32.mrb[24].mxu0  ;;  %20460 = vmatpush3.bf16.msra.mxu1 %v24049_v22  ;;  %v25736_v22 = vsel %vm1585_vm4, %v4320_v24, %v4331_v52 }
 0x344   : > { %v4150_v42 = vadd.f32 %v20395_v37, %v25591_v28  ;;  %v4054_v5 = vpop.f32.mrb[25].mxu0  ;;  %v25725_v61 = vsel %vm1585_vm4, %v4312_v14, %v4323_v62  ;;  %v4215_v32 = vsel %vm29798_vm5, %v25719_v0, 0  ;;  %20461 = vmatprep.subr.bf16.mxu1 %v24050_v1  ;;  %v29799_v62 = vld [vmem:[#allocation20_spill] sm:$0xff]  ;;  %vm29801_vm5 = vcmp.ne.s16.totalorder %v24945_v31, 0 }
 0x345   : > { %v4148_v15 = vadd.f32 %v25591_v28, %v4054_v5  ;;  %v20396_v50 = vpop.f32.mrb[26].mxu0  ;;  %20433 = vmatprep.mubr.bf16.mxu1 %v25725_v61  ;;  %vm29800_vm13 = vcmp.ne.s16.totalorder %v29799_v62, 0  ;;  %v4342_v19 = vshrl.u32 %v4215_v32, 16  ;;  %v4345_v23 = vshll.u32 %v4215_v32, 16 }
 0x346   : > { %v4214_v14 = vsel %vm29800_vm13, %v25721_v46, 0  ;;  %v4151_v41 = vadd.f32 %v20396_v50, %v25591_v28  ;;  %v4057_v56 = vpop.f32.mrb[27].mxu0  ;;  %20434 = vmatmul.mubr.bf16.gmra.mrb[12].mxu1 %v25736_v22  ;;  %v4182_v37 = vmax.f32 %v4150_v42, 0.0 }
 0x347   : > { %v4334_v20 = vshrl.u32 %v4214_v14, 16  ;;  %v4149_v26 = vadd.f32 %v25591_v28, %v4057_v56  ;;  %v4344_v44 = vrot.slane %v4342_v19, 7  ;;  %20462 = vmatpush3.bf16.msra.mxu1 %v24050_v1  ;;  %v4337_v24 = vshll.u32 %v4214_v14, 16 }
 0x348   : > { %v4183_v5 = vmax.f32 %v4151_v41, 0.0  ;;  %20463 = vmatprep.subr.bf16.mxu1 %v24051_v57  ;;  %v4180_v62 = vmax.f32 %v4148_v15, 0.0 }
 0x349   : > { %v4336_v52 = vrot.slane %v4334_v20, 7  ;;  %v4181_v50 = vmax.f32 %v4149_v26, 0.0  ;;  %v4347_v35 = vor.u32 %v4345_v23, %v4344_v44 }
 0x34a   : > { %v25747_v25 = vpack.c.bf16 %v4183_v5, %v4182_v37 }
 0x34b   : > { %v4339_v29 = vor.u32 %v4337_v24, %v4336_v52  ;;  %v25749_v7 = vpack.c.bf16 %v4181_v50, %v4180_v62  ;;  %v20399_v19 = vpop.f32.mrb[28].mxu0  ;;  %20464 = vmatpush3.bf16.msra.mxu1 %v24051_v57  ;;  %v25761_v62 = vsel %vm1585_vm4, %v4336_v52, %v4347_v35  ;;  %v29802_v57 = vld [vmem:[#allocation22_spill] sm:$0xff] }
 0x34c   : > { %v4154_v1 = vadd.f32 %v20399_v19, %v25591_v28  ;;  %v4070_v42 = vpop.f32.mrb[29].mxu0  ;;  %v4217_v14 = vsel %vm29801_vm5, %v25747_v25, 0  ;;  %20497 = vmatprep.subr.bf16.mxu1 %v24052_v11  ;;  %vm29803_vm13 = vcmp.ne.s16.totalorder %v29802_v57, 0  ;;  %vm29804_vm5 = vcmp.ne.s16.totalorder %v24968_v17, 0 }
 0x34d   : > { %v25753_v32 = vsel %vm1585_vm4, %v4328_v40, %v4339_v29  ;;  %v4152_v15 = vadd.f32 %v25591_v28, %v4070_v42  ;;  %v20400_v41 = vpop.f32.mrb[30].mxu0  ;;  %v4216_v56 = vsel %vm29803_vm13, %v25749_v7, 0  ;;  %v4358_v20 = vshrl.u32 %v4217_v14, 16 }
 0x34e   : > { %20437 = vmatprep.mubr.bf16.mxu1 %v25753_v32  ;;  %v4155_v29 = vadd.f32 %v20400_v41, %v25591_v28  ;;  %v4073_v40 = vpop.f32.mrb[31].mxu0  ;;  %v4350_v26 = vshrl.u32 %v4216_v56, 16  ;;  %v4361_v5 = vshll.u32 %v4217_v14, 16  ;;  %v4186_v24 = vmax.f32 %v4154_v1, 0.0 }
 0x34f   : > { %20438 = vmatmul.mubr.bf16.gmra.mrb[16].mxu1 %v25761_v62  ;;  %v4153_v23 = vadd.f32 %v25591_v28, %v4073_v40  ;;  %v4360_v37 = vrot.slane %v4358_v20, 7  ;;  %v4353_v35 = vshll.u32 %v4216_v56, 16  ;;  %v4184_v52 = vmax.f32 %v4152_v15, 0.0 }
 0x350   : > { %v4187_v50 = vmax.f32 %v4155_v29, 0.0  ;;  %v4352_v19 = vrot.slane %v4350_v26, 7  ;;  %vm29805_vm13 = vcmp.ne.s16.totalorder %v24957_v27, 0 }
 0x351   : > { %v4185_v42 = vmax.f32 %v4153_v23, 0.0  ;;  %v4363_v31 = vor.u32 %v4361_v5, %v4360_v37  ;;  %v24053_v5 = vld [vmem:[%s29539_s6 + $0x188] sm:$0xff]  }
 0x352   : > { %v25769_v57 = vpack.c.bf16 %v4187_v50, %v4186_v24  ;;  %v4355_v51 = vor.u32 %v4353_v35, %v4352_v19  ;;  %v24055_v24 = vld [vmem:[%s29539_s6 + $0x198] sm:$0xff]   ;;  %v24058_v50 = vld [vmem:[%s29539_s6 + $0x1b0] sm:$0xff]   ;;  %v24060_v35 = vld [vmem:[%s29539_s6 + $0x40] sm:$0xff]  }
 0x353   : > { %v25771_v13 = vpack.c.bf16 %v4185_v42, %v4184_v52  ;;  %v25781_v1 = vsel %vm1585_vm4, %v4352_v19, %v4363_v31  ;;  %v24059_v19 = vld [vmem:[%s29539_s6 + $0x1b8] sm:$0xff]   ;;  %v24061_v52 = vld [vmem:[%s29539_s6 + $0x48] sm:$0xff]   ;;  %v24062_v42 = vld [vmem:[%s29539_s6 + $0x50] sm:$0xff]  }
 0x354   : > { %v25774_v41 = vsel %vm1585_vm4, %v4344_v44, %v4355_v51  ;;  %v4219_v28 = vsel %vm29804_vm5, %v25769_v57, 0 }
 0x355   : > { %20441 = vmatprep.mubr.bf16.mxu1 %v25774_v41  ;;  %v4218_v14 = vsel %vm29805_vm13, %v25771_v13, 0  ;;  %v4374_v15 = vshrl.u32 %v4219_v28, 16  ;;  %v4377_v51 = vshll.u32 %v4219_v28, 16  ;;  %v24074_v28 = vld [vmem:[%s29539_s6 + $0x130] sm:$0xff]  }
 0x356   : > { %v4366_v56 = vshrl.u32 %v4218_v14, 16  ;;  %v4369_v29 = vshll.u32 %v4218_v14, 16 }
 0x357   : > { %20442 = vmatmul.mubr.bf16.gmra.mrb[20].mxu1 %v25781_v1  ;;  %v25787_v20 = vrot.slane %v4374_v15, 7 }
 0x358   : > { %v4368_v44 = vrot.slane %v4366_v56, 7 }
 0x359   : > { %v4379_v40 = vor.u32 %v4377_v51, %v25787_v20  ;;  %v24076_v51 = vld [vmem:[%s29539_s6 + $0x1c0] sm:$0xff]  }
 0x35a   : > { %v4371_v26 = vor.u32 %v4369_v29, %v4368_v44  ;;  %v24078_v29 = vld [vmem:[%s29539_s6 + $0x1d0] sm:$0xff]  }
 0x35b   : > { %v25795_v31 = vsel %vm1585_vm4, %v4368_v44, %v4379_v40  ;;  %v24077_v44 = vld [vmem:[%s29539_s6 + $0x1c8] sm:$0xff]   ;;  %v24079_v40 = vld [vmem:[%s29539_s6 + $0x1d8] sm:$0xff]  }
 0x35c   : > { %v25791_v23 = vsel %vm1585_vm4, %v4360_v37, %v4371_v26  ;;  %v24054_v37 = vld [vmem:[%s29539_s6 + $0x190] sm:$0xff]   ;;  %v24080_v26 = vld [vmem:[%s29539_s6 + $0x1e0] sm:$0xff]  }
 0x35d   : > { %20445 = vmatprep.mubr.bf16.mxu1 %v25791_v23 }
 0x35f   : > { %20446 = vmatmul.mubr.bf16.gmra.mrb[24].mxu1 %v25795_v31 }
 0x360   : > { %20465 = vmatprep.mubr.bf16.mxu1 %v24589_v9 }
 0x367   : > { %20466 = vmatmul.mubr.bf16.vlgmr.msra.gmra.mrb[28].mxu1 %v25618_v43  ;;  %v24056_v43 = vld [vmem:[%s29539_s6 + $0x1a0] sm:$0xff]  }
 0x368   : > { %20498 = vmatpush3.bf16.msra.mxu1 %v24052_v11  ;;  %20469 = vmatprep.mubr.bf16.mxu1 %v25626_v55  ;;  %v24057_v11 = vld [vmem:[%s29539_s6 + $0x1a8] sm:$0xff]  }
 0x369   : > { %20499 = vmatprep.subr.bf16.mxu1 %v24053_v5 }
 0x36c   : > { %20500 = vmatpush3.bf16.msra.mxu1 %v24053_v5  ;;  %v24083_v5 = vld [vmem:[%s29539_s6 + $0x1f8] sm:$0xff]  }
 0x36d   : > { %20501 = vmatprep.subr.bf16.mxu1 %v24054_v37 }
 0x36f   : > { %20470 = vmatmul.mubr.bf16.gmra.mrb[0].mxu1 %v25640_v12 }
 0x370   : > { %20473 = vmatprep.mubr.bf16.mxu1 %v25651_v6  ;;  %20502 = vmatpush3.bf16.msra.mxu1 %v24054_v37  ;;  %v24084_v37 = vld [vmem:[%s29539_s6 + $0x80] sm:$0xff]  }
 0x371   : > { %20503 = vmatprep.subr.bf16.mxu1 %v24055_v24 }
 0x374   : > { %20504 = vmatpush3.bf16.msra.mxu1 %v24055_v24  ;;  %v24085_v24 = vld [vmem:[%s29539_s6 + $0x88] sm:$0xff]  }
 0x375   : > { %20505 = vmatprep.subr.bf16.mxu1 %v24056_v43 }
 0x377   : > { %20474 = vmatmul.mubr.bf16.gmra.mrb[4].mxu1 %v25669_v8 }
 0x378   : > { %20477 = vmatprep.mubr.bf16.mxu1 %v25680_v59  ;;  %20506 = vmatpush3.bf16.msra.mxu1 %v24056_v43  ;;  %v24086_v43 = vld [vmem:[%s29539_s6 + $0x90] sm:$0xff]  }
 0x379   : > { %20507 = vmatprep.subr.bf16.mxu1 %v24057_v11 }
 0x37c   : > { %20508 = vmatpush3.bf16.msra.mxu1 %v24057_v11  ;;  %v24087_v11 = vld [vmem:[%s29539_s6 + $0x98] sm:$0xff]  }
 0x37d   : > { %20509 = vmatprep.subr.bf16.mxu1 %v24058_v50 }
 0x37f   : > { %20478 = vmatmul.mubr.bf16.gmra.mrb[8].mxu1 %v25697_v54 }
 0x380   : > { %20481 = vmatprep.mubr.bf16.mxu1 %v25708_v4  ;;  %20510 = vmatpush3.bf16.msra.mxu1 %v24058_v50  ;;  %v24088_v50 = vld [vmem:[%s29539_s6 + $0xa0] sm:$0xff]  }
 0x381   : > { %20511 = vmatprep.subr.bf16.mxu1 %v24059_v19 }
 0x384   : > { %20512 = vmatpush3.bf16.msra.mxu1 %v24059_v19  ;;  %v24089_v19 = vld [vmem:[%s29539_s6 + $0xa8] sm:$0xff]  }
 0x385   : > { %20545 = vmatprep.subr.bf16.mxu1 %v24060_v35 }
 0x387   : > { %20482 = vmatmul.mubr.bf16.gmra.mrb[12].mxu1 %v25725_v61 }
 0x388   : > { %20485 = vmatprep.mubr.bf16.mxu1 %v25736_v22 }
 0x38f   : > { %20486 = vmatmul.mubr.bf16.gmra.mrb[16].mxu1 %v25753_v32 }
 0x390   : > { %20489 = vmatprep.mubr.bf16.mxu1 %v25761_v62 }
 0x397   : > { %20490 = vmatmul.mubr.bf16.gmra.mrb[20].mxu1 %v25774_v41 }
 0x398   : > { %20493 = vmatprep.mubr.bf16.mxu1 %v25781_v1 }
 0x39f   : > { %20494 = vmatmul.mubr.bf16.gmra.mrb[24].mxu1 %v25791_v23 }
 0x3a0   : > { %20513 = vmatprep.mubr.bf16.mxu1 %v25626_v55  ;;  %v24063_v55 = vld [vmem:[%s29539_s6 + $0x58] sm:$0xff]  }
 0x3a7   : > { %20514 = vmatmul.mubr.bf16.vlgmr.msra.gmra.mrb[28].mxu1 %v25640_v12  ;;  %v24064_v12 = vld [vmem:[%s29539_s6 + $0x60] sm:$0xff]  }
 0x3a8   : > { %20546 = vmatpush3.bf16.msra.mxu1 %v24060_v35  ;;  %20517 = vmatprep.mubr.bf16.mxu1 %v25651_v6  ;;  %v24065_v6 = vld [vmem:[%s29539_s6 + $0x68] sm:$0xff]   ;;  %v24090_v35 = vld [vmem:[%s29539_s6 + $0xb0] sm:$0xff]  }
 0x3a9   : > { %20547 = vmatprep.subr.bf16.mxu1 %v24061_v52 }
 0x3ac   : > { %20548 = vmatpush3.bf16.msra.mxu1 %v24061_v52  ;;  %v24091_v52 = vld [vmem:[%s29539_s6 + $0xb8] sm:$0xff]  }
 0x3ad   : > { %20549 = vmatprep.subr.bf16.mxu1 %v24062_v42 }
 0x3af   : > { %20518 = vmatmul.mubr.bf16.gmra.mrb[0].mxu1 %v25669_v8  ;;  %v24066_v8 = vld [vmem:[%s29539_s6 + $0x70] sm:$0xff]  }
 0x3b0   : > { %20521 = vmatprep.mubr.bf16.mxu1 %v25680_v59  ;;  %20550 = vmatpush3.bf16.msra.mxu1 %v24062_v42  ;;  %v24067_v59 = vld [vmem:[%s29539_s6 + $0x78] sm:$0xff]   ;;  %v24092_v42 = vld [vmem:[%s29539_s6 + $0x140] sm:$0xff]  }
 0x3b1   : > { %20551 = vmatprep.subr.bf16.mxu1 %v24063_v55 }
 0x3b4   : > { %20552 = vmatpush3.bf16.msra.mxu1 %v24063_v55  ;;  %v5850_v55 = vsel %vm29618_vm1, %v25599_v36, 0  ;;  %vm29816_vm1 = vcmp.ne.s16.totalorder %v25319_v21, 0 }
 0x3b5   : > { %20553 = vmatprep.subr.bf16.mxu1 %v24064_v12 }
 0x3b7   : > { %20522 = vmatmul.mubr.bf16.gmra.mrb[4].mxu1 %v25697_v54  ;;  %v24068_v54 = vld [vmem:[%s29539_s6 + $0x100] sm:$0xff]  }
 0x3b8   : > { %20525 = vmatprep.mubr.bf16.mxu1 %v25708_v4  ;;  %20554 = vmatpush3.bf16.msra.mxu1 %v24064_v12  ;;  %v4833_v4 = vsel %vm1585_vm4, %v25787_v20, %v24589_v9  ;;  %v24075_v20 = vld [vmem:[%s29539_s6 + $0x138] sm:$0xff]   ;;  %v5884_v12 = vshll.u32 %v5850_v55, 16 }
 0x3b9   : > { %20555 = vmatprep.subr.bf16.mxu1 %v24065_v6 }
 0x3bc   : > { %20556 = vmatpush3.bf16.msra.mxu1 %v24065_v6  ;;  %v29806_v6 = vld [vmem:[#allocation27_spill] sm:$0xff] }
 0x3bd   : > { %20557 = vmatprep.subr.bf16.mxu1 %v24066_v8  ;;  %vm29807_vm5 = vcmp.ne.s16.totalorder %v29806_v6, 0 }
 0x3bf   : > { %20526 = vmatmul.mubr.bf16.gmra.mrb[8].mxu1 %v25725_v61  ;;  %v24069_v61 = vld [vmem:[%s29539_s6 + $0x108] sm:$0xff]  }
 0x3c0   : > { %20529 = vmatprep.mubr.bf16.mxu1 %v25736_v22  ;;  %20558 = vmatpush3.bf16.msra.mxu1 %v24066_v8  ;;  %v24070_v22 = vld [vmem:[%s29539_s6 + $0x110] sm:$0xff]   ;;  %v5851_v8 = vsel %vm29807_vm5, %v25597_v30, 0 }
 0x3c1   : > { %20559 = vmatprep.subr.bf16.mxu1 %v24067_v59 }
 0x3c4   : > { %20560 = vmatpush3.bf16.msra.mxu1 %v24067_v59  ;;  %v5886_v59 = vrot.slane %v5884_v12, 1  ;;  %v24095_v12 = vld [vmem:[%s29539_s6 + $0x158] sm:$0xff]  }
 0x3c5   : > { %20593 = vmatprep.subr.bf16.mxu1 %v24068_v54 }
 0x3c7   : > { %20530 = vmatmul.mubr.bf16.gmra.mrb[12].mxu1 %v25753_v32  ;;  %v24071_v32 = vld [vmem:[%s29539_s6 + $0x118] sm:$0xff]  }
 0x3c8   : > { %20533 = vmatprep.mubr.bf16.mxu1 %v25761_v62  ;;  %v24072_v62 = vld [vmem:[%s29539_s6 + $0x120] sm:$0xff]  }
 0x3cf   : > { %20534 = vmatmul.mubr.bf16.gmra.mrb[16].mxu1 %v25774_v41  ;;  %v24073_v41 = vld [vmem:[%s29539_s6 + $0x128] sm:$0xff]  }
 0x3d0   : > { %20537 = vmatprep.mubr.bf16.mxu1 %v25781_v1 }
 0x3d7   : > { %20538 = vmatmul.mubr.bf16.gmra.mrb[20].mxu1 %v25791_v23  ;;  %v24081_v23 = vld [vmem:[%s29539_s6 + $0x1e8] sm:$0xff]  }
 0x3d8   : > { %20541 = vmatprep.mubr.bf16.mxu1 %v25795_v31  ;;  %v24082_v31 = vld [vmem:[%s29539_s6 + $0x1f0] sm:$0xff]  }
 0x3df   : > { %20542 = vmatmul.mubr.bf16.gmra.mrb[24].mxu1 %v4833_v4 }
 0x3e0   : > { %20561 = vmatprep.mubr.bf16.mxu1 %v29751_v18 }
 0x3e7   : > { %20562 = vmatmul.mubr.bf16.vlgmr.msra.gmra.mrb[28].mxu1 %v25599_v36 }
 0x3e8   : > { %20594 = vmatpush3.bf16.msra.mxu1 %v24068_v54  ;;  %20565 = vmatprep.mubr.bf16.mxu1 %v25597_v30  ;;  %v29808_v54 = vld [vmem:[#allocation28_spill] sm:$0xff] }
 0x3e9   : > { %20595 = vmatprep.subr.bf16.mxu1 %v24069_v61  ;;  %vm29809_vm13 = vcmp.ne.s16.totalorder %v29808_v54, 0 }
 0x3ea   : > { %v5852_v4 = vsel %vm29809_vm13, %v25613_v47, 0 }
 0x3ec   : > { %20596 = vmatpush3.bf16.msra.mxu1 %v24069_v61  ;;  %v5892_v61 = vshll.u32 %v5851_v8, 16 }
 0x3ed   : > { %20597 = vmatprep.subr.bf16.mxu1 %v24070_v22 }
 0x3ef   : > { %20566 = vmatmul.mubr.bf16.gmra.mrb[0].mxu1 %v25613_v47 }
 0x3f0   : > { %20569 = vmatprep.mubr.bf16.mxu1 %v25611_v63  ;;  %20598 = vmatpush3.bf16.msra.mxu1 %v24070_v22  ;;  %v5900_v22 = vshll.u32 %v5852_v4, 16 }
 0x3f1   : > { %20599 = vmatprep.subr.bf16.mxu1 %v24071_v32 }
 0x3f4   : > { %20600 = vmatpush3.bf16.msra.mxu1 %v24071_v32  ;;  %v5888_v32 = vshrl.u32 %v5850_v55, 16 }
 0x3f5   : > { %20601 = vmatprep.subr.bf16.mxu1 %v24072_v62 }
 0x3f7   : > { %20570 = vmatmul.mubr.bf16.gmra.mrb[4].mxu1 %v25636_v38 }
 0x3f8   : > { %20573 = vmatprep.mubr.bf16.mxu1 %v25634_v39  ;;  %20602 = vmatpush3.bf16.msra.mxu1 %v24072_v62  ;;  %v5894_v62 = vrot.slane %v5892_v61, 1  ;;  %v603_v61 = vld [vmem:[%s26040_s27 + $0x28] sm:$0xff] }
 0x3f9   : > { %20603 = vmatprep.subr.bf16.mxu1 %v24073_v41  ;;  %v25905_v1 = vpop.f32.mrb[32].mxu0 }
 0x3fa   : > { %v25907_v14 = vpop.f32.mrb[33].mxu0 }
 0x3fb   : > { %v25909_v15 = vpop.f32.mrb[34].mxu0 }
 0x3fc   : > { %20604 = vmatpush3.bf16.msra.mxu1 %v24073_v41  ;;  %v25911_v56 = vpop.f32.mrb[35].mxu0  ;;  %v5890_v41 = vor.u32 %v5888_v32, %v5886_v59 }
 0x3fd   : > { %20605 = vmatprep.subr.bf16.mxu1 %v24074_v28 }
 0x3ff   : > { %20574 = vmatmul.mubr.bf16.gmra.mrb[8].mxu1 %v25665_v34 }
 0x400   : > { %20577 = vmatprep.mubr.bf16.mxu1 %v25663_v2  ;;  %20606 = vmatpush3.bf16.msra.mxu1 %v24074_v28  ;;  %v29810_v28 = vld [vmem:[#allocation29_spill] sm:$0xff] }
 0x401   : > { %20607 = vmatprep.subr.bf16.mxu1 %v24075_v20  ;;  %vm29811_vm5 = vcmp.ne.s16.totalorder %v29810_v28, 0 }
 0x404   : > { %20608 = vmatpush3.bf16.msra.mxu1 %v24075_v20  ;;  %v5896_v20 = vshrl.u32 %v5851_v8, 16 }
 0x405   : > { %20641 = vmatprep.subr.bf16.mxu1 %v24076_v51 }
 0x407   : > { %20578 = vmatmul.mubr.bf16.gmra.mrb[12].mxu1 %v25693_v58 }
 0x408   : > { %20581 = vmatprep.mubr.bf16.mxu1 %v25691_v49 }
 0x40f   : > { %20582 = vmatmul.mubr.bf16.gmra.mrb[16].mxu1 %v25721_v46 }
 0x410   : > { %20585 = vmatprep.mubr.bf16.mxu1 %v25719_v0 }
 0x417   : > { %20586 = vmatmul.mubr.bf16.gmra.mrb[20].mxu1 %v25749_v7 }
 0x418   : > { %20589 = vmatprep.mubr.bf16.mxu1 %v25747_v25 }
 0x41f   : > { %20590 = vmatmul.mubr.bf16.gmra.mrb[24].mxu1 %v25771_v13 }
 0x420   : > { %20609 = vmatprep.mubr.bf16.mxu1 %v25599_v36  ;;  %v5887_v36 = vsel %vm1417_vm6, %v25246_v10, %v5886_v59 }
 0x427   : > { %20610 = vmatmul.mubr.bf16.vlgmr.msra.gmra.mrb[28].mxu1 %v25597_v30 }
 0x428   : > { %20642 = vmatpush3.bf16.msra.mxu1 %v24076_v51  ;;  %20613 = vmatprep.mubr.bf16.mxu1 %v25613_v47  ;;  %v5902_v51 = vrot.slane %v5900_v22, 1  ;;  %v24096_v22 = vld [vmem:[%s29539_s6 + $0x160] sm:$0xff]  }
 0x429   : > { %20643 = vmatprep.subr.bf16.mxu1 %v24077_v44 }
 0x42c   : > { %20644 = vmatpush3.bf16.msra.mxu1 %v24077_v44 }
 0x42d   : > { %20645 = vmatprep.subr.bf16.mxu1 %v24078_v29 }
 0x42f   : > { %20614 = vmatmul.mubr.bf16.gmra.mrb[0].mxu1 %v25611_v63 }
 0x430   : > { %20617 = vmatprep.mubr.bf16.mxu1 %v25636_v38  ;;  %20646 = vmatpush3.bf16.msra.mxu1 %v24078_v29  ;;  %v5898_v29 = vor.u32 %v5896_v20, %v5894_v62 }
 0x431   : > { %20647 = vmatprep.subr.bf16.mxu1 %v24079_v40 }
 0x434   : > { %20648 = vmatpush3.bf16.msra.mxu1 %v24079_v40  ;;  %v24093_v40 = vld [vmem:[%s29539_s6 + $0x148] sm:$0xff]  }
 0x435   : > { %20649 = vmatprep.subr.bf16.mxu1 %v24080_v26 }
 0x437   : > { %20618 = vmatmul.mubr.bf16.gmra.mrb[4].mxu1 %v25634_v39 }
 0x438   : > { %20621 = vmatprep.mubr.bf16.mxu1 %v25665_v34  ;;  %20650 = vmatpush3.bf16.msra.mxu1 %v24080_v26 }
 0x439   : > { %20651 = vmatprep.subr.bf16.mxu1 %v24081_v23 }
 0x43c   : > { %20652 = vmatpush3.bf16.msra.mxu1 %v24081_v23  ;;  %v26029_v23 = vsel %vm1417_vm6, %v5890_v41, %v5894_v62  ;;  %v5857_v41 = vsel %vm3312_vm15, %v25663_v2, 0 }
 0x43d   : > { %20653 = vmatprep.subr.bf16.mxu1 %v24082_v31 }
 0x43f   : > { %20622 = vmatmul.mubr.bf16.gmra.mrb[8].mxu1 %v25663_v2 }
 0x440   : > { %20625 = vmatprep.mubr.bf16.mxu1 %v25693_v58  ;;  %20654 = vmatpush3.bf16.msra.mxu1 %v24082_v31  ;;  %v26033_v31 = vsel %vm1417_vm6, %v5898_v29, %v5902_v51 }
 0x441   : > { %20655 = vmatprep.subr.bf16.mxu1 %v24083_v5 }
 0x444   : > { %20656 = vmatpush3.bf16.msra.mxu1 %v24083_v5  ;;  %v5904_v5 = vshrl.u32 %v5852_v4, 16 }
 0x445   : > { %20689 = vmatprep.subr.bf16.mxu1 %v24084_v37 }
 0x447   : > { %20626 = vmatmul.mubr.bf16.gmra.mrb[12].mxu1 %v25691_v49 }
 0x448   : > { %20629 = vmatprep.mubr.bf16.mxu1 %v25721_v46 }
 0x44f   : > { %20630 = vmatmul.mubr.bf16.gmra.mrb[16].mxu1 %v25719_v0 }
 0x450   : > { %20633 = vmatprep.mubr.bf16.mxu1 %v25749_v7 }
 0x457   : > { %20634 = vmatmul.mubr.bf16.gmra.mrb[20].mxu1 %v25747_v25 }
 0x458   : > { %20637 = vmatprep.mubr.bf16.mxu1 %v25771_v13 }
 0x45f   : > { %20638 = vmatmul.mubr.bf16.gmra.mrb[24].mxu1 %v25769_v57 }
 0x460   : > { %20657 = vmatprep.mubr.bf16.mxu1 %v25597_v30  ;;  %v5853_v30 = vsel %vm29811_vm5, %v25611_v63, 0  ;;  %vm630_vm5 = vcmask 31744  }
 0x461   : > { %v5908_v26 = vshll.u32 %v5853_v30, 16 }
 0x467   : > { %20658 = vmatmul.mubr.bf16.vlgmr.msra.gmra.mrb[28].mxu1 %v25613_v47  ;;  %v29812_v47 = vld [vmem:[#allocation31_spill] sm:$0xff] }
 0x468   : > { %20690 = vmatpush3.bf16.msra.mxu1 %v24084_v37  ;;  %20661 = vmatprep.mubr.bf16.mxu1 %v25611_v63  ;;  %vm29813_vm13 = vcmp.ne.s16.totalorder %v29812_v47, 0  ;;  %v24094_v37 = vld [vmem:[%s29539_s6 + $0x150] sm:$0xff]  }
 0x469   : > { %20691 = vmatprep.subr.bf16.mxu1 %v24085_v24  ;;  %v5854_v44 = vsel %vm29813_vm13, %v25636_v38, 0  ;;  %vm29815_vm13 = vcmp.ne.s16.totalorder %v25286_v53, 0 }
 0x46a   : > { %v5916_v63 = vshll.u32 %v5854_v44, 16  ;;  %v5920_v4 = vshrl.u32 %v5854_v44, 16  ;;  %v5858_v44 = vsel %vm3313_vm12, %v25693_v58, 0 }
 0x46c   : > { %20692 = vmatpush3.bf16.msra.mxu1 %v24085_v24  ;;  %v600_v24 = vld [vmem:[%s26040_s27 + $0x10] sm:$0xff] }
 0x46d   : > { %20693 = vmatprep.subr.bf16.mxu1 %v24086_v43 }
 0x46f   : > { %20662 = vmatmul.mubr.bf16.gmra.mrb[0].mxu1 %v25636_v38  ;;  %v5910_v38 = vrot.slane %v5908_v26, 1  ;;  %v24097_v26 = vld [vmem:[%s29539_s6 + $0x168] sm:$0xff]  }
 0x470   : > { %20665 = vmatprep.mubr.bf16.mxu1 %v25634_v39  ;;  %20694 = vmatpush3.bf16.msra.mxu1 %v24086_v43  ;;  %v5906_v43 = vor.u32 %v5904_v5, %v5902_v51  ;;  %v646_v51 = vsel %vm630_vm5, %v603_v61, -inf  ;;  %v5948_v5 = vshll.u32 %v5858_v44, 16 }
 0x471   : > { %20695 = vmatprep.subr.bf16.mxu1 %v24087_v11 }
 0x474   : > { %20696 = vmatpush3.bf16.msra.mxu1 %v24087_v11  ;;  %v5855_v11 = vsel %vm29815_vm13, %v25634_v39, 0  ;;  %v26057_v39 = vsel %vm1417_vm6, %v5906_v43, %v5910_v38  ;;  %v24098_v43 = vld [vmem:[%s29539_s6 + $0x170] sm:$0xff]   ;;  %vm29819_vm13 = vcmp.ne.s16.totalorder %v25435_v33, 0 }
 0x475   : > { %20697 = vmatprep.subr.bf16.mxu1 %v24088_v50  ;;  %v5924_v55 = vshll.u32 %v5855_v11, 16 }
 0x477   : > { %20666 = vmatmul.mubr.bf16.gmra.mrb[4].mxu1 %v25665_v34 }
 0x478   : > { %20669 = vmatprep.mubr.bf16.mxu1 %v25663_v2  ;;  %20698 = vmatpush3.bf16.msra.mxu1 %v24088_v50  ;;  %v637_v50 = vsel %vm630_vm5, %v600_v24, -inf }
 0x479   : > { %20699 = vmatprep.subr.bf16.mxu1 %v24089_v19  ;;  %638 = vmax.xlane.f32.xlu1 %v637_v50 }
 0x47c   : > { %20700 = vmatpush3.bf16.msra.mxu1 %v24089_v19  ;;  %v5912_v19 = vshrl.u32 %v5853_v30, 16  ;;  %v5928_v30 = vshrl.u32 %v5855_v11, 16 }
 0x47d   : > { %20701 = vmatprep.subr.bf16.mxu1 %v24090_v35 }
 0x47f   : > { %20670 = vmatmul.mubr.bf16.gmra.mrb[8].mxu1 %v25693_v58 }
 0x480   : > { %20673 = vmatprep.mubr.bf16.mxu1 %v25691_v49  ;;  %20702 = vmatpush3.bf16.msra.mxu1 %v24090_v35  ;;  %v5918_v35 = vrot.slane %v5916_v63, 1 }
 0x481   : > { %20703 = vmatprep.subr.bf16.mxu1 %v24091_v52 }
 0x482   : > { %v5922_v62 = vor.u32 %v5920_v4, %v5918_v35 }
 0x484   : > { %20704 = vmatpush3.bf16.msra.mxu1 %v24091_v52  ;;  %v5856_v52 = vsel %vm29816_vm1, %v25665_v34, 0  ;;  %v601_v34 = vld [vmem:[%s26040_s27 + $0x18] sm:$0xff]  ;;  %vm29818_vm1 = vcmp.ne.s16.totalorder %v25428_v48, 0 }
 0x485   : > { %20737 = vmatprep.subr.bf16.mxu1 %v24092_v42  ;;  %v5932_v59 = vshll.u32 %v5856_v52, 16  ;;  %v640_v32 = vsel %vm630_vm5, %v601_v34, -inf  ;;  %v5936_v58 = vshrl.u32 %v5856_v52, 16  ;;  %v24099_v34 = vld [vmem:[%s29539_s6 + $0x178] sm:$0xff]  }
 0x486   : > { %641 = vmax.xlane.f32.xlu1 %v640_v32  ;;  %v611_v32 = vld [vmem:[%s26040_s27 + $0x68] sm:$0xff] }
 0x487   : > { %20674 = vmatmul.mubr.bf16.gmra.mrb[12].mxu1 %v25721_v46  ;;  %v5934_v20 = vrot.slane %v5932_v59, 1 }
 0x488   : > { %20677 = vmatprep.mubr.bf16.mxu1 %v25719_v0 }
 0x489   : > { %v5938_v50 = vor.u32 %v5936_v58, %v5934_v20 }
 0x48a   : > { %647 = vmax.xlane.f32.xlu1 %v646_v51  ;;  %v5861_v51 = vsel %vm29818_vm1, %v25719_v0, 0 }
 0x48b   : > { %v5972_v58 = vshll.u32 %v5861_v51, 16 }
 0x48f   : > { %20678 = vmatmul.mubr.bf16.gmra.mrb[16].mxu1 %v25749_v7 }
 0x490   : > { %20681 = vmatprep.mubr.bf16.mxu1 %v25747_v25 }
 0x497   : > { %20682 = vmatmul.mubr.bf16.gmra.mrb[20].mxu1 %v25771_v13 }
 0x498   : > { %20685 = vmatprep.mubr.bf16.mxu1 %v25769_v57 }
 0x49f   : > { %20686 = vmatmul.mubr.bf16.gmra.mrb[24].mxu1 %v29751_v18 }
 0x4a0   : > { %20705 = vmatprep.mubr.bf16.mxu1 %v5887_v36  ;;  %v5926_v36 = vrot.slane %v5924_v55, 1 }
 0x4a2   : > { %v5930_v29 = vor.u32 %v5928_v30, %v5926_v36  ;;  %v26081_v2 = vsel %vm1417_vm6, %v5922_v62, %v5926_v36 }
 0x4a4   : > { %v26085_v63 = vsel %vm1417_vm6, %v5930_v29, %v5934_v20 }
 0x4a7   : > { %20706 = vmatmul.mubr.bf16.vlgmr.msra.gmra.mrb[28].mxu1 %v26029_v23 }
 0x4a8   : > { %20738 = vmatpush3.bf16.msra.mxu1 %v24092_v42  ;;  %20709 = vmatprep.mubr.bf16.mxu1 %v26033_v31  ;;  %v5914_v42 = vor.u32 %v5912_v19, %v5910_v38  ;;  %v605_v38 = vld [vmem:[%s26040_s27 + $0x38] sm:$0xff]  ;;  %v5859_v19 = vsel %vm3314_vm14, %v25691_v49, 0 }
 0x4a9   : > { %20739 = vmatprep.subr.bf16.mxu1 %v24093_v40  ;;  %v652_v11 = vsel %vm630_vm5, %v605_v38, -inf  ;;  %v5956_v4 = vshll.u32 %v5859_v19, 16 }
 0x4aa   : > { %v26061_v8 = vsel %vm1417_vm6, %v5914_v42, %v5918_v35  ;;  %653 = vmax.xlane.f32.xlu1 %v652_v11  ;;  %v5944_v35 = vshrl.u32 %v5857_v41, 16  ;;  %v5950_v42 = vrot.slane %v5948_v5, 1  ;;  %v5974_v11 = vrot.slane %v5972_v58, 1 }
 0x4ab   : > { %v5958_v62 = vrot.slane %v5956_v4, 1 }
 0x4ac   : > { %20740 = vmatpush3.bf16.msra.mxu1 %v24093_v40  ;;  %v5940_v40 = vshll.u32 %v5857_v41, 16  ;;  %v26117_v41 = vld [vmem:[%s29539_s6 + $0x200] sm:$0xff]  }
 0x4ad   : > { %20741 = vmatprep.subr.bf16.mxu1 %v24094_v37 }
 0x4ae   : > { %v5942_v24 = vrot.slane %v5940_v40, 1  ;;  %v670_v40 = vsel %vm630_vm5, %v611_v32, -inf }
 0x4af   : > { %20710 = vmatmul.mubr.bf16.gmra.mrb[0].mxu1 %v26057_v39 }
 0x4b0   : > { %20713 = vmatprep.mubr.bf16.mxu1 %v26061_v8  ;;  %20742 = vmatpush3.bf16.msra.mxu1 %v24094_v37  ;;  %v607_v37 = vld [vmem:[%s26040_s27 + $0x48] sm:$0xff]  ;;  %v5946_v59 = vor.u32 %v5944_v35, %v5942_v24  ;;  %v26105_v49 = vsel %vm1417_vm6, %v5938_v50, %v5942_v24 }
 0x4b1   : > { %20743 = vmatprep.subr.bf16.mxu1 %v24095_v12  ;;  %v658_v52 = vsel %vm630_vm5, %v607_v37, -inf  ;;  %v29820_v35 = vld [vmem:[#allocation40_spill] sm:$0xff] }
 0x4b2   : > { %659 = vmax.xlane.f32.xlu1 %v658_v52  ;;  %v26109_v61 = vsel %vm1417_vm6, %v5946_v59, %v5950_v42  ;;  %vm29821_vm1 = vcmp.ne.s16.totalorder %v29820_v35, 0  ;;  %v5976_v52 = vshrl.u32 %v5861_v51, 16  ;;  %v599_v51 = vld [vmem:[%s26040_s27 + $0x8] sm:$0xff] }
 0x4b4   : > { %20744 = vmatpush3.bf16.msra.mxu1 %v24095_v12  ;;  %v5860_v12 = vsel %vm3315_vm0, %v25721_v46, 0  ;;  %v5952_v46 = vshrl.u32 %v5858_v44, 16  ;;  %v5960_v44 = vshrl.u32 %v5859_v19, 16 }
 0x4b5   : > { %20745 = vmatprep.subr.bf16.mxu1 %v24096_v22  ;;  %v5964_v36 = vshll.u32 %v5860_v12, 16  ;;  %v5968_v24 = vshrl.u32 %v5860_v12, 16  ;;  %v622_v12 = vld [vmem:[%s26040_s27 + $0xc0] sm:$0xff] }
 0x4b6   : > { %v5954_v20 = vor.u32 %v5952_v46, %v5950_v42  ;;  %v5962_v5 = vor.u32 %v5960_v44, %v5958_v62  ;;  %v5863_v42 = vsel %vm29821_vm1, %v25747_v25, 0  ;;  %vm29644_vm1 = vcmask 261120  }
 0x4b7   : > { %20714 = vmatmul.mubr.bf16.gmra.mrb[4].mxu1 %v26081_v2  ;;  %v5966_v29 = vrot.slane %v5964_v36, 1  ;;  %v5978_v36 = vor.u32 %v5976_v52, %v5974_v11  ;;  %v5988_v46 = vshll.u32 %v5863_v42, 16  ;;  %v5992_v58 = vshrl.u32 %v5863_v42, 16 }
 0x4b8   : > { %20717 = vmatprep.mubr.bf16.mxu1 %v26085_v63  ;;  %20746 = vmatpush3.bf16.msra.mxu1 %v24096_v22  ;;  %v609_v22 = vld [vmem:[%s26040_s27 + $0x58] sm:$0xff]  ;;  %v26129_v38 = vsel %vm1417_vm6, %v5954_v20, %v5958_v62 }
 0x4b9   : > { %20747 = vmatprep.subr.bf16.mxu1 %v24097_v26  ;;  %v664_v30 = vsel %vm630_vm5, %v609_v22, -inf  ;;  %v26133_v0 = vsel %vm1417_vm6, %v5962_v5, %v5966_v29  ;;  %v5970_v19 = vor.u32 %v5968_v24, %v5966_v29  ;;  %v617_v20 = vld [vmem:[%s26040_s27 + $0x98] sm:$0xff]  ;;  %v634_v24 = vsel %vm630_vm5, %v599_v51, -inf }
 0x4ba   : > { %665 = vmax.xlane.f32.xlu1 %v664_v30  ;;  %v598_v30 = vld [vmem:[%s26040_s27] sm:$0xff]  ;;  %v688_v29 = vsel %vm630_vm5, %v617_v20, -inf }
 0x4bb   : > { %v26147_v22 = vsel %vm1417_vm6, %v5970_v19, %v5974_v11  ;;  %v631_v44 = vsel %vm630_vm5, %v598_v30, -inf  ;;  %v26165_v11 = vsel %vm29698_vm2, %v25769_v57, 0  ;;  %v604_v57 = vld [vmem:[%s26040_s27 + $0x30] sm:$0xff] }
 0x4bc   : > { %20748 = vmatpush3.bf16.msra.mxu1 %v24097_v26  ;;  %v5862_v26 = vsel %vm29819_vm13, %v25749_v7, 0  ;;  %v615_v7 = vld [vmem:[%s26040_s27 + $0x88] sm:$0xff]  ;;  %632 = vmax.xlane.f32.xlu0 %v631_v44  ;;  %v6004_v52 = vshll.u32 %v26165_v11, 16  ;;  %v649_v30 = vsel %vm630_vm5, %v604_v57, -inf  ;;  %v625_v44 = vld [vmem:[%s26040_s27 + $0xd8] sm:$0xff]  ;;  %vm17537_vm13 = vcmask 7168  }
 0x4bd   : > { %20749 = vmatprep.subr.bf16.mxu1 %v24098_v43  ;;  %v5980_v37 = vshll.u32 %v5862_v26, 16  ;;  %v682_v4 = vsel %vm630_vm5, %v615_v7, -inf  ;;  %v5984_v62 = vshrl.u32 %v5862_v26, 16  ;;  %v26220_v57 = vld [vmem:[%s26202_s21 + $0x10] sm:$0xff]  ;;  %v26300_v7 = vld [vmem:[%s26202_s21 + $0x58] sm:$0xff] }
 0x4be   : > { %671 = vmax.xlane.f32.xlu1 %v670_v40  ;;  %v619_v40 = vld [vmem:[%s26040_s27 + $0xa8] sm:$0xff]  ;;  %v26184_v20 = vrot.slane %v6004_v52, 1 }
 0x4bf   : > { %20718 = vmatmul.mubr.bf16.gmra.mrb[8].mxu1 %v26105_v49  ;;  %v5982_v59 = vrot.slane %v5980_v37, 1  ;;  %v694_v26 = vsel %vm630_vm5, %v619_v40, -inf  ;;  %v712_v40 = vsel %vm630_vm5, %v625_v44, -inf }
 0x4c0   : > { %20721 = vmatprep.mubr.bf16.mxu1 %v26109_v61  ;;  %20750 = vmatpush3.bf16.msra.mxu1 %v24098_v43  ;;  %v613_v43 = vld [vmem:[%s26040_s27 + $0x78] sm:$0xff] }
 0x4c1   : > { %20751 = vmatprep.subr.bf16.mxu1 %v24099_v34  ;;  %v676_v50 = vsel %vm630_vm5, %v613_v43, -inf  ;;  %v26151_v25 = vsel %vm1417_vm6, %v5978_v36, %v5982_v59  ;;  %v5986_v5 = vor.u32 %v5984_v62, %v5982_v59  ;;  %635 = vmax.xlane.f32.xlu0 %v634_v24  ;;  %v602_v59 = vld [vmem:[%s26040_s27 + $0x20] sm:$0xff] }
 0x4c2   : > { %677 = vmax.xlane.f32.xlu1 %v676_v50  ;;  %v643_v36 = vsel %vm630_vm5, %v602_v59, -inf  ;;  %v610_v24 = vld [vmem:[%s26040_s27 + $0x60] sm:$0xff] }
 0x4c3   : > { %v667_v59 = vsel %vm630_vm5, %v610_v24, -inf }
 0x4c4   : > { %20752 = vmatpush3.bf16.msra.mxu1 %v24099_v34  ;;  %v5864_v34 = vsel %vm3319_vm3, %v25771_v13, 0  ;;  %v5990_v13 = vrot.slane %v5988_v46, 1 }
 0x4c5   : > { %20785 = vmatprep.subr.bf16.mxu1 %v26117_v41  ;;  %v5996_v32 = vshll.u32 %v5864_v34, 16  ;;  %v6000_v42 = vshrl.u32 %v5864_v34, 16  ;;  %644 = vmax.xlane.f32.xlu0 %v643_v36  ;;  %v26223_v36 = vld [vmem:[%s26202_s21] sm:$0xff] }
 0x4c6   : > { %683 = vmax.xlane.f32.xlu1 %v682_v4  ;;  %v5994_v43 = vor.u32 %v5992_v58, %v5990_v13  ;;  %v26168_v50 = vsel %vm1417_vm6, %v5986_v5, %v5990_v13  ;;  %v621_v4 = vld [vmem:[%s26040_s27 + $0xb8] sm:$0xff]  ;;  %v606_v13 = vld [vmem:[%s26040_s27 + $0x40] sm:$0xff]  ;;  %v608_v5 = vld [vmem:[%s26040_s27 + $0x50] sm:$0xff] }
 0x4c7   : > { %20722 = vmatmul.mubr.bf16.gmra.mrb[12].mxu1 %v26129_v38  ;;  %v5998_v37 = vrot.slane %v5996_v32, 1  ;;  %v700_v46 = vsel %vm630_vm5, %v621_v4, -inf  ;;  %v623_v32 = vld [vmem:[%s26040_s27 + $0xc8] sm:$0xff] }
 0x4c8   : > { %20725 = vmatprep.mubr.bf16.mxu1 %v26133_v0  ;;  %v706_v34 = vsel %vm630_vm5, %v623_v32, -inf  ;;  %v627_v58 = vld [vmem:[%s26040_s27 + $0xe8] sm:$0xff]  ;;  %v17541_v32 = vsel %vm17537_vm13, %v26220_v57, 0.0 }
 0x4c9   : > { %v26172_v19 = vsel %vm1417_vm6, %v5994_v43, %v5998_v37  ;;  %v6002_v62 = vor.u32 %v6000_v42, %v5998_v37  ;;  %650 = vmax.xlane.f32.xlu0 %v649_v30  ;;  %v661_v37 = vsel %vm630_vm5, %v608_v5, -inf  ;;  %v24101_v43 = vld [vmem:[%s29539_s6 + $0x208] sm:$0xff]   ;;  %v24102_v30 = vld [vmem:[%s29539_s6 + $0x210] sm:$0xff]   ;;  %v614_v5 = vld [vmem:[%s26040_s27 + $0x80] sm:$0xff] }
 0x4ca   : > { %689 = vmax.xlane.f32.xlu1 %v688_v29  ;;  %v655_v29 = vsel %vm630_vm5, %v606_v13, -inf  ;;  %v26212_v42 = vld [vmem:[%s26202_s21 + $0x8] sm:$0xff] }
 0x4cb   : > { %v26188_v51 = vsel %vm1417_vm6, %v6002_v62, %v26184_v20  ;;  %v17539_v52 = vsel %vm17537_vm13, %v26212_v42, 0.0  ;;  %v17538_v62 = vsel %vm17537_vm13, %v26223_v36, 0.0 }
 0x4cc   : > { %v17540_v13 = vadd.f32 %v17539_v52, %v17538_v62  ;;  %v26258_v52 = vld [vmem:[%s26202_s21 + $0x30] sm:$0xff]  ;;  %v26268_v62 = vld [vmem:[%s26202_s21 + $0x38] sm:$0xff] }
 0x4cd   : > { %656 = vmax.xlane.f32.xlu0 %v655_v29  ;;  %v26242_v29 = vld [vmem:[%s26202_s21 + $0x20] sm:$0xff] }
 0x4ce   : > { %695 = vmax.xlane.f32.xlu1 %v694_v26  ;;  %v629_v26 = vld [vmem:[%s26040_s27 + $0xf8] sm:$0xff] }
 0x4cf   : > { %20726 = vmatmul.mubr.bf16.gmra.mrb[16].mxu1 %v26147_v22  ;;  %v724_v4 = vsel %vm630_vm5, %v629_v26, -inf }
 0x4d0   : > { %20729 = vmatprep.mubr.bf16.mxu1 %v26151_v25 }
 0x4d1   : > { %662 = vmax.xlane.f32.xlu0 %v661_v37  ;;  %v24103_v37 = vld [vmem:[%s29539_s6 + $0x218] sm:$0xff]  }
 0x4d2   : > { %701 = vmax.xlane.f32.xlu1 %v700_v46  ;;  %v612_v46 = vld [vmem:[%s26040_s27 + $0x70] sm:$0xff] }
 0x4d3   : > { %v673_v44 = vsel %vm630_vm5, %v612_v46, -inf  ;;  %v17549_v46 = vsel %vm17537_vm13, %v26258_v52, 0.0 }
 0x4d5   : > { %668 = vmax.xlane.f32.xlu0 %v667_v59 }
 0x4d6   : > { %707 = vmax.xlane.f32.xlu1 %v706_v34  ;;  %v26236_v34 = vld [vmem:[%s26202_s21 + $0x18] sm:$0xff] }
 0x4d7   : > { %20730 = vmatmul.mubr.bf16.gmra.mrb[20].mxu1 %v26168_v50 }
 0x4d8   : > { %20733 = vmatprep.mubr.bf16.mxu1 %v26172_v19 }
 0x4d9   : > { %674 = vmax.xlane.f32.xlu0 %v673_v44  ;;  %v26274_v44 = vld [vmem:[%s26202_s21 + $0x40] sm:$0xff] }
 0x4da   : > { %713 = vmax.xlane.f32.xlu1 %v712_v40  ;;  %v17542_v40 = vadd.f32 %v17541_v32, %v17540_v13  ;;  %v24104_v32 = vld [vmem:[%s29539_s6 + $0x220] sm:$0xff]  }
 0x4df   : > { %20734 = vmatmul.mubr.bf16.gmra.mrb[24].mxu1 %v26188_v51 }
 0x4e0   : > { %20753 = vmatprep.mubr.bf16.mxu1 %v26029_v23  ;;  %v718_v23 = vsel %vm630_vm5, %v627_v58, -inf  ;;  %v17545_v58 = vsel %vm17537_vm13, %v26242_v29, 0.0 }
 0x4e1   : > { %719 = vmax.xlane.f32.xlu1 %v718_v23  ;;  %v26251_v23 = vld [vmem:[%s26202_s21 + $0x28] sm:$0xff] }
 0x4e2   : > { %v17547_v26 = vsel %vm17537_vm13, %v26251_v23, 0.0 }
 0x4e5   : > { %725 = vmax.xlane.f32.xlu1 %v724_v4  ;;  %v616_v4 = vld [vmem:[%s26040_s27 + $0x90] sm:$0xff] }
 0x4e7   : > { %20754 = vmatmul.mubr.bf16.vlgmr.msra.gmra.mrb[28].mxu1 %v26033_v31 }
 0x4e8   : > { %20786 = vmatpush3.bf16.msra.mxu1 %v26117_v41  ;;  %20757 = vmatprep.mubr.bf16.mxu1 %v26057_v39  ;;  %v17543_v41 = vsel %vm17537_vm13, %v26236_v34, 0.0 }
 0x4e9   : > { %20787 = vmatprep.subr.bf16.mxu1 %v24101_v43  ;;  %v17544_v24 = vadd.f32 %v17543_v41, %v17542_v40  ;;  %v17551_v41 = vsel %vm17537_vm13, %v26268_v62, 0.0 }
 0x4eb   : > { %v17546_v59 = vadd.f32 %v17545_v58, %v17544_v24  ;;  %v17553_v58 = vsel %vm17537_vm13, %v26274_v44, 0.0  ;;  %v24105_v24 = vld [vmem:[%s29539_s6 + $0x228] sm:$0xff]  }
 0x4ec   : > { %20788 = vmatpush3.bf16.msra.mxu1 %v24101_v43  ;;  %v679_v43 = vsel %vm630_vm5, %v614_v5, -inf  ;;  %v618_v5 = vld [vmem:[%s26040_s27 + $0xa0] sm:$0xff] }
 0x4ed   : > { %20789 = vmatprep.subr.bf16.mxu1 %v24102_v30  ;;  %v17548_v13 = vadd.f32 %v17547_v26, %v17546_v59  ;;  %680 = vmax.xlane.f32.xlu0 %v679_v43  ;;  %v26283_v26 = vld [vmem:[%s26202_s21 + $0x48] sm:$0xff] }
 0x4ee   : > { %v17555_v59 = vsel %vm17537_vm13, %v26283_v26, 0.0 }
 0x4ef   : > { %20758 = vmatmul.mubr.bf16.gmra.mrb[0].mxu1 %v26061_v8  ;;  %v17550_v40 = vadd.f32 %v17549_v46, %v17548_v13  ;;  %v620_v13 = vld [vmem:[%s26040_s27 + $0xb0] sm:$0xff] }
 0x4f0   : > { %20761 = vmatprep.mubr.bf16.mxu1 %v26081_v2  ;;  %20790 = vmatpush3.bf16.msra.mxu1 %v24102_v30  ;;  %v685_v30 = vsel %vm630_vm5, %v616_v4, -inf  ;;  %v26290_v4 = vld [vmem:[%s26202_s21 + $0x50] sm:$0xff] }
 0x4f1   : > { %20791 = vmatprep.subr.bf16.mxu1 %v24103_v37  ;;  %v17552_v43 = vadd.f32 %v17551_v41, %v17550_v40  ;;  %686 = vmax.xlane.f32.xlu0 %v685_v30  ;;  %v17557_v41 = vsel %vm17537_vm13, %v26290_v4, 0.0  ;;  %v24106_v30 = vld [vmem:[%s29539_s6 + $0x230] sm:$0xff]  }
 0x4f3   : > { %v17554_v46 = vadd.f32 %v17553_v58, %v17552_v43  ;;  %v7046_v58 = vld [vmem:[%s26202_s21 + $0x60] sm:$0xff] }
 0x4f4   : > { %20792 = vmatpush3.bf16.msra.mxu1 %v24103_v37  ;;  %v691_v37 = vsel %vm630_vm5, %v618_v5, -inf  ;;  %v17559_v5 = vsel %vm17537_vm13, %v26300_v7, 0.0  ;;  %v17561_v35 = vsel %vm17537_vm13, %v7046_v58, 0.0 }
 0x4f5   : > { %20793 = vmatprep.subr.bf16.mxu1 %v24104_v32  ;;  %v17556_v40 = vadd.f32 %v17555_v59, %v17554_v46  ;;  %692 = vmax.xlane.f32.xlu0 %v691_v37  ;;  %v24107_v59 = vld [vmem:[%s29539_s6 + $0x238] sm:$0xff]   ;;  %v7047_v46 = vld [vmem:[%s26202_s21 + $0x68] sm:$0xff] }
 0x4f6   : > { %7073 = vperm.xlu1 %23955, %v26212_v42   ;;  %v17563_v42 = vsel %vm17537_vm13, %v7047_v46, 0.0 }
 0x4f7   : > { %20762 = vmatmul.mubr.bf16.gmra.mrb[4].mxu1 %v26085_v63  ;;  %v17558_v43 = vadd.f32 %v17557_v41, %v17556_v40  ;;  %v624_v40 = vld [vmem:[%s26040_s27 + $0xd0] sm:$0xff] }
 0x4f8   : > { %20765 = vmatprep.mubr.bf16.mxu1 %v26105_v49  ;;  %20794 = vmatpush3.bf16.msra.mxu1 %v24104_v32  ;;  %v697_v32 = vsel %vm630_vm5, %v620_v13, -inf  ;;  %v7048_v13 = vld [vmem:[%s26202_s21 + $0x70] sm:$0xff] }
 0x4f9   : > { %20795 = vmatprep.subr.bf16.mxu1 %v24105_v24  ;;  %v17560_v37 = vadd.f32 %v17559_v5, %v17558_v43  ;;  %698 = vmax.xlane.f32.xlu0 %v697_v32  ;;  %v17565_v5 = vsel %vm17537_vm13, %v7048_v13, 0.0  ;;  %v7049_v43 = vld [vmem:[%s26202_s21 + $0x78] sm:$0xff] }
 0x4fa   : > { %7078 = vperm.xlu1 %23955, %v26220_v57   ;;  %v17567_v33 = vsel %vm17537_vm13, %v7049_v43, 0.0  ;;  %v7050_v57 = vld [vmem:[%s26202_s21 + $0x80] sm:$0xff] }
 0x4fb   : > { %v17562_v41 = vadd.f32 %v17561_v35, %v17560_v37  ;;  %v626_v35 = vld [vmem:[%s26040_s27 + $0xe0] sm:$0xff] }
 0x4fc   : > { %20796 = vmatpush3.bf16.msra.mxu1 %v24105_v24  ;;  %v703_v24 = vsel %vm630_vm5, %v622_v12, -inf  ;;  %v709_v12 = vsel %vm630_vm5, %v624_v40, -inf }
 0x4fd   : > { %20797 = vmatprep.subr.bf16.mxu1 %v24106_v30  ;;  %v17564_v32 = vadd.f32 %v17563_v42, %v17562_v41  ;;  %704 = vmax.xlane.f32.xlu0 %v703_v24  ;;  %v715_v42 = vsel %vm630_vm5, %v626_v35, -inf }
 0x4fe   : > { %7083 = vperm.xlu1 %23955, %v26236_v34   ;;  %v628_v34 = vld [vmem:[%s26040_s27 + $0xf0] sm:$0xff]  ;;  %s24446_s27 = smov 4  }
 0x4ff   : > { %20766 = vmatmul.mubr.bf16.gmra.mrb[8].mxu1 %v26109_v61  ;;  %v17566_v48 = vadd.f32 %v17565_v5, %v17564_v32 }
 0x500   : > { %20769 = vmatprep.mubr.bf16.mxu1 %v26129_v38  ;;  %20798 = vmatpush3.bf16.msra.mxu1 %v24106_v30  ;;  %v17569_v30 = vsel %vm17537_vm13, %v7050_v57, 0.0 }
 0x501   : > { %20799 = vmatprep.subr.bf16.mxu1 %v24107_v59  ;;  %v17568_v37 = vadd.f32 %v17567_v33, %v17566_v48  ;;  %710 = vmax.xlane.f32.xlu0 %v709_v12  ;;  %v6282_v48 = vshrl.u32 %v26165_v11, 16  ;;  %v26355_v11 = vld [vmem:[%s26202_s21 + $0x90] sm:$0xff] }
 0x502   : > { %7088 = vperm.xlu1 %23955, %v26242_v29  }
 0x503   : > { %v26331_v24 = vadd.f32 %v17569_v30, %v17568_v37  ;;  %v6284_v33 = vor.u32 %v6282_v48, %v26184_v20  ;;  %v26388_v20 = vld [vmem:[%s26202_s21 + $0xe0] sm:$0xff] }
 0x504   : > { %20800 = vmatpush3.bf16.msra.mxu1 %v24107_v59  ;;  %v721_v59 = vsel %vm630_vm5, %v628_v34, -inf }
 0x505   : > { %716 = vmax.xlane.f32.xlu0 %v715_v42  ;;  %v6285_v29 = vsel %vm1417_vm6, %v6284_v33, %v25246_v10 }
 0x506   : > { %7093 = vperm.xlu1 %23955, %v26251_v23   ;;  %v26406_v23 = vld [vmem:[%s26202_s21 + $0xc8] sm:$0xff] }
 0x507   : > { %20770 = vmatmul.mubr.bf16.gmra.mrb[12].mxu1 %v26133_v0 }
 0x508   : > { %20773 = vmatprep.mubr.bf16.mxu1 %v26147_v22 }
 0x509   : > { %722 = vmax.xlane.f32.xlu0 %v721_v59 }
 0x50a   : > { %7098 = vperm.xlu1 %23955, %v26258_v52   ;;  %v26422_v52 = vld [vmem:[%s26202_s21 + $0xf8] sm:$0xff] }
 0x50e   : > { %7103 = vperm.xlu1 %23955, %v26268_v62  }
 0x50f   : > { %20774 = vmatmul.mubr.bf16.gmra.mrb[16].mxu1 %v26151_v25 }
 0x510   : > { %20777 = vmatprep.mubr.bf16.mxu1 %v26168_v50 }
 0x512   : > { %7108 = vperm.xlu1 %23955, %v26274_v44  }
 0x516   : > { %7118 = vperm.xlu1 %23955, %v26290_v4  }
 0x517   : > { %20778 = vmatmul.mubr.bf16.gmra.mrb[20].mxu1 %v26172_v19 }
 0x518   : > { %20781 = vmatprep.mubr.bf16.mxu1 %v26188_v51 }
 0x51a   : > { %7128 = vperm.xlu1 %23955, %v7046_v58  }
 0x51e   : > { %7138 = vperm.xlu1 %23955, %v7048_v13  }
 0x51f   : > { %20782 = vmatmul.mubr.bf16.gmra.mrb[24].mxu1 %v6285_v29  ;;  %7068 = vperm.xlu0 %23954, %v26223_v36   ;;  %v26401_v36 = vld [vmem:[%s26202_s21 + $0xb8] sm:$0xff] }
 0x520   : > { %20801 = vmatprep.mubr.bf16.mxu1 %v26033_v31  ;;  %v26360_v31 = vld [vmem:[%s26202_s21 + $0xa0] sm:$0xff] }
 0x522   : > { %7148 = vperm.xlu1 %23955, %v7050_v57  }
 0x523   : > { %7113 = vperm.xlu0 %23954, %v26283_v26  }
 0x526   : > { %7158 = vperm.xlu1 %23955, %v26355_v11  }
 0x527   : > { %20802 = vmatmul.mubr.bf16.vlgmr.msra.gmra.mrb[28].mxu1 %v26057_v39  ;;  %7123 = vperm.xlu0 %23954, %v26300_v7   ;;  %v26366_v39 = vld [vmem:[%s26202_s21 + $0xb0] sm:$0xff]  ;;  %v26373_v7 = vld [vmem:[%s26202_s21 + $0x88] sm:$0xff] }
 0x528   : > { %20805 = vmatprep.mubr.bf16.mxu1 %v26061_v8  ;;  %v26370_v8 = vld [vmem:[%s26202_s21 + $0xc0] sm:$0xff] }
 0x52a   : > { %7168 = vperm.xlu1 %23955, %v26360_v31  }
 0x52b   : > { %7133 = vperm.xlu0 %23954, %v7047_v46  }
 0x52e   : > { %7178 = vperm.xlu1 %23955, %v26366_v39  }
 0x52f   : > { %20806 = vmatmul.mubr.bf16.gmra.mrb[0].mxu1 %v26081_v2  ;;  %7143 = vperm.xlu0 %23954, %v7049_v43   ;;  %v26380_v2 = vld [vmem:[%s26202_s21 + $0xd0] sm:$0xff] }
 0x530   : > { %20809 = vmatprep.mubr.bf16.mxu1 %v26085_v63  ;;  %v26383_v63 = vld [vmem:[%s26202_s21 + $0x98] sm:$0xff] }
 0x532   : > { %7188 = vperm.xlu1 %23955, %v26370_v8  }
 0x533   : > { %7153 = vperm.xlu0 %23954, %v26373_v7  }
 0x536   : > { %7198 = vperm.xlu1 %23955, %v26380_v2  }
 0x537   : > { %20810 = vmatmul.mubr.bf16.gmra.mrb[4].mxu1 %v26105_v49  ;;  %7163 = vperm.xlu0 %23954, %v26383_v63   ;;  %v26391_v49 = vld [vmem:[%s26202_s21 + $0xa8] sm:$0xff] }
 0x538   : > { %20813 = vmatprep.mubr.bf16.mxu1 %v26109_v61  ;;  %v26398_v61 = vld [vmem:[%s26202_s21 + $0xf0] sm:$0xff] }
 0x53a   : > { %7208 = vperm.xlu1 %23955, %v26388_v20  }
 0x53b   : > { %7173 = vperm.xlu0 %23954, %v26391_v49  }
 0x53e   : > { %7218 = vperm.xlu1 %23955, %v26398_v61  }
 0x53f   : > { %20814 = vmatmul.mubr.bf16.gmra.mrb[8].mxu1 %v26129_v38  ;;  %7183 = vperm.xlu0 %23954, %v26401_v36   ;;  %v26412_v38 = vld [vmem:[%s26202_s21 + $0xd8] sm:$0xff] }
 0x540   : > { %20817 = vmatprep.mubr.bf16.mxu1 %v26133_v0  ;;  %v26416_v0 = vld [vmem:[%s26202_s21 + $0xe8] sm:$0xff] }
 0x543   : > { %7193 = vperm.xlu0 %23954, %v26406_v23  }
 0x547   : > { %20818 = vmatmul.mubr.bf16.gmra.mrb[12].mxu1 %v26147_v22  ;;  %7203 = vperm.xlu0 %23954, %v26412_v38   ;;  %v26427_v22 = vpop.xlane.xlu1 %638 }
 0x548   : > { %20821 = vmatprep.mubr.bf16.mxu1 %v26151_v25 }
 0x549   : > { %v26429_v25 = vpop.xlane.xlu0 %632 }
 0x54b   : > { %7213 = vperm.xlu0 %23954, %v26416_v0   ;;  %v26431_v62 = vpop.xlane.xlu1 %641 }
 0x54f   : > { %20822 = vmatmul.mubr.bf16.gmra.mrb[16].mxu1 %v26168_v50  ;;  %7223 = vperm.xlu0 %23954, %v26422_v52   ;;  %v26433_v50 = vpop.xlane.xlu0 %635  ;;  %v26437_v44 = vpop.xlane.xlu1 %647 }
 0x550   : > { %20825 = vmatprep.mubr.bf16.mxu1 %v26172_v19  ;;  %v6960_v19 = vadd.f32 %v26433_v50, %v26429_v25 }
 0x552   : > { %v6961_v26 = vadd.f32 %v6960_v19, %v26427_v22 }
 0x553   : > { %v26440_v4 = vpop.xlane.xlu1 %653  ;;  %v26443_v58 = vpop.xlane.xlu0 %644 }
 0x557   : > { %20826 = vmatmul.mubr.bf16.gmra.mrb[20].mxu1 %v26188_v51  ;;  %v6962_v51 = vadd.f32 %v6961_v26, %v26431_v62  ;;  %v26446_v13 = vpop.xlane.xlu1 %659  ;;  %v26449_v40 = vpop.xlane.xlu0 %650 }
 0x558   : > { %20829 = vmatprep.mubr.bf16.mxu1 %v6285_v29 }
 0x559   : > { %v6963_v46 = vadd.f32 %v6962_v51, %v26443_v58 }
 0x55b   : > { %v6964_v41 = vadd.f32 %v6963_v46, %v26437_v44  ;;  %v26451_v5 = vpop.xlane.xlu1 %665  ;;  %v26457_v57 = vpop.xlane.xlu0 %656 }
 0x55d   : > { %v6965_v32 = vadd.f32 %v6964_v41, %v26449_v40 }
 0x55f   : > { %20830 = vmatmul.mubr.bf16.gmra.mrb[24].mxu1 %v25246_v10  ;;  %v6966_v43 = vadd.f32 %v6965_v32, %v26440_v4  ;;  %v26455_v12 = vpop.xlane.xlu1 %671  ;;  %v26463_v42 = vpop.xlane.xlu0 %662 }
 0x561   : > { %v6967_v35 = vadd.f32 %v6966_v43, %v26457_v57 }
 0x563   : > { %v26460_v30 = vpop.xlane.xlu1 %677  ;;  %v6968_v37 = vadd.f32 %v6967_v35, %v26446_v13  ;;  %v26469_v33 = vpop.xlane.xlu0 %668 }
 0x565   : > { %v6969_v34 = vadd.f32 %v6968_v37, %v26463_v42 }
 0x567   : > { %v26466_v59 = vpop.xlane.xlu1 %683  ;;  %v6970_v48 = vadd.f32 %v6969_v34, %v26451_v5  ;;  %v26477_v46 = vpop.xlane.xlu0 %674 }
 0x569   : > { %v6971_v19 = vadd.f32 %v6970_v48, %v26469_v33 }
 0x56b   : > { %v26471_v29 = vpop.xlane.xlu1 %689  ;;  %v6972_v26 = vadd.f32 %v6971_v19, %v26455_v12 }
 0x56d   : > { %v6973_v41 = vadd.f32 %v6972_v26, %v26477_v46 }
 0x56f   : > { %v26475_v51 = vpop.xlane.xlu1 %695  ;;  %v6974_v43 = vadd.f32 %v6973_v41, %v26460_v30 }
 0x573   : > { %v26480_v32 = vpop.xlane.xlu1 %701 }
 0x577   : > { %v26486_v34 = vpop.xlane.xlu1 %707 }
 0x57a   : > { %v26483_v35 = vpop.xlane.xlu0 %680 }
 0x57b   : > { %v6975_v37 = vadd.f32 %v6974_v43, %v26483_v35  ;;  %v26491_v19 = vpop.xlane.xlu1 %713  ;;  %v26503_v43 = vld [vmem:[%s29540_s7] ss:$0 sm:$0xff] }
 0x57d   : > { %v6976_v48 = vadd.f32 %v6975_v37, %v26466_v59 }
 0x57e   : > { %v26489_v55 = vpop.xlane.xlu0 %686 }
 0x57f   : > { %v6977_v60 = vadd.f32 %v6976_v48, %v26489_v55  ;;  %v26495_v3 = vpop.xlane.xlu1 %719 }
 0x581   : > { %v6978_v26 = vadd.f32 %v6977_v60, %v26471_v29 }
 0x582   : > { %v26497_v16 = vpop.xlane.xlu0 %692 }
 0x583   : > { %v6979_v41 = vadd.f32 %v6978_v26, %v26497_v16  ;;  %v26507_v28 = vpop.xlane.xlu1 %725 }
 0x585   : > { %v6980_v26 = vadd.f32 %v6979_v41, %v26475_v51 }
 0x587   : > { %v26520_v27 = vpop.permute.xlu1 %7073 }
 0x588   : > { %29825 = vst [vmem:[#allocation43_spill] sm:$0xff] %v26520_v27 }
 0x5fa   : > { %v20803_v21 = vpop.f32.mrb[28].mxu1 }
 0x5fb   : > { %v22361_v37 = vadd.f32 %v20803_v21, %v25905_v1  ;;  %v6628_v53 = vpop.f32.mrb[29].mxu1 }
 0x5fc   : > { %v22362_v47 = vadd.f32 %v6628_v53, %v25907_v14  ;;  %v20804_v48 = vpop.f32.mrb[30].mxu1  ;;  %v26516_v14 = vpop.xlane.xlu0 %698 }
 0x5fd   : > { %v6796_v60 = vadd.f32 %v22361_v37, %v26503_v43  ;;  %v22363_v10 = vadd.f32 %v20804_v48, %v25909_v15  ;;  %v6631_v54 = vpop.f32.mrb[31].mxu1  ;;  %v6981_v37 = vadd.f32 %v6980_v26, %v26516_v14 }
 0x5fe   : > { %v6794_v6 = vadd.f32 %v22362_v47, %v26503_v43  ;;  %v22364_v45 = vadd.f32 %v6631_v54, %v25911_v56 }
 0x5ff   : > { %v6797_v18 = vadd.f32 %v22363_v10, %v26503_v43  ;;  %v6828_v21 = vmax.f32 %v6796_v60, 0.0 }
 0x600   : > { %v6826_v1 = vmax.f32 %v6794_v6, 0.0  ;;  %v6795_v53 = vadd.f32 %v22364_v45, %v26503_v43 }
 0x601   : > { %v6829_v17 = vmax.f32 %v6797_v18, 0.0  ;;  %v6860_v56 = vmul.f32 %v6828_v21, %v26427_v22 }
 0x602   : > { %v6858_v15 = vmul.f32 %v6826_v1, %v26429_v25  ;;  %v6827_v48 = vmax.f32 %v6795_v53, 0.0  ;;  %v20807_v41 = vpop.f32.mrb[0].mxu1  ;;  %v6982_v25 = vadd.f32 %v6981_v37, %v26480_v32 }
 0x603   : > { %v6644_v47 = vpop.f32.mrb[1].mxu1  ;;  %v6800_v6 = vadd.f32 %v20807_v41, %v26503_v43  ;;  %v6861_v60 = vmul.f32 %v6829_v17, %v26431_v62  ;;  %v6894_v21 = vsel %vm29644_vm1, %v6860_v56, 0.0  ;;  %v26536_v17 = vpop.permute.xlu1 %7078 }
 0x604   : > { %v6859_v10 = vmul.f32 %v6827_v48, %v26433_v50  ;;  %v6798_v45 = vadd.f32 %v26503_v43, %v6644_v47  ;;  %v20808_v54 = vpop.f32.mrb[2].mxu1  ;;  %v6891_v18 = vsel %vm29644_vm1, %v6858_v15, 0.0  ;;  %v26534_v15 = vpop.xlane.xlu0 %704  ;;  %29826 = vst [vmem:[#allocation44_spill] sm:$0xff] %v26536_v17 }
 0x605   : > { %v6647_v26 = vpop.f32.mrb[3].mxu1  ;;  %v6801_v9 = vadd.f32 %v20808_v54, %v26503_v43  ;;  %v6832_v48 = vmax.f32 %v6800_v6, 0.0  ;;  %v6983_v37 = vadd.f32 %v6982_v25, %v26534_v15 }
 0x606   : > { %v6892_v1 = vsel %vm29644_vm1, %v6859_v10, 0.0  ;;  %v6830_v53 = vmax.f32 %v6798_v45, 0.0  ;;  %v6799_v22 = vadd.f32 %v26503_v43, %v6647_v26  ;;  %v6896_v10 = vsel %vm29644_vm1, %v6861_v60, 0.0 }
 0x607   : > { %v6893_v50 = vadd.f32 %v6892_v1, %v6891_v18  ;;  %v6833_v45 = vmax.f32 %v6801_v9, 0.0  ;;  %v6864_v56 = vmul.f32 %v6832_v48, %v26449_v40  ;;  %v6984_v9 = vadd.f32 %v6983_v37, %v26486_v34  ;;  %v26550_v48 = vpop.permute.xlu1 %7083 }
 0x608   : > { %v6862_v41 = vmul.f32 %v6830_v53, %v26443_v58  ;;  %v6831_v47 = vmax.f32 %v6799_v22, 0.0  ;;  %29827 = vst [vmem:[#allocation45_spill] sm:$0xff] %v26550_v48 }
 0x609   : > { %v6895_v62 = vadd.f32 %v6894_v21, %v6893_v50 }
 0x60a   : > { %v6863_v54 = vmul.f32 %v6831_v47, %v26437_v44  ;;  %v20811_v26 = vpop.f32.mrb[4].mxu1  ;;  %v6898_v58 = vsel %vm29644_vm1, %v6862_v41, 0.0  ;;  %v6865_v44 = vmul.f32 %v6833_v45, %v26440_v4 }
 0x60b   : > { %v6897_v18 = vadd.f32 %v6896_v10, %v6895_v62  ;;  %v6660_v1 = vpop.f32.mrb[5].mxu1  ;;  %v6804_v6 = vadd.f32 %v20811_v26, %v26503_v43  ;;  %v6902_v62 = vsel %vm29644_vm1, %v6864_v56, 0.0 }
 0x60c   : > { %v6802_v53 = vadd.f32 %v26503_v43, %v6660_v1  ;;  %v20812_v22 = vpop.f32.mrb[6].mxu1  ;;  %v6900_v60 = vsel %vm29644_vm1, %v6863_v54, 0.0  ;;  %v26554_v1 = vpop.xlane.xlu0 %710  ;;  %v6904_v45 = vsel %vm29644_vm1, %v6865_v44, 0.0 }
 0x60d   : > { %v6899_v50 = vadd.f32 %v6898_v58, %v6897_v18  ;;  %v6805_v25 = vadd.f32 %v20812_v22, %v26503_v43  ;;  %v6663_v21 = vpop.f32.mrb[7].mxu1  ;;  %v6836_v10 = vmax.f32 %v6804_v6, 0.0  ;;  %v6985_v4 = vadd.f32 %v6984_v9, %v26554_v1 }
 0x60e   : > { %v6834_v47 = vmax.f32 %v6802_v53, 0.0  ;;  %v6803_v40 = vadd.f32 %v26503_v43, %v6663_v21 }
 0x60f   : > { %v6901_v41 = vadd.f32 %v6900_v60, %v6899_v50  ;;  %v6837_v37 = vmax.f32 %v6805_v25, 0.0  ;;  %v6868_v50 = vmul.f32 %v6836_v10, %v26463_v42 }
 0x610   : > { %v6866_v26 = vmul.f32 %v6834_v47, %v26457_v57  ;;  %v6835_v18 = vmax.f32 %v6803_v40, 0.0  ;;  %v26563_v47 = vpop.permute.xlu1 %7088 }
 0x611   : > { %v6903_v58 = vadd.f32 %v6902_v62, %v6901_v41  ;;  %29828 = vst [vmem:[#allocation46_spill] sm:$0xff] %v26563_v47  ;;  %v6869_v9 = vmul.f32 %v6837_v37, %v26451_v5 }
 0x612   : > { %v6867_v54 = vmul.f32 %v6835_v18, %v26446_v13  ;;  %v20815_v53 = vpop.f32.mrb[8].mxu1  ;;  %v6906_v56 = vsel %vm29644_vm1, %v6866_v26, 0.0  ;;  %v6986_v13 = vadd.f32 %v6985_v4, %v26491_v19  ;;  %v6910_v26 = vsel %vm29644_vm1, %v6868_v50, 0.0 }
 0x613   : > { %v6905_v22 = vadd.f32 %v6904_v45, %v6903_v58  ;;  %v6676_v21 = vpop.f32.mrb[9].mxu1  ;;  %v6808_v57 = vadd.f32 %v20815_v53, %v26503_v43  ;;  %v26572_v53 = vpop.xlane.xlu0 %716  ;;  %v6912_v4 = vsel %vm29644_vm1, %v6869_v9, 0.0 }
 0x614   : > { %v6806_v6 = vadd.f32 %v26503_v43, %v6676_v21  ;;  %v20816_v60 = vpop.f32.mrb[10].mxu1  ;;  %v6908_v40 = vsel %vm29644_vm1, %v6867_v54, 0.0  ;;  %v6987_v37 = vadd.f32 %v6986_v13, %v26572_v53 }
 0x615   : > { %v6907_v25 = vadd.f32 %v6906_v56, %v6905_v22  ;;  %v6679_v44 = vpop.f32.mrb[11].mxu1  ;;  %v6809_v42 = vadd.f32 %v20816_v60, %v26503_v43  ;;  %v6840_v18 = vmax.f32 %v6808_v57, 0.0  ;;  %v26577_v56 = vpop.permute.xlu1 %7093 }
 0x616   : > { %v6838_v41 = vmax.f32 %v6806_v6, 0.0  ;;  %v6807_v62 = vadd.f32 %v26503_v43, %v6679_v44  ;;  %29829 = vst [vmem:[#allocation47_spill] sm:$0xff] %v26577_v56 }
 0x617   : > { %v6909_v10 = vadd.f32 %v6908_v40, %v6907_v25  ;;  %v6841_v54 = vmax.f32 %v6809_v42, 0.0  ;;  %v6872_v50 = vmul.f32 %v6840_v18, %v26477_v46  ;;  %v26590_v18 = vpop.xlane.xlu0 %722 }
 0x618   : > { %v6870_v58 = vmul.f32 %v6838_v41, %v26469_v33  ;;  %v6839_v45 = vmax.f32 %v6807_v62, 0.0 }
 0x619   : > { %v6911_v5 = vadd.f32 %v6910_v26, %v6909_v10  ;;  %v6873_v41 = vmul.f32 %v6841_v54, %v26460_v30  ;;  %v17571_v10 = vsel %vm17537_vm13, %v26373_v7, 0.0 }
 0x61a   : > { %v6871_v22 = vmul.f32 %v6839_v45, %v26455_v12  ;;  %v20819_v21 = vpop.f32.mrb[12].mxu1  ;;  %v6914_v33 = vsel %vm29644_vm1, %v6870_v58, 0.0  ;;  %v6988_v12 = vadd.f32 %v6987_v37, %v26495_v3  ;;  %v6918_v58 = vsel %vm29644_vm1, %v6872_v50, 0.0  ;;  %v26594_v37 = vpop.permute.xlu1 %7098 }
 0x61b   : > { %v6913_v6 = vadd.f32 %v6912_v4, %v6911_v5  ;;  %v6692_v60 = vpop.f32.mrb[13].mxu1  ;;  %v6812_v57 = vadd.f32 %v20819_v21, %v26503_v43  ;;  %29830 = vst [vmem:[#allocation48_spill] sm:$0xff] %v26594_v37  ;;  %v6920_v21 = vsel %vm29644_vm1, %v6873_v41, 0.0  ;;  %v17572_v50 = vadd.f32 %v17571_v10, %v26331_v24  ;;  %v26608_v41 = vpop.permute.xlu0 %7068 }
 0x61c   : > { %v6810_v25 = vadd.f32 %v26503_v43, %v6692_v60  ;;  %v20820_v44 = vpop.f32.mrb[14].mxu1  ;;  %v6916_v42 = vsel %vm29644_vm1, %v6871_v22, 0.0  ;;  %v6989_v22 = vadd.f32 %v6988_v12, %v26590_v18  ;;  %v17573_v60 = vsel %vm17537_vm13, %v26355_v11, 0.0  ;;  %29831 = vst [vmem:[#allocation49_spill] sm:$0xff] %v26608_v41 }
 0x61d   : > { %v6915_v13 = vadd.f32 %v6914_v33, %v6913_v6  ;;  %v6813_v9 = vadd.f32 %v20820_v44, %v26503_v43  ;;  %v6695_v40 = vpop.f32.mrb[15].mxu1  ;;  %v6844_v45 = vmax.f32 %v6812_v57, 0.0  ;;  %v17574_v10 = vadd.f32 %v17573_v60, %v17572_v50 }
 0x61e   : > { %v6842_v62 = vmax.f32 %v6810_v25, 0.0  ;;  %v6811_v46 = vadd.f32 %v26503_v43, %v6695_v40  ;;  %v6990_v12 = vadd.f32 %v6989_v22, %v26507_v28 }
 0x61f   : > { %v6917_v26 = vadd.f32 %v6916_v42, %v6915_v13  ;;  %v6845_v54 = vmax.f32 %v6813_v9, 0.0 }
 0x620   : > { %v6874_v5 = vmul.f32 %v6842_v62, %v26483_v35  ;;  %v6843_v4 = vmax.f32 %v6811_v46, 0.0  ;;  %v6876_v35 = vmul.f32 %v6844_v45, %v26489_v55  ;;  %v17575_v46 = vsel %vm17537_vm13, %v26383_v63, 0.0 }
 0x621   : > { %v6919_v30 = vadd.f32 %v6918_v58, %v6917_v26  ;;  %v26615_v26 = vpop.permute.xlu1 %7103  ;;  %v17577_v63 = vsel %vm17537_vm13, %v26360_v31, 0.0  ;;  %v17576_v60 = vadd.f32 %v17575_v46, %v17574_v10 }
 0x622   : > { %v6875_v6 = vmul.f32 %v6843_v4, %v26466_v59  ;;  %v20823_v7 = vpop.f32.mrb[16].mxu1  ;;  %v6922_v25 = vsel %vm29644_vm1, %v6874_v5, 0.0  ;;  %v6877_v59 = vmul.f32 %v6845_v54, %v26471_v29  ;;  %29832 = vst [vmem:[#allocation50_spill] sm:$0xff] %v26615_v26  ;;  %v6926_v29 = vsel %vm29644_vm1, %v6876_v35, 0.0 }
 0x623   : > { %v6921_v33 = vadd.f32 %v6920_v21, %v6919_v30  ;;  %v6708_v57 = vpop.f32.mrb[17].mxu1  ;;  %v6816_v44 = vadd.f32 %v20823_v7, %v26503_v43  ;;  %v6991_v54 = vrot.slane %v6990_v12, 4 }
 0x624   : > { %v6814_v13 = vadd.f32 %v26503_v43, %v6708_v57  ;;  %v20824_v9 = vpop.f32.mrb[18].mxu1  ;;  %v6924_v24 = vsel %vm29644_vm1, %v6875_v6, 0.0  ;;  %v6928_v22 = vsel %vm29644_vm1, %v6877_v59, 0.0 }
 0x625   : > { %v6923_v40 = vadd.f32 %v6922_v25, %v6921_v33  ;;  %v6711_v11 = vpop.f32.mrb[19].mxu1  ;;  %v6817_v55 = vadd.f32 %v20824_v9, %v26503_v43  ;;  %v6848_v45 = vmax.f32 %v6816_v44, 0.0  ;;  %v26623_v33 = vpop.permute.xlu0 %7113 }
 0x626   : > { %v6846_v42 = vmax.f32 %v6814_v13, 0.0  ;;  %v6815_v62 = vadd.f32 %v26503_v43, %v6711_v11  ;;  %29833 = vst [vmem:[#allocation51_spill] sm:$0xff] %v26623_v33  ;;  %v26629_v9 = vpop.permute.xlu1 %7108 }
 0x627   : > { %v6925_v58 = vadd.f32 %v6924_v24, %v6923_v40  ;;  %v6849_v21 = vmax.f32 %v6817_v55, 0.0  ;;  %v6880_v35 = vmul.f32 %v6848_v45, %v26516_v14  ;;  %29834 = vst [vmem:[#allocation52_spill] sm:$0xff] %v26629_v9  ;;  %v17579_v55 = vsel %vm17537_vm13, %v26391_v49, 0.0 }
 0x628   : > { %v6878_v5 = vmul.f32 %v6846_v42, %v26497_v16  ;;  %v6847_v4 = vmax.f32 %v6815_v62, 0.0  ;;  %v17578_v62 = vadd.f32 %v17577_v63, %v17576_v60  ;;  %v17581_v49 = vsel %vm17537_vm13, %v26366_v39, 0.0 }
 0x629   : > { %v6927_v30 = vadd.f32 %v6926_v29, %v6925_v58  ;;  %v6881_v11 = vmul.f32 %v6849_v21, %v26480_v32  ;;  %v6934_v10 = vsel %vm29644_vm1, %v6880_v35, 0.0 }
 0x62a   : > { %v6879_v6 = vmul.f32 %v6847_v4, %v26475_v51  ;;  %v20827_v7 = vpop.f32.mrb[20].mxu1  ;;  %v6930_v16 = vsel %vm29644_vm1, %v6878_v5, 0.0  ;;  %v6992_v51 = vadd.f32 %v6991_v54, %v6990_v12  ;;  %v26639_v4 = vpop.permute.xlu0 %7123  ;;  %v17580_v21 = vadd.f32 %v17579_v55, %v17578_v62 }
 0x62b   : > { %v6929_v50 = vadd.f32 %v6928_v22, %v6927_v30  ;;  %v6724_v57 = vpop.f32.mrb[21].mxu1  ;;  %v6820_v25 = vadd.f32 %v20827_v7, %v26503_v43  ;;  %29835 = vst [vmem:[#allocation53_spill] sm:$0xff] %v26639_v4  ;;  %v6936_v30 = vsel %vm29644_vm1, %v6881_v11, 0.0 }
 0x62c   : > { %v6818_v44 = vadd.f32 %v26503_v43, %v6724_v57  ;;  %v20828_v13 = vpop.f32.mrb[22].mxu1  ;;  %v6932_v24 = vsel %vm29644_vm1, %v6879_v6, 0.0  ;;  %v6993_v45 = vrot.slane %v6992_v51, 2  ;;  %v26645_v6 = vpop.permute.xlu1 %7118 }
 0x62d   : > { %v6931_v40 = vadd.f32 %v6930_v16, %v6929_v50  ;;  %v6821_v31 = vadd.f32 %v20828_v13, %v26503_v43  ;;  %v6727_v59 = vpop.f32.mrb[23].mxu1  ;;  %v6852_v58 = vmax.f32 %v6820_v25, 0.0  ;;  %29836 = vst [vmem:[#allocation54_spill] sm:$0xff] %v26645_v6 }
 0x62e   : > { %v6850_v42 = vmax.f32 %v6818_v44, 0.0  ;;  %v6819_v14 = vadd.f32 %v26503_v43, %v6727_v59  ;;  %v6994_v16 = vadd.f32 %v6993_v45, %v6992_v51  ;;  %v17582_v59 = vadd.f32 %v17581_v49, %v17580_v21 }
 0x62f   : > { %v6933_v46 = vadd.f32 %v6932_v24, %v6931_v40  ;;  %v6853_v32 = vmax.f32 %v6821_v31, 0.0  ;;  %v26657_v24 = vpop.permute.xlu0 %7133 }
 0x630   : > { %v6882_v12 = vmul.f32 %v6850_v42, %v26534_v15  ;;  %v6851_v29 = vmax.f32 %v6819_v14, 0.0  ;;  %v6884_v15 = vmul.f32 %v6852_v58, %v26554_v1  ;;  %v17583_v1 = vsel %vm17537_vm13, %v26401_v36, 0.0  ;;  %29837 = vst [vmem:[#allocation55_spill] sm:$0xff] %v26657_v24  ;;  %v26661_v55 = vpop.permute.xlu1 %7128 }
 0x631   : > { %v6935_v5 = vadd.f32 %v6934_v10, %v6933_v46  ;;  %v6885_v25 = vmul.f32 %v6853_v32, %v26491_v19  ;;  %29838 = vst [vmem:[#allocation56_spill] sm:$0xff] %v26661_v55  ;;  %v6995_v46 = vrot.slane %v6994_v16, 1  ;;  %v17584_v36 = vadd.f32 %v17583_v1, %v17582_v59 }
 0x632   : > { %v6883_v54 = vmul.f32 %v6851_v29, %v26486_v34  ;;  %v20831_v22 = vpop.f32.mrb[24].mxu1  ;;  %v6938_v60 = vsel %vm29644_vm1, %v6882_v12, 0.0  ;;  %v6942_v51 = vsel %vm29644_vm1, %v6884_v15, 0.0  ;;  %v17585_v29 = vsel %vm17537_vm13, %v26370_v8, 0.0 }
 0x633   : > { %v6937_v7 = vadd.f32 %v6936_v30, %v6935_v5  ;;  %v6740_v63 = vpop.f32.mrb[25].mxu1  ;;  %v6824_v50 = vadd.f32 %v20831_v22, %v26503_v43  ;;  %v6944_v10 = vsel %vm29644_vm1, %v6885_v25, 0.0  ;;  %v6996_v30 = vadd.f32 %v6995_v46, %v6994_v16 }
 0x634   : > { %v6822_v57 = vadd.f32 %v26503_v43, %v6740_v63  ;;  %v20832_v35 = vpop.f32.mrb[26].mxu1  ;;  %v6940_v39 = vsel %vm29644_vm1, %v6883_v54, 0.0  ;;  %v17586_v49 = vadd.f32 %v17585_v29, %v17584_v36  ;;  %v26673_v21 = vpop.permute.xlu1 %7138  ;;  %v17591_v25 = vsel %vm17537_vm13, %v26412_v38, 0.0 }
 0x635   : > { %v6939_v34 = vadd.f32 %v6938_v60, %v6937_v7  ;;  %v6743_v44 = vpop.f32.mrb[27].mxu1  ;;  %v6825_v40 = vadd.f32 %v20832_v35, %v26503_v43  ;;  %v6856_v42 = vmax.f32 %v6824_v50, 0.0  ;;  %29840 = vst [vmem:[#allocation58_spill] sm:$0xff] %v26673_v21  ;;  %v17587_v7 = vsel %vm17537_vm13, %v26406_v23, 0.0 }
 0x636   : > { %v6854_v13 = vmax.f32 %v6822_v57, 0.0  ;;  %v6823_v31 = vadd.f32 %v26503_v43, %v6743_v44  ;;  %v6997_v63 = vadd.f32 1e-06, %v6996_v30  ;;  %v17588_v60 = vadd.f32 %v17587_v7, %v17586_v49 }
 0x637   : > { %v6941_v11 = vadd.f32 %v6940_v39, %v6939_v34  ;;  %v6857_v43 = vmax.f32 %v6825_v40, 0.0  ;;  %v6888_v45 = vmul.f32 %v6856_v42, %v26590_v18  ;;  %v17593_v1 = vsel %vm17537_vm13, %v26388_v20, 0.0  ;;  %v24108_v20 = vld [vmem:[%s29541_s8 + $0x3c] sm:$0xff]  }
 0x638   : > { %v6886_v19 = vmul.f32 %v6854_v13, %v26572_v53  ;;  %v6855_v14 = vmax.f32 %v6823_v31, 0.0  ;;  %v26669_v53 = vpop.permute.xlu0 %7143  ;;  %v26683_v35 = vpop.permute.xlu1 %7148  ;;  %24279 = vrcp.f32 %v6997_v63  ;;  %v17595_v42 = vsel %vm17537_vm13, %v26416_v0, 0.0  ;;  %20833 = vmatprep.subr.bf16.mxu0 %v24108_v20 }
 0x639   : > { %v6943_v62 = vadd.f32 %v6942_v51, %v6941_v11  ;;  %29839 = vst [vmem:[#allocation57_spill] sm:$0xff] %v26669_v53  ;;  %v6889_v54 = vmul.f32 %v6857_v43, %v26507_v28  ;;  %v6950_v8 = vsel %vm29644_vm1, %v6888_v45, 0.0  ;;  %v17589_v28 = vsel %vm17537_vm13, %v26380_v2, 0.0  ;;  %29842 = vst [vmem:[#allocation60_spill] sm:$0xff] %v26683_v35  ;;  %20834 = vmatpush3.bf16.msra.mxu0 %v24108_v20 }
 0x63a   : > { %v6887_v58 = vmul.f32 %v6855_v14, %v26495_v3  ;;  %v6946_v5 = vsel %vm29644_vm1, %v6886_v19, 0.0  ;;  %v17590_v34 = vadd.f32 %v17589_v28, %v17588_v60  ;;  %v17597_v46 = vsel %vm17537_vm13, %v26398_v61, 0.0 }
 0x63b   : > { %v6945_v12 = vadd.f32 %v6944_v10, %v6943_v62  ;;  %v6952_v15 = vsel %vm29644_vm1, %v6889_v54, 0.0  ;;  %v17599_v45 = vsel %vm17537_vm13, %v26422_v52, 0.0  ;;  %vm29850_vm13 = vcmask 1041408  }
 0x63c   : > { %v6948_v22 = vsel %vm29644_vm1, %v6887_v58, 0.0  ;;  %v26679_v57 = vpop.permute.xlu0 %7153  ;;  %v17592_v13 = vadd.f32 %v17591_v25, %v17590_v34  ;;  %v26689_v40 = vpop.permute.xlu1 %7158  ;;  %vm29645_vm1 = vcmask 253952  }
 0x63d   : > { %v6947_v32 = vadd.f32 %v6946_v5, %v6945_v12  ;;  %29841 = vst [vmem:[#allocation59_spill] sm:$0xff] %v26679_v57  ;;  %29844 = vst [vmem:[#allocation62_spill] sm:$0xff] %v26689_v40  ;;  %v24109_v12 = vld [vmem:[%s29541_s8 + $0x44] sm:$0xff]  }
 0x63e   : > { %v17594_v59 = vadd.f32 %v17593_v1, %v17592_v13  ;;  %20835 = vmatprep.subr.bf16.mxu0 %v24109_v12 }
 0x63f   : > { %v6949_v3 = vadd.f32 %v6948_v22, %v6947_v32  ;;  %20836 = vmatpush3.bf16.msra.mxu0 %v24109_v12 }
 0x640   : > { %v26687_v39 = vpop.permute.xlu0 %7163  ;;  %v26700_v19 = vpop.permute.xlu1 %7168  ;;  %v17596_v62 = vadd.f32 %v17595_v42, %v17594_v59 }
 0x641   : > { %v6951_v18 = vadd.f32 %v6950_v8, %v6949_v3  ;;  %29843 = vst [vmem:[#allocation61_spill] sm:$0xff] %v26687_v39  ;;  %29846 = vst [vmem:[#allocation64_spill] sm:$0xff] %v26700_v19  ;;  %v24110_v3 = vld [vmem:[%s29541_s8 + $0x4c] ss:$0 sps:$4 sm:$0x33]  }
 0x642   : > { %v24280_v38 = vpop.eup %24279  ;;  %v17598_v61 = vadd.f32 %v17597_v46, %v17596_v62  ;;  %23897 = vmatprep.subr.msk.bf16.mxu0 %vm29850_vm13, %v24110_v3 }
 0x643   : > { %v6953_v50 = vadd.f32 %v6952_v15, %v6951_v18 }
 0x644   : > { %v26696_v51 = vpop.permute.xlu0 %7173  ;;  %v26727_v29 = vpop.permute.xlu1 %7178  ;;  %v17600_v52 = vadd.f32 %v17599_v45, %v17598_v61 }
 0x645   : > { %v6954_v16 = vrot.slane %v6953_v50, 4  ;;  %29845 = vst [vmem:[#allocation63_spill] sm:$0xff] %v26696_v51  ;;  %29848 = vst [vmem:[#allocation66_spill] sm:$0xff] %v26727_v29 }
 0x647   : > { %v6955_v23 = vadd.f32 %v6954_v16, %v6953_v50  ;;  %v26760_v16 = vld [vmem:[%s29541_s8] sm:$0xff]  }
 0x648   : > { %v26722_v36 = vpop.permute.xlu0 %7183  ;;  %v26755_v28 = vpop.permute.xlu1 %7188 }
 0x649   : > { %v6956_v44 = vrot.slane %v6955_v23, 2  ;;  %29847 = vst [vmem:[#allocation65_spill] sm:$0xff] %v26722_v36  ;;  %29851 = vst [vmem:[#allocation68_spill] sm:$0xff] %v26755_v28 }
 0x64b   : > { %v6957_v31 = vadd.f32 %v6956_v44, %v6955_v23  ;;  %v17601_v23 = vrot.slane %v17600_v52, 4 }
 0x64c   : > { %v26743_v7 = vpop.permute.xlu0 %7193 }
 0x64d   : > { %v6958_v2 = vrot.slane %v6957_v31, 1  ;;  %29849 = vst [vmem:[#allocation67_spill] sm:$0xff] %v26743_v7 }
 0x64f   : > { %v6959_v11 = vadd.f32 %v6958_v2, %v6957_v31 }
 0x650   : > { %v26774_v59 = vpop.permute.xlu0 %7203 }
 0x651   : > { %v26702_v14 = vmul.f32 %v24280_v38, %v6959_v11  ;;  %29853 = vst [vmem:[#allocation69_spill] sm:$0xff] %v26774_v59  ;;  %v17602_v11 = vadd.f32 %v17601_v23, %v17600_v52  ;;  %v26777_v38 = vpop.permute.xlu1 %7198 }
 0x652   : > { %29854 = vst [vmem:[#allocation70_spill] sm:$0xff] %v26777_v38 }
 0x653   : > { %7001 = vst.msk [vmem:[%s29680_s28] sm:$0x1] %vm29645_vm1, %v26702_v14  ;;  %v7228_v0 = vmul.f32 %v26536_v17, %v26702_v14  ;;  %v7229_v10 = vmul.f32 %v26550_v48, %v26702_v14  ;;  %v7226_v43 = vmul.f32 %v26608_v41, %v26702_v14  ;;  %v7227_v58 = vmul.f32 %v26520_v27, %v26702_v14  ;;  %vm29852_vm1 = vmmov %vm29850_vm13  ;;  %v7032_v17 = vld [vmem:[%s26834_s20 + $0xf0] sm:$0xff]  ;;  %v7033_v41 = vld [vmem:[%s26834_s20 + $0xf8] sm:$0xff]  ;;  %s17641_s28 = sshll.u32 %s30203_s26, 4  ;;  %s17642_s28 = int_to_ptr.vmem [resolvable:$true] %s17641_s28 }
 0x654   : > { %v7232_v5 = vmul.f32 %v26594_v37, %v26702_v14  ;;  %v7233_v32 = vmul.f32 %v26615_v26, %v26702_v14  ;;  %v7230_v54 = vmul.f32 %v26563_v47, %v26702_v14  ;;  %v7231_v22 = vmul.f32 %v26577_v56, %v26702_v14  ;;  %v7030_v37 = vld [vmem:[%s26834_s20 + $0xe0] sm:$0xff]  ;;  %v7031_v47 = vld [vmem:[%s26834_s20 + $0xe8] sm:$0xff]  ;;  %s24347_s21 = scalar_lea.vmem %s17642_s28, 16  ;;  %p24354_p0 = scmp.lt.s32.totalorder %s17642_s28, %s24352_s3 }
 0x655   : > { %v23961_v30 = vpack.i.bf16 %v7229_v10, %v7228_v0  ;;  %v23956_v49 = vpack.i.bf16 %v7227_v58, %v7226_v43  ;;  %v7236_v8 = vmul.f32 %v26645_v6, %v26702_v14  ;;  %v7237_v18 = vmul.f32 %v26639_v4, %v26702_v14  ;;  %v26789_v58 = vpop.permute.xlu0 %7213  ;;  %p24348_p11 = scmp.ne.s32.totalorder %s17642_s28, %s24347_s21 }
 0x656   : > { %v23971_v63 = vpack.i.bf16 %v7233_v32, %v7232_v5  ;;  %v7234_v15 = vmul.f32 %v26629_v9, %v26702_v14  ;;  %v7235_v60 = vmul.f32 %v26623_v33, %v26702_v14  ;;  %v23966_v50 = vpack.i.bf16 %v7231_v22, %v7230_v54  ;;  %29855 = vst [vmem:[#allocation71_spill] sm:$0xff] %v26789_v58  ;;  %v26800_v54 = vpop.permute.xlu1 %7208 }
 0x657   : > { %23962 = vrot.lane.b32.xlu0 %v23961_v30, %s24446_s27  ;;  %23957 = vrot.lane.b32.xlu1 %v23956_v49, %s24446_s27  ;;  %v7654_v34 = vsel %vm29852_vm1, %v24110_v3, 0  ;;  %v7240_v25 = vmul.f32 %v26673_v21, %v26702_v14  ;;  %v7241_v44 = vmul.f32 %v26669_v53, %v26702_v14  ;;  %v23981_v13 = vpack.i.bf16 %v7237_v18, %v7236_v8  ;;  %p24349_p12 = pnand %p24348_p11, %p24562_p5 }
 0x658   : > { %20838 = vmatpush3.bf16.msra.mxu0 %v7654_v34  ;;  %v7238_v31 = vmul.f32 %v26661_v55, %v26702_v14  ;;  %v7239_v1 = vmul.f32 %v26657_v24, %v26702_v14  ;;  %v23976_v2 = vpack.i.bf16 %v7235_v60, %v7234_v15  ;;  %v7244_v42 = vmul.f32 %v26689_v40, %v26702_v14 }
 0x659   : > { %20871 = vmatprep.subr.bf16.mxu0 %v26760_v16  ;;  %v23991_v20 = vpack.i.bf16 %v7241_v44, %v7240_v25  ;;  %v7245_v62 = vmul.f32 %v26687_v39, %v26702_v14  ;;  %v7242_v46 = vmul.f32 %v26683_v35, %v26702_v14  ;;  %v7243_v0 = vmul.f32 %v26679_v57, %v26702_v14  ;;  %v26812_v15 = vpop.permute.xlu0 %7223  ;;  %p24350_p13 = pneg %p24349_p12 }
 0x65a   : > { %v23986_v10 = vpack.i.bf16 %v7239_v1, %v7238_v31  ;;  %v17603_v43 = vrot.slane %v17602_v11, 2  ;;  %v7248_v12 = vmul.f32 %v26727_v29, %v26702_v14  ;;  %v7249_v45 = vmul.f32 %v26722_v36, %v26702_v14  ;;  %29856 = vst [vmem:[#allocation72_spill] sm:$0xff] %v26800_v54  ;;  %29857 = vst [vmem:[#allocation73_spill] sm:$0xff] %v26812_v15  ;;  %v26815_v60 = vpop.permute.xlu1 %7218  ;;  %v7022_v29 = vld [vmem:[%s26834_s20 + $0xa0] sm:$0xff] }
 0x65b   : > { %23972 = vrot.lane.b32.xlu0 %v23971_v63, %s24446_s27  ;;  %23967 = vrot.lane.b32.xlu1 %v23966_v50, %s24446_s27  ;;  %v24001_v61 = vpack.i.bf16 %v7245_v62, %v7244_v42  ;;  %v7246_v5 = vmul.f32 %v26700_v19, %v26702_v14  ;;  %v23996_v32 = vpack.i.bf16 %v7243_v0, %v7242_v46  ;;  %v7005_v62 = vld [vmem:[%s26834_s20 + $0x18] sm:$0xff]  ;;  %v7002_v0 = vld [vmem:[%s26834_s20] sm:$0xff]  ;;  %vm7604_vm1 = vcmask 293888  }
 0x65c   : > { %v7247_v30 = vmul.f32 %v26696_v51, %v26702_v14  ;;  %v17604_v22 = vadd.f32 %v17603_v43, %v17602_v11  ;;  %v7252_v49 = vmul.f32 %v26777_v38, %v26702_v14  ;;  %v24011_v3 = vpack.i.bf16 %v7249_v45, %v7248_v12  ;;  %29858 = vst [vmem:[#allocation74_spill] sm:$0xff] %v26815_v60  ;;  %v7023_v19 = vld [vmem:[%s26834_s20 + $0xa8] sm:$0xff] }
 0x65d   : > { %v7253_v52 = vmul.f32 %v26774_v59, %v26702_v14  ;;  %v7250_v8 = vmul.f32 %v26755_v28, %v26702_v14  ;;  %v7251_v63 = vmul.f32 %v26743_v7, %v26702_v14  ;;  %v7256_v34 = vmul.f32 %v26815_v60, %v26702_v14 }
 0x65e   : > { %v24006_v18 = vpack.i.bf16 %v7247_v30, %v7246_v5  ;;  %v17605_v50 = vrot.slane %v17604_v22, 1  ;;  %v7257_v25 = vmul.f32 %v26812_v15, %v26702_v14  ;;  %v7254_v44 = vmul.f32 %v26800_v54, %v26702_v14 }
 0x65f   : > { %23982 = vrot.lane.b32.xlu0 %v23981_v13, %s24446_s27  ;;  %23977 = vrot.lane.b32.xlu1 %v23976_v2, %s24446_s27  ;;  %v24021_v23 = vpack.i.bf16 %v7253_v52, %v7252_v49  ;;  %v24016_v13 = vpack.i.bf16 %v7251_v63, %v7250_v8  ;;  %v7255_v31 = vmul.f32 %v26789_v58, %v26702_v14  ;;  %v7007_v63 = vld [vmem:[%s26834_s20 + $0x28] sm:$0xff] }
 0x660   : > { %v17606_v1 = vadd.f32 %v17605_v50, %v17604_v22  ;;  %v24031_v2 = vpack.i.bf16 %v7257_v25, %v7256_v34 }
 0x661   : > { %v24026_v11 = vpack.i.bf16 %v7255_v31, %v7254_v44  ;;  %v7008_v44 = vld [vmem:[%s26834_s20 + $0x30] sm:$0xff] }
 0x662   : > { %v17607_v42 = vadd.f32 1e-06, %v17606_v1 }
 0x663   : > { %23992 = vrot.lane.b32.xlu0 %v23991_v20, %s24446_s27  ;;  %23987 = vrot.lane.b32.xlu1 %v23986_v10, %s24446_s27  ;;  %v7004_v20 = vld [vmem:[%s26834_s20 + $0x10] sm:$0xff]  ;;  %v7003_v10 = vld [vmem:[%s26834_s20 + $0x8] sm:$0xff] }
 0x667   : > { %24002 = vrot.lane.b32.xlu0 %v24001_v61, %s24446_s27  ;;  %23997 = vrot.lane.b32.xlu1 %v23996_v32, %s24446_s27 }
 0x66b   : > { %24012 = vrot.lane.b32.xlu0 %v24011_v3, %s24446_s27  ;;  %24007 = vrot.lane.b32.xlu1 %v24006_v18, %s24446_s27  ;;  %v7006_v18 = vld [vmem:[%s26834_s20 + $0x20] sm:$0xff] }
 0x66f   : > { %24022 = vrot.lane.b32.xlu0 %v24021_v23, %s24446_s27  ;;  %24017 = vrot.lane.b32.xlu1 %v24016_v13, %s24446_s27  ;;  %v7009_v13 = vld [vmem:[%s26834_s20 + $0x38] sm:$0xff] }
 0x673   : > { %24032 = vrot.lane.b32.xlu0 %v24031_v2, %s24446_s27  ;;  %24027 = vrot.lane.b32.xlu1 %v24026_v11, %s24446_s27  ;;  %s29360_s27 = scalar_lea.hbm %s29546_s13, %s29705_s2 }
 0x677   : > { %17610 = vperm.xlu1 %23955, %v17607_v42  }
 0x6c9   : > { %v23963_v14 = vpop.permute.xlu0 %23962  ;;  %v23958_v46 = vpop.permute.xlu1 %23957 }
 0x6ca   : > { %v23965_v43 = vunpack.i.h.bf16 %v23963_v14  ;;  %v23964_v12 = vunpack.i.l.bf16 %v23963_v14  ;;  %v23960_v61 = vunpack.i.h.bf16 %v23958_v46  ;;  %v23959_v45 = vunpack.i.l.bf16 %v23958_v46 }
 0x6cc   : > { %v7388_v5 = vsel %vm630_vm5, %v7004_v20, %v23964_v12  ;;  %v7389_v32 = vsel %vm630_vm5, %v7005_v62, %v23965_v43  ;;  %v7386_v30 = vsel %vm630_vm5, %v7002_v0, %v23959_v45  ;;  %v7387_v22 = vsel %vm630_vm5, %v7003_v10, %v23960_v61  ;;  %v7010_v61 = vld [vmem:[%s26834_s20 + $0x40] sm:$0xff]  ;;  %v7011_v45 = vld [vmem:[%s26834_s20 + $0x48] sm:$0xff] }
 0x6cd   : > { %v26844_v49 = vpack.c.bf16 %v7389_v32, %v7388_v5  ;;  %v23973_v3 = vpop.permute.xlu0 %23972  ;;  %v26846_v52 = vpack.c.bf16 %v7387_v22, %v7386_v30  ;;  %v23968_v8 = vpop.permute.xlu1 %23967 }
 0x6ce   : > { %v23975_v50 = vunpack.i.h.bf16 %v23973_v3  ;;  %v23974_v34 = vunpack.i.l.bf16 %v23973_v3  ;;  %v23970_v23 = vunpack.i.h.bf16 %v23968_v8  ;;  %v23969_v25 = vunpack.i.l.bf16 %v23968_v8 }
 0x6cf   : > { %v7435_v1 = vsel %vm29697_vm8, %v26844_v49, 0  ;;  %v7434_v11 = vsel %vm29696_vm7, %v26846_v52, 0 }
 0x6d0   : > { %v7470_v42 = vshrl.u32 %v7435_v1, 16  ;;  %v7390_v14 = vsel %vm630_vm5, %v7006_v18, %v23969_v25  ;;  %v7391_v20 = vsel %vm630_vm5, %v7007_v63, %v23970_v23  ;;  %v7462_v46 = vshrl.u32 %v7434_v11, 16  ;;  %v29862_v63 = vld [vmem:[#allocation12_spill] sm:$0xff] }
 0x6d1   : > { %v23983_v62 = vpop.permute.xlu0 %23982  ;;  %v26860_v0 = vpack.c.bf16 %v7391_v20, %v7390_v14  ;;  %v7392_v10 = vsel %vm630_vm5, %v7008_v44, %v23974_v34  ;;  %v7393_v43 = vsel %vm630_vm5, %v7009_v13, %v23975_v50  ;;  %v23978_v12 = vpop.permute.xlu1 %23977  ;;  %v7465_v5 = vshll.u32 %v7434_v11, 16  ;;  %v7012_v11 = vld [vmem:[%s26834_s20 + $0x50] sm:$0xff]  ;;  %v7013_v14 = vld [vmem:[%s26834_s20 + $0x58] sm:$0xff] }
 0x6d2   : > { %v23980_v32 = vunpack.i.h.bf16 %v23978_v12  ;;  %v23979_v30 = vunpack.i.l.bf16 %v23978_v12  ;;  %v7464_v22 = vrot.slane %v7462_v46, 7  ;;  %v7472_v3 = vrot.slane %v7470_v42, 7 }
 0x6d3   : > { %v23985_v8 = vunpack.i.h.bf16 %v23983_v62  ;;  %v7473_v18 = vshll.u32 %v7435_v1, 16  ;;  %v7436_v23 = vsel %vm29665_vm9, %v26860_v0, 0  ;;  %v23984_v25 = vunpack.i.l.bf16 %v23983_v62  ;;  %v29863_v1 = vld [vmem:[#allocation9_spill] sm:$0xff] }
 0x6d4   : > { %v7394_v34 = vsel %vm630_vm5, %v7010_v61, %v23979_v30  ;;  %v7395_v50 = vsel %vm630_vm5, %v7011_v45, %v23980_v32  ;;  %v7467_v44 = vor.u32 %v7465_v5, %v7464_v22  ;;  %v26871_v13 = vpack.c.bf16 %v7393_v43, %v7392_v10  ;;  %v24112_v61 = vld [vmem:[%s29541_s8 + $0x8] sm:$0xff]   ;;  %v7014_v43 = vld [vmem:[%s26834_s20 + $0x60] sm:$0xff] }
 0x6d5   : > { %v23988_v42 = vpop.permute.xlu1 %23987  ;;  %v23993_v20 = vpop.permute.xlu0 %23992  ;;  %v7475_v46 = vor.u32 %v7473_v18, %v7472_v3  ;;  %v7478_v15 = vshrl.u32 %v7436_v23, 16  ;;  %v26882_v45 = vpack.c.bf16 %v7395_v50, %v7394_v34  ;;  %v7396_v32 = vsel %vm630_vm5, %v7012_v11, %v23984_v25  ;;  %v7015_v18 = vld [vmem:[%s26834_s20 + $0x68] sm:$0xff]  ;;  %v7017_v11 = vld [vmem:[%s26834_s20 + $0x78] sm:$0xff] }
 0x6d6   : > { %v26877_v12 = vsel %vm1585_vm4, %v29863_v1, %v7467_v44  ;;  %v23990_v62 = vunpack.i.h.bf16 %v23988_v42  ;;  %v23989_v10 = vunpack.i.l.bf16 %v23988_v42  ;;  %v7397_v30 = vsel %vm630_vm5, %v7013_v14, %v23985_v8  ;;  %v24113_v44 = vld [vmem:[%s29541_s8 + $0x10] ss:$0 sps:$4 sm:$0x33]  }
 0x6d7   : > { %20839 = vmatprep.mubr.msk.bf16.mxu0 %vm7604_vm1, %v26877_v12  ;;  %v26888_v5 = vsel %vm1585_vm4, %v7464_v22, %v7475_v46  ;;  %v7480_v34 = vrot.slane %v7478_v15, 7  ;;  %v7481_v50 = vshll.u32 %v7436_v23, 16  ;;  %v23995_v42 = vunpack.i.h.bf16 %v23993_v20  ;;  %v7016_v8 = vld [vmem:[%s26834_s20 + $0x70] sm:$0xff] }
 0x6d8   : > { %20840 = vmatmul.mubr.msk.bf16.vlgmr.msra.gmra.mrb[36].mxu0 %vm7604_vm1, %v26888_v5  ;;  %v23994_v58 = vunpack.i.l.bf16 %v23993_v20  ;;  %v7437_v25 = vsel %vm29695_vm10, %v26871_v13, 0  ;;  %v26904_v15 = vpack.c.bf16 %v7397_v30, %v7396_v32  ;;  %v7398_v23 = vsel %vm630_vm5, %v7014_v43, %v23989_v10  ;;  %v29865_v20 = vld [vmem:[#allocation14_spill] sm:$0xff] }
 0x6d9   : > { %20872 = vmatpush3.bf16.msra.mxu0 %v26760_v16  ;;  %v23998_v22 = vpop.permute.xlu1 %23997  ;;  %v7483_v14 = vor.u32 %v7481_v50, %v7480_v34  ;;  %v7486_v60 = vshrl.u32 %v7437_v25, 16  ;;  %v7399_v54 = vsel %vm630_vm5, %v7015_v18, %v23990_v62  ;;  %v24003_v59 = vpop.permute.xlu0 %24002  ;;  %v7438_v16 = vsel %vm29653_vm11, %v26882_v45, 0 }
 0x6da   : > { %20873 = vmatprep.subr.bf16.mxu0 %v24112_v61  ;;  %v7835_v38 = vsel %vm29850_vm13, %v24113_v44, 0  ;;  %v7400_v50 = vsel %vm630_vm5, %v7016_v8, %v23994_v58  ;;  %v7401_v32 = vsel %vm630_vm5, %v7017_v11, %v23995_v42  ;;  %v7489_v43 = vshll.u32 %v7437_v25, 16  ;;  %v26925_v58 = vld [vmem:[%s29541_s8 + $0x78] sm:$0xff]   ;;  %v7018_v25 = vld [vmem:[%s26834_s20 + $0x80] sm:$0xff] }
 0x6db   : > { %v26912_v7 = vsel %vm1585_vm4, %v7472_v3, %v7483_v14  ;;  %v7488_v10 = vrot.slane %v7486_v60, 7  ;;  %v26919_v30 = vpack.c.bf16 %v7399_v54, %v7398_v23  ;;  %v24005_v3 = vunpack.i.h.bf16 %v24003_v59  ;;  %v7020_v60 = vld [vmem:[%s26834_s20 + $0x90] sm:$0xff]  ;;  %v7021_v23 = vld [vmem:[%s26834_s20 + $0x98] sm:$0xff] }
 0x6dc   : > { %20843 = vmatprep.mubr.msk.bf16.mxu0 %vm7604_vm1, %v26912_v7  ;;  %v24004_v18 = vunpack.i.l.bf16 %v24003_v59  ;;  %v7494_v14 = vshrl.u32 %v7438_v16, 16  ;;  %v24000_v42 = vunpack.i.h.bf16 %v23998_v22  ;;  %v23999_v8 = vunpack.i.l.bf16 %v23998_v22  ;;  %v7019_v59 = vld [vmem:[%s26834_s20 + $0x88] sm:$0xff] }
 0x6dd   : > { %v24008_v62 = vpop.permute.xlu1 %24007  ;;  %20874 = vmatpush3.bf16.msra.mxu0 %v24112_v61  ;;  %v7491_v11 = vor.u32 %v7489_v43, %v7488_v10  ;;  %v29866_v61 = vld [vmem:[#allocation15_spill] sm:$0xff]  ;;  %v26939_v22 = vpack.c.bf16 %v7401_v32, %v7400_v50  ;;  %v24013_v57 = vpop.permute.xlu0 %24012 }
 0x6de   : > { %23898 = vmatprep.subr.msk.bf16.mxu0 %vm29850_vm13, %v24113_v44  ;;  %vm29867_vm11 = vcmp.ne.s16.totalorder %v29866_v61, 0  ;;  %v24010_v28 = vunpack.i.h.bf16 %v24008_v62  ;;  %v24009_v36 = vunpack.i.l.bf16 %v24008_v62  ;;  %v7496_v51 = vrot.slane %v7494_v14, 7 }
 0x6df   : > { %v7439_v54 = vsel %vm29867_vm11, %v26904_v15, 0  ;;  %v7497_v44 = vshll.u32 %v7438_v16, 16  ;;  %v26937_v39 = vsel %vm1585_vm4, %v7480_v34, %v7491_v11  ;;  %v7404_v43 = vsel %vm630_vm5, %v7020_v60, %v24004_v18 }
 0x6e0   : > { %20844 = vmatmul.mubr.msk.bf16.gmra.mrb[40].mxu0 %vm7604_vm1, %v26937_v39  ;;  %v7502_v35 = vshrl.u32 %v7439_v54, 16  ;;  %v7402_v16 = vsel %vm630_vm5, %v7018_v25, %v23999_v8  ;;  %v7403_v62 = vsel %vm630_vm5, %v7019_v59, %v24000_v42  ;;  %v7405_v34 = vsel %vm630_vm5, %v7021_v23, %v24005_v3 }
 0x6e1   : > { %20876 = vmatpush3.bf16.msra.mxu0 %v7835_v38  ;;  %v7499_v40 = vor.u32 %v7497_v44, %v7496_v51  ;;  %v29868_v38 = vld [vmem:[#allocation16_spill] sm:$0xff]  ;;  %v7406_v32 = vsel %vm630_vm5, %v7022_v29, %v24009_v36  ;;  %v7407_v18 = vsel %vm630_vm5, %v7023_v19, %v24010_v28  ;;  %v24014_v60 = vunpack.i.l.bf16 %v24013_v57  ;;  %v24018_v11 = vpop.permute.xlu1 %24017  ;;  %v7024_v36 = vld [vmem:[%s26834_s20 + $0xb0] sm:$0xff] }
 0x6e2   : > { %20909 = vmatprep.subr.bf16.mxu0 %v26925_v58  ;;  %vm29869_vm11 = vcmp.ne.s16.totalorder %v29868_v38, 0  ;;  %v7504_v42 = vrot.slane %v7502_v35, 7  ;;  %v7505_v3 = vshll.u32 %v7439_v54, 16  ;;  %v26958_v8 = vpack.c.bf16 %v7403_v62, %v7402_v16  ;;  %v7026_v62 = vld [vmem:[%s26834_s20 + $0xc0] sm:$0xff] }
 0x6e3   : > { %v7440_v50 = vsel %vm29869_vm11, %v26919_v30, 0  ;;  %v26954_v14 = vsel %vm1585_vm4, %v7488_v10, %v7499_v40  ;;  %v26960_v25 = vpack.c.bf16 %v7405_v34, %v7404_v43  ;;  %v24015_v59 = vunpack.i.h.bf16 %v24013_v57  ;;  %v7025_v40 = vld [vmem:[%s26834_s20 + $0xb8] sm:$0xff]  ;;  %v29870_v10 = vld [vmem:[#allocation17_spill] sm:$0xff] }
 0x6e4   : > { %20847 = vmatprep.mubr.msk.bf16.mxu0 %vm7604_vm1, %v26954_v14  ;;  %v7510_v29 = vshrl.u32 %v7440_v50, 16  ;;  %v26963_v19 = vpack.c.bf16 %v7407_v18, %v7406_v32  ;;  %v7507_v28 = vor.u32 %v7505_v3, %v7504_v42  ;;  %vm29871_vm13 = vcmp.ne.s16.totalorder %v29870_v10, 0  ;;  %v7027_v43 = vld [vmem:[%s26834_s20 + $0xc8] sm:$0xff]  ;;  %v29872_v3 = vld [vmem:[#allocation18_spill] sm:$0xff] }
 0x6e5   : > { %v7441_v23 = vsel %vm29871_vm13, %v26939_v22, 0  ;;  %v24020_v44 = vunpack.i.h.bf16 %v24018_v11  ;;  %v24019_v35 = vunpack.i.l.bf16 %v24018_v11  ;;  %v7513_v54 = vshll.u32 %v7440_v50, 16  ;;  %v29874_v50 = vld [vmem:[#allocation19_spill] sm:$0xff]  ;;  %v24028_v55 = vpop.permute.xlu1 %24027 }
 0x6e6   : > { %v7512_v53 = vrot.slane %v7510_v29, 7  ;;  %v7408_v16 = vsel %vm630_vm5, %v7024_v36, %v24014_v60  ;;  %v26973_v57 = vsel %vm1585_vm4, %v7496_v51, %v7507_v28  ;;  %v7518_v34 = vshrl.u32 %v7441_v23, 16  ;;  %v29876_v51 = vld [vmem:[#allocation20_spill] sm:$0xff] }
 0x6e7   : > { %v7409_v32 = vsel %vm630_vm5, %v7025_v40, %v24015_v59  ;;  %vm29873_vm11 = vcmp.ne.s16.totalorder %v29872_v3, 0  ;;  %vm29875_vm13 = vcmp.ne.s16.totalorder %v29874_v50, 0  ;;  %v7521_v29 = vshll.u32 %v7441_v23, 16 }
 0x6e8   : > { %20848 = vmatmul.mubr.msk.bf16.gmra.mrb[44].mxu0 %vm7604_vm1, %v26973_v57  ;;  %v7515_v18 = vor.u32 %v7513_v54, %v7512_v53  ;;  %v7442_v11 = vsel %vm29873_vm11, %v26958_v8, 0  ;;  %v7443_v60 = vsel %vm29875_vm13, %v26960_v25, 0  ;;  %v7520_v36 = vrot.slane %v7518_v34, 7  ;;  %v24023_v54 = vpop.permute.xlu0 %24022 }
 0x6e9   : > { %v7526_v24 = vshrl.u32 %v7442_v11, 16  ;;  %vm29877_vm9 = vcmp.ne.s16.totalorder %v29876_v51, 0  ;;  %v7410_v59 = vsel %vm630_vm5, %v7026_v62, %v24019_v35  ;;  %v7411_v40 = vsel %vm630_vm5, %v7027_v43, %v24020_v44 }
 0x6ea   : > { %v7444_v28 = vsel %vm29877_vm9, %v26963_v19, 0  ;;  %v26990_v21 = vsel %vm1585_vm4, %v7504_v42, %v7515_v18  ;;  %v7523_v23 = vor.u32 %v7521_v29, %v7520_v36  ;;  %v7529_v4 = vshll.u32 %v7442_v11, 16  ;;  %v7028_v42 = vld [vmem:[%s26834_s20 + $0xd0] sm:$0xff]  ;;  %v7029_v18 = vld [vmem:[%s26834_s20 + $0xd8] sm:$0xff]  ;;  %s28135_s20 = scalar_lea.vmem %s29545_s12, %s24597_s25 }
 0x6eb   : > { %20851 = vmatprep.mubr.msk.bf16.mxu0 %vm7604_vm1, %v26990_v21  ;;  %v7528_v34 = vrot.slane %v7526_v24, 7  ;;  %v7534_v33 = vshrl.u32 %v7443_v60, 16  ;;  %v26994_v6 = vpack.c.bf16 %v7409_v32, %v7408_v16  ;;  %v7542_v35 = vshrl.u32 %v7444_v28, 16  ;;  %v29878_v11 = vld [vmem:[#allocation21_spill] sm:$0xff] }
 0x6ec   : > { %v26996_v62 = vpack.c.bf16 %v7411_v40, %v7410_v59  ;;  %v24025_v44 = vunpack.i.h.bf16 %v24023_v54  ;;  %v24024_v43 = vunpack.i.l.bf16 %v24023_v54  ;;  %v24030_v26 = vunpack.i.h.bf16 %v24028_v55  ;;  %v24033_v40 = vpop.permute.xlu0 %24032 }
 0x6ed   : > { %v7531_v9 = vor.u32 %v7529_v4, %v7528_v34  ;;  %v24029_v56 = vunpack.i.l.bf16 %v24028_v55  ;;  %v27003_v48 = vsel %vm1585_vm4, %v7512_v53, %v7523_v23  ;;  %v7536_v24 = vrot.slane %v7534_v33, 7  ;;  %v29880_v53 = vld [vmem:[#allocation22_spill] sm:$0xff] }
 0x6ee   : > { %v7544_v32 = vrot.slane %v7542_v35, 7  ;;  %vm29879_vm9 = vcmp.ne.s16.totalorder %v29878_v11, 0  ;;  %v7412_v29 = vsel %vm630_vm5, %v7028_v42, %v24024_v43  ;;  %v7413_v55 = vsel %vm630_vm5, %v7029_v18, %v24025_v44 }
 0x6ef   : > { %v27008_v16 = vsel %vm1585_vm4, %v7520_v36, %v7531_v9  ;;  %v7445_v4 = vsel %vm29879_vm9, %v26994_v6, 0  ;;  %v7537_v33 = vshll.u32 %v7443_v60, 16  ;;  %vm29881_vm11 = vcmp.ne.s16.totalorder %v29880_v53, 0 }
 0x6f0   : > { %20852 = vmatmul.mubr.msk.bf16.gmra.mrb[48].mxu0 %vm7604_vm1, %v27003_v48  ;;  %v7446_v9 = vsel %vm29881_vm11, %v26996_v62, 0  ;;  %v7414_v36 = vsel %vm630_vm5, %v7030_v37, %v24029_v56  ;;  %v7415_v59 = vsel %vm630_vm5, %v7031_v47, %v24030_v26  ;;  %v7545_v54 = vshll.u32 %v7444_v28, 16  ;;  %v29882_v26 = vld [vmem:[#allocation23_spill] sm:$0xff] }
 0x6f1   : > { %20855 = vmatprep.mubr.msk.bf16.mxu0 %vm7604_vm1, %v27008_v16  ;;  %v7539_v23 = vor.u32 %v7537_v33, %v7536_v24  ;;  %v7550_v35 = vshrl.u32 %v7445_v4, 16  ;;  %v27022_v43 = vpack.c.bf16 %v7413_v55, %v7412_v29  ;;  %v7558_v42 = vshrl.u32 %v7446_v9, 16  ;;  %v29884_v33 = vld [vmem:[#allocation24_spill] sm:$0xff] }
 0x6f2   : > { %v7547_v44 = vor.u32 %v7545_v54, %v7544_v32  ;;  %v27024_v18 = vpack.c.bf16 %v7415_v59, %v7414_v36  ;;  %v24035_v27 = vunpack.i.h.bf16 %v24033_v40  ;;  %v24034_v60 = vunpack.i.l.bf16 %v24033_v40 }
 0x6f3   : > { %v27029_v53 = vsel %vm1585_vm4, %v7528_v34, %v7539_v23  ;;  %v7552_v56 = vrot.slane %v7550_v35, 7  ;;  %v7560_v37 = vrot.slane %v7558_v42, 7  ;;  %vm29883_vm13 = vcmp.ne.s16.totalorder %v29882_v26, 0 }
 0x6f4   : > { %v27034_v47 = vsel %vm1585_vm4, %v7536_v24, %v7547_v44  ;;  %v7447_v28 = vsel %vm29883_vm13, %v27022_v43, 0  ;;  %v7416_v29 = vsel %vm630_vm5, %v7032_v17, %v24034_v60  ;;  %v7417_v55 = vsel %vm630_vm5, %v7033_v41, %v24035_v27 }
 0x6f5   : > { %v7553_v34 = vshll.u32 %v7445_v4, 16  ;;  %vm29885_vm9 = vcmp.ne.s16.totalorder %v29884_v33, 0  ;;  %v7561_v59 = vshll.u32 %v7446_v9, 16  ;;  %v7566_v40 = vshrl.u32 %v7447_v28, 16  ;;  %v29886_v4 = vld [vmem:[#allocation25_spill] sm:$0xff] }
 0x6f6   : > { %v7448_v36 = vsel %vm29885_vm9, %v27024_v18, 0  ;;  %v27046_v54 = vpack.c.bf16 %v7417_v55, %v7416_v29  ;;  %vm29887_vm5 = vcmp.ne.s16.totalorder %v29886_v4, 0  ;;  %v7569_v42 = vshll.u32 %v7447_v28, 16  ;;  %v24116_v28 = vld [vmem:[%s29541_s8 + $0x88] ss:$0 sps:$4 sm:$0x33]  }
 0x6f7   : > { %v7555_v24 = vor.u32 %v7553_v34, %v7552_v56  ;;  %v7563_v23 = vor.u32 %v7561_v59, %v7560_v37  ;;  %v7574_v35 = vshrl.u32 %v7448_v36, 16  ;;  %v7568_v17 = vrot.slane %v7566_v40, 7 }
 0x6f8   : > { %20856 = vmatmul.mubr.msk.bf16.gmra.mrb[52].mxu0 %vm7604_vm1, %v27029_v53  ;;  %v7449_v9 = vsel %vm29887_vm5, %v27046_v54, 0  ;;  %v7577_v60 = vshll.u32 %v7448_v36, 16  ;;  %vm29888_vm11 = vcmask 1041408  }
 0x6f9   : > { %20859 = vmatprep.mubr.msk.bf16.mxu0 %vm7604_vm1, %v27034_v47  ;;  %v27049_v44 = vsel %vm1585_vm4, %v7544_v32, %v7555_v24  ;;  %v27054_v27 = vsel %vm1585_vm4, %v7552_v56, %v7563_v23  ;;  %v7576_v41 = vrot.slane %v7574_v35, 7  ;;  %v7571_v29 = vor.u32 %v7569_v42, %v7568_v17  ;;  %vm29889_vm13 = vmmov %vm29888_vm11  ;;  %v24117_v35 = vld [vmem:[%s29541_s8 + $0x14] sm:$0xff]   ;;  %v24129_v42 = vld [vmem:[%s29541_s8 + $0x64] sm:$0xff]  }
 0x6fa   : > { %v7582_v32 = vshrl.u32 %v7449_v9, 16  ;;  %v7585_v24 = vshll.u32 %v7449_v9, 16  ;;  %v8024_v36 = vsel %vm29889_vm13, %v24116_v28, 0  ;;  %vm29890_vm9 = vmmov %vm29888_vm11 }
 0x6fb   : > { %v7579_v55 = vor.u32 %v7577_v60, %v7576_v41  ;;  %v7572_v34 = vsel %vm1585_vm4, %v7560_v37, %v7571_v29  ;;  %v24115_v37 = vld [vmem:[%s29541_s8 + $0x80] sm:$0xff]   ;;  %vm29891_vm5 = vmmov %vm29890_vm9  ;;  %v29898_v60 = vld [vmem:[#allocation26_spill] sm:$0xff] }
 0x6fc   : > { %v7584_v59 = vrot.slane %v7582_v32, 7  ;;  %vm29894_vm13 = vmmov %vm29891_vm5 }
 0x6fd   : > { %v7580_v56 = vsel %vm1585_vm4, %v7568_v17, %v7579_v55  ;;  %v24120_v17 = vld [vmem:[%s29541_s8 + $0x50] sm:$0xff]   ;;  %v29900_v55 = vld [vmem:[#allocation27_spill] sm:$0xff] }
 0x6fe   : > { %v7587_v40 = vor.u32 %v7585_v24, %v7584_v59 }
 0x700   : > { %20860 = vmatmul.mubr.msk.bf16.gmra.mrb[56].mxu0 %vm7604_vm1, %v27049_v44  ;;  %v7588_v23 = vsel %vm1585_vm4, %v7576_v41, %v7587_v40  ;;  %v24128_v41 = vld [vmem:[%s29541_s8 + $0x38] ss:$0 sps:$4 sm:$0x33]  }
 0x701   : > { %20863 = vmatprep.mubr.msk.bf16.mxu0 %vm7604_vm1, %v27054_v27 }
 0x708   : > { %20864 = vmatmul.mubr.msk.bf16.gmra.mrb[60].mxu0 %vm7604_vm1, %v7572_v34 }
 0x709   : > { %20867 = vmatprep.mubr.msk.bf16.mxu0 %vm7604_vm1, %v7580_v56 }
 0x710   : > { %20868 = vmatmul.mubr.msk.bf16.gmra.mrb[64].mxu0 %vm7604_vm1, %v7588_v23 }
 0x711   : > { %20877 = vmatprep.mubr.msk.bf16.mxu0 %vm7604_vm1, %v29863_v1 }
 0x718   : > { %20878 = vmatmul.mubr.msk.bf16.vlgmr.msra.gmra.mrb[36].mxu0 %vm7604_vm1, %v26877_v12  ;;  %v24118_v12 = vld [vmem:[%s29541_s8 + $0x1c] sm:$0xff]  }
 0x719   : > { %20910 = vmatpush3.bf16.msra.mxu0 %v26925_v58  ;;  %20881 = vmatprep.mubr.msk.bf16.mxu0 %vm7604_vm1, %v26888_v5  ;;  %v24119_v58 = vld [vmem:[%s29541_s8 + $0x24] ss:$0 sps:$4 sm:$0x33]  }
 0x71a   : > { %20911 = vmatprep.subr.bf16.mxu0 %v24115_v37 }
 0x71d   : > { %20912 = vmatpush3.bf16.msra.mxu0 %v24115_v37 }
 0x71e   : > { %23899 = vmatprep.subr.msk.bf16.mxu0 %vm29888_vm11, %v24116_v28  ;;  %vm29893_vm11 = vmmov %vm29891_vm5 }
 0x720   : > { %20882 = vmatmul.mubr.msk.bf16.gmra.mrb[40].mxu0 %vm7604_vm1, %v26912_v7 }
 0x721   : > { %20885 = vmatprep.mubr.msk.bf16.mxu0 %vm7604_vm1, %v26937_v39  ;;  %20914 = vmatpush3.bf16.msra.mxu0 %v8024_v36 }
 0x722   : > { %20947 = vmatprep.subr.bf16.mxu0 %v24117_v35 }
 0x728   : > { %20886 = vmatmul.mubr.msk.bf16.gmra.mrb[44].mxu0 %vm7604_vm1, %v26954_v14 }
 0x729   : > { %20889 = vmatprep.mubr.msk.bf16.mxu0 %vm7604_vm1, %v26973_v57 }
 0x730   : > { %20890 = vmatmul.mubr.msk.bf16.gmra.mrb[48].mxu0 %vm7604_vm1, %v26990_v21 }
 0x731   : > { %20893 = vmatprep.mubr.msk.bf16.mxu0 %vm7604_vm1, %v27003_v48 }
 0x738   : > { %20894 = vmatmul.mubr.msk.bf16.gmra.mrb[52].mxu0 %vm7604_vm1, %v27008_v16 }
 0x739   : > { %20897 = vmatprep.mubr.msk.bf16.mxu0 %vm7604_vm1, %v27029_v53 }
 0x740   : > { %20898 = vmatmul.mubr.msk.bf16.gmra.mrb[56].mxu0 %vm7604_vm1, %v27034_v47 }
 0x741   : > { %20901 = vmatprep.mubr.msk.bf16.mxu0 %vm7604_vm1, %v27049_v44 }
 0x748   : > { %20902 = vmatmul.mubr.msk.bf16.gmra.mrb[60].mxu0 %vm7604_vm1, %v27054_v27 }
 0x749   : > { %20905 = vmatprep.mubr.msk.bf16.mxu0 %vm7604_vm1, %v7572_v34 }
 0x750   : > { %20906 = vmatmul.mubr.msk.bf16.gmra.mrb[64].mxu0 %vm7604_vm1, %v7580_v56 }
 0x751   : > { %20915 = vmatprep.mubr.msk.bf16.mxu0 %vm7604_vm1, %v26888_v5  ;;  %v8288_v5 = vsel %vm29891_vm5, %v24119_v58, 0 }
 0x758   : > { %20916 = vmatmul.mubr.msk.bf16.vlgmr.msra.gmra.mrb[36].mxu0 %vm7604_vm1, %v26912_v7  ;;  %v24122_v7 = vld [vmem:[%s29541_s8 + $0x60] ss:$0 sps:$4 sm:$0x33]  }
 0x759   : > { %20948 = vmatpush3.bf16.msra.mxu0 %v24117_v35  ;;  %20919 = vmatprep.mubr.msk.bf16.mxu0 %vm7604_vm1, %v26937_v39  ;;  %v24121_v39 = vld [vmem:[%s29541_s8 + $0x58] sm:$0xff]  }
 0x75a   : > { %20949 = vmatprep.subr.bf16.mxu0 %v24118_v12 }
 0x75d   : > { %20950 = vmatpush3.bf16.msra.mxu0 %v24118_v12  ;;  %v29905_v12 = vld [vmem:[#allocation29_spill] sm:$0xff] }
 0x75e   : > { %23900 = vmatprep.subr.msk.bf16.mxu0 %vm29890_vm9, %v24119_v58  ;;  %vm29895_vm9 = vmmov %vm29891_vm5 }
 0x760   : > { %20920 = vmatmul.mubr.msk.bf16.gmra.mrb[40].mxu0 %vm7604_vm1, %v26954_v14  ;;  %v8508_v14 = vsel %vm29894_vm13, %v24122_v7, 0  ;;  %vm29897_vm13 = vmmov %vm29891_vm5 }
 0x761   : > { %20923 = vmatprep.mubr.msk.bf16.mxu0 %vm7604_vm1, %v26973_v57  ;;  %20952 = vmatpush3.bf16.msra.mxu0 %v8288_v5  ;;  %v24123_v57 = vld [vmem:[%s29541_s8 + $0x8c] sm:$0xff]   ;;  %v9131_v9 = vsel %vm29897_vm13, %v24128_v41, 0  ;;  %vm29906_vm13 = vcmp.ne.s16.totalorder %v29905_v12, 0 }
 0x762   : > { %20985 = vmatprep.subr.bf16.mxu0 %v24120_v17 }
 0x768   : > { %20924 = vmatmul.mubr.msk.bf16.gmra.mrb[44].mxu0 %vm7604_vm1, %v26990_v21  ;;  %v29892_v21 = vmov 0  }
 0x769   : > { %20927 = vmatprep.mubr.msk.bf16.mxu0 %vm7604_vm1, %v27003_v48  ;;  %v8004_v48 = vsel %vm1585_vm4, %v7584_v59, %v29863_v1 }
 0x770   : > { %20928 = vmatmul.mubr.msk.bf16.gmra.mrb[48].mxu0 %vm7604_vm1, %v27008_v16  ;;  %v24124_v16 = vld [vmem:[%s29541_s8 + $0x94] sm:$0xff]  }
 0x771   : > { %20931 = vmatprep.mubr.msk.bf16.mxu0 %vm7604_vm1, %v27029_v53  ;;  %v24125_v53 = vld [vmem:[%s29541_s8 + $0x9c] ss:$0 sps:$4 sm:$0x33]  }
 0x778   : > { %20932 = vmatmul.mubr.msk.bf16.gmra.mrb[52].mxu0 %vm7604_vm1, %v27034_v47  ;;  %v8725_v47 = vsel %vm29891_vm5, %v24125_v53, 0 }
 0x779   : > { %20935 = vmatprep.mubr.msk.bf16.mxu0 %vm7604_vm1, %v27049_v44  ;;  %v24126_v44 = vld [vmem:[%s29541_s8 + $0x28] sm:$0xff]  }
 0x780   : > { %20936 = vmatmul.mubr.msk.bf16.gmra.mrb[56].mxu0 %vm7604_vm1, %v27054_v27  ;;  %v24127_v27 = vld [vmem:[%s29541_s8 + $0x30] sm:$0xff]  }
 0x781   : > { %20939 = vmatprep.mubr.msk.bf16.mxu0 %vm7604_vm1, %v7572_v34 }
 0x788   : > { %20940 = vmatmul.mubr.msk.bf16.gmra.mrb[60].mxu0 %vm7604_vm1, %v7580_v56  ;;  %v29902_v56 = vld [vmem:[#allocation28_spill] sm:$0xff] }
 0x789   : > { %20943 = vmatprep.mubr.msk.bf16.mxu0 %vm7604_vm1, %v7588_v23 }
 0x790   : > { %20944 = vmatmul.mubr.msk.bf16.gmra.mrb[64].mxu0 %vm7604_vm1, %v8004_v48 }
 0x791   : > { %20953 = vmatprep.mubr.bf16.mxu0 %v29892_v21 }
 0x798   : > { %20954 = vmatmul.mubr.msk.bf16.vlgmr.msra.gmra.mrb[36].mxu0 %vm7604_vm1, %v26846_v52 }
 0x799   : > { %20986 = vmatpush3.bf16.msra.mxu0 %v24120_v17  ;;  %20957 = vmatprep.mubr.msk.bf16.mxu0 %vm7604_vm1, %v26844_v49 }
 0x79a   : > { %20987 = vmatprep.subr.bf16.mxu0 %v24121_v39 }
 0x79d   : > { %20988 = vmatpush3.bf16.msra.mxu0 %v24121_v39 }
 0x79e   : > { %23901 = vmatprep.subr.msk.bf16.mxu0 %vm29893_vm11, %v24122_v7  ;;  %vm29896_vm11 = vmmov %vm29891_vm5  ;;  %vm29901_vm5 = vcmp.ne.s16.totalorder %v29900_v55, 0  ;;  %v24130_v7 = vld [vmem:[%s29541_s8 + $0x6c] sm:$0xff]  }
 0x79f   : > { %v8921_v34 = vsel %vm29901_vm5, %v26844_v49, 0 }
 0x7a0   : > { %20958 = vmatmul.mubr.msk.bf16.gmra.mrb[40].mxu0 %vm7604_vm1, %v26860_v0  ;;  %v8951_v40 = vshll.u32 %v8921_v34, 16  ;;  %v8955_v58 = vshrl.u32 %v8921_v34, 16 }
 0x7a1   : > { %20961 = vmatprep.mubr.msk.bf16.mxu0 %vm7604_vm1, %v26871_v13  ;;  %20990 = vmatpush3.bf16.msra.mxu0 %v8508_v14 }
 0x7a2   : > { %21023 = vmatprep.subr.bf16.mxu0 %v24123_v57  ;;  %v8953_v36 = vrot.slane %v8951_v40, 1 }
 0x7a4   : > { %v8957_v48 = vor.u32 %v8955_v58, %v8953_v36 }
 0x7a8   : > { %20962 = vmatmul.mubr.msk.bf16.gmra.mrb[44].mxu0 %vm7604_vm1, %v26882_v45 }
 0x7a9   : > { %20965 = vmatprep.mubr.msk.bf16.mxu0 %vm7604_vm1, %v26904_v15 }
 0x7b0   : > { %20966 = vmatmul.mubr.msk.bf16.gmra.mrb[48].mxu0 %vm7604_vm1, %v26919_v30 }
 0x7b1   : > { %20969 = vmatprep.mubr.msk.bf16.mxu0 %vm7604_vm1, %v26939_v22 }
 0x7b8   : > { %20970 = vmatmul.mubr.msk.bf16.gmra.mrb[52].mxu0 %vm7604_vm1, %v26958_v8 }
 0x7b9   : > { %20973 = vmatprep.mubr.msk.bf16.mxu0 %vm7604_vm1, %v26960_v25 }
 0x7c0   : > { %20974 = vmatmul.mubr.msk.bf16.gmra.mrb[56].mxu0 %vm7604_vm1, %v26963_v19 }
 0x7c1   : > { %20977 = vmatprep.mubr.msk.bf16.mxu0 %vm7604_vm1, %v26994_v6 }
 0x7c8   : > { %20978 = vmatmul.mubr.msk.bf16.gmra.mrb[60].mxu0 %vm7604_vm1, %v26996_v62 }
 0x7c9   : > { %20981 = vmatprep.mubr.msk.bf16.mxu0 %vm7604_vm1, %v27022_v43 }
 0x7d0   : > { %20982 = vmatmul.mubr.msk.bf16.gmra.mrb[64].mxu0 %vm7604_vm1, %v27024_v18 }
 0x7d1   : > { %20991 = vmatprep.mubr.msk.bf16.mxu0 %vm7604_vm1, %v26846_v52 }
 0x7d8   : > { %20992 = vmatmul.mubr.msk.bf16.vlgmr.msra.gmra.mrb[36].mxu0 %vm7604_vm1, %v26844_v49 }
 0x7d9   : > { %21024 = vmatpush3.bf16.msra.mxu0 %v24123_v57  ;;  %20995 = vmatprep.mubr.msk.bf16.mxu0 %vm7604_vm1, %v26860_v0 }
 0x7da   : > { %21025 = vmatprep.subr.bf16.mxu0 %v24124_v16 }
 0x7dd   : > { %21026 = vmatpush3.bf16.msra.mxu0 %v24124_v16 }
 0x7de   : > { %23902 = vmatprep.subr.msk.bf16.mxu0 %vm29895_vm9, %v24125_v53  ;;  %vm29899_vm9 = vcmp.ne.s16.totalorder %v29898_v60, 0  ;;  %v24131_v53 = vld [vmem:[%s29541_s8 + $0x74] ss:$0 sps:$4 sm:$0x33]  }
 0x7df   : > { %v8920_v29 = vsel %vm29899_vm9, %v26846_v52, 0  ;;  %v29904_v52 = vld [vmem:[#allocation30_spill] sm:$0xff] }
 0x7e0   : > { %20996 = vmatmul.mubr.msk.bf16.gmra.mrb[40].mxu0 %vm7604_vm1, %v26871_v13  ;;  %v8943_v32 = vshll.u32 %v8920_v29, 16  ;;  %v8947_v28 = vshrl.u32 %v8920_v29, 16  ;;  %v29911_v29 = vld [vmem:[#allocation33_spill] sm:$0xff] }
 0x7e1   : > { %20999 = vmatprep.mubr.msk.bf16.mxu0 %vm7604_vm1, %v26882_v45  ;;  %21028 = vmatpush3.bf16.msra.mxu0 %v8725_v47 }
 0x7e2   : > { %21061 = vmatprep.subr.bf16.mxu0 %v24126_v44  ;;  %v8945_v59 = vrot.slane %v8943_v32, 1 }
 0x7e4   : > { %v8946_v23 = vsel %vm1417_vm6, %v29904_v52, %v8945_v59  ;;  %v8949_v35 = vor.u32 %v8947_v28, %v8945_v59 }
 0x7e6   : > { %v27299_v14 = vsel %vm1417_vm6, %v8949_v35, %v8953_v36  ;;  %v8927_v35 = vsel %vm3312_vm15, %v26939_v22, 0 }
 0x7e8   : > { %21000 = vmatmul.mubr.msk.bf16.gmra.mrb[44].mxu0 %vm7604_vm1, %v26904_v15 }
 0x7e9   : > { %21003 = vmatprep.mubr.msk.bf16.mxu0 %vm7604_vm1, %v26919_v30 }
 0x7f0   : > { %21004 = vmatmul.mubr.msk.bf16.gmra.mrb[48].mxu0 %vm7604_vm1, %v26939_v22 }
 0x7f1   : > { %21007 = vmatprep.mubr.msk.bf16.mxu0 %vm7604_vm1, %v26958_v8 }
 0x7f8   : > { %21008 = vmatmul.mubr.msk.bf16.gmra.mrb[52].mxu0 %vm7604_vm1, %v26960_v25 }
 0x7f9   : > { %21011 = vmatprep.mubr.msk.bf16.mxu0 %vm7604_vm1, %v26963_v19 }
 0x800   : > { %21012 = vmatmul.mubr.msk.bf16.gmra.mrb[56].mxu0 %vm7604_vm1, %v26994_v6 }
 0x801   : > { %21015 = vmatprep.mubr.msk.bf16.mxu0 %vm7604_vm1, %v26996_v62 }
 0x808   : > { %21016 = vmatmul.mubr.msk.bf16.gmra.mrb[60].mxu0 %vm7604_vm1, %v27022_v43 }
 0x809   : > { %21019 = vmatprep.mubr.msk.bf16.mxu0 %vm7604_vm1, %v27024_v18 }
 0x810   : > { %21020 = vmatmul.mubr.msk.bf16.gmra.mrb[64].mxu0 %vm7604_vm1, %v27046_v54 }
 0x811   : > { %21029 = vmatprep.mubr.msk.bf16.mxu0 %vm7604_vm1, %v26844_v49  ;;  %v8923_v49 = vsel %vm29906_vm13, %v26871_v13, 0  ;;  %vm29913_vm13 = vcmask 1041408  }
 0x812   : > { %v8967_v39 = vshll.u32 %v8923_v49, 16 }
 0x814   : > { %v8969_v16 = vrot.slane %v8967_v39, 1 }
 0x818   : > { %21030 = vmatmul.mubr.msk.bf16.vlgmr.msra.gmra.mrb[36].mxu0 %vm7604_vm1, %v26860_v0 }
 0x819   : > { %21062 = vmatpush3.bf16.msra.mxu0 %v24126_v44  ;;  %21033 = vmatprep.mubr.msk.bf16.mxu0 %vm7604_vm1, %v26871_v13  ;;  %v29909_v44 = vld [vmem:[#allocation32_spill] sm:$0xff] }
 0x81a   : > { %21063 = vmatprep.subr.bf16.mxu0 %v24127_v27  ;;  %vm29910_vm5 = vcmp.ne.s16.totalorder %v29909_v44, 0 }
 0x81d   : > { %21064 = vmatpush3.bf16.msra.mxu0 %v24127_v27  ;;  %v8925_v27 = vsel %vm29910_vm5, %v26904_v15, 0 }
 0x81e   : > { %23903 = vmatprep.subr.msk.bf16.mxu0 %vm29896_vm11, %v24128_v41  ;;  %vm29903_vm11 = vcmp.ne.s16.totalorder %v29902_v56, 0  ;;  %v8971_v41 = vshrl.u32 %v8923_v49, 16  ;;  %v8983_v34 = vshll.u32 %v8925_v27, 16  ;;  %v8987_v49 = vshrl.u32 %v8925_v27, 16 }
 0x81f   : > { %v8922_v24 = vsel %vm29903_vm11, %v26860_v0, 0  ;;  %v29907_v0 = vld [vmem:[#allocation31_spill] sm:$0xff]  ;;  %vm29912_vm11 = vcmp.ne.s16.totalorder %v29911_v29, 0  ;;  %v9003_v27 = vshrl.u32 %v8927_v35, 16 }
 0x820   : > { %21034 = vmatmul.mubr.msk.bf16.gmra.mrb[40].mxu0 %vm7604_vm1, %v26882_v45  ;;  %v8959_v37 = vshll.u32 %v8922_v24, 16  ;;  %vm29908_vm9 = vcmp.ne.s16.totalorder %v29907_v0, 0  ;;  %v8973_v32 = vor.u32 %v8971_v41, %v8969_v16 }
 0x821   : > { %21037 = vmatprep.mubr.msk.bf16.mxu0 %vm7604_vm1, %v26904_v15  ;;  %21066 = vmatpush3.bf16.msra.mxu0 %v9131_v9  ;;  %v8924_v17 = vsel %vm29908_vm9, %v26882_v45, 0  ;;  %v8963_v45 = vshrl.u32 %v8922_v24, 16  ;;  %vm29914_vm9 = vmmov %vm29913_vm13  ;;  %v27322_v24 = vld [vmem:[%s29541_s8 + $0xa0] sm:$0xff]  }
 0x822   : > { %21099 = vmatprep.subr.bf16.mxu0 %v24129_v42  ;;  %v8961_v5 = vrot.slane %v8959_v37, 1  ;;  %v8975_v57 = vshll.u32 %v8924_v17, 16  ;;  %v9355_v59 = vsel %vm29914_vm9, %v24131_v53, 0  ;;  %v8985_v37 = vrot.slane %v8983_v34, 1 }
 0x824   : > { %v27304_v13 = vsel %vm1417_vm6, %v8957_v48, %v8961_v5  ;;  %v8965_v47 = vor.u32 %v8963_v45, %v8961_v5  ;;  %v8977_v9 = vrot.slane %v8975_v57, 1  ;;  %v8928_v48 = vsel %vm3313_vm12, %v26958_v8, 0 }
 0x825   : > { %v8989_v39 = vor.u32 %v8987_v49, %v8985_v37  ;;  %v9007_v45 = vshll.u32 %v8928_v48, 16 }
 0x826   : > { %v27325_v15 = vsel %vm1417_vm6, %v8965_v47, %v8969_v16  ;;  %v8929_v47 = vsel %vm3314_vm14, %v26960_v25, 0 }
 0x827   : > { %v9009_v41 = vrot.slane %v9007_v45, 1  ;;  %v9019_v49 = vshrl.u32 %v8929_v47, 16 }
 0x828   : > { %21038 = vmatmul.mubr.msk.bf16.gmra.mrb[44].mxu0 %vm7604_vm1, %v26919_v30 }
 0x829   : > { %21041 = vmatprep.mubr.msk.bf16.mxu0 %vm7604_vm1, %v26939_v22 }
 0x830   : > { %21042 = vmatmul.mubr.msk.bf16.gmra.mrb[48].mxu0 %vm7604_vm1, %v26958_v8 }
 0x831   : > { %21045 = vmatprep.mubr.msk.bf16.mxu0 %vm7604_vm1, %v26960_v25  ;;  %v9011_v25 = vshrl.u32 %v8928_v48, 16 }
 0x838   : > { %21046 = vmatmul.mubr.msk.bf16.gmra.mrb[52].mxu0 %vm7604_vm1, %v26963_v19 }
 0x839   : > { %21049 = vmatprep.mubr.msk.bf16.mxu0 %vm7604_vm1, %v26994_v6 }
 0x840   : > { %21050 = vmatmul.mubr.msk.bf16.gmra.mrb[56].mxu0 %vm7604_vm1, %v26996_v62 }
 0x841   : > { %21053 = vmatprep.mubr.msk.bf16.mxu0 %vm7604_vm1, %v27022_v43 }
 0x848   : > { %21054 = vmatmul.mubr.msk.bf16.gmra.mrb[60].mxu0 %vm7604_vm1, %v27024_v18 }
 0x849   : > { %21057 = vmatprep.mubr.msk.bf16.mxu0 %vm7604_vm1, %v27046_v54 }
 0x850   : > { %21058 = vmatmul.mubr.bf16.gmra.mrb[64].mxu0 %v29892_v21 }
 0x851   : > { %21067 = vmatprep.mubr.msk.bf16.mxu0 %vm7604_vm1, %v8946_v23  ;;  %v8979_v23 = vshrl.u32 %v8924_v17, 16 }
 0x853   : > { %v8981_v28 = vor.u32 %v8979_v23, %v8977_v9 }
 0x855   : > { %v27342_v57 = vsel %vm1417_vm6, %v8981_v28, %v8985_v37  ;;  %v9013_v28 = vor.u32 %v9011_v25, %v9009_v41  ;;  %v8934_v25 = vsel %vm3319_vm3, %v27024_v18, 0 }
 0x858   : > { %21068 = vmatmul.mubr.msk.bf16.vlgmr.msra.gmra.mrb[36].mxu0 %vm7604_vm1, %v27299_v14 }
 0x859   : > { %21100 = vmatpush3.bf16.msra.mxu0 %v24129_v42  ;;  %21071 = vmatprep.mubr.msk.bf16.mxu0 %vm7604_vm1, %v27304_v13  ;;  %v8926_v42 = vsel %vm29912_vm11, %v26919_v30, 0  ;;  %v27330_v30 = vsel %vm1417_vm6, %v8973_v32, %v8977_v9  ;;  %v8930_v32 = vsel %vm3315_vm0, %v26963_v19, 0  ;;  %v29919_v19 = vld [vmem:[#allocation38_spill] sm:$0xff] }
 0x85a   : > { %21101 = vmatprep.subr.bf16.mxu0 %v24130_v7  ;;  %v8991_v40 = vshll.u32 %v8926_v42, 16  ;;  %v8995_v22 = vshrl.u32 %v8926_v42, 16  ;;  %v9023_v23 = vshll.u32 %v8930_v32, 16  ;;  %vm29920_vm5 = vcmp.ne.s16.totalorder %v29919_v19, 0 }
 0x85c   : > { %v8993_v58 = vrot.slane %v8991_v40, 1 }
 0x85d   : > { %21102 = vmatpush3.bf16.msra.mxu0 %v24130_v7  ;;  %v8999_v7 = vshll.u32 %v8927_v35, 16  ;;  %v8931_v35 = vsel %vm29920_vm5, %v26994_v6, 0  ;;  %v9027_v6 = vshrl.u32 %v8930_v32, 16  ;;  %vm29927_vm5 = vmmov %vm29914_vm9 }
 0x85e   : > { %23904 = vmatprep.subr.msk.bf16.mxu0 %vm29913_vm13, %v24131_v53  ;;  %v27347_v17 = vsel %vm1417_vm6, %v8989_v39, %v8993_v58  ;;  %v8997_v53 = vor.u32 %v8995_v22, %v8993_v58  ;;  %v9025_v58 = vrot.slane %v9023_v23, 1  ;;  %v29921_v39 = vld [vmem:[#allocation39_spill] sm:$0xff]  ;;  %v9031_v22 = vshll.u32 %v8931_v35, 16 }
 0x85f   : > { %v9001_v16 = vrot.slane %v8999_v7, 1  ;;  %vm29922_vm11 = vcmp.ne.s16.totalorder %v29921_v39, 0 }
 0x860   : > { %21072 = vmatmul.mubr.msk.bf16.gmra.mrb[40].mxu0 %vm7604_vm1, %v27325_v15  ;;  %v8932_v7 = vsel %vm29922_vm11, %v26996_v62, 0  ;;  %v29923_v62 = vld [vmem:[#allocation40_spill] sm:$0xff]  ;;  %vm29929_vm11 = vcmp.ne.s16.totalorder %v29866_v61, 0 }
 0x861   : > { %21075 = vmatprep.mubr.msk.bf16.mxu0 %vm7604_vm1, %v27330_v30  ;;  %21104 = vmatpush3.bf16.msra.mxu0 %v9355_v59  ;;  %v9005_v34 = vor.u32 %v9003_v27, %v9001_v16  ;;  %v9015_v59 = vshll.u32 %v8929_v47, 16  ;;  %v27358_v40 = vsel %vm1417_vm6, %v8997_v53, %v9001_v16  ;;  %v9039_v53 = vshll.u32 %v8932_v7, 16 }
 0x862   : > { %21137 = vmatprep.subr.bf16.mxu0 %v27322_v24  ;;  %v9033_v47 = vrot.slane %v9031_v22, 1  ;;  %v9029_v27 = vor.u32 %v9027_v6, %v9025_v58  ;;  %vm29924_vm13 = vcmp.ne.s16.totalorder %v29923_v62, 0 }
 0x863   : > { %v27363_v42 = vsel %vm1417_vm6, %v9005_v34, %v9009_v41  ;;  %v9017_v37 = vrot.slane %v9015_v59, 1  ;;  %v8933_v41 = vsel %vm29924_vm13, %v27022_v43, 0  ;;  %v9035_v34 = vshrl.u32 %v8931_v35, 16 }
 0x864   : > { %v9041_v59 = vrot.slane %v9039_v53, 1  ;;  %v9043_v43 = vshrl.u32 %v8932_v7, 16  ;;  %v9051_v22 = vshrl.u32 %v8933_v41, 16  ;;  %v9059_v7 = vshrl.u32 %v8934_v25, 16 }
 0x865   : > { %v9021_v45 = vor.u32 %v9019_v49, %v9017_v37  ;;  %v27374_v16 = vsel %vm1417_vm6, %v9013_v28, %v9017_v37  ;;  %v9037_v37 = vor.u32 %v9035_v34, %v9033_v47  ;;  %v9047_v28 = vshll.u32 %v8933_v41, 16 }
 0x866   : > { %v27390_v49 = vsel %vm1417_vm6, %v9029_v27, %v9033_v47  ;;  %v8935_v47 = vsel %vm29698_vm2, %v27046_v54, 0  ;;  %v24135_v54 = vld [vmem:[%s29543_s10 + $0xc0] sm:$0xff]   ;;  %vm29930_vm13 = vcmp.ne.s16.totalorder %v29865_v20, 0 }
 0x867   : > { %v27379_v48 = vsel %vm1417_vm6, %v9021_v45, %v9025_v58  ;;  %v27395_v32 = vsel %vm1417_vm6, %v9037_v37, %v9041_v59  ;;  %v9055_v58 = vshll.u32 %v8934_v25, 16  ;;  %v9049_v35 = vrot.slane %v9047_v28, 1  ;;  %21175 = vmatprep.subr.bf16.mxu1 %v24135_v54  ;;  %v24137_v25 = vld [vmem:[%s29543_s10 + $0xd0] sm:$0xff]  }
 0x868   : > { %21076 = vmatmul.mubr.msk.bf16.gmra.mrb[44].mxu0 %vm7604_vm1, %v27342_v57  ;;  %v9045_v45 = vor.u32 %v9043_v43, %v9041_v59  ;;  %v9063_v41 = vshll.u32 %v8935_v47, 16  ;;  %21176 = vmatpush3.bf16.msra.mxu1 %v24135_v54  ;;  %v24133_v43 = vld [vmem:[%s29541_s8 + $0xa8] sm:$0xff]  }
 0x869   : > { %21079 = vmatprep.mubr.msk.bf16.mxu0 %vm7604_vm1, %v27347_v17  ;;  %v9057_v18 = vrot.slane %v9055_v58, 1  ;;  %v9053_v53 = vor.u32 %v9051_v22, %v9049_v35  ;;  %v24136_v58 = vld [vmem:[%s29543_s10 + $0xc8] sm:$0xff]  }
 0x86a   : > { %v27403_v27 = vsel %vm1417_vm6, %v9045_v45, %v9049_v35  ;;  %v9065_v37 = vrot.slane %v9063_v41, 1  ;;  %21177 = vmatprep.subr.bf16.mxu1 %v24136_v58  ;;  %v24134_v35 = vld [vmem:[%s29541_s8 + $0xb0] ss:$0 sps:$4 sm:$0x33]   ;;  %v24139_v45 = vld [vmem:[%s29543_s10 + $0xe0] sm:$0xff]  }
 0x86b   : > { %v27408_v34 = vsel %vm1417_vm6, %v9053_v53, %v9057_v18  ;;  %v9061_v59 = vor.u32 %v9059_v7, %v9057_v18  ;;  %v9574_v22 = vsel %vm29927_vm5, %v24134_v35, 0  ;;  %v9332_v18 = vshrl.u32 %v8935_v47, 16 }
 0x86c   : > { %21178 = vmatpush3.bf16.msra.mxu1 %v24136_v58  ;;  %vm29932_vm5 = vcmp.ne.s16.totalorder %v29868_v38, 0 }
 0x86d   : > { %v9066_v28 = vsel %vm1417_vm6, %v9061_v59, %v9065_v37  ;;  %21179 = vmatprep.subr.bf16.mxu1 %v24137_v25  ;;  %v9334_v53 = vor.u32 %v9332_v18, %v9065_v37 }
 0x86f   : > { %v9335_v7 = vsel %vm1417_vm6, %v9334_v53, %v29904_v52 }
 0x870   : > { %21080 = vmatmul.mubr.msk.bf16.gmra.mrb[48].mxu0 %vm7604_vm1, %v27358_v40  ;;  %21180 = vmatpush3.bf16.msra.mxu1 %v24137_v25 }
 0x871   : > { %21083 = vmatprep.mubr.msk.bf16.mxu0 %vm7604_vm1, %v27363_v42 }
 0x878   : > { %21084 = vmatmul.mubr.msk.bf16.gmra.mrb[52].mxu0 %vm7604_vm1, %v27374_v16 }
 0x879   : > { %21087 = vmatprep.mubr.msk.bf16.mxu0 %vm7604_vm1, %v27379_v48 }
 0x880   : > { %21088 = vmatmul.mubr.msk.bf16.gmra.mrb[56].mxu0 %vm7604_vm1, %v27390_v49 }
 0x881   : > { %21091 = vmatprep.mubr.msk.bf16.mxu0 %vm7604_vm1, %v27395_v32 }
 0x888   : > { %21092 = vmatmul.mubr.msk.bf16.gmra.mrb[60].mxu0 %vm7604_vm1, %v27403_v27 }
 0x889   : > { %21095 = vmatprep.mubr.msk.bf16.mxu0 %vm7604_vm1, %v27408_v34 }
 0x890   : > { %21096 = vmatmul.mubr.msk.bf16.gmra.mrb[64].mxu0 %vm7604_vm1, %v9066_v28 }
 0x891   : > { %21105 = vmatprep.mubr.msk.bf16.mxu0 %vm7604_vm1, %v27299_v14  ;;  %v24138_v14 = vld [vmem:[%s29543_s10 + $0xd8] sm:$0xff]  }
 0x892   : > { %21181 = vmatprep.subr.bf16.mxu1 %v24138_v14 }
 0x893   : > { %21182 = vmatpush3.bf16.msra.mxu1 %v24138_v14 }
 0x894   : > { %21183 = vmatprep.subr.bf16.mxu1 %v24139_v45 }
 0x897   : > { %21184 = vmatpush3.bf16.msra.mxu1 %v24139_v45 }
 0x898   : > { %21106 = vmatmul.mubr.msk.bf16.vlgmr.msra.gmra.mrb[36].mxu0 %vm7604_vm1, %v27304_v13 }
 0x899   : > { %21138 = vmatpush3.bf16.msra.mxu0 %v27322_v24  ;;  %21109 = vmatprep.mubr.msk.bf16.mxu0 %vm7604_vm1, %v27325_v15  ;;  %v24140_v24 = vld [vmem:[%s29543_s10 + $0xe8] sm:$0xff]  }
 0x89a   : > { %21139 = vmatprep.subr.bf16.mxu0 %v24133_v43  ;;  %21185 = vmatprep.subr.bf16.mxu1 %v24140_v24 }
 0x89b   : > { %21186 = vmatpush3.bf16.msra.mxu1 %v24140_v24 }
 0x89d   : > { %21140 = vmatpush3.bf16.msra.mxu0 %v24133_v43 }
 0x89e   : > { %23905 = vmatprep.subr.msk.bf16.mxu0 %vm29914_vm9, %v24134_v35  ;;  %vm29931_vm9 = vcmp.ne.s16.totalorder %v29870_v10, 0 }
 0x8a0   : > { %21110 = vmatmul.mubr.msk.bf16.gmra.mrb[40].mxu0 %vm7604_vm1, %v27330_v30 }
 0x8a1   : > { %21113 = vmatprep.mubr.msk.bf16.mxu0 %vm7604_vm1, %v27342_v57  ;;  %21142 = vmatpush3.bf16.msra.mxu0 %v9574_v22 }
 0x8a8   : > { %21114 = vmatmul.mubr.msk.bf16.gmra.mrb[44].mxu0 %vm7604_vm1, %v27347_v17 }
 0x8a9   : > { %21117 = vmatprep.mubr.msk.bf16.mxu0 %vm7604_vm1, %v27358_v40 }
 0x8b0   : > { %21118 = vmatmul.mubr.msk.bf16.gmra.mrb[48].mxu0 %vm7604_vm1, %v27363_v42 }
 0x8b1   : > { %21121 = vmatprep.mubr.msk.bf16.mxu0 %vm7604_vm1, %v27374_v16 }
 0x8b8   : > { %21122 = vmatmul.mubr.msk.bf16.gmra.mrb[52].mxu0 %vm7604_vm1, %v27379_v48 }
 0x8b9   : > { %21125 = vmatprep.mubr.msk.bf16.mxu0 %vm7604_vm1, %v27390_v49 }
 0x8c0   : > { %21126 = vmatmul.mubr.msk.bf16.gmra.mrb[56].mxu0 %vm7604_vm1, %v27395_v32 }
 0x8c1   : > { %21129 = vmatprep.mubr.msk.bf16.mxu0 %vm7604_vm1, %v27403_v27 }
 0x8c8   : > { %21130 = vmatmul.mubr.msk.bf16.gmra.mrb[60].mxu0 %vm7604_vm1, %v27408_v34 }
 0x8c9   : > { %21133 = vmatprep.mubr.msk.bf16.mxu0 %vm7604_vm1, %v9066_v28 }
 0x8d0   : > { %21134 = vmatmul.mubr.msk.bf16.gmra.mrb[64].mxu0 %vm7604_vm1, %v9335_v7 }
 0x8d1   : > { %21143 = vmatprep.mubr.msk.bf16.mxu0 %vm7604_vm1, %v27304_v13  ;;  %v24141_v13 = vld [vmem:[%s29543_s10 + $0xf0] sm:$0xff]  }
 0x8d2   : > { %21187 = vmatprep.subr.bf16.mxu1 %v24141_v13 }
 0x8d3   : > { %21188 = vmatpush3.bf16.msra.mxu1 %v24141_v13 }
 0x8d8   : > { %21144 = vmatmul.mubr.msk.bf16.vlgmr.msra.gmra.mrb[36].mxu0 %vm7604_vm1, %v27325_v15  ;;  %v24142_v15 = vld [vmem:[%s29543_s10 + $0xf8] sm:$0xff]  }
 0x8d9   : > { %21147 = vmatprep.mubr.msk.bf16.mxu0 %vm7604_vm1, %v27330_v30  ;;  %21189 = vmatprep.subr.bf16.mxu1 %v24142_v15  ;;  %v24143_v30 = vld [vmem:[%s29543_s10] sm:$0xff]  }
 0x8da   : > { %21190 = vmatpush3.bf16.msra.mxu1 %v24142_v15 }
 0x8db   : > { %21223 = vmatprep.subr.bf16.mxu1 %v24143_v30 }
 0x8e0   : > { %21148 = vmatmul.mubr.msk.bf16.gmra.mrb[40].mxu0 %vm7604_vm1, %v27342_v57  ;;  %v27515_v57 = vld [vmem:[%s29542_s9] ss:$0 sm:$0xff] }
 0x8e1   : > { %21151 = vmatprep.mubr.msk.bf16.mxu0 %vm7604_vm1, %v27347_v17 }
 0x8e8   : > { %21152 = vmatmul.mubr.msk.bf16.gmra.mrb[44].mxu0 %vm7604_vm1, %v27358_v40 }
 0x8e9   : > { %21155 = vmatprep.mubr.msk.bf16.mxu0 %vm7604_vm1, %v27363_v42 }
 0x8f0   : > { %21156 = vmatmul.mubr.msk.bf16.gmra.mrb[48].mxu0 %vm7604_vm1, %v27374_v16 }
 0x8f1   : > { %21159 = vmatprep.mubr.msk.bf16.mxu0 %vm7604_vm1, %v27379_v48 }
 0x8f8   : > { %21160 = vmatmul.mubr.msk.bf16.gmra.mrb[52].mxu0 %vm7604_vm1, %v27390_v49 }
 0x8f9   : > { %21163 = vmatprep.mubr.msk.bf16.mxu0 %vm7604_vm1, %v27395_v32 }
 0x900   : > { %21164 = vmatmul.mubr.msk.bf16.gmra.mrb[56].mxu0 %vm7604_vm1, %v27403_v27 }
 0x901   : > { %21167 = vmatprep.mubr.msk.bf16.mxu0 %vm7604_vm1, %v27408_v34 }
 0x908   : > { %21168 = vmatmul.mubr.msk.bf16.gmra.mrb[60].mxu0 %vm7604_vm1, %v9066_v28 }
 0x909   : > { %21171 = vmatprep.mubr.msk.bf16.mxu0 %vm7604_vm1, %v9335_v7 }
 0x910   : > { %21172 = vmatmul.mubr.msk.bf16.gmra.mrb[64].mxu0 %vm7604_vm1, %v29904_v52  ;;  %vm29928_vm1 = vcmp.ne.s16.totalorder %v29862_v63, 0 }
 0x9ab   : > { %v21145_v17 = vpop.f32.mrb[36].mxu0 }
 0x9ac   : > { %v9778_v40 = vadd.f32 %v21145_v17, %v27515_v57  ;;  %v9610_v42 = vpop.f32.mrb[37].mxu0 }
 0x9ad   : > { %v9776_v16 = vadd.f32 %v27515_v57, %v9610_v42  ;;  %v21146_v48 = vpop.f32.mrb[38].mxu0 }
 0x9ae   : > { %v9779_v49 = vadd.f32 %v21146_v48, %v27515_v57  ;;  %v9613_v32 = vpop.f32.mrb[39].mxu0  ;;  %v9810_v27 = vmax.f32 %v9778_v40, 0.0 }
 0x9af   : > { %v9777_v47 = vadd.f32 %v27515_v57, %v9613_v32  ;;  %v9808_v41 = vmax.f32 %v9776_v16, 0.0 }
 0x9b0   : > { %v9811_v34 = vmax.f32 %v9779_v49, 0.0 }
 0x9b1   : > { %v9809_v59 = vmax.f32 %v9777_v47, 0.0 }
 0x9b2   : > { %v27521_v37 = vpack.c.bf16 %v9811_v34, %v9810_v27 }
 0x9b3   : > { %v27523_v28 = vpack.c.bf16 %v9809_v59, %v9808_v41  ;;  %v21149_v54 = vpop.f32.mrb[40].mxu0 }
 0x9b4   : > { %v9782_v58 = vadd.f32 %v21149_v54, %v27515_v57  ;;  %v9626_v25 = vpop.f32.mrb[41].mxu0  ;;  %v9857_v43 = vsel %vm29697_vm8, %v27521_v37, 0 }
 0x9b5   : > { %v9780_v14 = vadd.f32 %v27515_v57, %v9626_v25  ;;  %v21150_v35 = vpop.f32.mrb[42].mxu0  ;;  %v9856_v45 = vsel %vm29696_vm7, %v27523_v28, 0  ;;  %v9914_v22 = vshrl.u32 %v9857_v43, 16  ;;  %v9917_v15 = vshll.u32 %v9857_v43, 16 }
 0x9b6   : > { %v9783_v24 = vadd.f32 %v21150_v35, %v27515_v57  ;;  %v9629_v18 = vpop.f32.mrb[43].mxu0  ;;  %v9906_v53 = vshrl.u32 %v9856_v45, 16  ;;  %v9814_v17 = vmax.f32 %v9782_v58, 0.0  ;;  %v9909_v16 = vshll.u32 %v9856_v45, 16  ;;  %v24144_v58 = vld [vmem:[%s29543_s10 + $0x8] sm:$0xff]  }
 0x9b7   : > { %v9781_v7 = vadd.f32 %v27515_v57, %v9629_v18  ;;  %v9916_v13 = vrot.slane %v9914_v22, 7  ;;  %v9812_v48 = vmax.f32 %v9780_v14, 0.0 }
 0x9b8   : > { %v9815_v40 = vmax.f32 %v9783_v24, 0.0  ;;  %v9908_v42 = vrot.slane %v9906_v53, 7 }
 0x9b9   : > { %v9813_v49 = vmax.f32 %v9781_v7, 0.0  ;;  %v9919_v32 = vor.u32 %v9917_v15, %v9916_v13 }
 0x9ba   : > { %v27535_v47 = vpack.c.bf16 %v9815_v40, %v9814_v17  ;;  %v9911_v27 = vor.u32 %v9909_v16, %v9908_v42 }
 0x9bb   : > { %v27537_v34 = vpack.c.bf16 %v9813_v49, %v9812_v48  ;;  %v21153_v41 = vpop.f32.mrb[44].mxu0  ;;  %v27553_v45 = vsel %vm1585_vm4, %v9908_v42, %v9919_v32  ;;  %v24145_v32 = vld [vmem:[%s29543_s10 + $0x10] sm:$0xff]  }
 0x9bc   : > { %v9786_v59 = vadd.f32 %v21153_v41, %v27515_v57  ;;  %v9642_v54 = vpop.f32.mrb[45].mxu0  ;;  %v27542_v25 = vsel %vm1585_vm4, %v29863_v1, %v9911_v27  ;;  %v9859_v43 = vsel %vm29695_vm10, %v27535_v47, 0 }
 0x9bd   : > { %v9784_v14 = vadd.f32 %v27515_v57, %v9642_v54  ;;  %v21154_v35 = vpop.f32.mrb[46].mxu0  ;;  %21191 = vmatprep.mubr.bf16.mxu1 %v27542_v25  ;;  %v9858_v22 = vsel %vm29928_vm1, %v27537_v34, 0  ;;  %v9930_v24 = vshrl.u32 %v9859_v43, 16  ;;  %v9933_v40 = vshll.u32 %v9859_v43, 16 }
 0x9be   : > { %v9787_v18 = vadd.f32 %v21154_v35, %v27515_v57  ;;  %v9645_v53 = vpop.f32.mrb[47].mxu0  ;;  %21192 = vmatmul.mubr.bf16.vlgmr.msra.gmra.mrb[32].mxu1 %v27553_v45  ;;  %v9922_v7 = vshrl.u32 %v9858_v22, 16  ;;  %v9818_v16 = vmax.f32 %v9786_v59, 0.0  ;;  %v9925_v49 = vshll.u32 %v9858_v22, 16 }
 0x9bf   : > { %v9785_v15 = vadd.f32 %v27515_v57, %v9645_v53  ;;  %21224 = vmatpush3.bf16.msra.mxu1 %v24143_v30  ;;  %v9932_v17 = vrot.slane %v9930_v24, 7  ;;  %v9816_v27 = vmax.f32 %v9784_v14, 0.0  ;;  %v24146_v24 = vld [vmem:[%s29543_s10 + $0x18] sm:$0xff]   ;;  %vm29933_vm1 = vcmp.ne.s16.totalorder %v29874_v50, 0 }
 0x9c0   : > { %v9819_v48 = vmax.f32 %v9787_v18, 0.0  ;;  %v9924_v42 = vrot.slane %v9922_v7, 7  ;;  %21225 = vmatprep.subr.bf16.mxu1 %v24144_v58 }
 0x9c1   : > { %v9817_v41 = vmax.f32 %v9785_v15, 0.0  ;;  %v9935_v54 = vor.u32 %v9933_v40, %v9932_v17 }
 0x9c2   : > { %v27564_v35 = vpack.c.bf16 %v9819_v48, %v9818_v16  ;;  %v9927_v63 = vor.u32 %v9925_v49, %v9924_v42 }
 0x9c3   : > { %v27566_v46 = vpack.c.bf16 %v9817_v41, %v9816_v27  ;;  %v21157_v30 = vpop.f32.mrb[48].mxu0  ;;  %21226 = vmatpush3.bf16.msra.mxu1 %v24144_v58  ;;  %v27581_v58 = vsel %vm1585_vm4, %v9924_v42, %v9935_v54 }
 0x9c4   : > { %v9790_v59 = vadd.f32 %v21157_v30, %v27515_v57  ;;  %v9658_v43 = vpop.f32.mrb[49].mxu0  ;;  %v27570_v22 = vsel %vm1585_vm4, %v9916_v13, %v9927_v63  ;;  %21227 = vmatprep.subr.bf16.mxu1 %v24145_v32  ;;  %v9861_v14 = vsel %vm29929_vm11, %v27564_v35, 0  ;;  %v24147_v30 = vld [vmem:[%s29543_s10 + $0x20] sm:$0xff]   ;;  %vm29934_vm11 = vcmp.ne.s16.totalorder %v29872_v3, 0 }
 0x9c5   : > { %v9788_v18 = vadd.f32 %v27515_v57, %v9658_v43  ;;  %v21158_v53 = vpop.f32.mrb[50].mxu0  ;;  %21195 = vmatprep.mubr.bf16.mxu1 %v27570_v22  ;;  %v9860_v63 = vsel %vm29930_vm13, %v27566_v46, 0  ;;  %v9946_v13 = vshrl.u32 %v9861_v14, 16  ;;  %v9949_v49 = vshll.u32 %v9861_v14, 16 }
 0x9c6   : > { %v9791_v7 = vadd.f32 %v21158_v53, %v27515_v57  ;;  %v9661_v15 = vpop.f32.mrb[51].mxu0  ;;  %21196 = vmatmul.mubr.bf16.gmra.mrb[36].mxu1 %v27581_v58  ;;  %v9938_v40 = vshrl.u32 %v9860_v63, 16  ;;  %v9822_v27 = vmax.f32 %v9790_v59, 0.0  ;;  %v9941_v54 = vshll.u32 %v9860_v63, 16 }
 0x9c7   : > { %v9789_v16 = vadd.f32 %v27515_v57, %v9661_v15  ;;  %v9948_v48 = vrot.slane %v9946_v13, 7  ;;  %21228 = vmatpush3.bf16.msra.mxu1 %v24145_v32  ;;  %v9820_v43 = vmax.f32 %v9788_v18, 0.0  ;;  %v24148_v18 = vld [vmem:[%s29543_s10 + $0x28] sm:$0xff]   ;;  %vm29935_vm13 = vcmp.ne.s16.totalorder %v29878_v11, 0 }
 0x9c8   : > { %v9823_v41 = vmax.f32 %v9791_v7, 0.0  ;;  %v9940_v42 = vrot.slane %v9938_v40, 7  ;;  %21229 = vmatprep.subr.bf16.mxu1 %v24146_v24 }
 0x9c9   : > { %v9821_v53 = vmax.f32 %v9789_v16, 0.0  ;;  %v9951_v20 = vor.u32 %v9949_v49, %v9948_v48 }
 0x9ca   : > { %v27592_v61 = vpack.c.bf16 %v9823_v41, %v9822_v27  ;;  %v9943_v2 = vor.u32 %v9941_v54, %v9940_v42 }
 0x9cb   : > { %v27594_v31 = vpack.c.bf16 %v9821_v53, %v9820_v43  ;;  %v21161_v13 = vpop.f32.mrb[52].mxu0  ;;  %21230 = vmatpush3.bf16.msra.mxu1 %v24146_v24  ;;  %v27609_v24 = vsel %vm1585_vm4, %v9940_v42, %v9951_v20 }
 0x9cc   : > { %v9794_v32 = vadd.f32 %v21161_v13, %v27515_v57  ;;  %v9674_v59 = vpop.f32.mrb[53].mxu0  ;;  %v27598_v14 = vsel %vm1585_vm4, %v9932_v17, %v9943_v2  ;;  %v9863_v63 = vsel %vm29931_vm9, %v27592_v61, 0  ;;  %21231 = vmatprep.subr.bf16.mxu1 %v24147_v30  ;;  %v24149_v13 = vld [vmem:[%s29543_s10 + $0x30] sm:$0xff]   ;;  %vm29936_vm9 = vcmp.ne.s16.totalorder %v29876_v51, 0 }
 0x9cd   : > { %v9792_v7 = vadd.f32 %v27515_v57, %v9674_v59  ;;  %v21162_v15 = vpop.f32.mrb[54].mxu0  ;;  %21199 = vmatprep.mubr.bf16.mxu1 %v27598_v14  ;;  %v9862_v2 = vsel %vm29932_vm5, %v27594_v31, 0  ;;  %v9962_v17 = vshrl.u32 %v9863_v63, 16  ;;  %v9965_v54 = vshll.u32 %v9863_v63, 16 }
 0x9ce   : > { %v9795_v40 = vadd.f32 %v21162_v15, %v27515_v57  ;;  %v9677_v16 = vpop.f32.mrb[55].mxu0  ;;  %21200 = vmatmul.mubr.bf16.gmra.mrb[40].mxu1 %v27609_v24  ;;  %v9954_v49 = vshrl.u32 %v9862_v2, 16  ;;  %v9826_v43 = vmax.f32 %v9794_v32, 0.0  ;;  %v9957_v42 = vshll.u32 %v9862_v2, 16 }
 0x9cf   : > { %v9793_v27 = vadd.f32 %v27515_v57, %v9677_v16  ;;  %v9964_v41 = vrot.slane %v9962_v17, 7  ;;  %21232 = vmatpush3.bf16.msra.mxu1 %v24147_v30  ;;  %v9824_v59 = vmax.f32 %v9792_v7, 0.0  ;;  %v24150_v7 = vld [vmem:[%s29543_s10 + $0x38] sm:$0xff]   ;;  %vm29937_vm5 = vcmp.ne.s16.totalorder %v29882_v26, 0 }
 0x9d0   : > { %v9827_v53 = vmax.f32 %v9795_v40, 0.0  ;;  %v9956_v20 = vrot.slane %v9954_v49, 7  ;;  %21233 = vmatprep.subr.bf16.mxu1 %v24148_v18 }
 0x9d1   : > { %v9825_v15 = vmax.f32 %v9793_v27, 0.0  ;;  %v9967_v38 = vor.u32 %v9965_v54, %v9964_v41 }
 0x9d2   : > { %v27620_v10 = vpack.c.bf16 %v9827_v53, %v9826_v43  ;;  %v9959_v6 = vor.u32 %v9957_v42, %v9956_v20 }
 0x9d3   : > { %v27622_v23 = vpack.c.bf16 %v9825_v15, %v9824_v59  ;;  %v21165_v17 = vpop.f32.mrb[56].mxu0  ;;  %21234 = vmatpush3.bf16.msra.mxu1 %v24148_v18  ;;  %v27637_v18 = vsel %vm1585_vm4, %v9956_v20, %v9967_v38 }
 0x9d4   : > { %v9798_v30 = vadd.f32 %v21165_v17, %v27515_v57  ;;  %v9690_v32 = vpop.f32.mrb[57].mxu0  ;;  %v27626_v63 = vsel %vm1585_vm4, %v9948_v48, %v9959_v6  ;;  %v9865_v2 = vsel %vm29933_vm1, %v27620_v10, 0  ;;  %21235 = vmatprep.subr.bf16.mxu1 %v24149_v13  ;;  %v27648_v17 = vld [vmem:[%s29543_s10 + $0x180] sm:$0xff]  }
 0x9d5   : > { %v9796_v40 = vadd.f32 %v27515_v57, %v9690_v32  ;;  %v21166_v16 = vpop.f32.mrb[58].mxu0  ;;  %21203 = vmatprep.mubr.bf16.mxu1 %v27626_v63  ;;  %v9864_v6 = vsel %vm29934_vm11, %v27622_v23, 0  ;;  %v9978_v48 = vshrl.u32 %v9865_v2, 16  ;;  %v9981_v42 = vshll.u32 %v9865_v2, 16 }
 0x9d6   : > { %v9799_v49 = vadd.f32 %v21166_v16, %v27515_v57  ;;  %v9693_v27 = vpop.f32.mrb[59].mxu0  ;;  %21204 = vmatmul.mubr.bf16.gmra.mrb[44].mxu1 %v27637_v18  ;;  %v9970_v54 = vshrl.u32 %v9864_v6, 16  ;;  %v9830_v59 = vmax.f32 %v9798_v30, 0.0  ;;  %v9973_v20 = vshll.u32 %v9864_v6, 16 }
 0x9d7   : > { %v9797_v43 = vadd.f32 %v27515_v57, %v9693_v27  ;;  %v9980_v53 = vrot.slane %v9978_v48, 7  ;;  %21236 = vmatpush3.bf16.msra.mxu1 %v24149_v13  ;;  %v9828_v32 = vmax.f32 %v9796_v40, 0.0  ;;  %vm29940_vm11 = vcmp.ne.s16.totalorder %v29886_v4, 0 }
 0x9d8   : > { %v9831_v15 = vmax.f32 %v9799_v49, 0.0  ;;  %v9972_v38 = vrot.slane %v9970_v54, 7  ;;  %21237 = vmatprep.subr.bf16.mxu1 %v24150_v7 }
 0x9d9   : > { %v9829_v16 = vmax.f32 %v9797_v43, 0.0  ;;  %v9983_v3 = vor.u32 %v9981_v42, %v9980_v53 }
 0x9da   : > { %v27650_v50 = vpack.c.bf16 %v9831_v15, %v9830_v59  ;;  %v9975_v62 = vor.u32 %v9973_v20, %v9972_v38 }
 0x9db   : > { %v27652_v27 = vpack.c.bf16 %v9829_v16, %v9828_v32  ;;  %v21169_v2 = vpop.f32.mrb[60].mxu0  ;;  %21238 = vmatpush3.bf16.msra.mxu1 %v24150_v7  ;;  %v27665_v54 = vsel %vm1585_vm4, %v9972_v38, %v9983_v3 }
 0x9dc   : > { %v9802_v13 = vadd.f32 %v21169_v2, %v27515_v57  ;;  %v9706_v30 = vpop.f32.mrb[61].mxu0  ;;  %v27656_v6 = vsel %vm1585_vm4, %v9964_v41, %v9975_v62  ;;  %v9867_v48 = vsel %vm29935_vm13, %v27650_v50, 0  ;;  %21271 = vmatprep.subr.bf16.mxu1 %v27648_v17  ;;  %vm29941_vm13 = vcmp.ne.s16.totalorder %v29884_v33, 0 }
 0x9dd   : > { %v9800_v40 = vadd.f32 %v27515_v57, %v9706_v30  ;;  %v21170_v49 = vpop.f32.mrb[62].mxu0  ;;  %21207 = vmatprep.mubr.bf16.mxu1 %v27656_v6  ;;  %v9866_v7 = vsel %vm29936_vm9, %v27652_v27, 0  ;;  %v9994_v62 = vshrl.u32 %v9867_v48, 16  ;;  %v9997_v20 = vshll.u32 %v9867_v48, 16 }
 0x9de   : > { %v9803_v41 = vadd.f32 %v21170_v49, %v27515_v57  ;;  %v9709_v43 = vpop.f32.mrb[63].mxu0  ;;  %21208 = vmatmul.mubr.bf16.gmra.mrb[48].mxu1 %v27665_v54  ;;  %v9986_v42 = vshrl.u32 %v9866_v7, 16  ;;  %v9834_v32 = vmax.f32 %v9802_v13, 0.0  ;;  %v9989_v3 = vshll.u32 %v9866_v7, 16 }
 0x9df   : > { %v9801_v59 = vadd.f32 %v27515_v57, %v9709_v43  ;;  %v9996_v15 = vrot.slane %v9994_v62, 7  ;;  %v9832_v38 = vmax.f32 %v9800_v40, 0.0  ;;  %v29938_v62 = vld [vmem:[#allocation22_spill] sm:$0xff]  ;;  %vm29942_vm9 = vcmp.ne.s16.totalorder %v29898_v60, 0 }
 0x9e0   : > { %v9835_v16 = vmax.f32 %v9803_v41, 0.0  ;;  %v9988_v2 = vrot.slane %v9986_v42, 7  ;;  %vm29939_vm1 = vcmp.ne.s16.totalorder %v29938_v62, 0 }
 0x9e1   : > { %v9833_v30 = vmax.f32 %v9801_v59, 0.0  ;;  %v9999_v11 = vor.u32 %v9997_v20, %v9996_v15 }
 0x9e2   : > { %v27673_v51 = vpack.c.bf16 %v9835_v16, %v9834_v32  ;;  %v9991_v39 = vor.u32 %v9989_v3, %v9988_v2 }
 0x9e3   : > { %v27675_v19 = vpack.c.bf16 %v9833_v30, %v9832_v38  ;;  %v21173_v49 = vpop.f32.mrb[64].mxu0  ;;  %v27687_v7 = vsel %vm1585_vm4, %v9988_v2, %v9999_v11 }
 0x9e4   : > { %v9806_v9 = vadd.f32 %v21173_v49, %v27515_v57  ;;  %v9722_v8 = vpop.f32.mrb[65].mxu0  ;;  %v27679_v43 = vsel %vm1585_vm4, %v9980_v53, %v9991_v39  ;;  %v9869_v13 = vsel %vm29937_vm5, %v27673_v51, 0  ;;  %vm29943_vm5 = vcmp.ne.s16.totalorder %v29900_v55, 0 }
 0x9e5   : > { %v9804_v48 = vadd.f32 %v27515_v57, %v9722_v8  ;;  %v21174_v40 = vpop.f32.mrb[66].mxu0  ;;  %21211 = vmatprep.mubr.bf16.mxu1 %v27679_v43  ;;  %v9868_v41 = vsel %vm29939_vm1, %v27675_v19, 0  ;;  %v10010_v42 = vshrl.u32 %v9869_v13, 16  ;;  %v10013_v32 = vshll.u32 %v9869_v13, 16 }
 0x9e6   : > { %v9807_v39 = vadd.f32 %v21174_v40, %v27515_v57  ;;  %v9725_v53 = vpop.f32.mrb[67].mxu0  ;;  %21212 = vmatmul.mubr.bf16.gmra.mrb[52].mxu1 %v27687_v7  ;;  %v10002_v59 = vshrl.u32 %v9868_v41, 16  ;;  %v9838_v16 = vmax.f32 %v9806_v9, 0.0  ;;  %v10005_v11 = vshll.u32 %v9868_v41, 16 }
 0x9e7   : > { %v9805_v20 = vadd.f32 %v27515_v57, %v9725_v53  ;;  %v10012_v8 = vrot.slane %v10010_v42, 7  ;;  %v9836_v2 = vmax.f32 %v9804_v48, 0.0  ;;  %vm29944_vm1 = vcmp.ne.s16.totalorder %v29902_v56, 0 }
 0x9e8   : > { %v9839_v3 = vmax.f32 %v9807_v39, 0.0  ;;  %v10004_v38 = vrot.slane %v10002_v59, 7 }
 0x9e9   : > { %v9837_v30 = vmax.f32 %v9805_v20, 0.0  ;;  %v10015_v49 = vor.u32 %v10013_v32, %v10012_v8 }
 0x9ea   : > { %v27695_v62 = vpack.c.bf16 %v9839_v3, %v9838_v16  ;;  %v10007_v26 = vor.u32 %v10005_v11, %v10004_v38  ;;  %v24152_v16 = vld [vmem:[%s29543_s10 + $0x188] sm:$0xff]   ;;  %v24154_v3 = vld [vmem:[%s29543_s10 + $0x198] sm:$0xff]  }
 0x9eb   : > { %v27697_v5 = vpack.c.bf16 %v9837_v30, %v9836_v2  ;;  %v27707_v9 = vsel %vm1585_vm4, %v10004_v38, %v10015_v49  ;;  %v24157_v38 = vld [vmem:[%s29543_s10 + $0x1b0] sm:$0xff]   ;;  %v24158_v11 = vld [vmem:[%s29543_s10 + $0x1b8] sm:$0xff]   ;;  %v24159_v2 = vld [vmem:[%s29543_s10 + $0x40] sm:$0xff]  }
 0x9ec   : > { %v27700_v40 = vsel %vm1585_vm4, %v9996_v15, %v10007_v26  ;;  %v9871_v57 = vsel %vm29940_vm11, %v27695_v62, 0  ;;  %v24160_v30 = vld [vmem:[%s29543_s10 + $0x48] sm:$0xff]   ;;  %v24161_v49 = vld [vmem:[%s29543_s10 + $0x50] sm:$0xff]   ;;  %vm29945_vm11 = vcmp.ne.s16.totalorder %v29905_v12, 0 }
 0x9ed   : > { %21215 = vmatprep.mubr.bf16.mxu1 %v27700_v40  ;;  %v9870_v13 = vsel %vm29941_vm13, %v27697_v5, 0  ;;  %v10026_v48 = vshrl.u32 %v9871_v57, 16  ;;  %v10029_v26 = vshll.u32 %v9871_v57, 16  ;;  %v24173_v57 = vld [vmem:[%s29543_s10 + $0x130] sm:$0xff]   ;;  %vm29946_vm13 = vcmp.ne.s16.totalorder %v29907_v0, 0 }
 0x9ee   : > { %21216 = vmatmul.mubr.bf16.gmra.mrb[56].mxu1 %v27707_v9  ;;  %v10018_v41 = vshrl.u32 %v9870_v13, 16  ;;  %v10021_v39 = vshll.u32 %v9870_v13, 16  ;;  %v24175_v13 = vld [vmem:[%s29543_s10 + $0x1c0] sm:$0xff]  }
 0x9ef   : > { %v27713_v42 = vrot.slane %v10026_v48, 7  ;;  %v24176_v48 = vld [vmem:[%s29543_s10 + $0x1c8] sm:$0xff]  }
 0x9f0   : > { %v10020_v15 = vrot.slane %v10018_v41, 7  ;;  %v24177_v41 = vld [vmem:[%s29543_s10 + $0x1d0] sm:$0xff]  }
 0x9f1   : > { %v10031_v53 = vor.u32 %v10029_v26, %v27713_v42  ;;  %v24179_v26 = vld [vmem:[%s29543_s10 + $0x1e0] sm:$0xff]  }
 0x9f2   : > { %v10023_v59 = vor.u32 %v10021_v39, %v10020_v15  ;;  %v24181_v39 = vld [vmem:[%s29543_s10 + $0x1f0] sm:$0xff]  }
 0x9f3   : > { %v27721_v32 = vsel %vm1585_vm4, %v10020_v15, %v10031_v53  ;;  %v24180_v15 = vld [vmem:[%s29543_s10 + $0x1e8] sm:$0xff]   ;;  %v24182_v53 = vld [vmem:[%s29543_s10 + $0x1f8] sm:$0xff]  }
 0x9f4   : > { %v27717_v20 = vsel %vm1585_vm4, %v10012_v8, %v10023_v59  ;;  %v24153_v8 = vld [vmem:[%s29543_s10 + $0x190] sm:$0xff]   ;;  %v24183_v59 = vld [vmem:[%s29543_s10 + $0x80] sm:$0xff]  }
 0x9f5   : > { %21219 = vmatprep.mubr.bf16.mxu1 %v27717_v20 }
 0x9f6   : > { %21220 = vmatmul.mubr.bf16.gmra.mrb[60].mxu1 %v27721_v32 }
 0x9f7   : > { %21239 = vmatprep.mubr.bf16.mxu1 %v29863_v1 }
 0x9fe   : > { %21240 = vmatmul.mubr.bf16.vlgmr.msra.gmra.mrb[32].mxu1 %v27542_v25  ;;  %v24155_v25 = vld [vmem:[%s29543_s10 + $0x1a0] sm:$0xff]  }
 0x9ff   : > { %21272 = vmatpush3.bf16.msra.mxu1 %v27648_v17  ;;  %21243 = vmatprep.mubr.bf16.mxu1 %v27553_v45  ;;  %v24156_v17 = vld [vmem:[%s29543_s10 + $0x1a8] sm:$0xff]  }
 0xa00   : > { %21273 = vmatprep.subr.bf16.mxu1 %v24152_v16 }
 0xa03   : > { %21274 = vmatpush3.bf16.msra.mxu1 %v24152_v16  ;;  %v24186_v16 = vld [vmem:[%s29543_s10 + $0x98] sm:$0xff]  }
 0xa04   : > { %21275 = vmatprep.subr.bf16.mxu1 %v24153_v8 }
 0xa06   : > { %21244 = vmatmul.mubr.bf16.gmra.mrb[36].mxu1 %v27570_v22 }
 0xa07   : > { %21247 = vmatprep.mubr.bf16.mxu1 %v27581_v58  ;;  %21276 = vmatpush3.bf16.msra.mxu1 %v24153_v8  ;;  %v24187_v8 = vld [vmem:[%s29543_s10 + $0xa0] sm:$0xff]  }
 0xa08   : > { %21277 = vmatprep.subr.bf16.mxu1 %v24154_v3 }
 0xa0b   : > { %21278 = vmatpush3.bf16.msra.mxu1 %v24154_v3  ;;  %v24188_v3 = vld [vmem:[%s29543_s10 + $0xa8] sm:$0xff]  }
 0xa0c   : > { %21279 = vmatprep.subr.bf16.mxu1 %v24155_v25 }
 0xa0e   : > { %21248 = vmatmul.mubr.bf16.gmra.mrb[40].mxu1 %v27598_v14 }
 0xa0f   : > { %21251 = vmatprep.mubr.bf16.mxu1 %v27609_v24  ;;  %21280 = vmatpush3.bf16.msra.mxu1 %v24155_v25  ;;  %v24189_v25 = vld [vmem:[%s29543_s10 + $0xb0] sm:$0xff]  }
 0xa10   : > { %21281 = vmatprep.subr.bf16.mxu1 %v24156_v17 }
 0xa13   : > { %21282 = vmatpush3.bf16.msra.mxu1 %v24156_v17  ;;  %v24190_v17 = vld [vmem:[%s29543_s10 + $0xb8] sm:$0xff]  }
 0xa14   : > { %21283 = vmatprep.subr.bf16.mxu1 %v24157_v38 }
 0xa16   : > { %21252 = vmatmul.mubr.bf16.gmra.mrb[44].mxu1 %v27626_v63 }
 0xa17   : > { %21255 = vmatprep.mubr.bf16.mxu1 %v27637_v18  ;;  %21284 = vmatpush3.bf16.msra.mxu1 %v24157_v38  ;;  %v24191_v38 = vld [vmem:[%s29543_s10 + $0x140] sm:$0xff]  }
 0xa18   : > { %21285 = vmatprep.subr.bf16.mxu1 %v24158_v11 }
 0xa1b   : > { %21286 = vmatpush3.bf16.msra.mxu1 %v24158_v11  ;;  %v11501_v11 = vsel %vm29942_vm9, %v27523_v28, 0  ;;  %vm29947_vm9 = vcmp.ne.s16.totalorder %v29909_v44, 0 }
 0xa1c   : > { %21319 = vmatprep.subr.bf16.mxu1 %v24159_v2 }
 0xa1e   : > { %21256 = vmatmul.mubr.bf16.gmra.mrb[48].mxu1 %v27656_v6 }
 0xa1f   : > { %21259 = vmatprep.mubr.bf16.mxu1 %v27665_v54 }
 0xa26   : > { %21260 = vmatmul.mubr.bf16.gmra.mrb[52].mxu1 %v27679_v43 }
 0xa27   : > { %21263 = vmatprep.mubr.bf16.mxu1 %v27687_v7 }
 0xa2e   : > { %21264 = vmatmul.mubr.bf16.gmra.mrb[56].mxu1 %v27700_v40 }
 0xa2f   : > { %21267 = vmatprep.mubr.bf16.mxu1 %v27707_v9 }
 0xa36   : > { %21268 = vmatmul.mubr.bf16.gmra.mrb[60].mxu1 %v27717_v20 }
 0xa37   : > { %21287 = vmatprep.mubr.bf16.mxu1 %v27553_v45  ;;  %v24162_v45 = vld [vmem:[%s29543_s10 + $0x58] sm:$0xff]  }
 0xa3e   : > { %21288 = vmatmul.mubr.bf16.vlgmr.msra.gmra.mrb[32].mxu1 %v27570_v22  ;;  %v24163_v22 = vld [vmem:[%s29543_s10 + $0x60] sm:$0xff]  }
 0xa3f   : > { %21320 = vmatpush3.bf16.msra.mxu1 %v24159_v2  ;;  %21291 = vmatprep.mubr.bf16.mxu1 %v27581_v58  ;;  %v24164_v58 = vld [vmem:[%s29543_s10 + $0x68] sm:$0xff]   ;;  %v11535_v2 = vshll.u32 %v11501_v11, 16 }
 0xa40   : > { %21321 = vmatprep.subr.bf16.mxu1 %v24160_v30 }
 0xa43   : > { %21322 = vmatpush3.bf16.msra.mxu1 %v24160_v30  ;;  %v11502_v30 = vsel %vm29943_vm5, %v27521_v37, 0  ;;  %vm29948_vm5 = vcmp.ne.s16.totalorder %v29911_v29, 0 }
 0xa44   : > { %21323 = vmatprep.subr.bf16.mxu1 %v24161_v49 }
 0xa46   : > { %21292 = vmatmul.mubr.bf16.gmra.mrb[36].mxu1 %v27598_v14  ;;  %v24165_v14 = vld [vmem:[%s29543_s10 + $0x70] sm:$0xff]  }
 0xa47   : > { %21295 = vmatprep.mubr.bf16.mxu1 %v27609_v24  ;;  %21324 = vmatpush3.bf16.msra.mxu1 %v24161_v49  ;;  %v24166_v24 = vld [vmem:[%s29543_s10 + $0x78] sm:$0xff]   ;;  %v11537_v49 = vrot.slane %v11535_v2, 1  ;;  %v11509_v2 = vsel %vm3313_vm12, %v27622_v23, 0 }
 0xa48   : > { %21325 = vmatprep.subr.bf16.mxu1 %v24162_v45 }
 0xa4b   : > { %21326 = vmatpush3.bf16.msra.mxu1 %v24162_v45  ;;  %v11503_v45 = vsel %vm29944_vm1, %v27537_v34, 0 }
 0xa4c   : > { %21327 = vmatprep.subr.bf16.mxu1 %v24163_v22 }
 0xa4e   : > { %21296 = vmatmul.mubr.bf16.gmra.mrb[40].mxu1 %v27626_v63  ;;  %v24167_v63 = vld [vmem:[%s29543_s10 + $0x100] sm:$0xff]  }
 0xa4f   : > { %21299 = vmatprep.mubr.bf16.mxu1 %v27637_v18  ;;  %21328 = vmatpush3.bf16.msra.mxu1 %v24163_v22  ;;  %v10484_v18 = vsel %vm1585_vm4, %v27713_v42, %v29863_v1  ;;  %v24178_v42 = vld [vmem:[%s29543_s10 + $0x1d8] sm:$0xff]   ;;  %v11543_v22 = vshll.u32 %v11502_v30, 16 }
 0xa50   : > { %21329 = vmatprep.subr.bf16.mxu1 %v24164_v58 }
 0xa53   : > { %21330 = vmatpush3.bf16.msra.mxu1 %v24164_v58  ;;  %v11551_v58 = vshll.u32 %v11503_v45, 16 }
 0xa54   : > { %21331 = vmatprep.subr.bf16.mxu1 %v24165_v14 }
 0xa56   : > { %21300 = vmatmul.mubr.bf16.gmra.mrb[44].mxu1 %v27656_v6  ;;  %v24168_v6 = vld [vmem:[%s29543_s10 + $0x108] sm:$0xff]  }
 0xa57   : > { %21303 = vmatprep.mubr.bf16.mxu1 %v27665_v54  ;;  %21332 = vmatpush3.bf16.msra.mxu1 %v24165_v14  ;;  %v24169_v54 = vld [vmem:[%s29543_s10 + $0x110] sm:$0xff]   ;;  %v11539_v14 = vshrl.u32 %v11501_v11, 16 }
 0xa58   : > { %21333 = vmatprep.subr.bf16.mxu1 %v24166_v24  ;;  %v30181_v11 = vld [vmem:[#allocation25_spill] sm:$0xff] }
 0xa5b   : > { %21334 = vmatpush3.bf16.msra.mxu1 %v24166_v24  ;;  %v11545_v24 = vrot.slane %v11543_v22, 1 }
 0xa5c   : > { %21367 = vmatprep.subr.bf16.mxu1 %v24167_v63 }
 0xa5e   : > { %21304 = vmatmul.mubr.bf16.gmra.mrb[48].mxu1 %v27679_v43  ;;  %v24170_v43 = vld [vmem:[%s29543_s10 + $0x118] sm:$0xff]  }
 0xa5f   : > { %21307 = vmatprep.mubr.bf16.mxu1 %v27687_v7  ;;  %v24171_v7 = vld [vmem:[%s29543_s10 + $0x120] sm:$0xff]  }
 0xa66   : > { %21308 = vmatmul.mubr.bf16.gmra.mrb[52].mxu1 %v27700_v40  ;;  %v24172_v40 = vld [vmem:[%s29543_s10 + $0x128] sm:$0xff]  }
 0xa67   : > { %21311 = vmatprep.mubr.bf16.mxu1 %v27707_v9  ;;  %v24174_v9 = vld [vmem:[%s29543_s10 + $0x138] sm:$0xff]  }
 0xa6e   : > { %21312 = vmatmul.mubr.bf16.gmra.mrb[56].mxu1 %v27717_v20  ;;  %v24184_v20 = vld [vmem:[%s29543_s10 + $0x88] sm:$0xff]  }
 0xa6f   : > { %21315 = vmatprep.mubr.bf16.mxu1 %v27721_v32  ;;  %v24185_v32 = vld [vmem:[%s29543_s10 + $0x90] sm:$0xff]  }
 0xa76   : > { %21316 = vmatmul.mubr.bf16.gmra.mrb[60].mxu1 %v10484_v18  ;;  %v11547_v18 = vshrl.u32 %v11502_v30, 16 }
 0xa77   : > { %21335 = vmatprep.mubr.bf16.mxu1 %v29892_v21 }
 0xa7e   : > { %21336 = vmatmul.mubr.bf16.vlgmr.msra.gmra.mrb[32].mxu1 %v27523_v28 }
 0xa7f   : > { %21368 = vmatpush3.bf16.msra.mxu1 %v24167_v63  ;;  %21339 = vmatprep.mubr.bf16.mxu1 %v27521_v37  ;;  %v11541_v63 = vor.u32 %v11539_v14, %v11537_v49  ;;  %v24197_v14 = vld [vmem:[%s29543_s10 + $0x170] sm:$0xff]  }
 0xa80   : > { %21369 = vmatprep.subr.bf16.mxu1 %v24168_v6 }
 0xa83   : > { %21370 = vmatpush3.bf16.msra.mxu1 %v24168_v6  ;;  %v11553_v6 = vrot.slane %v11551_v58, 1 }
 0xa84   : > { %21371 = vmatprep.subr.bf16.mxu1 %v24169_v54 }
 0xa86   : > { %21340 = vmatmul.mubr.bf16.gmra.mrb[36].mxu1 %v27537_v34 }
 0xa87   : > { %21343 = vmatprep.mubr.bf16.mxu1 %v27535_v47  ;;  %21372 = vmatpush3.bf16.msra.mxu1 %v24169_v54  ;;  %v11549_v54 = vor.u32 %v11547_v18, %v11545_v24 }
 0xa88   : > { %21373 = vmatprep.subr.bf16.mxu1 %v24170_v43 }
 0xa8b   : > { %21374 = vmatpush3.bf16.msra.mxu1 %v24170_v43  ;;  %v24192_v43 = vld [vmem:[%s29543_s10 + $0x148] sm:$0xff]  }
 0xa8c   : > { %21375 = vmatprep.subr.bf16.mxu1 %v24171_v7 }
 0xa8e   : > { %21344 = vmatmul.mubr.bf16.gmra.mrb[40].mxu1 %v27566_v46 }
 0xa8f   : > { %21347 = vmatprep.mubr.bf16.mxu1 %v27564_v35  ;;  %21376 = vmatpush3.bf16.msra.mxu1 %v24171_v7 }
 0xa90   : > { %21377 = vmatprep.subr.bf16.mxu1 %v24172_v40 }
 0xa93   : > { %21378 = vmatpush3.bf16.msra.mxu1 %v24172_v40  ;;  %v27948_v40 = vsel %vm1417_vm6, %v11541_v63, %v11545_v24 }
 0xa94   : > { %21379 = vmatprep.subr.bf16.mxu1 %v24173_v57 }
 0xa96   : > { %21348 = vmatmul.mubr.bf16.gmra.mrb[44].mxu1 %v27594_v31 }
 0xa97   : > { %21351 = vmatprep.mubr.bf16.mxu1 %v27592_v61  ;;  %21380 = vmatpush3.bf16.msra.mxu1 %v24173_v57  ;;  %v27952_v57 = vsel %vm1417_vm6, %v11549_v54, %v11553_v6  ;;  %v11511_v54 = vsel %vm3315_vm0, %v27652_v27, 0 }
 0xa98   : > { %21381 = vmatprep.subr.bf16.mxu1 %v24174_v9 }
 0xa9b   : > { %21382 = vmatpush3.bf16.msra.mxu1 %v24174_v9  ;;  %v11555_v9 = vshrl.u32 %v11503_v45, 16  ;;  %v24196_v45 = vld [vmem:[%s29543_s10 + $0x168] sm:$0xff]  }
 0xa9c   : > { %21415 = vmatprep.subr.bf16.mxu1 %v24175_v13 }
 0xa9e   : > { %21352 = vmatmul.mubr.bf16.gmra.mrb[48].mxu1 %v27622_v23 }
 0xa9f   : > { %21355 = vmatprep.mubr.bf16.mxu1 %v27620_v10 }
 0xaa6   : > { %21356 = vmatmul.mubr.bf16.gmra.mrb[52].mxu1 %v27652_v27 }
 0xaa7   : > { %21359 = vmatprep.mubr.bf16.mxu1 %v27650_v50 }
 0xaae   : > { %21360 = vmatmul.mubr.bf16.gmra.mrb[56].mxu1 %v27675_v19 }
 0xaaf   : > { %21363 = vmatprep.mubr.bf16.mxu1 %v27673_v51 }
 0xab6   : > { %21364 = vmatmul.mubr.bf16.gmra.mrb[60].mxu1 %v27697_v5 }
 0xab7   : > { %21383 = vmatprep.mubr.bf16.mxu1 %v27523_v28  ;;  %v11538_v28 = vsel %vm1417_vm6, %v29904_v52, %v11537_v49 }
 0xabe   : > { %21384 = vmatmul.mubr.bf16.vlgmr.msra.gmra.mrb[32].mxu1 %v27521_v37 }
 0xabf   : > { %21416 = vmatpush3.bf16.msra.mxu1 %v24175_v13  ;;  %21387 = vmatprep.mubr.bf16.mxu1 %v27537_v34  ;;  %v24193_v13 = vld [vmem:[%s29543_s10 + $0x150] sm:$0xff]  }
 0xac0   : > { %21417 = vmatprep.subr.bf16.mxu1 %v24176_v48 }
 0xac3   : > { %21418 = vmatpush3.bf16.msra.mxu1 %v24176_v48  ;;  %v11557_v48 = vor.u32 %v11555_v9, %v11553_v6 }
 0xac4   : > { %21419 = vmatprep.subr.bf16.mxu1 %v24177_v41 }
 0xac6   : > { %21388 = vmatmul.mubr.bf16.gmra.mrb[36].mxu1 %v27535_v47 }
 0xac7   : > { %21391 = vmatprep.mubr.bf16.mxu1 %v27566_v46  ;;  %21420 = vmatpush3.bf16.msra.mxu1 %v24177_v41  ;;  %v11506_v41 = vsel %vm29947_vm9, %v27564_v35, 0  ;;  %vm29961_vm9 = vcmask 23552  }
 0xac8   : > { %21421 = vmatprep.subr.bf16.mxu1 %v24178_v42 }
 0xacb   : > { %21422 = vmatpush3.bf16.msra.mxu1 %v24178_v42 }
 0xacc   : > { %21423 = vmatprep.subr.bf16.mxu1 %v24179_v26 }
 0xace   : > { %21392 = vmatmul.mubr.bf16.gmra.mrb[40].mxu1 %v27564_v35 }
 0xacf   : > { %21395 = vmatprep.mubr.bf16.mxu1 %v27594_v31  ;;  %21424 = vmatpush3.bf16.msra.mxu1 %v24179_v26 }
 0xad0   : > { %21425 = vmatprep.subr.bf16.mxu1 %v24180_v15 }
 0xad3   : > { %21426 = vmatpush3.bf16.msra.mxu1 %v24180_v15  ;;  %v11507_v15 = vsel %vm29948_vm5, %v27594_v31, 0  ;;  %vm29962_vm5 = vmmov %vm29961_vm9 }
 0xad4   : > { %21427 = vmatprep.subr.bf16.mxu1 %v24181_v39  ;;  %v11587_v58 = vshrl.u32 %v11507_v15, 16 }
 0xad6   : > { %21396 = vmatmul.mubr.bf16.gmra.mrb[44].mxu1 %v27592_v61 }
 0xad7   : > { %21399 = vmatprep.mubr.bf16.mxu1 %v27622_v23  ;;  %21428 = vmatpush3.bf16.msra.mxu1 %v24181_v39 }
 0xad8   : > { %21429 = vmatprep.subr.bf16.mxu1 %v24182_v53 }
 0xadb   : > { %21430 = vmatpush3.bf16.msra.mxu1 %v24182_v53  ;;  %v11575_v53 = vshll.u32 %v11506_v41, 16 }
 0xadc   : > { %21463 = vmatprep.subr.bf16.mxu1 %v24183_v59 }
 0xade   : > { %21400 = vmatmul.mubr.bf16.gmra.mrb[48].mxu1 %v27620_v10 }
 0xadf   : > { %21403 = vmatprep.mubr.bf16.mxu1 %v27652_v27 }
 0xae6   : > { %21404 = vmatmul.mubr.bf16.gmra.mrb[52].mxu1 %v27650_v50 }
 0xae7   : > { %21407 = vmatprep.mubr.bf16.mxu1 %v27675_v19 }
 0xaee   : > { %21408 = vmatmul.mubr.bf16.gmra.mrb[56].mxu1 %v27673_v51 }
 0xaef   : > { %21411 = vmatprep.mubr.bf16.mxu1 %v27697_v5 }
 0xaf6   : > { %21412 = vmatmul.mubr.bf16.gmra.mrb[60].mxu1 %v27695_v62 }
 0xaf7   : > { %21431 = vmatprep.mubr.bf16.mxu1 %v27521_v37  ;;  %v11504_v37 = vsel %vm29945_vm11, %v27535_v47, 0 }
 0xaf8   : > { %v11559_v7 = vshll.u32 %v11504_v37, 16  ;;  %v11563_v42 = vshrl.u32 %v11504_v37, 16  ;;  %v11510_v37 = vsel %vm3314_vm14, %v27620_v10, 0 }
 0xafe   : > { %21432 = vmatmul.mubr.bf16.vlgmr.msra.gmra.mrb[32].mxu1 %v27537_v34  ;;  %v11505_v34 = vsel %vm29946_vm13, %v27566_v46, 0 }
 0xaff   : > { %21464 = vmatpush3.bf16.msra.mxu1 %v24183_v59  ;;  %21435 = vmatprep.mubr.bf16.mxu1 %v27535_v47  ;;  %v11567_v47 = vshll.u32 %v11505_v34, 16  ;;  %v24194_v59 = vld [vmem:[%s29543_s10 + $0x158] sm:$0xff]  }
 0xb00   : > { %21465 = vmatprep.subr.bf16.mxu1 %v24184_v20 }
 0xb01   : > { %v11569_v26 = vrot.slane %v11567_v47, 1  ;;  %v24198_v47 = vld [vmem:[%s29543_s10 + $0x178] sm:$0xff]  }
 0xb03   : > { %21466 = vmatpush3.bf16.msra.mxu1 %v24184_v20 }
 0xb04   : > { %21467 = vmatprep.subr.bf16.mxu1 %v24185_v32 }
 0xb06   : > { %21436 = vmatmul.mubr.bf16.gmra.mrb[36].mxu1 %v27566_v46  ;;  %v11561_v46 = vrot.slane %v11559_v7, 1  ;;  %v11607_v7 = vshll.u32 %v11510_v37, 16 }
 0xb07   : > { %21439 = vmatprep.mubr.bf16.mxu1 %v27564_v35  ;;  %21468 = vmatpush3.bf16.msra.mxu1 %v24185_v32  ;;  %v11583_v32 = vshll.u32 %v11507_v15, 16  ;;  %v11611_v15 = vshrl.u32 %v11510_v37, 16 }
 0xb08   : > { %21469 = vmatprep.subr.bf16.mxu1 %v24186_v16  ;;  %v11565_v39 = vor.u32 %v11563_v42, %v11561_v46  ;;  %v27968_v20 = vsel %vm1417_vm6, %v11557_v48, %v11561_v46  ;;  %v11615_v46 = vshll.u32 %v11511_v54, 16  ;;  %v24199_v48 = vld [vmem:[%s29543_s10 + $0x200] sm:$0xff]   ;;  %v29952_v42 = vld [vmem:[#allocation38_spill] sm:$0xff] }
 0xb09   : > { %vm29953_vm1 = vcmp.ne.s16.totalorder %v29952_v42, 0 }
 0xb0a   : > { %v27972_v35 = vsel %vm1417_vm6, %v11565_v39, %v11569_v26  ;;  %v11617_v39 = vrot.slane %v11615_v46, 1 }
 0xb0b   : > { %21470 = vmatpush3.bf16.msra.mxu1 %v24186_v16  ;;  %v11571_v16 = vshrl.u32 %v11505_v34, 16 }
 0xb0c   : > { %21471 = vmatprep.subr.bf16.mxu1 %v24187_v8 }
 0xb0e   : > { %21440 = vmatmul.mubr.bf16.gmra.mrb[40].mxu1 %v27594_v31  ;;  %v11577_v31 = vrot.slane %v11575_v53, 1  ;;  %v29954_v53 = vld [vmem:[#allocation39_spill] sm:$0xff] }
 0xb0f   : > { %21443 = vmatprep.mubr.bf16.mxu1 %v27592_v61  ;;  %21472 = vmatpush3.bf16.msra.mxu1 %v24187_v8  ;;  %v24195_v8 = vld [vmem:[%s29543_s10 + $0x160] sm:$0xff]   ;;  %vm29955_vm11 = vcmp.ne.s16.totalorder %v29954_v53, 0 }
 0xb10   : > { %21473 = vmatprep.subr.bf16.mxu1 %v24188_v3 }
 0xb13   : > { %21474 = vmatpush3.bf16.msra.mxu1 %v24188_v3  ;;  %v11573_v3 = vor.u32 %v11571_v16, %v11569_v26  ;;  %v11512_v26 = vsel %vm29953_vm1, %v27650_v50, 0  ;;  %vm29963_vm1 = vmmov %vm29962_vm5 }
 0xb14   : > { %21475 = vmatprep.subr.bf16.mxu1 %v24189_v25  ;;  %v11623_v16 = vshll.u32 %v11512_v26, 16 }
 0xb15   : > { %v27988_v22 = vsel %vm1417_vm6, %v11573_v3, %v11577_v31 }
 0xb16   : > { %21444 = vmatmul.mubr.bf16.gmra.mrb[44].mxu1 %v27622_v23 }
 0xb17   : > { %21447 = vmatprep.mubr.bf16.mxu1 %v27620_v10  ;;  %21476 = vmatpush3.bf16.msra.mxu1 %v24189_v25  ;;  %v11508_v25 = vsel %vm3312_vm15, %v27592_v61, 0 }
 0xb18   : > { %21477 = vmatprep.subr.bf16.mxu1 %v24190_v17  ;;  %v11591_v49 = vshll.u32 %v11508_v25, 16  ;;  %v11595_v18 = vshrl.u32 %v11508_v25, 16  ;;  %v11625_v25 = vrot.slane %v11623_v16, 1  ;;  %v24201_v16 = vld [vmem:[%s29543_s10 + $0x210] sm:$0xff]  }
 0xb1a   : > { %v11593_v23 = vrot.slane %v11591_v49, 1 }
 0xb1b   : > { %21478 = vmatpush3.bf16.msra.mxu1 %v24190_v17  ;;  %v11579_v17 = vshrl.u32 %v11506_v41, 16 }
 0xb1c   : > { %21511 = vmatprep.subr.bf16.mxu1 %v24191_v38 }
 0xb1d   : > { %v11581_v30 = vor.u32 %v11579_v17, %v11577_v31 }
 0xb1e   : > { %21448 = vmatmul.mubr.bf16.gmra.mrb[48].mxu1 %v27652_v27  ;;  %v11603_v27 = vshrl.u32 %v11509_v2, 16 }
 0xb1f   : > { %21451 = vmatprep.mubr.bf16.mxu1 %v27650_v50  ;;  %v11619_v50 = vshrl.u32 %v11511_v54, 16 }
 0xb21   : > { %v11621_v17 = vor.u32 %v11619_v50, %v11617_v39  ;;  %v24205_v50 = vld [vmem:[%s29543_s10 + $0x230] sm:$0xff]  }
 0xb26   : > { %21452 = vmatmul.mubr.bf16.gmra.mrb[52].mxu1 %v27675_v19 }
 0xb27   : > { %21455 = vmatprep.mubr.bf16.mxu1 %v27673_v51 }
 0xb2e   : > { %21456 = vmatmul.mubr.bf16.gmra.mrb[56].mxu1 %v27697_v5 }
 0xb2f   : > { %21459 = vmatprep.mubr.bf16.mxu1 %v27695_v62 }
 0xb36   : > { %21460 = vmatmul.mubr.bf16.gmra.mrb[60].mxu1 %v29892_v21 }
 0xb37   : > { %21479 = vmatprep.mubr.bf16.mxu1 %v11538_v28  ;;  %v11599_v28 = vshll.u32 %v11509_v2, 16  ;;  %v11627_v2 = vshrl.u32 %v11512_v26, 16 }
 0xb39   : > { %v11601_v6 = vrot.slane %v11599_v28, 1  ;;  %v11629_v28 = vor.u32 %v11627_v2, %v11625_v25 }
 0xb3b   : > { %v11605_v41 = vor.u32 %v11603_v27, %v11601_v6 }
 0xb3e   : > { %21480 = vmatmul.mubr.bf16.vlgmr.msra.gmra.mrb[32].mxu1 %v27948_v40 }
 0xb3f   : > { %21512 = vmatpush3.bf16.msra.mxu1 %v24191_v38  ;;  %21483 = vmatprep.mubr.bf16.mxu1 %v27952_v57  ;;  %v11585_v38 = vrot.slane %v11583_v32, 1 }
 0xb40   : > { %21513 = vmatprep.subr.bf16.mxu1 %v24192_v43 }
 0xb41   : > { %v27992_v61 = vsel %vm1417_vm6, %v11581_v30, %v11585_v38  ;;  %v11589_v24 = vor.u32 %v11587_v58, %v11585_v38 }
 0xb43   : > { %21514 = vmatpush3.bf16.msra.mxu1 %v24192_v43  ;;  %v11597_v43 = vor.u32 %v11595_v18, %v11593_v23  ;;  %v28008_v9 = vsel %vm1417_vm6, %v11589_v24, %v11593_v23  ;;  %v28039_v23 = vsel %vm1417_vm6, %v11621_v17, %v11625_v25  ;;  %v24206_v25 = vld [vmem:[%s29543_s10 + $0x238] sm:$0xff]  }
 0xb44   : > { %21515 = vmatprep.subr.bf16.mxu1 %v24193_v13 }
 0xb45   : > { %v28012_v10 = vsel %vm1417_vm6, %v11597_v43, %v11601_v6 }
 0xb46   : > { %21484 = vmatmul.mubr.bf16.gmra.mrb[36].mxu1 %v27968_v20 }
 0xb47   : > { %21487 = vmatprep.mubr.bf16.mxu1 %v27972_v35  ;;  %21516 = vmatpush3.bf16.msra.mxu1 %v24193_v13  ;;  %v11609_v13 = vrot.slane %v11607_v7, 1  ;;  %v11516_v7 = vsel %vm29698_vm2, %v27695_v62, 0  ;;  %v18609_v62 = vld [vmem:[%s29713_s4 + $0x6] sm:$0x3] }
 0xb48   : > { %21517 = vmatprep.subr.bf16.mxu1 %v24194_v59  ;;  %v11933_v17 = vshrl.u32 %v11516_v7, 16 }
 0xb49   : > { %v11613_v32 = vor.u32 %v11611_v15, %v11609_v13  ;;  %v28025_v31 = vsel %vm1417_vm6, %v11605_v41, %v11609_v13  ;;  %v11655_v13 = vshll.u32 %v11516_v7, 16 }
 0xb4b   : > { %21518 = vmatpush3.bf16.msra.mxu1 %v24194_v59  ;;  %v11513_v59 = vsel %vm29955_vm11, %v27675_v19, 0  ;;  %v29956_v19 = vld [vmem:[#allocation40_spill] sm:$0xff]  ;;  %v11657_v26 = vrot.slane %v11655_v13, 1  ;;  %vm29964_vm11 = vmmov %vm29963_vm1 }
 0xb4c   : > { %21519 = vmatprep.subr.bf16.mxu1 %v24195_v8  ;;  %v11631_v3 = vshll.u32 %v11513_v59, 16  ;;  %vm29957_vm13 = vcmp.ne.s16.totalorder %v29956_v19, 0 }
 0xb4d   : > { %v11514_v38 = vsel %vm29957_vm13, %v27673_v51, 0  ;;  %v11635_v51 = vshrl.u32 %v11513_v59, 16  ;;  %vm29967_vm13 = vmmov %vm29963_vm1 }
 0xb4e   : > { %21488 = vmatmul.mubr.bf16.gmra.mrb[40].mxu1 %v27988_v22  ;;  %v11633_v30 = vrot.slane %v11631_v3, 1  ;;  %v11639_v58 = vshll.u32 %v11514_v38, 16  ;;  %v11643_v6 = vshrl.u32 %v11514_v38, 16  ;;  %v24204_v3 = vld [vmem:[%s29543_s10 + $0x228] sm:$0xff]   ;;  %v11935_v38 = vor.u32 %v11933_v17, %v11657_v26 }
 0xb4f   : > { %21491 = vmatprep.mubr.bf16.mxu1 %v27992_v61  ;;  %21520 = vmatpush3.bf16.msra.mxu1 %v24195_v8  ;;  %v28029_v8 = vsel %vm1417_vm6, %v11613_v32, %v11617_v39  ;;  %v29960_v39 = vld [vmem:[#allocation8_spill] sm:$0xff] }
 0xb50   : > { %21521 = vmatprep.subr.bf16.mxu1 %v24196_v45  ;;  %v11641_v37 = vrot.slane %v11639_v58, 1  ;;  %v11637_v18 = vor.u32 %v11635_v51, %v11633_v30  ;;  %v12751_v59 = vand.u32 %v18609_v62, %v29960_v39  ;;  %v24200_v32 = vld [vmem:[%s29543_s10 + $0x208] sm:$0xff]   ;;  %v11936_v2 = vsel %vm1417_vm6, %v11935_v38, %v29904_v52 }
 0xb52   : > { %v11645_v43 = vor.u32 %v11643_v6, %v11641_v37  ;;  %21607 = vmatprep.subr.bf16.mxu0 %v12751_v59 }
 0xb53   : > { %21522 = vmatpush3.bf16.msra.mxu1 %v24196_v45  ;;  %v11515_v45 = vsel %vm3319_vm3, %v27697_v5, 0  ;;  %21608 = vmatpush3.bf16.msra.mxu0 %v12751_v59 }
 0xb54   : > { %21523 = vmatprep.subr.bf16.mxu1 %v24197_v14  ;;  %v11647_v24 = vshll.u32 %v11515_v45, 16  ;;  %v11651_v27 = vshrl.u32 %v11515_v45, 16 }
 0xb56   : > { %21492 = vmatmul.mubr.bf16.gmra.mrb[44].mxu1 %v28008_v9  ;;  %v11649_v54 = vrot.slane %v11647_v24, 1 }
 0xb57   : > { %21495 = vmatprep.mubr.bf16.mxu1 %v28012_v10  ;;  %21524 = vmatpush3.bf16.msra.mxu1 %v24197_v14  ;;  %v28043_v14 = vsel %vm1417_vm6, %v11629_v28, %v11633_v30 }
 0xb58   : > { %21525 = vmatprep.subr.bf16.mxu1 %v24198_v47  ;;  %v28054_v46 = vsel %vm1417_vm6, %v11645_v43, %v11649_v54  ;;  %v11653_v41 = vor.u32 %v11651_v27, %v11649_v54 }
 0xb5a   : > { %v11658_v15 = vsel %vm1417_vm6, %v11653_v41, %v11657_v26 }
 0xb5b   : > { %21526 = vmatpush3.bf16.msra.mxu1 %v24198_v47  ;;  %v28050_v47 = vsel %vm1417_vm6, %v11637_v18, %v11641_v37 }
 0xb5c   : > { %21559 = vmatprep.subr.bf16.mxu1 %v24199_v48 }
 0xb5e   : > { %21496 = vmatmul.mubr.bf16.gmra.mrb[48].mxu1 %v28025_v31 }
 0xb5f   : > { %21499 = vmatprep.mubr.bf16.mxu1 %v28029_v8 }
 0xb66   : > { %21500 = vmatmul.mubr.bf16.gmra.mrb[52].mxu1 %v28039_v23 }
 0xb67   : > { %21503 = vmatprep.mubr.bf16.mxu1 %v28043_v14 }
 0xb6e   : > { %21504 = vmatmul.mubr.bf16.gmra.mrb[56].mxu1 %v28050_v47 }
 0xb6f   : > { %21507 = vmatprep.mubr.bf16.mxu1 %v28054_v46 }
 0xb76   : > { %21508 = vmatmul.mubr.bf16.gmra.mrb[60].mxu1 %v11658_v15 }
 0xb77   : > { %21527 = vmatprep.mubr.bf16.mxu1 %v27948_v40  ;;  %v24202_v40 = vld [vmem:[%s29543_s10 + $0x218] sm:$0xff]  }
 0xb7e   : > { %21528 = vmatmul.mubr.bf16.vlgmr.msra.gmra.mrb[32].mxu1 %v27952_v57 }
 0xb7f   : > { %21560 = vmatpush3.bf16.msra.mxu1 %v24199_v48  ;;  %21531 = vmatprep.mubr.bf16.mxu1 %v27968_v20  ;;  %v24203_v48 = vld [vmem:[%s29543_s10 + $0x220] sm:$0xff]  }
 0xb80   : > { %21561 = vmatprep.subr.bf16.mxu1 %v24200_v32 }
 0xb83   : > { %21562 = vmatpush3.bf16.msra.mxu1 %v24200_v32 }
 0xb84   : > { %21563 = vmatprep.subr.bf16.mxu1 %v24201_v16 }
 0xb86   : > { %21532 = vmatmul.mubr.bf16.gmra.mrb[36].mxu1 %v27972_v35 }
 0xb87   : > { %21535 = vmatprep.mubr.bf16.mxu1 %v27988_v22  ;;  %21564 = vmatpush3.bf16.msra.mxu1 %v24201_v16 }
 0xb88   : > { %21565 = vmatprep.subr.bf16.mxu1 %v24202_v40 }
 0xb8b   : > { %21566 = vmatpush3.bf16.msra.mxu1 %v24202_v40 }
 0xb8c   : > { %21567 = vmatprep.subr.bf16.mxu1 %v24203_v48 }
 0xb8e   : > { %21536 = vmatmul.mubr.bf16.gmra.mrb[40].mxu1 %v27992_v61 }
 0xb8f   : > { %21539 = vmatprep.mubr.bf16.mxu1 %v28008_v9  ;;  %21568 = vmatpush3.bf16.msra.mxu1 %v24203_v48 }
 0xb90   : > { %21569 = vmatprep.subr.bf16.mxu1 %v24204_v3 }
 0xb93   : > { %21570 = vmatpush3.bf16.msra.mxu1 %v24204_v3 }
 0xb94   : > { %21571 = vmatprep.subr.bf16.mxu1 %v24205_v50 }
 0xb96   : > { %21540 = vmatmul.mubr.bf16.gmra.mrb[44].mxu1 %v28012_v10 }
 0xb97   : > { %21543 = vmatprep.mubr.bf16.mxu1 %v28025_v31  ;;  %21572 = vmatpush3.bf16.msra.mxu1 %v24205_v50 }
 0xb98   : > { %21573 = vmatprep.subr.bf16.mxu1 %v24206_v25 }
 0xb9b   : > { %21574 = vmatpush3.bf16.msra.mxu1 %v24206_v25 }
 0xb9e   : > { %21544 = vmatmul.mubr.bf16.gmra.mrb[48].mxu1 %v28029_v8 }
 0xb9f   : > { %21547 = vmatprep.mubr.bf16.mxu1 %v28039_v23 }
 0xba6   : > { %21548 = vmatmul.mubr.bf16.gmra.mrb[52].mxu1 %v28043_v14 }
 0xba7   : > { %21551 = vmatprep.mubr.bf16.mxu1 %v28050_v47 }
 0xbae   : > { %21552 = vmatmul.mubr.bf16.gmra.mrb[56].mxu1 %v28054_v46 }
 0xbaf   : > { %21555 = vmatprep.mubr.bf16.mxu1 %v11658_v15 }
 0xbb6   : > { %21556 = vmatmul.mubr.bf16.gmra.mrb[60].mxu1 %v11936_v2 }
 0xbb7   : > { %21575 = vmatprep.mubr.bf16.mxu1 %v27952_v57  ;;  %v12572_v57 = vld [vmem:[%s29713_s4] sm:$0x3] }
 0xbbe   : > { %21576 = vmatmul.mubr.bf16.vlgmr.msra.gmra.mrb[32].mxu1 %v27968_v20  ;;  %v28117_v20 = vand.u32 %v12572_v57, %v29960_v39 }
 0xbbf   : > { %21579 = vmatprep.mubr.bf16.mxu1 %v27972_v35  ;;  %v28123_v35 = vld [vmem:[%s29544_s11] ss:$0 sm:$0xff] }
 0xbc0   : > { %21641 = vmatprep.subr.bf16.mxu0 %v28117_v20 }
 0xbc6   : > { %21580 = vmatmul.mubr.bf16.gmra.mrb[36].mxu1 %v27988_v22 }
 0xbc7   : > { %21583 = vmatprep.mubr.bf16.mxu1 %v27992_v61 }
 0xbce   : > { %21584 = vmatmul.mubr.bf16.gmra.mrb[40].mxu1 %v28008_v9 }
 0xbcf   : > { %21587 = vmatprep.mubr.bf16.mxu1 %v28012_v10 }
 0xbd6   : > { %21588 = vmatmul.mubr.bf16.gmra.mrb[44].mxu1 %v28025_v31 }
 0xbd7   : > { %21591 = vmatprep.mubr.bf16.mxu1 %v28029_v8 }
 0xbde   : > { %21592 = vmatmul.mubr.bf16.gmra.mrb[48].mxu1 %v28039_v23 }
 0xbdf   : > { %21595 = vmatprep.mubr.bf16.mxu1 %v28043_v14 }
 0xbe6   : > { %21596 = vmatmul.mubr.bf16.gmra.mrb[52].mxu1 %v28050_v47 }
 0xbe7   : > { %21599 = vmatprep.mubr.bf16.mxu1 %v28054_v46 }
 0xbee   : > { %21600 = vmatmul.mubr.bf16.gmra.mrb[56].mxu1 %v11658_v15 }
 0xbef   : > { %21603 = vmatprep.mubr.bf16.mxu1 %v11936_v2 }
 0xbf6   : > { %21604 = vmatmul.mubr.bf16.gmra.mrb[60].mxu1 %v29904_v52 }
 0xc91   : > { %v21577_v22 = vpop.f32.mrb[32].mxu1 }
 0xc92   : > { %v12446_v61 = vadd.f32 %v21577_v22, %v28123_v35  ;;  %v12278_v9 = vpop.f32.mrb[33].mxu1 }
 0xc93   : > { %v12444_v10 = vadd.f32 %v28123_v35, %v12278_v9  ;;  %v21578_v31 = vpop.f32.mrb[34].mxu1  ;;  %v18642_v9 = vld [vmem:[%s29713_s4 + $0xc] sm:$0x3] }
 0xc94   : > { %24281 = vtanh.f32 %v12446_v61  ;;  %v12447_v8 = vadd.f32 %v21578_v31, %v28123_v35  ;;  %v12281_v30 = vpop.f32.mrb[35].mxu1 }
 0xc95   : > { %24283 = vtanh.f32 %v12444_v10  ;;  %v12445_v45 = vadd.f32 %v28123_v35, %v12281_v30 }
 0xc96   : > { %24285 = vtanh.f32 %v12447_v8 }
 0xc97   : > { %24287 = vtanh.f32 %v12445_v45 }
 0xc99   : > { %v21581_v28 = vpop.f32.mrb[36].mxu1 }
 0xc9a   : > { %v12450_v58 = vadd.f32 %v21581_v28, %v28123_v35  ;;  %v12294_v23 = vpop.f32.mrb[37].mxu1 }
 0xc9b   : > { %v12448_v14 = vadd.f32 %v28123_v35, %v12294_v23  ;;  %v21582_v24 = vpop.f32.mrb[38].mxu1 }
 0xc9c   : > { %24289 = vtanh.f32 %v12450_v58  ;;  %v12451_v51 = vadd.f32 %v21582_v24, %v28123_v35  ;;  %v12297_v37 = vpop.f32.mrb[39].mxu1  ;;  %v28178_v24 = vand.u32 %v18642_v9, %v29960_v39 }
 0xc9d   : > { %24291 = vtanh.f32 %v12448_v14  ;;  %v12449_v18 = vadd.f32 %v28123_v35, %v12297_v37 }
 0xc9e   : > { %v24282_v6 = vpop.eup %24281  ;;  %24293 = vtanh.f32 %v12451_v51 }
 0xc9f   : > { %v24284_v54 = vpop.eup %24283  ;;  %12510 = vst.msk [vmem:[%s28135_s20 + $0x10] sm:$0xff] %vm29961_vm9, %v24282_v6  ;;  %24295 = vtanh.f32 %v12449_v18  ;;  %vm29968_vm9 = vmmov %vm29963_vm1 }
 0xca0   : > { %v24286_v43 = vpop.eup %24285  ;;  %12508 = vst.msk [vmem:[%s28135_s20] sm:$0xff] %vm29962_vm5, %v24284_v54  ;;  %vm29969_vm5 = vmmov %vm29963_vm1 }
 0xca1   : > { %v24288_v7 = vpop.eup %24287  ;;  %12511 = vst.msk [vmem:[%s28135_s20 + $0x18] sm:$0xff] %vm29963_vm1, %v24286_v43  ;;  %v28145_v47 = vpack.c.bf16 %v24286_v43, %v24282_v6  ;;  %v21585_v46 = vpop.f32.mrb[40].mxu1 }
 0xca2   : > { %12509 = vst.msk [vmem:[%s28135_s20 + $0x8] sm:$0xff] %vm29964_vm11, %v24288_v7  ;;  %v28149_v27 = vpack.c.bf16 %v24288_v7, %v24284_v54  ;;  %v12454_v13 = vadd.f32 %v21585_v46, %v28123_v35  ;;  %v12310_v41 = vpop.f32.mrb[41].mxu1  ;;  %vm29971_vm11 = vmmov %vm29963_vm1 }
 0xca3   : > { %v12452_v26 = vadd.f32 %v28123_v35, %v12310_v41  ;;  %v21586_v15 = vpop.f32.mrb[42].mxu1  ;;  %v12557_v59 = vsel %vm29697_vm8, %v28145_v47, 0 }
 0xca4   : > { %24297 = vtanh.f32 %v12454_v13  ;;  %v12455_v32 = vadd.f32 %v21586_v15, %v28123_v35  ;;  %v12313_v16 = vpop.f32.mrb[43].mxu1  ;;  %v12556_v48 = vsel %vm29696_vm7, %v28149_v27, 0  ;;  %v12583_v3 = vshrl.u32 %v12557_v59, 16  ;;  %v29972_v13 = vld [vmem:[#allocation12_spill] sm:$0xff] }
 0xca5   : > { %24299 = vtanh.f32 %v12452_v26  ;;  %v12453_v50 = vadd.f32 %v28123_v35, %v12313_v16  ;;  %v12575_v25 = vshrl.u32 %v12556_v48, 16  ;;  %v12586_v2 = vshll.u32 %v12557_v59, 16 }
 0xca6   : > { %v24290_v17 = vpop.eup %24289  ;;  %24301 = vtanh.f32 %v12455_v32  ;;  %v12585_v38 = vrot.slane %v12583_v3, 7  ;;  %v12578_v61 = vshll.u32 %v12556_v48, 16 }
 0xca7   : > { %v24292_v57 = vpop.eup %24291  ;;  %12514 = vst.msk [vmem:[%s28135_s20 + $0x30] sm:$0xff] %vm29967_vm13, %v24290_v17  ;;  %24303 = vtanh.f32 %v12453_v50  ;;  %v12577_v22 = vrot.slane %v12575_v25, 7  ;;  %vm29973_vm13 = vcmp.ne.s16.totalorder %v29972_v13, 0 }
 0xca8   : > { %v24294_v10 = vpop.eup %24293  ;;  %12512 = vst.msk [vmem:[%s28135_s20 + $0x20] sm:$0xff] %vm29968_vm9, %v24292_v57  ;;  %v12588_v31 = vor.u32 %v12586_v2, %v12585_v38  ;;  %vm29974_vm9 = vmmov %vm29963_vm1 }
 0xca9   : > { %v24296_v8 = vpop.eup %24295  ;;  %12515 = vst.msk [vmem:[%s28135_s20 + $0x38] sm:$0xff] %vm29969_vm5, %v24294_v10  ;;  %v28170_v30 = vpack.c.bf16 %v24294_v10, %v24290_v17  ;;  %v21589_v45 = vpop.f32.mrb[44].mxu1  ;;  %v12580_v28 = vor.u32 %v12578_v61, %v12577_v22  ;;  %vm29975_vm5 = vmmov %vm29963_vm1 }
 0xcaa   : > { %12513 = vst.msk [vmem:[%s28135_s20 + $0x28] sm:$0xff] %vm29963_vm1, %v24296_v8  ;;  %v28174_v58 = vpack.c.bf16 %v24296_v8, %v24292_v57  ;;  %v12458_v23 = vadd.f32 %v21589_v45, %v28123_v35  ;;  %v12326_v14 = vpop.f32.mrb[45].mxu1  ;;  %v28186_v6 = vsel %vm1585_vm4, %v12577_v22, %v12588_v31 }
 0xcab   : > { %v12456_v51 = vadd.f32 %v28123_v35, %v12326_v14  ;;  %v21590_v37 = vpop.f32.mrb[46].mxu1  ;;  %v28183_v18 = vsel %vm1585_vm4, %v29863_v1, %v12580_v28  ;;  %v12559_v43 = vsel %vm29695_vm10, %v28170_v30, 0  ;;  %v29978_v14 = vld [vmem:[#allocation15_spill] sm:$0xff] }
 0xcac   : > { %24305 = vtanh.f32 %v12458_v23  ;;  %v12459_v7 = vadd.f32 %v21590_v37, %v28123_v35  ;;  %v12329_v46 = vpop.f32.mrb[47].mxu1  ;;  %21609 = vmatprep.mubr.msk.bf16.mxu0 %vm29971_vm11, %v28183_v18  ;;  %v12558_v41 = vsel %vm29973_vm13, %v28174_v58, 0  ;;  %v12599_v26 = vshrl.u32 %v12559_v43, 16  ;;  %vm29976_vm11 = vmmov %vm29963_vm1 }
 0xcad   : > { %24307 = vtanh.f32 %v12456_v51  ;;  %v12457_v15 = vadd.f32 %v28123_v35, %v12329_v46  ;;  %21610 = vmatmul.mubr.msk.bf16.vlgmr.msra.gmra.mrb[68].mxu0 %vm29974_vm9, %v28186_v6  ;;  %v12591_v59 = vshrl.u32 %v12558_v41, 16  ;;  %v12602_v48 = vshll.u32 %v12559_v43, 16  ;;  %vm29977_vm13 = vmmov %vm29963_vm1 }
 0xcae   : > { %v24298_v32 = vpop.eup %24297  ;;  %24309 = vtanh.f32 %v12459_v7  ;;  %21642 = vmatpush3.bf16.msra.mxu0 %v28117_v20  ;;  %v12601_v16 = vrot.slane %v12599_v26, 7  ;;  %v12594_v25 = vshll.u32 %v12558_v41, 16  ;;  %vm29979_vm9 = vcmp.ne.s16.totalorder %v29978_v14, 0  ;;  %v29981_v7 = vld [vmem:[#allocation14_spill] sm:$0xff] }
 0xcaf   : > { %v24300_v3 = vpop.eup %24299  ;;  %12518 = vst.msk [vmem:[%s28135_s20 + $0x50] sm:$0xff] %vm29975_vm5, %v24298_v32  ;;  %24311 = vtanh.f32 %v12457_v15  ;;  %v12593_v50 = vrot.slane %v12591_v59, 7  ;;  %21675 = vmatprep.subr.bf16.mxu0 %v28178_v24  ;;  %vm29980_vm5 = vmmov %vm29963_vm1 }
 0xcb0   : > { %v24302_v17 = vpop.eup %24301  ;;  %12516 = vst.msk [vmem:[%s28135_s20 + $0x40] sm:$0xff] %vm29963_vm1, %v24300_v3  ;;  %v12604_v2 = vor.u32 %v12602_v48, %v12601_v16  ;;  %vm29982_vm1 = vcmp.ne.s16.totalorder %v29981_v7, 0 }
 0xcb1   : > { %v24304_v57 = vpop.eup %24303  ;;  %12519 = vst.msk [vmem:[%s28135_s20 + $0x58] sm:$0xff] %vm29976_vm11, %v24302_v17  ;;  %v28208_v22 = vpack.c.bf16 %v24302_v17, %v24298_v32  ;;  %v21593_v20 = vpop.f32.mrb[48].mxu1  ;;  %v12596_v61 = vor.u32 %v12594_v25, %v12593_v50  ;;  %vm29983_vm11 = vmmov %vm29980_vm5 }
 0xcb2   : > { %12517 = vst.msk [vmem:[%s28135_s20 + $0x48] sm:$0xff] %vm29977_vm13, %v24304_v57  ;;  %v28212_v9 = vpack.c.bf16 %v24304_v57, %v24300_v3  ;;  %v12462_v10 = vadd.f32 %v21593_v20, %v28123_v35  ;;  %v12342_v31 = vpop.f32.mrb[49].mxu1  ;;  %v28220_v23 = vsel %vm1585_vm4, %v12593_v50, %v12604_v2  ;;  %vm29984_vm13 = vmmov %vm29980_vm5 }
 0xcb3   : > { %v12460_v8 = vadd.f32 %v28123_v35, %v12342_v31  ;;  %v21594_v45 = vpop.f32.mrb[50].mxu1  ;;  %v28217_v28 = vsel %vm1585_vm4, %v12585_v38, %v12596_v61  ;;  %v12561_v51 = vsel %vm29979_vm9, %v28208_v22, 0  ;;  %vm29985_vm9 = vmmov %vm29980_vm5 }
 0xcb4   : > { %24313 = vtanh.f32 %v12462_v10  ;;  %v12463_v37 = vadd.f32 %v21594_v45, %v28123_v35  ;;  %v12345_v43 = vpop.f32.mrb[51].mxu1  ;;  %21613 = vmatprep.mubr.msk.bf16.mxu0 %vm29980_vm5, %v28217_v28  ;;  %v12560_v38 = vsel %vm29982_vm1, %v28212_v9, 0  ;;  %v12615_v46 = vshrl.u32 %v12561_v51, 16  ;;  %vm29986_vm1 = vmmov %vm29980_vm5 }
 0xcb5   : > { %24315 = vtanh.f32 %v12460_v8  ;;  %v12461_v41 = vadd.f32 %v28123_v35, %v12345_v43  ;;  %21614 = vmatmul.mubr.msk.bf16.gmra.mrb[72].mxu0 %vm29983_vm11, %v28220_v23  ;;  %v12607_v26 = vshrl.u32 %v12560_v38, 16  ;;  %v12618_v32 = vshll.u32 %v12561_v51, 16 }
 0xcb6   : > { %v24306_v15 = vpop.eup %24305  ;;  %24317 = vtanh.f32 %v12463_v37  ;;  %v12617_v59 = vrot.slane %v12615_v46, 7  ;;  %v12610_v50 = vshll.u32 %v12560_v38, 16  ;;  %v29987_v38 = vld [vmem:[#allocation17_spill] sm:$0xff] }
 0xcb7   : > { %v24308_v48 = vpop.eup %24307  ;;  %12522 = vst.msk [vmem:[%s28135_s20 + $0x70] sm:$0xff] %vm29984_vm13, %v24306_v15  ;;  %24319 = vtanh.f32 %v12461_v41  ;;  %v12609_v3 = vrot.slane %v12607_v26, 7  ;;  %vm29988_vm11 = vcmp.ne.s16.totalorder %v29987_v38, 0  ;;  %vm29989_vm13 = vmmov %vm29986_vm1 }
 0xcb8   : > { %v24310_v25 = vpop.eup %24309  ;;  %12520 = vst.msk [vmem:[%s28135_s20 + $0x60] sm:$0xff] %vm29985_vm9, %v24308_v48  ;;  %v12620_v17 = vor.u32 %v12618_v32, %v12617_v59 }
 0xcb9   : > { %v24312_v2 = vpop.eup %24311  ;;  %12523 = vst.msk [vmem:[%s28135_s20 + $0x78] sm:$0xff] %vm29980_vm5, %v24310_v25  ;;  %v28240_v57 = vpack.c.bf16 %v24310_v25, %v24306_v15  ;;  %v21597_v20 = vpop.f32.mrb[52].mxu1  ;;  %v12612_v61 = vor.u32 %v12610_v50, %v12609_v3  ;;  %v29990_v15 = vld [vmem:[#allocation16_spill] sm:$0xff]  ;;  %vm29992_vm5 = vmmov %vm29986_vm1 }
 0xcba   : > { %12521 = vst.msk [vmem:[%s28135_s20 + $0x68] sm:$0xff] %vm29986_vm1, %v24312_v2  ;;  %v28244_v10 = vpack.c.bf16 %v24312_v2, %v24308_v48  ;;  %v12466_v31 = vadd.f32 %v21597_v20, %v28123_v35  ;;  %v12358_v8 = vpop.f32.mrb[53].mxu1  ;;  %v28252_v43 = vsel %vm1585_vm4, %v12609_v3, %v12620_v17  ;;  %vm29991_vm9 = vcmp.ne.s16.totalorder %v29990_v15, 0 }
 0xcbb   : > { %v12464_v45 = vadd.f32 %v28123_v35, %v12358_v8  ;;  %v21598_v51 = vpop.f32.mrb[54].mxu1  ;;  %v28249_v37 = vsel %vm1585_vm4, %v12601_v16, %v12612_v61  ;;  %v12563_v46 = vsel %vm29988_vm11, %v28240_v57, 0  ;;  %vm29993_vm11 = vmmov %vm29986_vm1 }
 0xcbc   : > { %24321 = vtanh.f32 %v12466_v31  ;;  %v12467_v41 = vadd.f32 %v21598_v51, %v28123_v35  ;;  %v12361_v26 = vpop.f32.mrb[55].mxu1  ;;  %21617 = vmatprep.mubr.msk.bf16.mxu0 %vm29989_vm13, %v28249_v37  ;;  %v12562_v16 = vsel %vm29991_vm9, %v28244_v10, 0  ;;  %v12631_v32 = vshrl.u32 %v12563_v46, 16  ;;  %vm29994_vm13 = vmmov %vm29986_vm1 }
 0xcbd   : > { %24323 = vtanh.f32 %v12464_v45  ;;  %v12465_v48 = vadd.f32 %v28123_v35, %v12361_v26  ;;  %21618 = vmatmul.mubr.msk.bf16.gmra.mrb[76].mxu0 %vm29992_vm5, %v28252_v43  ;;  %v12623_v3 = vshrl.u32 %v12562_v16, 16  ;;  %v12634_v17 = vshll.u32 %v12563_v46, 16  ;;  %vm29995_vm9 = vmmov %vm29986_vm1 }
 0xcbe   : > { %v24314_v50 = vpop.eup %24313  ;;  %24325 = vtanh.f32 %v12467_v41  ;;  %v12633_v25 = vrot.slane %v12631_v32, 7  ;;  %v12626_v61 = vshll.u32 %v12562_v16, 16 }
 0xcbf   : > { %v24316_v2 = vpop.eup %24315  ;;  %12526 = vst.msk [vmem:[%s28135_s20 + $0x90] sm:$0xff] %vm29986_vm1, %v24314_v50  ;;  %24327 = vtanh.f32 %v12465_v48  ;;  %v12625_v20 = vrot.slane %v12623_v3, 7 }
 0xcc0   : > { %v24318_v31 = vpop.eup %24317  ;;  %12524 = vst.msk [vmem:[%s28135_s20 + $0x80] sm:$0xff] %vm29993_vm11, %v24316_v2  ;;  %v12636_v8 = vor.u32 %v12634_v17, %v12633_v25 }
 0xcc1   : > { %v24320_v45 = vpop.eup %24319  ;;  %12527 = vst.msk [vmem:[%s28135_s20 + $0x98] sm:$0xff] %vm29994_vm13, %v24318_v31  ;;  %v28272_v51 = vpack.c.bf16 %v24318_v31, %v24314_v50  ;;  %v21601_v26 = vpop.f32.mrb[56].mxu1  ;;  %v12628_v41 = vor.u32 %v12626_v61, %v12625_v20  ;;  %v29996_v50 = vld [vmem:[#allocation19_spill] sm:$0xff]  ;;  %vm30000_vm13 = vmmov %vm29986_vm1 }
 0xcc2   : > { %12525 = vst.msk [vmem:[%s28135_s20 + $0x88] sm:$0xff] %vm29995_vm9, %v24320_v45  ;;  %v28276_v46 = vpack.c.bf16 %v24320_v45, %v24316_v2  ;;  %v12470_v32 = vadd.f32 %v21601_v26, %v28123_v35  ;;  %v12374_v48 = vpop.f32.mrb[57].mxu1  ;;  %v28284_v17 = vsel %vm1585_vm4, %v12625_v20, %v12636_v8  ;;  %vm29997_vm5 = vcmp.ne.s16.totalorder %v29996_v50, 0  ;;  %v29998_v45 = vld [vmem:[#allocation18_spill] sm:$0xff]  ;;  %vm30001_vm9 = vmmov %vm29986_vm1 }
 0xcc3   : > { %v12468_v16 = vadd.f32 %v28123_v35, %v12374_v48  ;;  %v21602_v3 = vpop.f32.mrb[58].mxu1  ;;  %v28281_v15 = vsel %vm1585_vm4, %v12617_v59, %v12628_v41  ;;  %v12565_v61 = vsel %vm29997_vm5, %v28272_v51, 0  ;;  %vm29999_vm11 = vcmp.ne.s16.totalorder %v29998_v45, 0  ;;  %vm30002_vm5 = vmmov %vm29986_vm1 }
 0xcc4   : > { %24329 = vtanh.f32 %v12470_v32  ;;  %v12471_v2 = vadd.f32 %v21602_v3, %v28123_v35  ;;  %v12377_v31 = vpop.f32.mrb[59].mxu1  ;;  %21621 = vmatprep.mubr.msk.bf16.mxu0 %vm29986_vm1, %v28281_v15  ;;  %v12564_v59 = vsel %vm29999_vm11, %v28276_v46, 0  ;;  %v12647_v26 = vshrl.u32 %v12565_v61, 16  ;;  %vm30003_vm11 = vmmov %vm29986_vm1 }
 0xcc5   : > { %24331 = vtanh.f32 %v12468_v16  ;;  %v12469_v20 = vadd.f32 %v28123_v35, %v12377_v31  ;;  %21622 = vmatmul.mubr.msk.bf16.gmra.mrb[80].mxu0 %vm30000_vm13, %v28284_v17  ;;  %v12639_v8 = vshrl.u32 %v12564_v59, 16  ;;  %v12650_v48 = vshll.u32 %v12565_v61, 16 }
 0xcc6   : > { %v24322_v41 = vpop.eup %24321  ;;  %24333 = vtanh.f32 %v12471_v2  ;;  %v12649_v32 = vrot.slane %v12647_v26, 7  ;;  %v12642_v50 = vshll.u32 %v12564_v59, 16 }
 0xcc7   : > { %v24324_v3 = vpop.eup %24323  ;;  %12530 = vst.msk [vmem:[%s28135_s20 + $0xb0] sm:$0xff] %vm30001_vm9, %v24322_v41  ;;  %24335 = vtanh.f32 %v12469_v20  ;;  %v12641_v45 = vrot.slane %v12639_v8, 7  ;;  %vm30006_vm9 = vmmov %vm29986_vm1 }
 0xcc8   : > { %v24326_v38 = vpop.eup %24325  ;;  %12528 = vst.msk [vmem:[%s28135_s20 + $0xa0] sm:$0xff] %vm30002_vm5, %v24324_v3  ;;  %v12652_v16 = vor.u32 %v12650_v48, %v12649_v32 }
 0xcc9   : > { %v24328_v31 = vpop.eup %24327  ;;  %12531 = vst.msk [vmem:[%s28135_s20 + $0xb8] sm:$0xff] %vm29986_vm1, %v24326_v38  ;;  %v28304_v7 = vpack.c.bf16 %v24326_v38, %v24322_v41  ;;  %v21605_v14 = vpop.f32.mrb[60].mxu1  ;;  %v12644_v2 = vor.u32 %v12642_v50, %v12641_v45  ;;  %v30004_v38 = vld [vmem:[#allocation21_spill] sm:$0xff] }
 0xcca   : > { %12529 = vst.msk [vmem:[%s28135_s20 + $0xa8] sm:$0xff] %vm30003_vm11, %v24328_v31  ;;  %v28308_v61 = vpack.c.bf16 %v24328_v31, %v24324_v3  ;;  %v12474_v26 = vadd.f32 %v21605_v14, %v28123_v35  ;;  %v12390_v20 = vpop.f32.mrb[61].mxu1  ;;  %v28316_v48 = vsel %vm1585_vm4, %v12641_v45, %v12652_v16  ;;  %vm30005_vm13 = vcmp.ne.s16.totalorder %v30004_v38, 0  ;;  %v30007_v14 = vld [vmem:[#allocation20_spill] sm:$0xff]  ;;  %vm30009_vm11 = vmmov %vm29986_vm1 }
 0xccb   : > { %v12472_v59 = vadd.f32 %v28123_v35, %v12390_v20  ;;  %v21606_v8 = vpop.f32.mrb[62].mxu1  ;;  %v28313_v13 = vsel %vm1585_vm4, %v12633_v25, %v12644_v2  ;;  %v12567_v50 = vsel %vm30005_vm13, %v28304_v7, 0  ;;  %vm30008_vm5 = vcmp.ne.s16.totalorder %v30007_v14, 0  ;;  %vm30010_vm13 = vmmov %vm29986_vm1 }
 0xccc   : > { %24337 = vtanh.f32 %v12474_v26  ;;  %v12475_v41 = vadd.f32 %v21606_v8, %v28123_v35  ;;  %v12393_v3 = vpop.f32.mrb[63].mxu1  ;;  %21625 = vmatprep.mubr.msk.bf16.mxu0 %vm30006_vm9, %v28313_v13  ;;  %v12566_v25 = vsel %vm30008_vm5, %v28308_v61, 0  ;;  %v12663_v31 = vshrl.u32 %v12567_v50, 16  ;;  %vm30011_vm9 = vmmov %vm29986_vm1 }
 0xccd   : > { %24339 = vtanh.f32 %v12472_v59  ;;  %v12473_v45 = vadd.f32 %v28123_v35, %v12393_v3  ;;  %21626 = vmatmul.mubr.msk.bf16.gmra.mrb[84].mxu0 %vm29986_vm1, %v28316_v48  ;;  %v12655_v16 = vshrl.u32 %v12566_v25, 16  ;;  %v12666_v20 = vshll.u32 %v12567_v50, 16  ;;  %vm30012_vm5 = vmmov %vm29986_vm1 }
 0xcce   : > { %v24330_v2 = vpop.eup %24329  ;;  %24341 = vtanh.f32 %v12475_v41  ;;  %v12665_v26 = vrot.slane %v12663_v31, 7  ;;  %v12658_v38 = vshll.u32 %v12566_v25, 16  ;;  %v30013_v25 = vld [vmem:[#allocation23_spill] sm:$0xff] }
 0xccf   : > { %v24332_v8 = vpop.eup %24331  ;;  %12534 = vst.msk [vmem:[%s28135_s20 + $0xd0] sm:$0xff] %vm30009_vm11, %v24330_v2  ;;  %24343 = vtanh.f32 %v12473_v45  ;;  %v12657_v14 = vrot.slane %v12655_v16, 7  ;;  %vm30014_vm1 = vcmp.ne.s16.totalorder %v30013_v25, 0  ;;  %vm30015_vm11 = vmmov %vm30012_vm5 }
 0xcd0   : > { %v24334_v54 = vpop.eup %24333  ;;  %12532 = vst.msk [vmem:[%s28135_s20 + $0xc0] sm:$0xff] %vm30010_vm13, %v24332_v8  ;;  %v12668_v35 = vor.u32 %v12666_v20, %v12665_v26 }
 0xcd1   : > { %v24336_v59 = vpop.eup %24335  ;;  %12535 = vst.msk [vmem:[%s28135_s20 + $0xd8] sm:$0xff] %vm30011_vm9, %v24334_v54  ;;  %v28336_v3 = vpack.c.bf16 %v24334_v54, %v24330_v2  ;;  %v12660_v40 = vor.u32 %v12658_v38, %v12657_v14  ;;  %v30016_v38 = vld [vmem:[#allocation22_spill] sm:$0xff]  ;;  %vm30018_vm9 = vmmov %vm30012_vm5 }
 0xcd2   : > { %12533 = vst.msk [vmem:[%s28135_s20 + $0xc8] sm:$0xff] %vm30012_vm5, %v24336_v59  ;;  %v28340_v50 = vpack.c.bf16 %v24336_v59, %v24332_v8  ;;  %v28351_v54 = vsel %vm1585_vm4, %v12657_v14, %v12668_v35  ;;  %vm30017_vm13 = vcmp.ne.s16.totalorder %v30016_v38, 0 }
 0xcd3   : > { %v28343_v41 = vsel %vm1585_vm4, %v12649_v32, %v12660_v40  ;;  %v12569_v31 = vsel %vm30014_vm1, %v28336_v3, 0  ;;  %vm30019_vm1 = vmmov %vm30012_vm5 }
 0xcd4   : > { %21629 = vmatprep.mubr.msk.bf16.mxu0 %vm30015_vm11, %v28343_v41  ;;  %v12568_v45 = vsel %vm30017_vm13, %v28340_v50, 0  ;;  %v12679_v16 = vshrl.u32 %v12569_v31, 16  ;;  %v12682_v20 = vshll.u32 %v12569_v31, 16  ;;  %vm30020_vm11 = vmmov %vm30019_vm1 }
 0xcd5   : > { %21630 = vmatmul.mubr.msk.bf16.gmra.mrb[88].mxu0 %vm30018_vm9, %v28351_v54  ;;  %v12671_v40 = vshrl.u32 %v12568_v45, 16  ;;  %v12674_v14 = vshll.u32 %v12568_v45, 16  ;;  %vm30021_vm13 = vmmov %vm30019_vm1  ;;  %vm30022_vm9 = vcmp.ne.s16.totalorder %v29886_v4, 0 }
 0xcd6   : > { %v24338_v32 = vpop.eup %24337  ;;  %v12681_v2 = vrot.slane %v12679_v16, 7 }
 0xcd7   : > { %v24340_v8 = vpop.eup %24339  ;;  %12538 = vst.msk [vmem:[%s28135_s20 + $0xf0] sm:$0xff] %vm30012_vm5, %v24338_v32  ;;  %v12673_v59 = vrot.slane %v12671_v40, 7  ;;  %vm30023_vm5 = vmmov %vm30019_vm1 }
 0xcd8   : > { %v24342_v35 = vpop.eup %24341  ;;  %12536 = vst.msk [vmem:[%s28135_s20 + $0xe0] sm:$0xff] %vm30019_vm1, %v24340_v8  ;;  %v12684_v38 = vor.u32 %v12682_v20, %v12681_v2  ;;  %vm30024_vm1 = vcmp.ne.s16.totalorder %v29884_v33, 0 }
 0xcd9   : > { %v24344_v25 = vpop.eup %24343  ;;  %12539 = vst.msk [vmem:[%s28135_s20 + $0xf8] sm:$0xff] %vm30020_vm11, %v24342_v35  ;;  %v28364_v62 = vpack.c.bf16 %v24342_v35, %v24338_v32  ;;  %v12676_v5 = vor.u32 %v12674_v14, %v12673_v59  ;;  %vm30025_vm11 = vmmov %vm30023_vm5 }
 0xcda   : > { %12537 = vst.msk [vmem:[%s28135_s20 + $0xe8] sm:$0xff] %vm30021_vm13, %v24344_v25  ;;  %v28368_v49 = vpack.c.bf16 %v24344_v25, %v24340_v8  ;;  %v12685_v16 = vsel %vm1585_vm4, %v12673_v59, %v12684_v38  ;;  %vm30026_vm13 = vmmov %vm30023_vm5  ;;  %v18659_v59 = vld [vmem:[%s29713_s4 + $0x2] sm:$0x3] }
 0xcdb   : > { %v12677_v31 = vsel %vm1585_vm4, %v12665_v26, %v12676_v5  ;;  %v12571_v45 = vsel %vm30022_vm9, %v28364_v62, 0  ;;  %vm30027_vm9 = vmmov %vm30023_vm5 }
 0xcdc   : > { %21633 = vmatprep.mubr.msk.bf16.mxu0 %vm30023_vm5, %v12677_v31  ;;  %v12570_v40 = vsel %vm30024_vm1, %v28368_v49, 0  ;;  %v12695_v32 = vshrl.u32 %v12571_v45, 16  ;;  %v12698_v8 = vshll.u32 %v12571_v45, 16  ;;  %v13326_v45 = vand.u32 %v18659_v59, %v29960_v39  ;;  %vm30028_vm1 = vmmov %vm30023_vm5 }
 0xcdd   : > { %21634 = vmatmul.mubr.msk.bf16.gmra.mrb[92].mxu0 %vm30025_vm11, %v12685_v16  ;;  %v12687_v20 = vshrl.u32 %v12570_v40, 16  ;;  %v12690_v5 = vshll.u32 %v12570_v40, 16  ;;  %vm30029_vm11 = vmmov %vm30028_vm1 }
 0xcde   : > { %v12697_v25 = vrot.slane %v12695_v32, 7  ;;  %vm30033_vm10 = vmmov %vm30028_vm1 }
 0xcdf   : > { %v12689_v14 = vrot.slane %v12687_v20, 7  ;;  %vm30034_vm7 = vmmov %vm30028_vm1 }
 0xce0   : > { %v12700_v26 = vor.u32 %v12698_v8, %v12697_v25  ;;  %vm30039_vm8 = vmmov %vm30028_vm1 }
 0xce1   : > { %v12692_v35 = vor.u32 %v12690_v5, %v12689_v14  ;;  %vm30054_vm2 = vmmov %vm30028_vm1 }
 0xce2   : > { %v12701_v38 = vsel %vm1585_vm4, %v12689_v14, %v12700_v26 }
 0xce3   : > { %v12693_v4 = vsel %vm1585_vm4, %v12681_v2, %v12692_v35 }
 0xce4   : > { %21637 = vmatprep.mubr.msk.bf16.mxu0 %vm30026_vm13, %v12693_v4  ;;  %vm30030_vm13 = vmmov %vm30028_vm1 }
 0xce5   : > { %21638 = vmatmul.mubr.msk.bf16.gmra.mrb[96].mxu0 %vm30027_vm9, %v12701_v38  ;;  %vm30031_vm9 = vmmov %vm30028_vm1 }
 0xce6   : > { %21643 = vmatprep.mubr.msk.bf16.mxu0 %vm30023_vm5, %v29863_v1  ;;  %vm30032_vm5 = vmmov %vm30028_vm1 }
 0xced   : > { %21644 = vmatmul.mubr.msk.bf16.vlgmr.msra.gmra.mrb[68].mxu0 %vm30028_vm1, %v28183_v18 }
 0xcee   : > { %21676 = vmatpush3.bf16.msra.mxu0 %v28178_v24  ;;  %21647 = vmatprep.mubr.msk.bf16.mxu0 %vm30029_vm11, %v28186_v6  ;;  %vm30035_vm11 = vmmov %vm30028_vm1  ;;  %v18675_v24 = vld [vmem:[%s29713_s4 + $0x8] sm:$0x3] }
 0xcef   : > { %21709 = vmatprep.subr.bf16.mxu0 %v13326_v45  ;;  %v13526_v18 = vand.u32 %v18675_v24, %v29960_v39 }
 0xcf5   : > { %21648 = vmatmul.mubr.msk.bf16.gmra.mrb[72].mxu0 %vm30030_vm13, %v28217_v28  ;;  %vm30036_vm13 = vmmov %vm30028_vm1 }
 0xcf6   : > { %21651 = vmatprep.mubr.msk.bf16.mxu0 %vm30031_vm9, %v28220_v23  ;;  %vm30037_vm9 = vmmov %vm30028_vm1 }
 0xcfd   : > { %21652 = vmatmul.mubr.msk.bf16.gmra.mrb[76].mxu0 %vm30032_vm5, %v28249_v37  ;;  %vm30038_vm5 = vmmov %vm30028_vm1 }
 0xcfe   : > { %21655 = vmatprep.mubr.msk.bf16.mxu0 %vm30033_vm10, %v28252_v43  ;;  %vm30040_vm10 = vmmov %vm30028_vm1 }
 0xd05   : > { %21656 = vmatmul.mubr.msk.bf16.gmra.mrb[80].mxu0 %vm30028_vm1, %v28281_v15 }
 0xd06   : > { %21659 = vmatprep.mubr.msk.bf16.mxu0 %vm30034_vm7, %v28284_v17  ;;  %vm30041_vm7 = vmmov %vm30028_vm1 }
 0xd0d   : > { %21660 = vmatmul.mubr.msk.bf16.gmra.mrb[84].mxu0 %vm30035_vm11, %v28313_v13  ;;  %vm30042_vm11 = vmmov %vm30028_vm1 }
 0xd0e   : > { %21663 = vmatprep.mubr.msk.bf16.mxu0 %vm30036_vm13, %v28316_v48  ;;  %vm30043_vm13 = vmmov %vm30028_vm1 }
 0xd15   : > { %21664 = vmatmul.mubr.msk.bf16.gmra.mrb[88].mxu0 %vm30037_vm9, %v28343_v41  ;;  %vm30045_vm9 = vmmov %vm30028_vm1 }
 0xd16   : > { %21667 = vmatprep.mubr.msk.bf16.mxu0 %vm30038_vm5, %v28351_v54  ;;  %vm30046_vm5 = vmmov %vm30028_vm1 }
 0xd1d   : > { %21668 = vmatmul.mubr.msk.bf16.gmra.mrb[92].mxu0 %vm30039_vm8, %v12677_v31  ;;  %vm30044_vm8 = vmmov %vm30028_vm1 }
 0xd1e   : > { %21671 = vmatprep.mubr.msk.bf16.mxu0 %vm30040_vm10, %v12685_v16  ;;  %vm30047_vm10 = vmmov %vm30028_vm1 }
 0xd25   : > { %21672 = vmatmul.mubr.msk.bf16.gmra.mrb[96].mxu0 %vm30028_vm1, %v12693_v4 }
 0xd26   : > { %21677 = vmatprep.mubr.msk.bf16.mxu0 %vm30041_vm7, %v28186_v6  ;;  %vm30048_vm7 = vmmov %vm30028_vm1  ;;  %v13079_v6 = vsel %vm1585_vm4, %v12697_v25, %v29863_v1 }
 0xd2d   : > { %21678 = vmatmul.mubr.msk.bf16.vlgmr.msra.gmra.mrb[68].mxu0 %vm30042_vm11, %v28217_v28  ;;  %vm30049_vm11 = vmmov %vm30028_vm1 }
 0xd2e   : > { %21710 = vmatpush3.bf16.msra.mxu0 %v13326_v45  ;;  %21681 = vmatprep.mubr.msk.bf16.mxu0 %vm30043_vm13, %v28220_v23  ;;  %vm30050_vm13 = vmmov %vm30028_vm1 }
 0xd2f   : > { %21743 = vmatprep.subr.bf16.mxu0 %v13526_v18 }
 0xd35   : > { %21682 = vmatmul.mubr.msk.bf16.gmra.mrb[72].mxu0 %vm30044_vm8, %v28249_v37  ;;  %vm30051_vm8 = vmmov %vm30028_vm1  ;;  %v18725_v37 = vld [vmem:[%s29713_s4 + $0xa] sm:$0x3] }
 0xd36   : > { %21685 = vmatprep.mubr.msk.bf16.mxu0 %vm30045_vm9, %v28252_v43  ;;  %vm30052_vm9 = vmmov %vm30028_vm1  ;;  %v14313_v43 = vand.u32 %v18725_v37, %v29960_v39 }
 0xd3d   : > { %21686 = vmatmul.mubr.msk.bf16.gmra.mrb[76].mxu0 %vm30046_vm5, %v28281_v15  ;;  %vm30053_vm5 = vmmov %vm30028_vm1 }
 0xd3e   : > { %21689 = vmatprep.mubr.msk.bf16.mxu0 %vm30047_vm10, %v28284_v17  ;;  %vm30055_vm10 = vmmov %vm30028_vm1 }
 0xd45   : > { %21690 = vmatmul.mubr.msk.bf16.gmra.mrb[80].mxu0 %vm30028_vm1, %v28313_v13  ;;  %v18692_v13 = vld [vmem:[%s29713_s4 + $0xe] sm:$0x3] }
 0xd46   : > { %21693 = vmatprep.mubr.msk.bf16.mxu0 %vm30048_vm7, %v28316_v48  ;;  %v13723_v28 = vand.u32 %v18692_v13, %v29960_v39  ;;  %vm30056_vm7 = vmmov %vm30028_vm1 }
 0xd4d   : > { %21694 = vmatmul.mubr.msk.bf16.gmra.mrb[84].mxu0 %vm30049_vm11, %v28343_v41  ;;  %vm30058_vm11 = vmmov %vm30028_vm1 }
 0xd4e   : > { %21697 = vmatprep.mubr.msk.bf16.mxu0 %vm30050_vm13, %v28351_v54  ;;  %vm30059_vm13 = vmmov %vm30028_vm1 }
 0xd55   : > { %21698 = vmatmul.mubr.msk.bf16.gmra.mrb[88].mxu0 %vm30051_vm8, %v12677_v31  ;;  %vm30060_vm8 = vmmov %vm30028_vm1 }
 0xd56   : > { %21701 = vmatprep.mubr.msk.bf16.mxu0 %vm30052_vm9, %v12685_v16  ;;  %vm30061_vm9 = vmmov %vm30028_vm1 }
 0xd5d   : > { %21702 = vmatmul.mubr.msk.bf16.gmra.mrb[92].mxu0 %vm30053_vm5, %v12693_v4  ;;  %vm30062_vm5 = vmmov %vm30028_vm1  ;;  %v18708_v4 = vld [vmem:[%s29713_s4 + $0x4] sm:$0x3] }
 0xd5e   : > { %21705 = vmatprep.mubr.msk.bf16.mxu0 %vm30054_vm2, %v12701_v38  ;;  %vm30057_vm2 = vmmov %vm30028_vm1  ;;  %v14109_v23 = vand.u32 %v18708_v4, %v29960_v39 }
 0xd65   : > { %21706 = vmatmul.mubr.msk.bf16.gmra.mrb[96].mxu0 %vm30055_vm10, %v13079_v6  ;;  %vm30063_vm10 = vmmov %vm30028_vm1 }
 0xd66   : > { %21711 = vmatprep.mubr.bf16.mxu0 %v29892_v21 }
 0xd6d   : > { %21712 = vmatmul.mubr.msk.bf16.vlgmr.msra.gmra.mrb[68].mxu0 %vm30028_vm1, %v28149_v27 }
 0xd6e   : > { %21744 = vmatpush3.bf16.msra.mxu0 %v13526_v18  ;;  %21715 = vmatprep.mubr.msk.bf16.mxu0 %vm30056_vm7, %v28145_v47  ;;  %vm30064_vm7 = vmmov %vm30028_vm1 }
 0xd6f   : > { %21777 = vmatprep.subr.bf16.mxu0 %v13723_v28 }
 0xd75   : > { %21716 = vmatmul.mubr.msk.bf16.gmra.mrb[72].mxu0 %vm30057_vm2, %v28174_v58  ;;  %vm30065_vm2 = vmmov %vm30028_vm1 }
 0xd76   : > { %21719 = vmatprep.mubr.msk.bf16.mxu0 %vm30058_vm11, %v28170_v30  ;;  %vm30066_vm11 = vmmov %vm30028_vm1 }
 0xd7d   : > { %21720 = vmatmul.mubr.msk.bf16.gmra.mrb[76].mxu0 %vm30059_vm13, %v28212_v9  ;;  %vm30067_vm13 = vmmov %vm30028_vm1 }
 0xd7e   : > { %21723 = vmatprep.mubr.msk.bf16.mxu0 %vm30060_vm8, %v28208_v22  ;;  %vm30068_vm8 = vmmov %vm30028_vm1 }
 0xd85   : > { %21724 = vmatmul.mubr.msk.bf16.gmra.mrb[80].mxu0 %vm30061_vm9, %v28244_v10  ;;  %vm30069_vm9 = vmmov %vm30028_vm1 }
 0xd86   : > { %21727 = vmatprep.mubr.msk.bf16.mxu0 %vm30062_vm5, %v28240_v57  ;;  %vm30070_vm5 = vmmov %vm30028_vm1 }
 0xd8d   : > { %21728 = vmatmul.mubr.msk.bf16.gmra.mrb[84].mxu0 %vm30063_vm10, %v28276_v46  ;;  %vm30071_vm10 = vmmov %vm30028_vm1 }
 0xd8e   : > { %21731 = vmatprep.mubr.msk.bf16.mxu0 %vm30028_vm1, %v28272_v51 }
 0xd95   : > { %21732 = vmatmul.mubr.msk.bf16.gmra.mrb[88].mxu0 %vm30064_vm7, %v28308_v61  ;;  %vm30072_vm7 = vmmov %vm30028_vm1 }
 0xd96   : > { %21735 = vmatprep.mubr.msk.bf16.mxu0 %vm30065_vm2, %v28304_v7  ;;  %vm30073_vm2 = vmmov %vm30028_vm1 }
 0xd9d   : > { %21736 = vmatmul.mubr.msk.bf16.gmra.mrb[92].mxu0 %vm30066_vm11, %v28340_v50  ;;  %vm30074_vm11 = vmmov %vm30028_vm1 }
 0xd9e   : > { %21739 = vmatprep.mubr.msk.bf16.mxu0 %vm30067_vm13, %v28336_v3  ;;  %vm30075_vm13 = vmmov %vm30028_vm1 }
 0xda5   : > { %21740 = vmatmul.mubr.msk.bf16.gmra.mrb[96].mxu0 %vm30068_vm8, %v28368_v49  ;;  %vm30076_vm8 = vmmov %vm30028_vm1 }
 0xda6   : > { %21745 = vmatprep.mubr.msk.bf16.mxu0 %vm30069_vm9, %v28149_v27  ;;  %vm30077_vm9 = vmmov %vm30028_vm1 }
 0xdad   : > { %21746 = vmatmul.mubr.msk.bf16.vlgmr.msra.gmra.mrb[68].mxu0 %vm30070_vm5, %v28145_v47  ;;  %vm30078_vm5 = vmmov %vm30028_vm1 }
 0xdae   : > { %21778 = vmatpush3.bf16.msra.mxu0 %v13723_v28  ;;  %21749 = vmatprep.mubr.msk.bf16.mxu0 %vm30071_vm10, %v28174_v58  ;;  %vm30079_vm10 = vmmov %vm30028_vm1 }
 0xdaf   : > { %21811 = vmatprep.subr.bf16.mxu0 %v14109_v23 }
 0xdb5   : > { %21750 = vmatmul.mubr.msk.bf16.gmra.mrb[72].mxu0 %vm30028_vm1, %v28170_v30 }
 0xdb6   : > { %21753 = vmatprep.mubr.msk.bf16.mxu0 %vm30072_vm7, %v28212_v9  ;;  %vm30080_vm7 = vmmov %vm30028_vm1 }
 0xdbd   : > { %21754 = vmatmul.mubr.msk.bf16.gmra.mrb[76].mxu0 %vm30073_vm2, %v28208_v22  ;;  %vm30081_vm2 = vmmov %vm30028_vm1 }
 0xdbe   : > { %21757 = vmatprep.mubr.msk.bf16.mxu0 %vm30074_vm11, %v28244_v10  ;;  %vm30082_vm11 = vmmov %vm30028_vm1 }
 0xdc5   : > { %21758 = vmatmul.mubr.msk.bf16.gmra.mrb[80].mxu0 %vm30075_vm13, %v28240_v57  ;;  %vm30083_vm13 = vmmov %vm30028_vm1 }
 0xdc6   : > { %21761 = vmatprep.mubr.msk.bf16.mxu0 %vm30076_vm8, %v28276_v46  ;;  %vm30084_vm8 = vmmov %vm30028_vm1 }
 0xdcd   : > { %21762 = vmatmul.mubr.msk.bf16.gmra.mrb[84].mxu0 %vm30077_vm9, %v28272_v51  ;;  %vm30085_vm9 = vmmov %vm30028_vm1 }
 0xdce   : > { %21765 = vmatprep.mubr.msk.bf16.mxu0 %vm30078_vm5, %v28308_v61  ;;  %vm30086_vm5 = vmmov %vm30028_vm1 }
 0xdd5   : > { %21766 = vmatmul.mubr.msk.bf16.gmra.mrb[88].mxu0 %vm30079_vm10, %v28304_v7  ;;  %vm30087_vm10 = vmmov %vm30028_vm1 }
 0xdd6   : > { %21769 = vmatprep.mubr.msk.bf16.mxu0 %vm30028_vm1, %v28340_v50 }
 0xddd   : > { %21770 = vmatmul.mubr.msk.bf16.gmra.mrb[92].mxu0 %vm30080_vm7, %v28336_v3  ;;  %vm30088_vm7 = vmmov %vm30028_vm1 }
 0xdde   : > { %21773 = vmatprep.mubr.msk.bf16.mxu0 %vm30081_vm2, %v28368_v49  ;;  %vm30089_vm2 = vmmov %vm30028_vm1 }
 0xde5   : > { %21774 = vmatmul.mubr.msk.bf16.gmra.mrb[96].mxu0 %vm30082_vm11, %v28364_v62  ;;  %vm30090_vm11 = vmmov %vm30028_vm1 }
 0xde6   : > { %21779 = vmatprep.mubr.msk.bf16.mxu0 %vm30083_vm13, %v28145_v47  ;;  %vm30091_vm13 = vmmov %vm30028_vm1 }
 0xded   : > { %21780 = vmatmul.mubr.msk.bf16.vlgmr.msra.gmra.mrb[68].mxu0 %vm30084_vm8, %v28174_v58  ;;  %vm30092_vm8 = vmmov %vm30028_vm1 }
 0xdee   : > { %21812 = vmatpush3.bf16.msra.mxu0 %v14109_v23  ;;  %21783 = vmatprep.mubr.msk.bf16.mxu0 %vm30085_vm9, %v28170_v30  ;;  %vm30093_vm9 = vmmov %vm30028_vm1 }
 0xdef   : > { %21845 = vmatprep.subr.bf16.mxu0 %v14313_v43 }
 0xdf5   : > { %21784 = vmatmul.mubr.msk.bf16.gmra.mrb[72].mxu0 %vm30086_vm5, %v28212_v9  ;;  %vm30094_vm5 = vmmov %vm30028_vm1 }
 0xdf6   : > { %21787 = vmatprep.mubr.msk.bf16.mxu0 %vm30087_vm10, %v28208_v22  ;;  %vm30095_vm10 = vcmp.ne.s16.totalorder %v29898_v60, 0 }
 0xdf7   : > { %v13918_v15 = vsel %vm30095_vm10, %v28149_v27, 0  ;;  %vm30103_vm10 = vmmov %vm30028_vm1 }
 0xdf8   : > { %v13936_v17 = vshll.u32 %v13918_v15, 16  ;;  %v13940_v16 = vshrl.u32 %v13918_v15, 16 }
 0xdfa   : > { %v13938_v41 = vrot.slane %v13936_v17, 1 }
 0xdfc   : > { %v13939_v27 = vsel %vm1417_vm6, %v29904_v52, %v13938_v41  ;;  %v13942_v32 = vor.u32 %v13940_v16, %v13938_v41  ;;  %v13926_v41 = vsel %vm3313_vm12, %v28276_v46, 0 }
 0xdfd   : > { %21788 = vmatmul.mubr.msk.bf16.gmra.mrb[76].mxu0 %vm30028_vm1, %v28244_v10  ;;  %v14000_v16 = vshll.u32 %v13926_v41, 16 }
 0xdfe   : > { %21791 = vmatprep.mubr.msk.bf16.mxu0 %vm30088_vm7, %v28240_v57  ;;  %vm30096_vm7 = vmmov %vm30028_vm1 }
 0xe05   : > { %21792 = vmatmul.mubr.msk.bf16.gmra.mrb[80].mxu0 %vm30089_vm2, %v28276_v46  ;;  %vm30097_vm2 = vcmp.ne.s16.totalorder %v29900_v55, 0  ;;  %v13927_v46 = vsel %vm3314_vm14, %v28272_v51, 0 }
 0xe06   : > { %21795 = vmatprep.mubr.msk.bf16.mxu0 %vm30090_vm11, %v28272_v51  ;;  %v13919_v48 = vsel %vm30097_vm2, %v28145_v47, 0  ;;  %vm30098_vm11 = vcmp.ne.s16.totalorder %v29902_v56, 0  ;;  %v14004_v51 = vshrl.u32 %v13926_v41, 16 }
 0xe07   : > { %v13920_v54 = vsel %vm30098_vm11, %v28174_v58, 0  ;;  %v13944_v2 = vshll.u32 %v13919_v48, 16  ;;  %v18742_v58 = vld [vmem:[%s29713_s4 + $0x10] sm:$0x3]  ;;  %v13948_v20 = vshrl.u32 %v13919_v48, 16  ;;  %s24353_s4 = scalar_lea.vmem %s24352_s3, 32 }
 0xe08   : > { %v13952_v31 = vshll.u32 %v13920_v54, 16  ;;  %v28579_v26 = vand.u32 %v18742_v58, %v29960_v39  ;;  %v14002_v58 = vrot.slane %v14000_v16, 1  ;;  %p24355_p1 = scmp.lt.s32.totalorder %s24353_s4, %s24347_s21 }
 0xe09   : > { %v13946_v40 = vrot.slane %v13944_v2, 1 }
 0xe0a   : > { %v13954_v25 = vrot.slane %v13952_v31, 1  ;;  %p24356_p2 = por %p24355_p1, %p24354_p0 }
 0xe0b   : > { %v13950_v14 = vor.u32 %v13948_v20, %v13946_v40  ;;  %v28582_v35 = vsel %vm1417_vm6, %v13942_v32, %v13946_v40  ;;  %v13928_v20 = vsel %vm3315_vm0, %v28308_v61, 0 }
 0xe0c   : > { %p24357_p3 = pnand %p24356_p2, %p24350_p13 }
 0xe0d   : > { %21796 = vmatmul.mubr.msk.bf16.gmra.mrb[84].mxu0 %vm30091_vm13, %v28308_v61  ;;  %vm30099_vm13 = vmmov %vm30028_vm1 }
 0xe0e   : > { %21799 = vmatprep.mubr.msk.bf16.mxu0 %vm30092_vm8, %v28304_v7  ;;  %vm30100_vm8 = vcmp.ne.s16.totalorder %v29905_v12, 0 }
 0xe0f   : > { %v13921_v47 = vsel %vm30100_vm8, %v28170_v30, 0  ;;  %v28587_v30 = vsel %vm1417_vm6, %v13950_v14, %v13954_v25 }
 0xe10   : > { %v13960_v5 = vshll.u32 %v13921_v47, 16  ;;  %v13964_v24 = vshrl.u32 %v13921_v47, 16 }
 0xe12   : > { %v13962_v59 = vrot.slane %v13960_v5, 1 }
 0xe14   : > { %v13966_v13 = vor.u32 %v13964_v24, %v13962_v59 }
 0xe15   : > { %21800 = vmatmul.mubr.msk.bf16.gmra.mrb[88].mxu0 %vm30093_vm9, %v28340_v50  ;;  %vm30101_vm9 = vcmp.ne.s16.totalorder %v29907_v0, 0 }
 0xe16   : > { %21803 = vmatprep.mubr.msk.bf16.mxu0 %vm30094_vm5, %v28336_v3  ;;  %v13922_v8 = vsel %vm30101_vm9, %v28212_v9, 0  ;;  %vm30102_vm5 = vmmov %vm30028_vm1  ;;  %v13956_v9 = vshrl.u32 %v13920_v54, 16 }
 0xe17   : > { %v13968_v38 = vshll.u32 %v13922_v8, 16  ;;  %vm30106_vm2 = vmmov %vm30102_vm5 }
 0xe18   : > { %v13958_v39 = vor.u32 %v13956_v9, %v13954_v25  ;;  %vm30107_vm11 = vmmov %vm30106_vm2 }
 0xe19   : > { %v13970_v18 = vrot.slane %v13968_v38, 1  ;;  %vm30109_vm8 = vmmov %vm30106_vm2  ;;  %v14016_v38 = vshll.u32 %v13928_v20, 16 }
 0xe1a   : > { %v28599_v4 = vsel %vm1417_vm6, %v13958_v39, %v13962_v59  ;;  %vm30110_vm9 = vmmov %vm30106_vm2  ;;  %v14006_v59 = vor.u32 %v14004_v51, %v14002_v58  ;;  %v14012_v39 = vshrl.u32 %v13927_v46, 16 }
 0xe1b   : > { %v28604_v23 = vsel %vm1417_vm6, %v13966_v13, %v13970_v18 }
 0xe1d   : > { %21804 = vmatmul.mubr.msk.bf16.gmra.mrb[92].mxu0 %vm30028_vm1, %v28368_v49  ;;  %vm30104_vm1 = vcmp.ne.s16.totalorder %v29909_v44, 0 }
 0xe1e   : > { %21807 = vmatprep.mubr.msk.bf16.mxu0 %vm30096_vm7, %v28364_v62  ;;  %v13923_v45 = vsel %vm30104_vm1, %v28208_v22, 0  ;;  %vm30105_vm7 = vcmp.ne.s16.totalorder %v29911_v29, 0  ;;  %v13972_v22 = vshrl.u32 %v13922_v8, 16  ;;  %v14008_v8 = vshll.u32 %v13927_v46, 16 }
 0xe1f   : > { %v13924_v6 = vsel %vm30105_vm7, %v28244_v10, 0  ;;  %v13976_v28 = vshll.u32 %v13923_v45, 16  ;;  %v13925_v10 = vsel %vm3312_vm15, %v28240_v57, 0  ;;  %v13980_v17 = vshrl.u32 %v13923_v45, 16  ;;  %vm30114_vm7 = vmmov %vm30106_vm2 }
 0xe20   : > { %v13984_v37 = vshll.u32 %v13924_v6, 16  ;;  %v13974_v15 = vor.u32 %v13972_v22, %v13970_v18  ;;  %v13992_v2 = vshll.u32 %v13925_v10, 16  ;;  %v13988_v57 = vshrl.u32 %v13924_v6, 16 }
 0xe21   : > { %v13996_v47 = vshrl.u32 %v13925_v10, 16  ;;  %v14010_v9 = vrot.slane %v14008_v8, 1  ;;  %v14018_v45 = vrot.slane %v14016_v38, 1  ;;  %vm30113_vm1 = vcmp.ne.s16.totalorder %v29954_v53, 0 }
 0xe22   : > { %v13986_v48 = vrot.slane %v13984_v37, 1  ;;  %v13994_v40 = vrot.slane %v13992_v2, 1  ;;  %v13930_v24 = vsel %vm30113_vm1, %v28340_v50, 0  ;;  %vm30123_vm1 = vmmov %vm30106_vm2 }
 0xe23   : > { %v14014_v18 = vor.u32 %v14012_v39, %v14010_v9  ;;  %v28647_v13 = vsel %vm1417_vm6, %v14006_v59, %v14010_v9  ;;  %v14032_v37 = vshll.u32 %v13930_v24, 16  ;;  %v24208_v39 = vld [vmem:[%s29539_s6 + $0xc8] sm:$0xff]  }
 0xe24   : > { %v13990_v32 = vor.u32 %v13988_v57, %v13986_v48  ;;  %v13998_v25 = vor.u32 %v13996_v47, %v13994_v40 }
 0xe25   : > { %21808 = vmatmul.mubr.bf16.gmra.mrb[96].mxu0 %v29892_v21  ;;  %v14034_v10 = vrot.slane %v14032_v37, 1 }
 0xe26   : > { %21813 = vmatprep.mubr.msk.bf16.mxu0 %vm30099_vm13, %v13939_v27  ;;  %vm30108_vm13 = vmmov %vm30106_vm2  ;;  %v28631_v14 = vsel %vm1417_vm6, %v13990_v32, %v13994_v40  ;;  %v28636_v5 = vsel %vm1417_vm6, %v13998_v25, %v14002_v58  ;;  %v30119_v58 = vld [vmem:[#allocation42_spill] sm:$0xff] }
 0xe2d   : > { %21814 = vmatmul.mubr.msk.bf16.vlgmr.msra.gmra.mrb[68].mxu0 %vm30102_vm5, %v28582_v35  ;;  %vm30111_vm5 = vmmov %vm30106_vm2 }
 0xe2e   : > { %21846 = vmatpush3.bf16.msra.mxu0 %v14313_v43  ;;  %21817 = vmatprep.mubr.msk.bf16.mxu0 %vm30103_vm10, %v28587_v30  ;;  %v13978_v43 = vrot.slane %v13976_v28, 1  ;;  %vm30112_vm10 = vcmp.ne.s16.totalorder %v29952_v42, 0  ;;  %v28652_v28 = vsel %vm1417_vm6, %v14014_v18, %v14018_v45  ;;  %v24212_v18 = vld [vmem:[%s29539_s6 + $0xe8] sm:$0xff]  }
 0xe2f   : > { %21879 = vmatprep.subr.bf16.mxu0 %v28579_v26  ;;  %v13929_v61 = vsel %vm30112_vm10, %v28304_v7, 0  ;;  %v14020_v7 = vshrl.u32 %v13928_v20, 16  ;;  %vm30122_vm10 = vmmov %vm30106_vm2 }
 0xe30   : > { %v13982_v54 = vor.u32 %v13980_v17, %v13978_v43  ;;  %v28615_v27 = vsel %vm1417_vm6, %v13974_v15, %v13978_v43  ;;  %v14024_v6 = vshll.u32 %v13929_v61, 16  ;;  %v14028_v15 = vshrl.u32 %v13929_v61, 16 }
 0xe31   : > { %v14022_v43 = vor.u32 %v14020_v7, %v14018_v45  ;;  %v24209_v45 = vld [vmem:[%s29539_s6 + $0xd0] sm:$0xff]  }
 0xe32   : > { %v28620_v31 = vsel %vm1417_vm6, %v13982_v54, %v13986_v48  ;;  %v14026_v22 = vrot.slane %v14024_v6, 1  ;;  %v13932_v48 = vsel %vm3319_vm3, %v28368_v49, 0 }
 0xe33   : > { %v14048_v57 = vshll.u32 %v13932_v48, 16  ;;  %v14052_v38 = vshrl.u32 %v13932_v48, 16 }
 0xe34   : > { %v14030_v41 = vor.u32 %v14028_v15, %v14026_v22  ;;  %v28663_v2 = vsel %vm1417_vm6, %v14022_v43, %v14026_v22 }
 0xe35   : > { %21818 = vmatmul.mubr.msk.bf16.gmra.mrb[72].mxu0 %vm30106_vm2, %v28599_v4  ;;  %v14050_v49 = vrot.slane %v14048_v57, 1 }
 0xe36   : > { %21821 = vmatprep.mubr.msk.bf16.mxu0 %vm30107_vm11, %v28604_v23  ;;  %vm30115_vm11 = vcmp.ne.s16.totalorder %v29956_v19, 0  ;;  %v28668_v16 = vsel %vm1417_vm6, %v14030_v41, %v14034_v10 }
 0xe37   : > { %v13931_v50 = vsel %vm30115_vm11, %v28336_v3, 0  ;;  %v14036_v3 = vshrl.u32 %v13930_v24, 16  ;;  %v14054_v9 = vor.u32 %v14052_v38, %v14050_v49  ;;  %v24210_v24 = vld [vmem:[%s29539_s6 + $0xd8] sm:$0xff]   ;;  %vm30126_vm11 = vmmov %vm30123_vm1 }
 0xe38   : > { %v14040_v54 = vshll.u32 %v13931_v50, 16  ;;  %v14044_v46 = vshrl.u32 %v13931_v50, 16 }
 0xe39   : > { %v14038_v32 = vor.u32 %v14036_v3, %v14034_v10  ;;  %v30153_v3 = vld [vmem:[#allocation11_spill] sm:$0xff] }
 0xe3a   : > { %v14042_v40 = vrot.slane %v14040_v54, 1 }
 0xe3c   : > { %v14046_v47 = vor.u32 %v14044_v46, %v14042_v40  ;;  %v14043_v25 = vsel %vm1417_vm6, %v14038_v32, %v14042_v40 }
 0xe3d   : > { %21822 = vmatmul.mubr.msk.bf16.gmra.mrb[76].mxu0 %vm30108_vm13, %v28615_v27  ;;  %vm30117_vm13 = vmmov %vm30106_vm2 }
 0xe3e   : > { %21825 = vmatprep.mubr.msk.bf16.mxu0 %vm30109_vm8, %v28620_v31  ;;  %vm30118_vm8 = vmmov %vm30106_vm2  ;;  %v14051_v8 = vsel %vm1417_vm6, %v14046_v47, %v14050_v49  ;;  %v30155_v49 = vld [vmem:[#allocation10_spill] sm:$0xff] }
 0xe45   : > { %21826 = vmatmul.mubr.msk.bf16.gmra.mrb[80].mxu0 %vm30110_vm9, %v28631_v14  ;;  %vm30120_vm9 = vcmp.ne.s16.totalorder %v30119_v58, 0 }
 0xe46   : > { %21829 = vmatprep.mubr.msk.bf16.mxu0 %vm30111_vm5, %v28636_v5  ;;  %v13933_v20 = vsel %vm30120_vm9, %v28364_v62, 0  ;;  %vm30121_vm5 = vmmov %vm30106_vm2  ;;  %v24207_v62 = vld [vmem:[%s29539_s6 + $0xc0] sm:$0xff]  }
 0xe47   : > { %v14056_v51 = vshll.u32 %v13933_v20, 16  ;;  %21913 = vmatprep.subr.bf16.mxu1 %v24207_v62  ;;  %vm30129_vm9 = vmmov %vm30123_vm1 }
 0xe48   : > { %21914 = vmatpush3.bf16.msra.mxu1 %v24207_v62 }
 0xe49   : > { %v14058_v59 = vrot.slane %v14056_v51, 1  ;;  %21915 = vmatprep.subr.bf16.mxu1 %v24208_v39 }
 0xe4b   : > { %v14059_v61 = vsel %vm1417_vm6, %v14054_v9, %v14058_v59 }
 0xe4c   : > { %21916 = vmatpush3.bf16.msra.mxu1 %v24208_v39 }
 0xe4d   : > { %21830 = vmatmul.mubr.msk.bf16.gmra.mrb[84].mxu0 %vm30114_vm7, %v28647_v13  ;;  %vm30124_vm7 = vmmov %vm30123_vm1  ;;  %21917 = vmatprep.subr.bf16.mxu1 %v24209_v45 }
 0xe4e   : > { %21833 = vmatprep.mubr.msk.bf16.mxu0 %vm30106_vm2, %v28652_v28  ;;  %vm30125_vm2 = vmmov %vm30123_vm1 }
 0xe50   : > { %21918 = vmatpush3.bf16.msra.mxu1 %v24209_v45 }
 0xe51   : > { %21919 = vmatprep.subr.bf16.mxu1 %v24210_v24 }
 0xe54   : > { %21920 = vmatpush3.bf16.msra.mxu1 %v24210_v24 }
 0xe55   : > { %21834 = vmatmul.mubr.msk.bf16.gmra.mrb[88].mxu0 %vm30117_vm13, %v28663_v2  ;;  %vm30127_vm13 = vmmov %vm30123_vm1 }
 0xe56   : > { %21837 = vmatprep.mubr.msk.bf16.mxu0 %vm30118_vm8, %v28668_v16  ;;  %vm30128_vm8 = vmmov %vm30123_vm1 }
 0xe5d   : > { %21838 = vmatmul.mubr.msk.bf16.gmra.mrb[92].mxu0 %vm30121_vm5, %v14043_v25  ;;  %vm30130_vm5 = vmmov %vm30123_vm1 }
 0xe5e   : > { %21841 = vmatprep.mubr.msk.bf16.mxu0 %vm30122_vm10, %v14051_v8  ;;  %vm30131_vm10 = vmmov %vm30123_vm1 }
 0xe65   : > { %21842 = vmatmul.mubr.msk.bf16.gmra.mrb[96].mxu0 %vm30123_vm1, %v14059_v61 }
 0xe66   : > { %21847 = vmatprep.mubr.msk.bf16.mxu0 %vm30124_vm7, %v28582_v35  ;;  %v24211_v35 = vld [vmem:[%s29539_s6 + $0xe0] sm:$0xff]   ;;  %vm30132_vm7 = vmmov %vm30123_vm1 }
 0xe67   : > { %21921 = vmatprep.subr.bf16.mxu1 %v24211_v35 }
 0xe68   : > { %21922 = vmatpush3.bf16.msra.mxu1 %v24211_v35 }
 0xe69   : > { %21923 = vmatprep.subr.bf16.mxu1 %v24212_v18 }
 0xe6c   : > { %21924 = vmatpush3.bf16.msra.mxu1 %v24212_v18 }
 0xe6d   : > { %21848 = vmatmul.mubr.msk.bf16.vlgmr.msra.gmra.mrb[68].mxu0 %vm30125_vm2, %v28587_v30  ;;  %vm30133_vm2 = vmmov %vm30123_vm1 }
 0xe6e   : > { %21880 = vmatpush3.bf16.msra.mxu0 %v28579_v26  ;;  %21851 = vmatprep.mubr.msk.bf16.mxu0 %vm30126_vm11, %v28599_v4  ;;  %vm30134_vm11 = vmmov %vm30123_vm1  ;;  %v14305_v26 = vshrl.u32 %v13933_v20, 16 }
 0xe70   : > { %v14307_v6 = vor.u32 %v14305_v26, %v14058_v59 }
 0xe72   : > { %v14308_v37 = vsel %vm1417_vm6, %v14307_v6, %v29904_v52 }
 0xe75   : > { %21852 = vmatmul.mubr.msk.bf16.gmra.mrb[72].mxu0 %vm30127_vm13, %v28604_v23  ;;  %vm30135_vm13 = vmmov %vm30123_vm1 }
 0xe76   : > { %21855 = vmatprep.mubr.msk.bf16.mxu0 %vm30128_vm8, %v28615_v27  ;;  %vm30136_vm8 = vmmov %vm30123_vm1 }
 0xe7d   : > { %21856 = vmatmul.mubr.msk.bf16.gmra.mrb[76].mxu0 %vm30129_vm9, %v28620_v31  ;;  %vm30137_vm9 = vmmov %vm30123_vm1 }
 0xe7e   : > { %21859 = vmatprep.mubr.msk.bf16.mxu0 %vm30130_vm5, %v28631_v14  ;;  %vm30138_vm5 = vmmov %vm30123_vm1 }
 0xe85   : > { %21860 = vmatmul.mubr.msk.bf16.gmra.mrb[80].mxu0 %vm30131_vm10, %v28636_v5  ;;  %vm30139_vm10 = vmmov %vm30123_vm1 }
 0xe86   : > { %21863 = vmatprep.mubr.msk.bf16.mxu0 %vm30123_vm1, %v28647_v13 }
 0xe8d   : > { %21864 = vmatmul.mubr.msk.bf16.gmra.mrb[84].mxu0 %vm30132_vm7, %v28652_v28  ;;  %vm30140_vm7 = vmmov %vm30123_vm1 }
 0xe8e   : > { %21867 = vmatprep.mubr.msk.bf16.mxu0 %vm30133_vm2, %v28663_v2  ;;  %vm30141_vm2 = vmmov %vm30123_vm1 }
 0xe95   : > { %21868 = vmatmul.mubr.msk.bf16.gmra.mrb[88].mxu0 %vm30134_vm11, %v28668_v16  ;;  %vm30142_vm11 = vmmov %vm30123_vm1 }
 0xe96   : > { %21871 = vmatprep.mubr.msk.bf16.mxu0 %vm30135_vm13, %v14043_v25  ;;  %vm30143_vm13 = vmmov %vm30123_vm1 }
 0xe9d   : > { %21872 = vmatmul.mubr.msk.bf16.gmra.mrb[92].mxu0 %vm30136_vm8, %v14051_v8  ;;  %vm30144_vm8 = vmmov %vm30123_vm1 }
 0xe9e   : > { %21875 = vmatprep.mubr.msk.bf16.mxu0 %vm30137_vm9, %v14059_v61  ;;  %vm30145_vm9 = vmmov %vm30123_vm1 }
 0xea5   : > { %21876 = vmatmul.mubr.msk.bf16.gmra.mrb[96].mxu0 %vm30138_vm5, %v14308_v37  ;;  %vm30146_vm5 = vmmov %vm30123_vm1 }
 0xea6   : > { %21881 = vmatprep.mubr.msk.bf16.mxu0 %vm30139_vm10, %v28587_v30  ;;  %vm30147_vm10 = vmmov %vm30123_vm1  ;;  %v24213_v30 = vld [vmem:[%s29539_s6 + $0xf0] sm:$0xff]  }
 0xea7   : > { %21925 = vmatprep.subr.bf16.mxu1 %v24213_v30 }
 0xea8   : > { %21926 = vmatpush3.bf16.msra.mxu1 %v24213_v30 }
 0xead   : > { %21882 = vmatmul.mubr.msk.bf16.vlgmr.msra.gmra.mrb[68].mxu0 %vm30123_vm1, %v28599_v4  ;;  %v24214_v4 = vld [vmem:[%s29539_s6 + $0xf8] sm:$0xff]  }
 0xeae   : > { %21885 = vmatprep.mubr.msk.bf16.mxu0 %vm30140_vm7, %v28604_v23  ;;  %vm30148_vm7 = vmmov %vm30123_vm1  ;;  %21927 = vmatprep.subr.bf16.mxu1 %v24214_v4  ;;  %v24215_v23 = vld [vmem:[%s29539_s6] sm:$0xff]  }
 0xeaf   : > { %21928 = vmatpush3.bf16.msra.mxu1 %v24214_v4 }
 0xeb0   : > { %21961 = vmatprep.subr.bf16.mxu1 %v24215_v23 }
 0xeb5   : > { %21886 = vmatmul.mubr.msk.bf16.gmra.mrb[72].mxu0 %vm30141_vm2, %v28615_v27  ;;  %vm30149_vm2 = vmmov %vm30123_vm1  ;;  %v28770_v27 = vld [vmem:[%s29538_s5] ss:$0 sm:$0xff] }
 0xeb6   : > { %21889 = vmatprep.mubr.msk.bf16.mxu0 %vm30142_vm11, %v28620_v31  ;;  %vm30150_vm11 = vmmov %vm30123_vm1 }
 0xebd   : > { %21890 = vmatmul.mubr.msk.bf16.gmra.mrb[76].mxu0 %vm30143_vm13, %v28631_v14  ;;  %vm30151_vm13 = vmmov %vm30123_vm1 }
 0xebe   : > { %21893 = vmatprep.mubr.msk.bf16.mxu0 %vm30144_vm8, %v28636_v5  ;;  %vm30152_vm8 = vmmov %vm30123_vm1 }
 0xec5   : > { %21894 = vmatmul.mubr.msk.bf16.gmra.mrb[80].mxu0 %vm30145_vm9, %v28647_v13  ;;  %vm30154_vm9 = vcmp.ne.s16.totalorder %v30153_v3, 0 }
 0xec6   : > { %21897 = vmatprep.mubr.msk.bf16.mxu0 %vm30146_vm5, %v28652_v28  ;;  %vm30156_vm5 = vcmp.ne.s16.totalorder %v30155_v49, 0 }
 0xecd   : > { %21898 = vmatmul.mubr.msk.bf16.gmra.mrb[84].mxu0 %vm30147_vm10, %v28663_v2 }
 0xece   : > { %21901 = vmatprep.mubr.msk.bf16.mxu0 %vm30123_vm1, %v28668_v16 }
 0xed5   : > { %21902 = vmatmul.mubr.msk.bf16.gmra.mrb[88].mxu0 %vm30148_vm7, %v14043_v25 }
 0xed6   : > { %21905 = vmatprep.mubr.msk.bf16.mxu0 %vm30149_vm2, %v14051_v8 }
 0xedd   : > { %21906 = vmatmul.mubr.msk.bf16.gmra.mrb[92].mxu0 %vm30150_vm11, %v14059_v61 }
 0xede   : > { %21909 = vmatprep.mubr.msk.bf16.mxu0 %vm30151_vm13, %v14308_v37 }
 0xee5   : > { %21910 = vmatmul.mubr.msk.bf16.gmra.mrb[96].mxu0 %vm30152_vm8, %v29904_v52 }
 0xf80   : > { %v21883_v31 = vpop.f32.mrb[68].mxu0 }
 0xf81   : > { %v14714_v14 = vadd.f32 %v21883_v31, %v28770_v27  ;;  %v14546_v5 = vpop.f32.mrb[69].mxu0 }
 0xf82   : > { %v14712_v13 = vadd.f32 %v28770_v27, %v14546_v5  ;;  %v21884_v28 = vpop.f32.mrb[70].mxu0  ;;  %v24216_v5 = vld [vmem:[%s29539_s6 + $0x8] sm:$0xff]  }
 0xf83   : > { %v14715_v7 = vadd.f32 %v21884_v28, %v28770_v27  ;;  %v14549_v22 = vpop.f32.mrb[71].mxu0  ;;  %v14746_v50 = vmax.f32 %v14714_v14, 0.0 }
 0xf84   : > { %v14713_v43 = vadd.f32 %v28770_v27, %v14549_v22  ;;  %v14744_v10 = vmax.f32 %v14712_v13, 0.0  ;;  %v30157_v13 = vld [vmem:[#allocation13_spill] sm:$0xff] }
 0xf85   : > { %v14747_v15 = vmax.f32 %v14715_v7, 0.0  ;;  %vm30158_vm10 = vcmp.ne.s16.totalorder %v30157_v13, 0 }
 0xf86   : > { %v14745_v48 = vmax.f32 %v14713_v43, 0.0 }
 0xf87   : > { %v28776_v41 = vpack.c.bf16 %v14747_v15, %v14746_v50  ;;  %v30159_v50 = vld [vmem:[#allocation12_spill] sm:$0xff] }
 0xf88   : > { %v28778_v54 = vpack.c.bf16 %v14745_v48, %v14744_v10  ;;  %v21887_v2 = vpop.f32.mrb[72].mxu0  ;;  %vm30160_vm1 = vcmp.ne.s16.totalorder %v30159_v50, 0 }
 0xf89   : > { %v14718_v16 = vadd.f32 %v21887_v2, %v28770_v27  ;;  %v14562_v57 = vpop.f32.mrb[73].mxu0  ;;  %v14793_v40 = vsel %vm30154_vm9, %v28776_v41, 0 }
 0xf8a   : > { %v14716_v32 = vadd.f32 %v28770_v27, %v14562_v57  ;;  %v21888_v46 = vpop.f32.mrb[74].mxu0  ;;  %v14792_v47 = vsel %vm30156_vm5, %v28778_v54, 0  ;;  %v14849_v20 = vshrl.u32 %v14793_v40, 16  ;;  %v14852_v59 = vshll.u32 %v14793_v40, 16 }
 0xf8b   : > { %v14719_v25 = vadd.f32 %v21888_v46, %v28770_v27  ;;  %v14565_v8 = vpop.f32.mrb[75].mxu0  ;;  %v14841_v38 = vshrl.u32 %v14792_v47, 16  ;;  %v14750_v61 = vmax.f32 %v14718_v16, 0.0  ;;  %v14844_v45 = vshll.u32 %v14792_v47, 16 }
 0xf8c   : > { %v14717_v51 = vadd.f32 %v28770_v27, %v14565_v8  ;;  %v14851_v9 = vrot.slane %v14849_v20, 7  ;;  %v14748_v24 = vmax.f32 %v14716_v32, 0.0  ;;  %v24217_v20 = vld [vmem:[%s29539_s6 + $0x10] sm:$0xff]  }
 0xf8d   : > { %v14751_v62 = vmax.f32 %v14719_v25, 0.0  ;;  %v14843_v39 = vrot.slane %v14841_v38, 7 }
 0xf8e   : > { %v14749_v35 = vmax.f32 %v14717_v51, 0.0  ;;  %v14854_v18 = vor.u32 %v14852_v59, %v14851_v9 }
 0xf8f   : > { %v28790_v26 = vpack.c.bf16 %v14751_v62, %v14750_v61  ;;  %v14846_v6 = vor.u32 %v14844_v45, %v14843_v39 }
 0xf90   : > { %v28792_v37 = vpack.c.bf16 %v14749_v35, %v14748_v24  ;;  %v21891_v30 = vpop.f32.mrb[76].mxu0  ;;  %v28808_v43 = vsel %vm1585_vm4, %v14843_v39, %v14854_v18  ;;  %v30161_v24 = vld [vmem:[#allocation15_spill] sm:$0xff] }
 0xf91   : > { %v14722_v4 = vadd.f32 %v21891_v30, %v28770_v27  ;;  %v14578_v31 = vpop.f32.mrb[77].mxu0  ;;  %v28797_v14 = vsel %vm1585_vm4, %v29863_v1, %v14846_v6  ;;  %v14795_v28 = vsel %vm30158_vm10, %v28790_v26, 0  ;;  %vm30162_vm7 = vcmp.ne.s16.totalorder %v30161_v24, 0  ;;  %v24218_v18 = vld [vmem:[%s29539_s6 + $0x18] sm:$0xff]  }
 0xf92   : > { %v14720_v7 = vadd.f32 %v28770_v27, %v14578_v31  ;;  %v21892_v22 = vpop.f32.mrb[78].mxu0  ;;  %21929 = vmatprep.mubr.bf16.mxu1 %v28797_v14  ;;  %v14794_v15 = vsel %vm30160_vm1, %v28792_v37, 0  ;;  %v14865_v10 = vshrl.u32 %v14795_v28, 16  ;;  %v14868_v40 = vshll.u32 %v14795_v28, 16 }
 0xf93   : > { %v14723_v48 = vadd.f32 %v21892_v22, %v28770_v27  ;;  %v14581_v2 = vpop.f32.mrb[79].mxu0  ;;  %21930 = vmatmul.mubr.bf16.vlgmr.msra.gmra.mrb[64].mxu1 %v28808_v43  ;;  %v14857_v16 = vshrl.u32 %v14794_v15, 16  ;;  %v14754_v32 = vmax.f32 %v14722_v4, 0.0  ;;  %v14860_v47 = vshll.u32 %v14794_v15, 16 }
 0xf94   : > { %v14721_v57 = vadd.f32 %v28770_v27, %v14581_v2  ;;  %21962 = vmatpush3.bf16.msra.mxu1 %v24215_v23  ;;  %v14867_v3 = vrot.slane %v14865_v10, 7  ;;  %v14752_v25 = vmax.f32 %v14720_v7, 0.0 }
 0xf95   : > { %v14755_v46 = vmax.f32 %v14723_v48, 0.0  ;;  %v14859_v49 = vrot.slane %v14857_v16, 7  ;;  %21963 = vmatprep.subr.bf16.mxu1 %v24216_v5 }
 0xf96   : > { %v14753_v8 = vmax.f32 %v14721_v57, 0.0  ;;  %v14870_v38 = vor.u32 %v14868_v40, %v14867_v3  ;;  %v24219_v57 = vld [vmem:[%s29539_s6 + $0x20] sm:$0xff]  }
 0xf97   : > { %v28819_v51 = vpack.c.bf16 %v14755_v46, %v14754_v32  ;;  %v14862_v59 = vor.u32 %v14860_v47, %v14859_v49 }
 0xf98   : > { %v28821_v61 = vpack.c.bf16 %v14753_v8, %v14752_v25  ;;  %v21895_v23 = vpop.f32.mrb[80].mxu0  ;;  %21964 = vmatpush3.bf16.msra.mxu1 %v24216_v5  ;;  %v28836_v4 = vsel %vm1585_vm4, %v14859_v49, %v14870_v38 }
 0xf99   : > { %v14726_v62 = vadd.f32 %v21895_v23, %v28770_v27  ;;  %v14594_v39 = vpop.f32.mrb[81].mxu0  ;;  %v28825_v45 = vsel %vm1585_vm4, %v14851_v9, %v14862_v59  ;;  %21965 = vmatprep.subr.bf16.mxu1 %v24217_v20  ;;  %v14797_v35 = vsel %vm30162_vm7, %v28819_v51, 0  ;;  %v30163_v9 = vld [vmem:[#allocation14_spill] sm:$0xff]  ;;  %v30165_v23 = vld [vmem:[#allocation17_spill] sm:$0xff] }
 0xf9a   : > { %v14724_v6 = vadd.f32 %v28770_v27, %v14594_v39  ;;  %v21896_v30 = vpop.f32.mrb[82].mxu0  ;;  %21933 = vmatprep.mubr.bf16.mxu1 %v28825_v45  ;;  %vm30164_vm2 = vcmp.ne.s16.totalorder %v30163_v9, 0  ;;  %v14881_v5 = vshrl.u32 %v14797_v35, 16  ;;  %v14884_v15 = vshll.u32 %v14797_v35, 16  ;;  %v24220_v39 = vld [vmem:[%s29539_s6 + $0x28] sm:$0xff]  }
 0xf9b   : > { %v14796_v31 = vsel %vm30164_vm2, %v28821_v61, 0  ;;  %v14727_v13 = vadd.f32 %v21896_v30, %v28770_v27  ;;  %v14597_v28 = vpop.f32.mrb[83].mxu0  ;;  %21934 = vmatmul.mubr.bf16.gmra.mrb[68].mxu1 %v28836_v4  ;;  %v14758_v10 = vmax.f32 %v14726_v62, 0.0  ;;  %vm30166_vm11 = vcmp.ne.s16.totalorder %v30165_v23, 0 }
 0xf9c   : > { %v14873_v7 = vshrl.u32 %v14796_v31, 16  ;;  %v14725_v22 = vadd.f32 %v28770_v27, %v14597_v28  ;;  %v14883_v50 = vrot.slane %v14881_v5, 7  ;;  %21966 = vmatpush3.bf16.msra.mxu1 %v24217_v20  ;;  %v14876_v16 = vshll.u32 %v14796_v31, 16 }
 0xf9d   : > { %v14759_v48 = vmax.f32 %v14727_v13, 0.0  ;;  %21967 = vmatprep.subr.bf16.mxu1 %v24218_v18  ;;  %v14756_v40 = vmax.f32 %v14724_v6, 0.0  ;;  %vm30182_vm2 = vcmp.ne.s16.totalorder %v30181_v11, 0 }
 0xf9e   : > { %v14875_v2 = vrot.slane %v14873_v7, 7  ;;  %v14757_v32 = vmax.f32 %v14725_v22, 0.0  ;;  %v14886_v46 = vor.u32 %v14884_v15, %v14883_v50 }
 0xf9f   : > { %v28847_v49 = vpack.c.bf16 %v14759_v48, %v14758_v10 }
 0xfa0   : > { %v14878_v47 = vor.u32 %v14876_v16, %v14875_v2  ;;  %v28849_v25 = vpack.c.bf16 %v14757_v32, %v14756_v40  ;;  %v21899_v8 = vpop.f32.mrb[84].mxu0  ;;  %21968 = vmatpush3.bf16.msra.mxu1 %v24218_v18  ;;  %v28864_v18 = vsel %vm1585_vm4, %v14875_v2, %v14886_v46  ;;  %v24221_v2 = vld [vmem:[%s29539_s6 + $0x30] sm:$0xff]  }
 0xfa1   : > { %v14730_v20 = vadd.f32 %v21899_v8, %v28770_v27  ;;  %v14610_v38 = vpop.f32.mrb[85].mxu0  ;;  %v14799_v62 = vsel %vm30166_vm11, %v28847_v49, 0  ;;  %21969 = vmatprep.subr.bf16.mxu1 %v24219_v57  ;;  %vm30183_vm11 = vcmp.ne.s16.totalorder %v29884_v33, 0 }
 0xfa2   : > { %v28853_v59 = vsel %vm1585_vm4, %v14867_v3, %v14878_v47  ;;  %v14728_v24 = vadd.f32 %v28770_v27, %v14610_v38  ;;  %v21900_v35 = vpop.f32.mrb[86].mxu0  ;;  %v30167_v3 = vld [vmem:[#allocation16_spill] sm:$0xff]  ;;  %v14897_v30 = vshrl.u32 %v14799_v62, 16  ;;  %v14900_v7 = vshll.u32 %v14799_v62, 16  ;;  %v30169_v62 = vld [vmem:[#allocation19_spill] sm:$0xff] }
 0xfa3   : > { %21937 = vmatprep.mubr.bf16.mxu1 %v28853_v59  ;;  %vm30168_vm13 = vcmp.ne.s16.totalorder %v30167_v3, 0  ;;  %v14731_v9 = vadd.f32 %v21900_v35, %v28770_v27  ;;  %v14613_v31 = vpop.f32.mrb[87].mxu0  ;;  %v14762_v22 = vmax.f32 %v14730_v20, 0.0  ;;  %vm30170_vm8 = vcmp.ne.s16.totalorder %v30169_v62, 0 }
 0xfa4   : > { %v14798_v6 = vsel %vm30168_vm13, %v28849_v25, 0  ;;  %21938 = vmatmul.mubr.bf16.gmra.mrb[72].mxu1 %v28864_v18  ;;  %v14729_v13 = vadd.f32 %v28770_v27, %v14613_v31  ;;  %v14899_v28 = vrot.slane %v14897_v30, 7  ;;  %v14760_v16 = vmax.f32 %v14728_v24, 0.0  ;;  %v24222_v24 = vld [vmem:[%s29539_s6 + $0x38] sm:$0xff]  }
 0xfa5   : > { %v14889_v5 = vshrl.u32 %v14798_v6, 16  ;;  %21970 = vmatpush3.bf16.msra.mxu1 %v24219_v57  ;;  %v14763_v15 = vmax.f32 %v14731_v9, 0.0  ;;  %v14892_v48 = vshll.u32 %v14798_v6, 16  ;;  %vm30185_vm13 = vcmp.ne.s16.totalorder %v29900_v55, 0 }
 0xfa6   : > { %21971 = vmatprep.subr.bf16.mxu1 %v24220_v39  ;;  %v14761_v40 = vmax.f32 %v14729_v13, 0.0  ;;  %v14902_v32 = vor.u32 %v14900_v7, %v14899_v28 }
 0xfa7   : > { %v14891_v10 = vrot.slane %v14889_v5, 7  ;;  %v28875_v46 = vpack.c.bf16 %v14763_v15, %v14762_v22 }
 0xfa8   : > { %v28877_v8 = vpack.c.bf16 %v14761_v40, %v14760_v16  ;;  %v21903_v38 = vpop.f32.mrb[88].mxu0 }
 0xfa9   : > { %v14894_v47 = vor.u32 %v14892_v48, %v14891_v10  ;;  %21972 = vmatpush3.bf16.msra.mxu1 %v24220_v39  ;;  %v14734_v57 = vadd.f32 %v21903_v38, %v28770_v27  ;;  %v14626_v20 = vpop.f32.mrb[89].mxu0  ;;  %v14801_v35 = vsel %vm30170_vm8, %v28875_v46, 0  ;;  %v28892_v39 = vsel %vm1585_vm4, %v14891_v10, %v14902_v32  ;;  %v28903_v32 = vld [vmem:[%s29539_s6 + $0x180] sm:$0xff]  }
 0xfaa   : > { %21973 = vmatprep.subr.bf16.mxu1 %v24221_v2  ;;  %v14732_v3 = vadd.f32 %v28770_v27, %v14626_v20  ;;  %v21904_v6 = vpop.f32.mrb[90].mxu0  ;;  %v14913_v9 = vshrl.u32 %v14801_v35, 16  ;;  %v14916_v15 = vshll.u32 %v14801_v35, 16  ;;  %vm30186_vm8 = vcmp.ne.s16.totalorder %v29902_v56, 0 }
 0xfab   : > { %v28881_v23 = vsel %vm1585_vm4, %v14883_v50, %v14894_v47  ;;  %v30171_v50 = vld [vmem:[#allocation18_spill] sm:$0xff]  ;;  %v14735_v31 = vadd.f32 %v21904_v6, %v28770_v27  ;;  %v14629_v5 = vpop.f32.mrb[91].mxu0  ;;  %v14766_v48 = vmax.f32 %v14734_v57, 0.0 }
 0xfac   : > { %21941 = vmatprep.mubr.bf16.mxu1 %v28881_v23  ;;  %vm30172_vm9 = vcmp.ne.s16.totalorder %v30171_v50, 0  ;;  %v14733_v7 = vadd.f32 %v28770_v27, %v14629_v5  ;;  %v14915_v22 = vrot.slane %v14913_v9, 7  ;;  %v14764_v47 = vmax.f32 %v14732_v3, 0.0  ;;  %v30173_v9 = vld [vmem:[#allocation21_spill] sm:$0xff] }
 0xfad   : > { %v14800_v30 = vsel %vm30172_vm9, %v28877_v8, 0  ;;  %21942 = vmatmul.mubr.bf16.gmra.mrb[76].mxu1 %v28892_v39  ;;  %v14767_v16 = vmax.f32 %v14735_v31, 0.0  ;;  %vm30174_vm5 = vcmp.ne.s16.totalorder %v30173_v9, 0  ;;  %vm30187_vm9 = vcmp.ne.s16.totalorder %v29905_v12, 0 }
 0xfae   : > { %v14905_v13 = vshrl.u32 %v14800_v30, 16  ;;  %21974 = vmatpush3.bf16.msra.mxu1 %v24221_v2  ;;  %v14908_v40 = vshll.u32 %v14800_v30, 16  ;;  %v14765_v38 = vmax.f32 %v14733_v7, 0.0  ;;  %v14918_v20 = vor.u32 %v14916_v15, %v14915_v22 }
 0xfaf   : > { %21975 = vmatprep.subr.bf16.mxu1 %v24222_v24  ;;  %v28905_v62 = vpack.c.bf16 %v14767_v16, %v14766_v48  ;;  %v16435_v55 = vsel %vm30187_vm9, %v28790_v26, 0 }
 0xfb0   : > { %v14907_v10 = vrot.slane %v14905_v13, 7  ;;  %v28907_v50 = vpack.c.bf16 %v14765_v38, %v14764_v47  ;;  %v21907_v35 = vpop.f32.mrb[92].mxu0 }
 0xfb1   : > { %v14738_v2 = vadd.f32 %v21907_v35, %v28770_v27  ;;  %v14642_v57 = vpop.f32.mrb[93].mxu0  ;;  %v14803_v31 = vsel %vm30174_vm5, %v28905_v62, 0  ;;  %vm30188_vm5 = vcmp.ne.s16.totalorder %v29907_v0, 0 }
 0xfb2   : > { %v14910_v6 = vor.u32 %v14908_v40, %v14907_v10  ;;  %21976 = vmatpush3.bf16.msra.mxu1 %v24222_v24  ;;  %v14736_v3 = vadd.f32 %v28770_v27, %v14642_v57  ;;  %v21908_v5 = vpop.f32.mrb[94].mxu0  ;;  %v28920_v13 = vsel %vm1585_vm4, %v14907_v10, %v14918_v20  ;;  %v30175_v24 = vld [vmem:[#allocation20_spill] sm:$0xff]  ;;  %v14932_v38 = vshll.u32 %v14803_v31, 16 }
 0xfb3   : > { %22009 = vmatprep.subr.bf16.mxu1 %v28903_v32  ;;  %vm30176_vm10 = vcmp.ne.s16.totalorder %v30175_v24, 0  ;;  %v14739_v15 = vadd.f32 %v21908_v5, %v28770_v27  ;;  %v14645_v48 = vpop.f32.mrb[95].mxu0  ;;  %v16436_v56 = vsel %vm30188_vm5, %v28821_v61, 0 }
 0xfb4   : > { %v28911_v30 = vsel %vm1585_vm4, %v14899_v28, %v14910_v6  ;;  %v14802_v7 = vsel %vm30176_vm10, %v28907_v50, 0  ;;  %v14929_v28 = vshrl.u32 %v14803_v31, 16  ;;  %v14737_v40 = vadd.f32 %v28770_v27, %v14645_v48 }
 0xfb5   : > { %21945 = vmatprep.mubr.bf16.mxu1 %v28911_v30  ;;  %v14921_v16 = vshrl.u32 %v14802_v7, 16  ;;  %v14770_v6 = vmax.f32 %v14738_v2, 0.0  ;;  %v14771_v35 = vmax.f32 %v14739_v15, 0.0  ;;  %v14924_v10 = vshll.u32 %v14802_v7, 16  ;;  %v30177_v2 = vld [vmem:[#allocation23_spill] sm:$0xff]  ;;  %v30179_v15 = vld [vmem:[#allocation22_spill] sm:$0xff] }
 0xfb6   : > { %21946 = vmatmul.mubr.bf16.gmra.mrb[80].mxu1 %v28920_v13  ;;  %v14931_v47 = vrot.slane %v14929_v28, 7  ;;  %v14768_v20 = vmax.f32 %v14736_v3, 0.0  ;;  %v14769_v9 = vmax.f32 %v14737_v40, 0.0  ;;  %vm30178_vm1 = vcmp.ne.s16.totalorder %v30177_v2, 0 }
 0xfb7   : > { %v14923_v57 = vrot.slane %v14921_v16, 7  ;;  %v28928_v24 = vpack.c.bf16 %v14771_v35, %v14770_v6  ;;  %vm30180_vm7 = vcmp.ne.s16.totalorder %v30179_v15, 0  ;;  %vm30189_vm10 = vcmp.ne.s16.totalorder %v29909_v44, 0 }
 0xfb8   : > { %v14934_v58 = vor.u32 %v14932_v38, %v14931_v47  ;;  %v28930_v19 = vpack.c.bf16 %v14769_v9, %v14768_v20  ;;  %v21911_v5 = vpop.f32.mrb[96].mxu0 }
 0xfb9   : > { %v14926_v17 = vor.u32 %v14924_v10, %v14923_v57  ;;  %v14742_v53 = vadd.f32 %v21911_v5, %v28770_v27  ;;  %v14658_v42 = vpop.f32.mrb[97].mxu0  ;;  %v14805_v31 = vsel %vm30178_vm1, %v28928_v24, 0  ;;  %vm30190_vm1 = vcmp.ne.s16.totalorder %v29911_v29, 0 }
 0xfba   : > { %v14740_v3 = vadd.f32 %v28770_v27, %v14658_v42  ;;  %v21912_v7 = vpop.f32.mrb[98].mxu0  ;;  %v28942_v28 = vsel %vm1585_vm4, %v14923_v57, %v14934_v58  ;;  %v14804_v16 = vsel %vm30180_vm7, %v28930_v19, 0  ;;  %v14945_v40 = vshrl.u32 %v14805_v31, 16 }
 0xfbb   : > { %v28934_v48 = vsel %vm1585_vm4, %v14915_v22, %v14926_v17  ;;  %v14743_v17 = vadd.f32 %v21912_v7, %v28770_v27  ;;  %v14661_v22 = vpop.f32.mrb[99].mxu0  ;;  %v14937_v38 = vshrl.u32 %v14804_v16, 16  ;;  %v14948_v35 = vshll.u32 %v14805_v31, 16 }
 0xfbc   : > { %21949 = vmatprep.mubr.bf16.mxu1 %v28934_v48  ;;  %v14741_v6 = vadd.f32 %v28770_v27, %v14661_v22  ;;  %v14947_v42 = vrot.slane %v14945_v40, 7  ;;  %v14774_v10 = vmax.f32 %v14742_v53, 0.0  ;;  %v14940_v58 = vshll.u32 %v14804_v16, 16 }
 0xfbd   : > { %v14775_v20 = vmax.f32 %v14743_v17, 0.0  ;;  %v14939_v9 = vrot.slane %v14937_v38, 7  ;;  %v14772_v57 = vmax.f32 %v14740_v3, 0.0  ;;  %v16501_v29 = vshrl.u32 %v16436_v56, 16 }
 0xfbe   : > { %21950 = vmatmul.mubr.bf16.gmra.mrb[84].mxu1 %v28942_v28  ;;  %v14773_v5 = vmax.f32 %v14741_v6, 0.0  ;;  %v14950_v2 = vor.u32 %v14948_v35, %v14947_v42  ;;  %v24224_v6 = vld [vmem:[%s29539_s6 + $0x188] sm:$0xff]   ;;  %v24226_v35 = vld [vmem:[%s29539_s6 + $0x198] sm:$0xff]  }
 0xfbf   : > { %v28950_v15 = vpack.c.bf16 %v14775_v20, %v14774_v10  ;;  %v14942_v34 = vor.u32 %v14940_v58, %v14939_v9  ;;  %v24229_v10 = vld [vmem:[%s29539_s6 + $0x1b0] sm:$0xff]   ;;  %v24230_v20 = vld [vmem:[%s29539_s6 + $0x1b8] sm:$0xff]   ;;  %v24232_v58 = vld [vmem:[%s29539_s6 + $0x48] sm:$0xff]  }
 0xfc0   : > { %v28952_v63 = vpack.c.bf16 %v14773_v5, %v14772_v57  ;;  %v28962_v53 = vsel %vm1585_vm4, %v14939_v9, %v14950_v2  ;;  %v24231_v9 = vld [vmem:[%s29539_s6 + $0x40] sm:$0xff]   ;;  %v24233_v57 = vld [vmem:[%s29539_s6 + $0x50] sm:$0xff]   ;;  %v24246_v2 = vld [vmem:[%s29539_s6 + $0x138] sm:$0xff]  }
 0xfc1   : > { %v28955_v7 = vsel %vm1585_vm4, %v14931_v47, %v14942_v34  ;;  %v14807_v27 = vsel %vm30182_vm2, %v28950_v15, 0  ;;  %v24245_v5 = vld [vmem:[%s29539_s6 + $0x130] sm:$0xff]  }
 0xfc2   : > { %21953 = vmatprep.mubr.bf16.mxu1 %v28955_v7  ;;  %v14806_v31 = vsel %vm30183_vm11, %v28952_v63, 0  ;;  %v14961_v3 = vshrl.u32 %v14807_v27, 16  ;;  %v14964_v34 = vshll.u32 %v14807_v27, 16  ;;  %v24248_v27 = vld [vmem:[%s29539_s6 + $0x1c8] sm:$0xff]  }
 0xfc3   : > { %v14953_v16 = vshrl.u32 %v14806_v31, 16  ;;  %v14956_v17 = vshll.u32 %v14806_v31, 16  ;;  %v24250_v31 = vld [vmem:[%s29539_s6 + $0x1d8] sm:$0xff]  }
 0xfc4   : > { %v28968_v40 = vrot.slane %v14961_v3, 7  ;;  %v24251_v3 = vld [vmem:[%s29539_s6 + $0x1e0] sm:$0xff]  }
 0xfc5   : > { %v14955_v47 = vrot.slane %v14953_v16, 7  ;;  %v24252_v16 = vld [vmem:[%s29539_s6 + $0x1e8] sm:$0xff]  }
 0xfc6   : > { %21954 = vmatmul.mubr.bf16.gmra.mrb[88].mxu1 %v28962_v53  ;;  %v14966_v11 = vor.u32 %v14964_v34, %v28968_v40  ;;  %v24254_v34 = vld [vmem:[%s29539_s6 + $0x1f8] sm:$0xff]  }
 0xfc7   : > { %v14958_v22 = vor.u32 %v14956_v17, %v14955_v47  ;;  %v24256_v17 = vld [vmem:[%s29539_s6 + $0x88] sm:$0xff]  }
 0xfc8   : > { %v28976_v33 = vsel %vm1585_vm4, %v14955_v47, %v14966_v11  ;;  %v24255_v47 = vld [vmem:[%s29539_s6 + $0x80] sm:$0xff]   ;;  %v24257_v11 = vld [vmem:[%s29539_s6 + $0x90] sm:$0xff]  }
 0xfc9   : > { %v28972_v38 = vsel %vm1585_vm4, %v14947_v42, %v14958_v22  ;;  %v24225_v42 = vld [vmem:[%s29539_s6 + $0x190] sm:$0xff]   ;;  %v24258_v22 = vld [vmem:[%s29539_s6 + $0x98] sm:$0xff]  }
 0xfca   : > { %21957 = vmatprep.mubr.bf16.mxu1 %v28972_v38 }
 0xfce   : > { %21958 = vmatmul.mubr.bf16.gmra.mrb[92].mxu1 %v28976_v33 }
 0xfcf   : > { %21977 = vmatprep.mubr.bf16.mxu1 %v29863_v1 }
 0xfd6   : > { %21978 = vmatmul.mubr.bf16.vlgmr.msra.gmra.mrb[64].mxu1 %v28797_v14  ;;  %v24227_v14 = vld [vmem:[%s29539_s6 + $0x1a0] sm:$0xff]  }
 0xfd7   : > { %22010 = vmatpush3.bf16.msra.mxu1 %v28903_v32  ;;  %21981 = vmatprep.mubr.bf16.mxu1 %v28808_v43  ;;  %v24228_v32 = vld [vmem:[%s29539_s6 + $0x1a8] sm:$0xff]  }
 0xfd8   : > { %22011 = vmatprep.subr.bf16.mxu1 %v24224_v6 }
 0xfdb   : > { %22012 = vmatpush3.bf16.msra.mxu1 %v24224_v6  ;;  %v24261_v6 = vld [vmem:[%s29539_s6 + $0xb0] sm:$0xff]  }
 0xfdc   : > { %22013 = vmatprep.subr.bf16.mxu1 %v24225_v42 }
 0xfde   : > { %21982 = vmatmul.mubr.bf16.gmra.mrb[68].mxu1 %v28825_v45 }
 0xfdf   : > { %21985 = vmatprep.mubr.bf16.mxu1 %v28836_v4  ;;  %22014 = vmatpush3.bf16.msra.mxu1 %v24225_v42  ;;  %v24262_v42 = vld [vmem:[%s29539_s6 + $0xb8] sm:$0xff]  }
 0xfe0   : > { %22015 = vmatprep.subr.bf16.mxu1 %v24226_v35 }
 0xfe3   : > { %22016 = vmatpush3.bf16.msra.mxu1 %v24226_v35  ;;  %v24263_v35 = vld [vmem:[%s29539_s6 + $0x140] sm:$0xff]  }
 0xfe4   : > { %22017 = vmatprep.subr.bf16.mxu1 %v24227_v14 }
 0xfe6   : > { %21986 = vmatmul.mubr.bf16.gmra.mrb[72].mxu1 %v28853_v59 }
 0xfe7   : > { %21989 = vmatprep.mubr.bf16.mxu1 %v28864_v18  ;;  %22018 = vmatpush3.bf16.msra.mxu1 %v24227_v14 }
 0xfe8   : > { %22019 = vmatprep.subr.bf16.mxu1 %v24228_v32 }
 0xfeb   : > { %22020 = vmatpush3.bf16.msra.mxu1 %v24228_v32 }
 0xfec   : > { %22021 = vmatprep.subr.bf16.mxu1 %v24229_v10 }
 0xfee   : > { %21990 = vmatmul.mubr.bf16.gmra.mrb[76].mxu1 %v28881_v23 }
 0xfef   : > { %21993 = vmatprep.mubr.bf16.mxu1 %v28892_v39  ;;  %22022 = vmatpush3.bf16.msra.mxu1 %v24229_v10  ;;  %v16433_v10 = vsel %vm30185_vm13, %v28776_v41, 0 }
 0xff0   : > { %22023 = vmatprep.subr.bf16.mxu1 %v24230_v20 }
 0xff3   : > { %22024 = vmatpush3.bf16.msra.mxu1 %v24230_v20 }
 0xff4   : > { %22057 = vmatprep.subr.bf16.mxu1 %v24231_v9 }
 0xff6   : > { %21994 = vmatmul.mubr.bf16.gmra.mrb[80].mxu1 %v28911_v30 }
 0xff7   : > { %21997 = vmatprep.mubr.bf16.mxu1 %v28920_v13 }
 0xffe   : > { %21998 = vmatmul.mubr.bf16.gmra.mrb[84].mxu1 %v28934_v48 }
 0xfff   : > { %22001 = vmatprep.mubr.bf16.mxu1 %v28942_v28 }
0x1006   : > { %22002 = vmatmul.mubr.bf16.gmra.mrb[88].mxu1 %v28955_v7 }
0x1007   : > { %22005 = vmatprep.mubr.bf16.mxu1 %v28962_v53 }
0x100e   : > { %22006 = vmatmul.mubr.bf16.gmra.mrb[92].mxu1 %v28972_v38 }
0x100f   : > { %22025 = vmatprep.mubr.bf16.mxu1 %v28808_v43  ;;  %v24234_v43 = vld [vmem:[%s29539_s6 + $0x58] sm:$0xff]  }
0x1016   : > { %22026 = vmatmul.mubr.bf16.vlgmr.msra.gmra.mrb[64].mxu1 %v28825_v45  ;;  %v24235_v45 = vld [vmem:[%s29539_s6 + $0x60] sm:$0xff]  }
0x1017   : > { %22058 = vmatpush3.bf16.msra.mxu1 %v24231_v9  ;;  %22029 = vmatprep.mubr.bf16.mxu1 %v28836_v4  ;;  %v24236_v4 = vld [vmem:[%s29539_s6 + $0x68] sm:$0xff]   ;;  %v16434_v9 = vsel %vm30186_vm8, %v28792_v37, 0 }
0x1018   : > { %22059 = vmatprep.subr.bf16.mxu1 %v24232_v58  ;;  %v16485_v0 = vshrl.u32 %v16434_v9, 16 }
0x101b   : > { %22060 = vmatpush3.bf16.msra.mxu1 %v24232_v58  ;;  %v16473_v58 = vshll.u32 %v16433_v10, 16 }
0x101c   : > { %22061 = vmatprep.subr.bf16.mxu1 %v24233_v57 }
0x101e   : > { %22030 = vmatmul.mubr.bf16.gmra.mrb[68].mxu1 %v28853_v59  ;;  %v24237_v59 = vld [vmem:[%s29539_s6 + $0x70] sm:$0xff]  }
0x101f   : > { %22033 = vmatprep.mubr.bf16.mxu1 %v28864_v18  ;;  %22062 = vmatpush3.bf16.msra.mxu1 %v24233_v57  ;;  %v24238_v18 = vld [vmem:[%s29539_s6 + $0x78] sm:$0xff]  }
0x1020   : > { %22063 = vmatprep.subr.bf16.mxu1 %v24234_v43 }
0x1023   : > { %22064 = vmatpush3.bf16.msra.mxu1 %v24234_v43  ;;  %v16475_v43 = vrot.slane %v16473_v58, 1 }
0x1024   : > { %22065 = vmatprep.subr.bf16.mxu1 %v24235_v45 }
0x1026   : > { %22034 = vmatmul.mubr.bf16.gmra.mrb[72].mxu1 %v28881_v23  ;;  %v24239_v23 = vld [vmem:[%s29539_s6 + $0x100] sm:$0xff]  }
0x1027   : > { %22037 = vmatprep.mubr.bf16.mxu1 %v28892_v39  ;;  %22066 = vmatpush3.bf16.msra.mxu1 %v24235_v45  ;;  %v15418_v39 = vsel %vm1585_vm4, %v28968_v40, %v29863_v1  ;;  %v24242_v1 = vld [vmem:[%s29539_s6 + $0x118] sm:$0xff]   ;;  %v24253_v40 = vld [vmem:[%s29539_s6 + $0x1f0] sm:$0xff]   ;;  %vm30184_vm4 = vcmp.ne.s16.totalorder %v29898_v60, 0 }
0x1028   : > { %22067 = vmatprep.subr.bf16.mxu1 %v24236_v4  ;;  %v16432_v14 = vsel %vm30184_vm4, %v28778_v54, 0 }
0x1029   : > { %v16465_v32 = vshll.u32 %v16432_v14, 16  ;;  %v16469_v57 = vshrl.u32 %v16432_v14, 16 }
0x102b   : > { %22068 = vmatpush3.bf16.msra.mxu1 %v24236_v4  ;;  %v16467_v20 = vrot.slane %v16465_v32, 1 }
0x102c   : > { %22069 = vmatprep.subr.bf16.mxu1 %v24237_v59 }
0x102d   : > { %v16468_v60 = vsel %vm1417_vm6, %v29904_v52, %v16467_v20  ;;  %v16471_v45 = vor.u32 %v16469_v57, %v16467_v20  ;;  %v16442_v20 = vsel %vm3315_vm0, %v28907_v50, 0 }
0x102e   : > { %22038 = vmatmul.mubr.bf16.gmra.mrb[76].mxu1 %v28911_v30  ;;  %v24240_v30 = vld [vmem:[%s29539_s6 + $0x108] sm:$0xff]   ;;  %v16545_v57 = vshll.u32 %v16442_v20, 16 }
0x102f   : > { %22041 = vmatprep.mubr.bf16.mxu1 %v28920_v13  ;;  %22070 = vmatpush3.bf16.msra.mxu1 %v24237_v59  ;;  %v24241_v13 = vld [vmem:[%s29539_s6 + $0x110] sm:$0xff]   ;;  %v16489_v59 = vshll.u32 %v16435_v55, 16 }
0x1030   : > { %22071 = vmatprep.subr.bf16.mxu1 %v24238_v18 }
0x1033   : > { %22072 = vmatpush3.bf16.msra.mxu1 %v24238_v18  ;;  %v29203_v18 = vsel %vm1417_vm6, %v16471_v45, %v16475_v43  ;;  %v24271_v45 = vld [vmem:[%s29539_s6 + $0x200] sm:$0xff]  }
0x1034   : > { %22105 = vmatprep.subr.bf16.mxu1 %v24239_v23 }
0x1036   : > { %22042 = vmatmul.mubr.bf16.gmra.mrb[80].mxu1 %v28934_v48  ;;  %v24243_v48 = vld [vmem:[%s29539_s6 + $0x120] sm:$0xff]  }
0x1037   : > { %22045 = vmatprep.mubr.bf16.mxu1 %v28942_v28  ;;  %v24244_v28 = vld [vmem:[%s29539_s6 + $0x128] sm:$0xff]  }
0x103e   : > { %22046 = vmatmul.mubr.bf16.gmra.mrb[84].mxu1 %v28955_v7  ;;  %v24247_v7 = vld [vmem:[%s29539_s6 + $0x1c0] sm:$0xff]  }
0x103f   : > { %22049 = vmatprep.mubr.bf16.mxu1 %v28962_v53  ;;  %v24249_v53 = vld [vmem:[%s29539_s6 + $0x1d0] sm:$0xff]  }
0x1046   : > { %22050 = vmatmul.mubr.bf16.gmra.mrb[88].mxu1 %v28972_v38  ;;  %v24259_v38 = vld [vmem:[%s29539_s6 + $0xa0] sm:$0xff]  }
0x1047   : > { %22053 = vmatprep.mubr.bf16.mxu1 %v28976_v33  ;;  %v24260_v33 = vld [vmem:[%s29539_s6 + $0xa8] sm:$0xff]  }
0x104e   : > { %22054 = vmatmul.mubr.bf16.gmra.mrb[92].mxu1 %v15418_v39 }
0x104f   : > { %22073 = vmatprep.mubr.bf16.mxu1 %v29892_v21 }
0x1056   : > { %22074 = vmatmul.mubr.bf16.vlgmr.msra.gmra.mrb[64].mxu1 %v28778_v54 }
0x1057   : > { %22106 = vmatpush3.bf16.msra.mxu1 %v24239_v23  ;;  %22077 = vmatprep.mubr.bf16.mxu1 %v28776_v41  ;;  %v24265_v23 = vld [vmem:[%s29539_s6 + $0x150] sm:$0xff]  }
0x1058   : > { %22107 = vmatprep.subr.bf16.mxu1 %v24240_v30 }
0x105b   : > { %22108 = vmatpush3.bf16.msra.mxu1 %v24240_v30  ;;  %v16437_v30 = vsel %vm30189_vm10, %v28819_v51, 0 }
0x105c   : > { %22109 = vmatprep.subr.bf16.mxu1 %v24241_v13 }
0x105e   : > { %22078 = vmatmul.mubr.bf16.gmra.mrb[68].mxu1 %v28792_v37 }
0x105f   : > { %22081 = vmatprep.mubr.bf16.mxu1 %v28790_v26  ;;  %22110 = vmatpush3.bf16.msra.mxu1 %v24241_v13  ;;  %v16493_v13 = vshrl.u32 %v16435_v55, 16 }
0x1060   : > { %22111 = vmatprep.subr.bf16.mxu1 %v24242_v1 }
0x1063   : > { %22112 = vmatpush3.bf16.msra.mxu1 %v24242_v1 }
0x1064   : > { %22113 = vmatprep.subr.bf16.mxu1 %v24243_v48 }
0x1066   : > { %22082 = vmatmul.mubr.bf16.gmra.mrb[72].mxu1 %v28821_v61 }
0x1067   : > { %22085 = vmatprep.mubr.bf16.mxu1 %v28819_v51  ;;  %22114 = vmatpush3.bf16.msra.mxu1 %v24243_v48  ;;  %v16438_v48 = vsel %vm30190_vm1, %v28849_v25, 0 }
0x1068   : > { %22115 = vmatprep.subr.bf16.mxu1 %v24244_v28 }
0x106b   : > { %22116 = vmatpush3.bf16.msra.mxu1 %v24244_v28 }
0x106c   : > { %22117 = vmatprep.subr.bf16.mxu1 %v24245_v5 }
0x106e   : > { %22086 = vmatmul.mubr.bf16.gmra.mrb[76].mxu1 %v28849_v25 }
0x106f   : > { %22089 = vmatprep.mubr.bf16.mxu1 %v28847_v49  ;;  %22118 = vmatpush3.bf16.msra.mxu1 %v24245_v5  ;;  %v16505_v5 = vshll.u32 %v16437_v30, 16 }
0x1070   : > { %22119 = vmatprep.subr.bf16.mxu1 %v24246_v2 }
0x1073   : > { %22120 = vmatpush3.bf16.msra.mxu1 %v24246_v2  ;;  %v24266_v2 = vld [vmem:[%s29539_s6 + $0x158] sm:$0xff]  }
0x1074   : > { %22153 = vmatprep.subr.bf16.mxu1 %v24247_v7 }
0x1076   : > { %22090 = vmatmul.mubr.bf16.gmra.mrb[80].mxu1 %v28877_v8 }
0x1077   : > { %22093 = vmatprep.mubr.bf16.mxu1 %v28875_v46 }
0x107e   : > { %22094 = vmatmul.mubr.bf16.gmra.mrb[84].mxu1 %v28907_v50 }
0x107f   : > { %22097 = vmatprep.mubr.bf16.mxu1 %v28905_v62 }
0x1086   : > { %22098 = vmatmul.mubr.bf16.gmra.mrb[88].mxu1 %v28930_v19 }
0x1087   : > { %22101 = vmatprep.mubr.bf16.mxu1 %v28928_v24 }
0x108e   : > { %22102 = vmatmul.mubr.bf16.gmra.mrb[92].mxu1 %v28952_v63 }
0x108f   : > { %22121 = vmatprep.mubr.bf16.mxu1 %v28778_v54  ;;  %v16481_v54 = vshll.u32 %v16434_v9, 16 }
0x1091   : > { %v16483_v4 = vrot.slane %v16481_v54, 1 }
0x1093   : > { %v16487_v39 = vor.u32 %v16485_v0, %v16483_v4 }
0x1096   : > { %22122 = vmatmul.mubr.bf16.vlgmr.msra.gmra.mrb[64].mxu1 %v28776_v41 }
0x1097   : > { %22154 = vmatpush3.bf16.msra.mxu1 %v24247_v7  ;;  %22125 = vmatprep.mubr.bf16.mxu1 %v28792_v37 }
0x1098   : > { %22155 = vmatprep.subr.bf16.mxu1 %v24248_v27 }
0x109b   : > { %22156 = vmatpush3.bf16.msra.mxu1 %v24248_v27  ;;  %v24267_v27 = vld [vmem:[%s29539_s6 + $0x160] sm:$0xff]  }
0x109c   : > { %22157 = vmatprep.subr.bf16.mxu1 %v24249_v53 }
0x109e   : > { %22126 = vmatmul.mubr.bf16.gmra.mrb[68].mxu1 %v28790_v26 }
0x109f   : > { %22129 = vmatprep.mubr.bf16.mxu1 %v28821_v61  ;;  %22158 = vmatpush3.bf16.msra.mxu1 %v24249_v53 }
0x10a0   : > { %22159 = vmatprep.subr.bf16.mxu1 %v24250_v31 }
0x10a3   : > { %22160 = vmatpush3.bf16.msra.mxu1 %v24250_v31  ;;  %v16439_v31 = vsel %vm3312_vm15, %v28847_v49, 0 }
0x10a4   : > { %22161 = vmatprep.subr.bf16.mxu1 %v24251_v3  ;;  %v16525_v14 = vshrl.u32 %v16439_v31, 16 }
0x10a6   : > { %22130 = vmatmul.mubr.bf16.gmra.mrb[72].mxu1 %v28819_v51 }
0x10a7   : > { %22133 = vmatprep.mubr.bf16.mxu1 %v28849_v25  ;;  %22162 = vmatpush3.bf16.msra.mxu1 %v24251_v3  ;;  %v16509_v3 = vshrl.u32 %v16437_v30, 16 }
0x10a8   : > { %22163 = vmatprep.subr.bf16.mxu1 %v24252_v16 }
0x10ab   : > { %22164 = vmatpush3.bf16.msra.mxu1 %v24252_v16 }
0x10ac   : > { %22165 = vmatprep.subr.bf16.mxu1 %v24253_v40 }
0x10ae   : > { %22134 = vmatmul.mubr.bf16.gmra.mrb[76].mxu1 %v28847_v49 }
0x10af   : > { %22137 = vmatprep.mubr.bf16.mxu1 %v28877_v8  ;;  %22166 = vmatpush3.bf16.msra.mxu1 %v24253_v40 }
0x10b0   : > { %22167 = vmatprep.subr.bf16.mxu1 %v24254_v34 }
0x10b3   : > { %22168 = vmatpush3.bf16.msra.mxu1 %v24254_v34  ;;  %v16440_v34 = vsel %vm3313_vm12, %v28877_v8, 0 }
0x10b4   : > { %22201 = vmatprep.subr.bf16.mxu1 %v24255_v47 }
0x10b6   : > { %22138 = vmatmul.mubr.bf16.gmra.mrb[80].mxu1 %v28875_v46 }
0x10b7   : > { %22141 = vmatprep.mubr.bf16.mxu1 %v28907_v50 }
0x10be   : > { %22142 = vmatmul.mubr.bf16.gmra.mrb[84].mxu1 %v28905_v62 }
0x10bf   : > { %22145 = vmatprep.mubr.bf16.mxu1 %v28930_v19 }
0x10c6   : > { %22146 = vmatmul.mubr.bf16.gmra.mrb[88].mxu1 %v28928_v24 }
0x10c7   : > { %22149 = vmatprep.mubr.bf16.mxu1 %v28952_v63 }
0x10ce   : > { %22150 = vmatmul.mubr.bf16.gmra.mrb[92].mxu1 %v28950_v15 }
0x10cf   : > { %22169 = vmatprep.mubr.bf16.mxu1 %v28776_v41  ;;  %v16477_v41 = vshrl.u32 %v16433_v10, 16  ;;  %v24278_v10 = vld [vmem:[%s29539_s6 + $0x238] sm:$0xff]  }
0x10d6   : > { %22170 = vmatmul.mubr.bf16.vlgmr.msra.gmra.mrb[64].mxu1 %v28792_v37  ;;  %v16479_v37 = vor.u32 %v16477_v41, %v16475_v43  ;;  %v30194_v41 = vld [vmem:[#allocation38_spill] sm:$0xff] }
0x10d7   : > { %22202 = vmatpush3.bf16.msra.mxu1 %v24255_v47  ;;  %22173 = vmatprep.mubr.bf16.mxu1 %v28790_v26  ;;  %v16497_v26 = vshll.u32 %v16436_v56, 16  ;;  %vm30195_vm12 = vcmp.ne.s16.totalorder %v30194_v41, 0 }
0x10d8   : > { %22203 = vmatprep.subr.bf16.mxu1 %v24256_v17  ;;  %v29207_v12 = vsel %vm1417_vm6, %v16479_v37, %v16483_v4  ;;  %v16443_v4 = vsel %vm30195_vm12, %v28905_v62, 0  ;;  %v16547_v37 = vrot.slane %v16545_v57, 1 }
0x10d9   : > { %v16499_v1 = vrot.slane %v16497_v26, 1  ;;  %v16553_v0 = vshll.u32 %v16443_v4, 16 }
0x10db   : > { %22204 = vmatpush3.bf16.msra.mxu1 %v24256_v17  ;;  %v16503_v53 = vor.u32 %v16501_v29, %v16499_v1  ;;  %v16521_v17 = vshll.u32 %v16439_v31, 16  ;;  %v16555_v30 = vrot.slane %v16553_v0, 1 }
0x10dc   : > { %22205 = vmatprep.subr.bf16.mxu1 %v24257_v11 }
0x10de   : > { %22174 = vmatmul.mubr.bf16.gmra.mrb[68].mxu1 %v28821_v61  ;;  %v16491_v61 = vrot.slane %v16489_v59, 1 }
0x10df   : > { %22177 = vmatprep.mubr.bf16.mxu1 %v28819_v51  ;;  %22206 = vmatpush3.bf16.msra.mxu1 %v24257_v11  ;;  %v16513_v51 = vshll.u32 %v16438_v48, 16  ;;  %v24268_v11 = vld [vmem:[%s29539_s6 + $0x168] sm:$0xff]  }
0x10e0   : > { %22207 = vmatprep.subr.bf16.mxu1 %v24258_v22  ;;  %v16495_v28 = vor.u32 %v16493_v13, %v16491_v61  ;;  %v29223_v7 = vsel %vm1417_vm6, %v16487_v39, %v16491_v61 }
0x10e1   : > { %v16515_v16 = vrot.slane %v16513_v51, 1 }
0x10e2   : > { %v29227_v44 = vsel %vm1417_vm6, %v16495_v28, %v16499_v1 }
0x10e3   : > { %22208 = vmatpush3.bf16.msra.mxu1 %v24258_v22 }
0x10e4   : > { %22209 = vmatprep.subr.bf16.mxu1 %v24259_v38 }
0x10e6   : > { %22178 = vmatmul.mubr.bf16.gmra.mrb[72].mxu1 %v28849_v25  ;;  %v16507_v25 = vrot.slane %v16505_v5, 1 }
0x10e7   : > { %22181 = vmatprep.mubr.bf16.mxu1 %v28847_v49  ;;  %22210 = vmatpush3.bf16.msra.mxu1 %v24259_v38  ;;  %v16529_v49 = vshll.u32 %v16440_v34, 16  ;;  %v16517_v38 = vshrl.u32 %v16438_v48, 16  ;;  %v16557_v48 = vshrl.u32 %v16443_v4, 16 }
0x10e8   : > { %22211 = vmatprep.subr.bf16.mxu1 %v24260_v33  ;;  %v16511_v47 = vor.u32 %v16509_v3, %v16507_v25  ;;  %v29243_v22 = vsel %vm1417_vm6, %v16503_v53, %v16507_v25 }
0x10e9   : > { %v16531_v32 = vrot.slane %v16529_v49, 1  ;;  %v16559_v51 = vor.u32 %v16557_v48, %v16555_v30 }
0x10ea   : > { %v29247_v36 = vsel %vm1417_vm6, %v16511_v47, %v16515_v16 }
0x10eb   : > { %22212 = vmatpush3.bf16.msra.mxu1 %v24260_v33  ;;  %v24269_v33 = vld [vmem:[%s29539_s6 + $0x170] sm:$0xff]  }
0x10ec   : > { %22213 = vmatprep.subr.bf16.mxu1 %v24261_v6 }
0x10ee   : > { %22182 = vmatmul.mubr.bf16.gmra.mrb[76].mxu1 %v28877_v8  ;;  %v16523_v8 = vrot.slane %v16521_v17, 1 }
0x10ef   : > { %22185 = vmatprep.mubr.bf16.mxu1 %v28875_v46  ;;  %22214 = vmatpush3.bf16.msra.mxu1 %v24261_v6  ;;  %v16519_v6 = vor.u32 %v16517_v38, %v16515_v16 }
0x10f0   : > { %22215 = vmatprep.subr.bf16.mxu1 %v24262_v42  ;;  %v16527_v9 = vor.u32 %v16525_v14, %v16523_v8  ;;  %v24276_v14 = vld [vmem:[%s29539_s6 + $0x228] sm:$0xff]  }
0x10f1   : > { %v29263_v54 = vsel %vm1417_vm6, %v16519_v6, %v16523_v8 }
0x10f3   : > { %22216 = vmatpush3.bf16.msra.mxu1 %v24262_v42  ;;  %v24272_v42 = vld [vmem:[%s29539_s6 + $0x208] sm:$0xff]  }
0x10f4   : > { %22249 = vmatprep.subr.bf16.mxu1 %v24263_v35 }
0x10f6   : > { %22186 = vmatmul.mubr.bf16.gmra.mrb[80].mxu1 %v28907_v50  ;;  %v16533_v50 = vshrl.u32 %v16440_v34, 16 }
0x10f7   : > { %22189 = vmatprep.mubr.bf16.mxu1 %v28905_v62  ;;  %v16549_v62 = vshrl.u32 %v16442_v20, 16 }
0x10f8   : > { %v16535_v55 = vor.u32 %v16533_v50, %v16531_v32 }
0x10f9   : > { %v16551_v13 = vor.u32 %v16549_v62, %v16547_v37 }
0x10fb   : > { %v29294_v25 = vsel %vm1417_vm6, %v16551_v13, %v16555_v30 }
0x10fe   : > { %22190 = vmatmul.mubr.bf16.gmra.mrb[84].mxu1 %v28930_v19 }
0x10ff   : > { %22193 = vmatprep.mubr.bf16.mxu1 %v28928_v24 }
0x1106   : > { %22194 = vmatmul.mubr.bf16.gmra.mrb[88].mxu1 %v28952_v63 }
0x1107   : > { %22197 = vmatprep.mubr.bf16.mxu1 %v28950_v15 }
0x110e   : > { %22198 = vmatmul.mubr.bf16.gmra.mrb[92].mxu1 %v29892_v21  ;;  %v24264_v21 = vld [vmem:[%s29539_s6 + $0x148] sm:$0xff]  }
0x110f   : > { %22217 = vmatprep.mubr.bf16.mxu1 %v16468_v60  ;;  %v24270_v60 = vld [vmem:[%s29539_s6 + $0x178] sm:$0xff]  }
0x1116   : > { %22218 = vmatmul.mubr.bf16.vlgmr.msra.gmra.mrb[64].mxu1 %v29203_v18 }
0x1117   : > { %22250 = vmatpush3.bf16.msra.mxu1 %v24263_v35  ;;  %22221 = vmatprep.mubr.bf16.mxu1 %v29207_v12  ;;  %v16441_v35 = vsel %vm3314_vm14, %v28875_v46, 0  ;;  %v29267_v46 = vsel %vm1417_vm6, %v16527_v9, %v16531_v32  ;;  %v24277_v32 = vld [vmem:[%s29539_s6 + $0x230] sm:$0xff]  }
0x1118   : > { %22251 = vmatprep.subr.bf16.mxu1 %v24264_v21  ;;  %v16537_v58 = vshll.u32 %v16441_v35, 16  ;;  %v16541_v56 = vshrl.u32 %v16441_v35, 16  ;;  %v24275_v35 = vld [vmem:[%s29539_s6 + $0x220] sm:$0xff]  }
0x111a   : > { %v16539_v43 = vrot.slane %v16537_v58, 1 }
0x111b   : > { %22252 = vmatpush3.bf16.msra.mxu1 %v24264_v21  ;;  %v30196_v21 = vld [vmem:[#allocation39_spill] sm:$0xff] }
0x111c   : > { %22253 = vmatprep.subr.bf16.mxu1 %v24265_v23  ;;  %vm30197_vm15 = vcmp.ne.s16.totalorder %v30196_v21, 0  ;;  %v16543_v26 = vor.u32 %v16541_v56, %v16539_v43  ;;  %v29280_v61 = vsel %vm1417_vm6, %v16535_v55, %v16539_v43 }
0x111d   : > { %v16444_v59 = vsel %vm30197_vm15, %v28930_v19, 0  ;;  %v30198_v19 = vld [vmem:[#allocation40_spill] sm:$0xff] }
0x111e   : > { %22222 = vmatmul.mubr.bf16.gmra.mrb[68].mxu1 %v29223_v7  ;;  %v16561_v39 = vshll.u32 %v16444_v59, 16  ;;  %vm30199_vm14 = vcmp.ne.s16.totalorder %v30198_v19, 0 }
0x111f   : > { %22225 = vmatprep.mubr.bf16.mxu1 %v29227_v44  ;;  %22254 = vmatpush3.bf16.msra.mxu1 %v24265_v23  ;;  %v29284_v23 = vsel %vm1417_vm6, %v16543_v26, %v16547_v37  ;;  %v16445_v1 = vsel %vm30199_vm14, %v28928_v24, 0  ;;  %v16565_v24 = vshrl.u32 %v16444_v59, 16 }
0x1120   : > { %22255 = vmatprep.subr.bf16.mxu1 %v24266_v2  ;;  %v16563_v28 = vrot.slane %v16561_v39, 1  ;;  %v16569_v29 = vshll.u32 %v16445_v1, 16  ;;  %v16573_v16 = vshrl.u32 %v16445_v1, 16 }
0x1122   : > { %v16571_v31 = vrot.slane %v16569_v29, 1  ;;  %v16567_v3 = vor.u32 %v16565_v24, %v16563_v28 }
0x1123   : > { %22256 = vmatpush3.bf16.msra.mxu1 %v24266_v2  ;;  %v16446_v2 = vsel %vm3319_vm3, %v28952_v63, 0  ;;  %v30201_v63 = vld [vmem:[#allocation42_spill] sm:$0xff] }
0x1124   : > { %22257 = vmatprep.subr.bf16.mxu1 %v24267_v27  ;;  %v16577_v53 = vshll.u32 %v16446_v2, 16  ;;  %v16575_v34 = vor.u32 %v16573_v16, %v16571_v31  ;;  %vm30202_vm0 = vcmp.ne.s16.totalorder %v30201_v63, 0  ;;  %v16572_v17 = vsel %vm1417_vm6, %v16567_v3, %v16571_v31 }
0x1125   : > { %v16447_v47 = vsel %vm30202_vm0, %v28950_v15, 0  ;;  %v16581_v49 = vshrl.u32 %v16446_v2, 16  ;;  %v24273_v15 = vld [vmem:[%s29539_s6 + $0x210] sm:$0xff]  }
0x1126   : > { %22226 = vmatmul.mubr.bf16.gmra.mrb[72].mxu1 %v29243_v22  ;;  %v16579_v40 = vrot.slane %v16577_v53, 1  ;;  %v16585_v38 = vshll.u32 %v16447_v47, 16  ;;  %v16862_v20 = vshrl.u32 %v16447_v47, 16 }
0x1127   : > { %22229 = vmatprep.mubr.bf16.mxu1 %v29247_v36  ;;  %22258 = vmatpush3.bf16.msra.mxu1 %v24267_v27  ;;  %v29298_v27 = vsel %vm1417_vm6, %v16559_v51, %v16563_v28 }
0x1128   : > { %22259 = vmatprep.subr.bf16.mxu1 %v24268_v11  ;;  %v16583_v8 = vor.u32 %v16581_v49, %v16579_v40 }
0x112b   : > { %22260 = vmatpush3.bf16.msra.mxu1 %v24268_v11  ;;  %v16580_v11 = vsel %vm1417_vm6, %v16575_v34, %v16579_v40 }
0x112c   : > { %22261 = vmatprep.subr.bf16.mxu1 %v24269_v33 }
0x112e   : > { %22230 = vmatmul.mubr.bf16.gmra.mrb[76].mxu1 %v29263_v54 }
0x112f   : > { %22233 = vmatprep.mubr.bf16.mxu1 %v29267_v46  ;;  %22262 = vmatpush3.bf16.msra.mxu1 %v24269_v33  ;;  %v16587_v33 = vrot.slane %v16585_v38, 1 }
0x1130   : > { %22263 = vmatprep.subr.bf16.mxu1 %v24270_v60 }
0x1131   : > { %v16588_v6 = vsel %vm1417_vm6, %v16583_v8, %v16587_v33  ;;  %v16864_v9 = vor.u32 %v16862_v20, %v16587_v33 }
0x1133   : > { %22264 = vmatpush3.bf16.msra.mxu1 %v24270_v60  ;;  %v16865_v58 = vsel %vm1417_vm6, %v16864_v9, %v29904_v52 }
0x1134   : > { %22297 = vmatprep.subr.bf16.mxu1 %v24271_v45 }
0x1136   : > { %22234 = vmatmul.mubr.bf16.gmra.mrb[80].mxu1 %v29280_v61 }
0x1137   : > { %22237 = vmatprep.mubr.bf16.mxu1 %v29284_v23 }
0x113e   : > { %22238 = vmatmul.mubr.bf16.gmra.mrb[84].mxu1 %v29294_v25 }
0x113f   : > { %22241 = vmatprep.mubr.bf16.mxu1 %v29298_v27 }
0x1146   : > { %22242 = vmatmul.mubr.bf16.gmra.mrb[88].mxu1 %v16572_v17 }
0x1147   : > { %22245 = vmatprep.mubr.bf16.mxu1 %v16580_v11 }
0x114e   : > { %22246 = vmatmul.mubr.bf16.gmra.mrb[92].mxu1 %v16588_v6 }
0x114f   : > { %22265 = vmatprep.mubr.bf16.mxu1 %v29203_v18  ;;  %v24274_v18 = vld [vmem:[%s29539_s6 + $0x218] sm:$0xff]  }
0x1156   : > { %22266 = vmatmul.mubr.bf16.vlgmr.msra.gmra.mrb[64].mxu1 %v29207_v12 }
0x1157   : > { %22298 = vmatpush3.bf16.msra.mxu1 %v24271_v45  ;;  %22269 = vmatprep.mubr.bf16.mxu1 %v29223_v7 }
0x1158   : > { %22299 = vmatprep.subr.bf16.mxu1 %v24272_v42 }
0x115b   : > { %22300 = vmatpush3.bf16.msra.mxu1 %v24272_v42 }
0x115c   : > { %22301 = vmatprep.subr.bf16.mxu1 %v24273_v15 }
0x115e   : > { %22270 = vmatmul.mubr.bf16.gmra.mrb[68].mxu1 %v29227_v44 }
0x115f   : > { %22273 = vmatprep.mubr.bf16.mxu1 %v29243_v22  ;;  %22302 = vmatpush3.bf16.msra.mxu1 %v24273_v15 }
0x1160   : > { %22303 = vmatprep.subr.bf16.mxu1 %v24274_v18 }
0x1163   : > { %22304 = vmatpush3.bf16.msra.mxu1 %v24274_v18 }
0x1164   : > { %22305 = vmatprep.subr.bf16.mxu1 %v24275_v35 }
0x1166   : > { %22274 = vmatmul.mubr.bf16.gmra.mrb[72].mxu1 %v29247_v36 }
0x1167   : > { %22277 = vmatprep.mubr.bf16.mxu1 %v29263_v54  ;;  %22306 = vmatpush3.bf16.msra.mxu1 %v24275_v35 }
0x1168   : > { %22307 = vmatprep.subr.bf16.mxu1 %v24276_v14 }
0x116b   : > { %22308 = vmatpush3.bf16.msra.mxu1 %v24276_v14 }
0x116c   : > { %22309 = vmatprep.subr.bf16.mxu1 %v24277_v32 }
0x116e   : > { %22278 = vmatmul.mubr.bf16.gmra.mrb[76].mxu1 %v29267_v46 }
0x116f   : > { %22281 = vmatprep.mubr.bf16.mxu1 %v29280_v61  ;;  %22310 = vmatpush3.bf16.msra.mxu1 %v24277_v32 }
0x1170   : > { %22311 = vmatprep.subr.bf16.mxu1 %v24278_v10 }
0x1173   : > { %22312 = vmatpush3.bf16.msra.mxu1 %v24278_v10 }
0x1176   : > { %22282 = vmatmul.mubr.bf16.gmra.mrb[80].mxu1 %v29284_v23 }
0x1177   : > { %22285 = vmatprep.mubr.bf16.mxu1 %v29294_v25 }
0x117e   : > { %22286 = vmatmul.mubr.bf16.gmra.mrb[84].mxu1 %v29298_v27 }
0x117f   : > { %22289 = vmatprep.mubr.bf16.mxu1 %v16572_v17 }
0x1186   : > { %22290 = vmatmul.mubr.bf16.gmra.mrb[88].mxu1 %v16580_v11 }
0x1187   : > { %22293 = vmatprep.mubr.bf16.mxu1 %v16588_v6 }
0x118e   : > { %22294 = vmatmul.mubr.bf16.gmra.mrb[92].mxu1 %v16865_v58 }
0x118f   : > { %22313 = vmatprep.mubr.bf16.mxu1 %v29207_v12 }
0x1196   : > { %22314 = vmatmul.mubr.bf16.vlgmr.msra.gmra.mrb[64].mxu1 %v29223_v7 }
0x1197   : > { %22317 = vmatprep.mubr.bf16.mxu1 %v29227_v44 }
0x119e   : > { %22318 = vmatmul.mubr.bf16.gmra.mrb[68].mxu1 %v29243_v22 }
0x119f   : > { %22321 = vmatprep.mubr.bf16.mxu1 %v29247_v36 }
0x11a6   : > { %22322 = vmatmul.mubr.bf16.gmra.mrb[72].mxu1 %v29263_v54 }
0x11a7   : > { %22325 = vmatprep.mubr.bf16.mxu1 %v29267_v46 }
0x11ae   : > { %22326 = vmatmul.mubr.bf16.gmra.mrb[76].mxu1 %v29280_v61 }
0x11af   : > { %22329 = vmatprep.mubr.bf16.mxu1 %v29284_v23 }
0x11b6   : > { %22330 = vmatmul.mubr.bf16.gmra.mrb[80].mxu1 %v29294_v25 }
0x11b7   : > { %22333 = vmatprep.mubr.bf16.mxu1 %v29298_v27 }
0x11be   : > { %22334 = vmatmul.mubr.bf16.gmra.mrb[84].mxu1 %v16572_v17 }
0x11bf   : > { %22337 = vmatprep.mubr.bf16.mxu1 %v16580_v11 }
0x11c6   : > { %22338 = vmatmul.mubr.bf16.gmra.mrb[88].mxu1 %v16588_v6 }
0x11c7   : > { %22341 = vmatprep.mubr.bf16.mxu1 %v16865_v58 }
0x11ce   : > { %22342 = vmatmul.mubr.bf16.gmra.mrb[92].mxu1 %v29904_v52 }
0x11cf   : > { %24360 = shalt.err (!%p24357_p3)
}
0x11d0   : > { %s24361_s20 = scalar_lea.hbm %s29360_s27, 16  ;;  %s24365_s1 = scalar_lea.hbm %s29546_s13, 32 }
0x11d1   : > { %p24362_p4 = scmp.ne.s32.totalorder %s29360_s27, %s24361_s20  ;;  %p24366_p9 = scmp.lt.u32.totalorder %s29360_s27, %s29546_s13 }
0x11d2   : > { %p24367_p10 = scmp.lt.u32.totalorder %s24365_s1, %s24361_s20  ;;  %p24369_p12 = scmp.lt.u32.totalorder %s24361_s20, %s29360_s27 }
0x11d3   : > { %p24363_p7 = pnand %p24362_p4, %p24562_p5 }
0x11d4   : > { %p24368_p11 = por %p24367_p10, %p24366_p9 }
0x11d5   : > { %p24364_p8 = pneg %p24363_p7 }
0x11d6   : > { %p24370_p13 = por %p24369_p12, %p24368_p11 }
0x11d8   : > { %p24371_p0 = pnand %p24370_p13, %p24364_p8 }
0x11da   : > { %24374 = shalt.err (!%p24371_p0)
}
0x11db   : > { %23906 = dma.vmem_to_hbm [thread:$0]  (%p24562_p5), %s17642_s28, 16, %s29360_s27, %s17622_s0   ;;  %v29385_v52 = vld [vmem:[%s29540_s7] ss:$0 sm:$0xff]  ;;  %v30204_v43 = vld [vmem:[#allocation49_spill] sm:$0xff]  ;;  %v30205_v4 = vld [vmem:[#allocation44_spill] sm:$0xff]  ;;  %vm30207_vm6 = vcmask 261120  }
0x11dc   : > { %v30206_v37 = vld [vmem:[#allocation43_spill] sm:$0xff]  ;;  %v30208_v23 = vld [vmem:[#allocation45_spill] sm:$0xff]  ;;  %vm30209_vm3 = vmmov %vm30207_vm6  ;;  %s521_s2 = scalar_lea.vmem [#allocation4], %s26694_s18  ;;  %s30267_s28 = sshll.u32 %s24545_s17, 4 }
0x11dd   : > { %vm30210_vm7 = vmmov %vm30209_vm3  ;;  %v30212_v27 = vld [vmem:[#allocation46_spill] sm:$0xff]  ;;  %v30213_v16 = vld [vmem:[#allocation48_spill] sm:$0xff]  ;;  %s17654_s27 = sshll.u32 %s521_s2, 4  ;;  %s29489_s25 = scalar_lea.hbm %s29547_s14, %s30267_s28  ;;  %s29491_s27 = int_to_ptr.vmem [resolvable:$true] %s17654_s27 }
0x11de   : > { %vm30211_vm2 = vmmov %vm30209_vm3  ;;  %v30215_v63 = vld [vmem:[#allocation47_spill] sm:$0xff]  ;;  %v30216_v8 = vld [vmem:[#allocation50_spill] sm:$0xff]  ;;  %s17626_s26 = scalar_lea.sflag [#allocation5], %s26694_s18  ;;  %s24375_s1 = scalar_lea.vmem %s29491_s27, 16 }
0x11df   : > { %vm30214_vm11 = vmmov %vm30211_vm2  ;;  %p24376_p1 = scmp.ne.s32.totalorder %s29491_s27, %s24375_s1  ;;  %s24448_s3 = smov [#allocation4]  }
0x11e0   : > { %vm30217_vm4 = vmmov %vm30211_vm2  ;;  %s24379_s17 = sshll.u32 %s24448_s3, 4  ;;  %s24380_s17 = int_to_ptr.vmem [resolvable:$false] %s24379_s17 }
0x11e1   : > { %vm30218_vm13 = vmmov %vm30211_vm2  ;;  %p24377_p2 = pnand %p24376_p1, %p24562_p5  ;;  %s24381_s4 = scalar_lea.vmem %s24380_s17, 32 }
0x11e2   : > { %vm30219_vm8 = vmmov %vm30211_vm2  ;;  %p24382_p4 = scmp.lt.s32.totalorder %s29491_s27, %s24380_s17  ;;  %p24383_p7 = scmp.lt.s32.totalorder %s24381_s4, %s24375_s1 }
0x11e3   : > { %vm30222_vm9 = vmmov %vm30211_vm2  ;;  %p24378_p3 = pneg %p24377_p2 }
0x11e4   : > { %vm30225_vm5 = vmmov %vm30211_vm2  ;;  %p24384_p8 = por %p24383_p7, %p24382_p4 }
0x11e5   : > { %vm30226_vm10 = vmmov %vm30211_vm2 }
0x11e6   : > { %vm30227_vm1 = vmmov %vm30211_vm2  ;;  %p24385_p9 = pnand %p24384_p8, %p24378_p3 }
0x11e7   : > { %vm30230_vm12 = vmmov %vm30227_vm1 }
0x11e8   : > { %vm30233_vm15 = vmmov %vm30227_vm1 }
0x11e9   : > { %vm30234_vm14 = vmmov %vm30227_vm1 }
0x11ea   : > { %vm30235_vm0 = vmmov %vm30227_vm1 }
0x1269   : > { %v22315_v12 = vpop.f32.mrb[64].mxu1 }
0x126a   : > { %v17374_v7 = vadd.f32 %v22315_v12, %v29385_v52  ;;  %v17206_v44 = vpop.f32.mrb[65].mxu1 }
0x126b   : > { %v17372_v22 = vadd.f32 %v29385_v52, %v17206_v44  ;;  %v22316_v36 = vpop.f32.mrb[66].mxu1 }
0x126c   : > { %v17375_v60 = vadd.f32 %v22316_v36, %v29385_v52  ;;  %v17209_v54 = vpop.f32.mrb[67].mxu1  ;;  %v17406_v46 = vmax.f32 %v17374_v7, 0.0  ;;  %v30220_v7 = vld [vmem:[#allocation52_spill] sm:$0xff] }
0x126d   : > { %v17404_v57 = vmax.f32 %v17372_v22, 0.0  ;;  %v17373_v50 = vadd.f32 %v29385_v52, %v17209_v54  ;;  %v30221_v54 = vld [vmem:[#allocation54_spill] sm:$0xff] }
0x126e   : > { %v17407_v55 = vmax.f32 %v17375_v60, 0.0  ;;  %v17438_v56 = vmul.f32 %v17406_v46, %v30205_v4 }
0x126f   : > { %v17436_v45 = vmul.f32 %v17404_v57, %v30204_v43  ;;  %v17405_v41 = vmax.f32 %v17373_v50, 0.0  ;;  %v30223_v50 = vld [vmem:[#allocation51_spill] sm:$0xff] }
0x1270   : > { %v17439_v39 = vmul.f32 %v17407_v55, %v30208_v23  ;;  %v17471_v28 = vsel %vm30210_vm7, %v17438_v56, 0.0  ;;  %v30224_v56 = vld [vmem:[#allocation53_spill] sm:$0xff]  ;;  %vm30242_vm7 = vmmov %vm30235_vm0 }
0x1271   : > { %v17437_v21 = vmul.f32 %v17405_v41, %v30206_v37  ;;  %v22319_v59 = vpop.f32.mrb[68].mxu1  ;;  %v17468_v61 = vsel %vm30207_vm6, %v17436_v45, 0.0  ;;  %vm30238_vm6 = vmmov %vm30235_vm0 }
0x1272   : > { %v17378_v26 = vadd.f32 %v22319_v59, %v29385_v52  ;;  %v17222_v0 = vpop.f32.mrb[69].mxu1  ;;  %v17473_v25 = vsel %vm30211_vm2, %v17439_v39, 0.0  ;;  %vm30243_vm2 = vmmov %vm30235_vm0 }
0x1273   : > { %v17469_v62 = vsel %vm30209_vm3, %v17437_v21, 0.0  ;;  %v17376_v30 = vadd.f32 %v29385_v52, %v17222_v0  ;;  %v22320_v13 = vpop.f32.mrb[70].mxu1  ;;  %vm30241_vm3 = vmmov %vm30235_vm0 }
0x1274   : > { %v17470_v19 = vadd.f32 %v17469_v62, %v17468_v61  ;;  %v17379_v1 = vadd.f32 %v22320_v13, %v29385_v52  ;;  %v17225_v48 = vpop.f32.mrb[71].mxu1  ;;  %v17410_v5 = vmax.f32 %v17378_v26, 0.0 }
0x1275   : > { %v17408_v2 = vmax.f32 %v17376_v30, 0.0  ;;  %v17377_v51 = vadd.f32 %v29385_v52, %v17225_v48  ;;  %v30228_v48 = vld [vmem:[#allocation56_spill] sm:$0xff] }
0x1276   : > { %v17472_v29 = vadd.f32 %v17471_v28, %v17470_v19  ;;  %v17411_v24 = vmax.f32 %v17379_v1, 0.0  ;;  %v17442_v40 = vmul.f32 %v17410_v5, %v30213_v16 }
0x1277   : > { %v17440_v53 = vmul.f32 %v17408_v2, %v30212_v27  ;;  %v17409_v31 = vmax.f32 %v17377_v51, 0.0 }
0x1278   : > { %v17474_v3 = vadd.f32 %v17473_v25, %v17472_v29  ;;  %v17443_v33 = vmul.f32 %v17411_v24, %v30216_v8  ;;  %v17479_v32 = vsel %vm30218_vm13, %v17442_v40, 0.0  ;;  %v30229_v29 = vld [vmem:[#allocation58_spill] sm:$0xff]  ;;  %vm30250_vm13 = vmmov %vm30235_vm0 }
0x1279   : > { %v17475_v34 = vsel %vm30214_vm11, %v17440_v53, 0.0  ;;  %v17441_v47 = vmul.f32 %v17409_v31, %v30215_v63  ;;  %v22323_v17 = vpop.f32.mrb[72].mxu1  ;;  %v30231_v53 = vld [vmem:[#allocation55_spill] sm:$0xff]  ;;  %vm30246_vm11 = vmmov %vm30235_vm0 }
0x127a   : > { %v17476_v11 = vadd.f32 %v17475_v34, %v17474_v3  ;;  %v17382_v49 = vadd.f32 %v22323_v17, %v29385_v52  ;;  %v17238_v38 = vpop.f32.mrb[73].mxu1  ;;  %v17481_v12 = vsel %vm30219_vm8, %v17443_v33, 0.0  ;;  %v30232_v34 = vld [vmem:[#allocation57_spill] sm:$0xff]  ;;  %vm30251_vm8 = vmmov %vm30235_vm0 }
0x127b   : > { %v17477_v6 = vsel %vm30217_vm4, %v17441_v47, 0.0  ;;  %v17380_v42 = vadd.f32 %v29385_v52, %v17238_v38  ;;  %v22324_v15 = vpop.f32.mrb[74].mxu1  ;;  %vm30249_vm4 = vmmov %vm30235_vm0 }
0x127c   : > { %v17478_v18 = vadd.f32 %v17477_v6, %v17476_v11  ;;  %v17383_v35 = vadd.f32 %v22324_v15, %v29385_v52  ;;  %v17241_v14 = vpop.f32.mrb[75].mxu1  ;;  %v17414_v10 = vmax.f32 %v17382_v49, 0.0 }
0x127d   : > { %v17412_v20 = vmax.f32 %v17380_v42, 0.0  ;;  %v17381_v9 = vadd.f32 %v29385_v52, %v17241_v14  ;;  %v30236_v14 = vld [vmem:[#allocation60_spill] sm:$0xff] }
0x127e   : > { %v17480_v58 = vadd.f32 %v17479_v32, %v17478_v18  ;;  %v17415_v22 = vmax.f32 %v17383_v35, 0.0  ;;  %v17446_v46 = vmul.f32 %v17414_v10, %v30221_v54 }
0x127f   : > { %v17444_v44 = vmul.f32 %v17412_v20, %v30220_v7  ;;  %v17413_v36 = vmax.f32 %v17381_v9, 0.0 }
0x1280   : > { %v17482_v60 = vadd.f32 %v17481_v12, %v17480_v58  ;;  %v17447_v37 = vmul.f32 %v17415_v22, %v30224_v56  ;;  %v17487_v39 = vsel %vm30226_vm10, %v17446_v46, 0.0  ;;  %v30237_v58 = vld [vmem:[#allocation62_spill] sm:$0xff]  ;;  %vm30258_vm10 = vmmov %vm30235_vm0 }
0x1281   : > { %v17483_v57 = vsel %vm30222_vm9, %v17444_v44, 0.0  ;;  %v17445_v43 = vmul.f32 %v17413_v36, %v30223_v50  ;;  %v22327_v45 = vpop.f32.mrb[76].mxu1  ;;  %v30239_v44 = vld [vmem:[#allocation59_spill] sm:$0xff]  ;;  %vm30254_vm9 = vmmov %vm30235_vm0 }
0x1282   : > { %v17484_v55 = vadd.f32 %v17483_v57, %v17482_v60  ;;  %v17386_v41 = vadd.f32 %v22327_v45, %v29385_v52  ;;  %v17254_v4 = vpop.f32.mrb[77].mxu1  ;;  %v17489_v1 = vsel %vm30227_vm1, %v17447_v37, 0.0  ;;  %v30240_v57 = vld [vmem:[#allocation61_spill] sm:$0xff]  ;;  %vm30259_vm1 = vmmov %vm30235_vm0 }
0x1283   : > { %v17485_v21 = vsel %vm30225_vm5, %v17445_v43, 0.0  ;;  %v17384_v59 = vadd.f32 %v29385_v52, %v17254_v4  ;;  %v22328_v26 = vpop.f32.mrb[78].mxu1  ;;  %vm30257_vm5 = vmmov %vm30235_vm0 }
0x1284   : > { %v17486_v0 = vadd.f32 %v17485_v21, %v17484_v55  ;;  %v17387_v61 = vadd.f32 %v22328_v26, %v29385_v52  ;;  %v17257_v23 = vpop.f32.mrb[79].mxu1  ;;  %v17418_v62 = vmax.f32 %v17386_v41, 0.0 }
0x1285   : > { %v17416_v30 = vmax.f32 %v17384_v59, 0.0  ;;  %v17385_v13 = vadd.f32 %v29385_v52, %v17257_v23  ;;  %v30244_v23 = vld [vmem:[#allocation64_spill] sm:$0xff] }
0x1286   : > { %v17488_v19 = vadd.f32 %v17487_v39, %v17486_v0  ;;  %v17419_v5 = vmax.f32 %v17387_v61, 0.0  ;;  %v17450_v25 = vmul.f32 %v17418_v62, %v30229_v29 }
0x1287   : > { %v17448_v28 = vmul.f32 %v17416_v30, %v30228_v48  ;;  %v17417_v2 = vmax.f32 %v17385_v13, 0.0 }
0x1288   : > { %v17490_v51 = vadd.f32 %v17489_v1, %v17488_v19  ;;  %v17451_v63 = vmul.f32 %v17419_v5, %v30232_v34  ;;  %v17495_v33 = vsel %vm30234_vm14, %v17450_v25, 0.0  ;;  %v30245_v19 = vld [vmem:[#allocation66_spill] sm:$0xff]  ;;  %vm30266_vm14 = vmmov %vm30235_vm0 }
0x1289   : > { %v17491_v27 = vsel %vm30230_vm12, %v17448_v28, 0.0  ;;  %v17449_v24 = vmul.f32 %v17417_v2, %v30231_v53  ;;  %v22331_v31 = vpop.f32.mrb[80].mxu1  ;;  %v30247_v28 = vld [vmem:[#allocation63_spill] sm:$0xff]  ;;  %vm30262_vm12 = vmmov %vm30235_vm0 }
0x128a   : > { %v17492_v3 = vadd.f32 %v17491_v27, %v17490_v51  ;;  %v17390_v16 = vadd.f32 %v22331_v31, %v29385_v52  ;;  %v17270_v40 = vpop.f32.mrb[81].mxu1  ;;  %v17497_v35 = vsel %vm30235_vm0, %v17451_v63, 0.0  ;;  %v30248_v27 = vld [vmem:[#allocation65_spill] sm:$0xff] }
0x128b   : > { %v17493_v47 = vsel %vm30233_vm15, %v17449_v24, 0.0  ;;  %v17388_v17 = vadd.f32 %v29385_v52, %v17270_v40  ;;  %v22332_v11 = vpop.f32.mrb[82].mxu1  ;;  %vm30265_vm15 = vmmov %vm30235_vm0 }
0x128c   : > { %v17494_v49 = vadd.f32 %v17493_v47, %v17492_v3  ;;  %v17391_v38 = vadd.f32 %v22332_v11, %v29385_v52  ;;  %v17273_v8 = vpop.f32.mrb[83].mxu1  ;;  %v17422_v6 = vmax.f32 %v17390_v16, 0.0 }
0x128d   : > { %v17420_v42 = vmax.f32 %v17388_v17, 0.0  ;;  %v17389_v15 = vadd.f32 %v29385_v52, %v17273_v8  ;;  %v30252_v8 = vld [vmem:[#allocation68_spill] sm:$0xff] }
0x128e   : > { %v17496_v18 = vadd.f32 %v17495_v33, %v17494_v49  ;;  %v17423_v10 = vmax.f32 %v17391_v38, 0.0  ;;  %v17454_v12 = vmul.f32 %v17422_v6, %v30237_v58 }
0x128f   : > { %v17452_v32 = vmul.f32 %v17420_v42, %v30236_v14  ;;  %v17421_v20 = vmax.f32 %v17389_v15, 0.0 }
0x1290   : > { %v17498_v9 = vadd.f32 %v17497_v35, %v17496_v18  ;;  %v17455_v50 = vmul.f32 %v17423_v10, %v30240_v57  ;;  %v17503_v37 = vsel %vm30242_vm7, %v17454_v12, 0.0  ;;  %v30253_v18 = vld [vmem:[#allocation70_spill] sm:$0xff] }
0x1291   : > { %v17499_v7 = vsel %vm30238_vm6, %v17452_v32, 0.0  ;;  %v17453_v22 = vmul.f32 %v17421_v20, %v30239_v44  ;;  %v22335_v36 = vpop.f32.mrb[84].mxu1  ;;  %v30255_v32 = vld [vmem:[#allocation67_spill] sm:$0xff]  ;;  %vm30268_vm6 = vcmask 253952  }
0x1292   : > { %v17500_v60 = vadd.f32 %v17499_v7, %v17498_v9  ;;  %v17394_v54 = vadd.f32 %v22335_v36, %v29385_v52  ;;  %v17286_v46 = vpop.f32.mrb[85].mxu1  ;;  %v17505_v61 = vsel %vm30243_vm2, %v17455_v50, 0.0  ;;  %v30256_v7 = vld [vmem:[#allocation69_spill] sm:$0xff] }
0x1293   : > { %v17501_v43 = vsel %vm30241_vm3, %v17453_v22, 0.0  ;;  %v17392_v45 = vadd.f32 %v29385_v52, %v17286_v46  ;;  %v22336_v55 = vpop.f32.mrb[86].mxu1 }
0x1294   : > { %v17502_v41 = vadd.f32 %v17501_v43, %v17500_v60  ;;  %v17395_v4 = vadd.f32 %v22336_v55, %v29385_v52  ;;  %v17289_v56 = vpop.f32.mrb[87].mxu1  ;;  %v17426_v21 = vmax.f32 %v17394_v54, 0.0 }
0x1295   : > { %v17424_v59 = vmax.f32 %v17392_v45, 0.0  ;;  %v17393_v26 = vadd.f32 %v29385_v52, %v17289_v56  ;;  %v30260_v56 = vld [vmem:[#allocation72_spill] sm:$0xff] }
0x1296   : > { %v17504_v0 = vadd.f32 %v17503_v37, %v17502_v41  ;;  %v17427_v62 = vmax.f32 %v17395_v4, 0.0  ;;  %v17458_v1 = vmul.f32 %v17426_v21, %v30245_v19 }
0x1297   : > { %v17456_v39 = vmul.f32 %v17424_v59, %v30244_v23  ;;  %v17425_v30 = vmax.f32 %v17393_v26, 0.0 }
0x1298   : > { %v17506_v13 = vadd.f32 %v17505_v61, %v17504_v0  ;;  %v17459_v53 = vmul.f32 %v17427_v62, %v30248_v27  ;;  %v17511_v63 = vsel %vm30250_vm13, %v17458_v1, 0.0  ;;  %v30261_v0 = vld [vmem:[#allocation74_spill] sm:$0xff] }
0x1299   : > { %v17507_v48 = vsel %vm30246_vm11, %v17456_v39, 0.0  ;;  %v17457_v5 = vmul.f32 %v17425_v30, %v30247_v28  ;;  %v22339_v2 = vpop.f32.mrb[88].mxu1  ;;  %v30263_v39 = vld [vmem:[#allocation71_spill] sm:$0xff] }
0x129a   : > { %v17508_v51 = vadd.f32 %v17507_v48, %v17506_v13  ;;  %v17398_v29 = vadd.f32 %v22339_v2, %v29385_v52  ;;  %v17302_v25 = vpop.f32.mrb[89].mxu1  ;;  %v17513_v38 = vsel %vm30251_vm8, %v17459_v53, 0.0  ;;  %v30264_v13 = vld [vmem:[#allocation73_spill] sm:$0xff]  ;;  %v17611_v2 = vpop.permute.xlu1 %17610 }
0x129b   : > { %v17509_v24 = vsel %vm30249_vm4, %v17457_v5, 0.0  ;;  %v17396_v31 = vadd.f32 %v29385_v52, %v17302_v25  ;;  %v22340_v3 = vpop.f32.mrb[90].mxu1  ;;  %24345 = vrcp.f32 %v17611_v2 }
0x129c   : > { %v17510_v16 = vadd.f32 %v17509_v24, %v17508_v51  ;;  %v17399_v40 = vadd.f32 %v22340_v3, %v29385_v52  ;;  %v17305_v34 = vpop.f32.mrb[91].mxu1  ;;  %v17430_v47 = vmax.f32 %v17398_v29, 0.0 }
0x129d   : > { %v17428_v17 = vmax.f32 %v17396_v31, 0.0  ;;  %v17397_v11 = vadd.f32 %v29385_v52, %v17305_v34 }
0x129e   : > { %v17512_v49 = vadd.f32 %v17511_v63, %v17510_v16  ;;  %v17431_v6 = vmax.f32 %v17399_v40, 0.0  ;;  %v17462_v35 = vmul.f32 %v17430_v47, %v30253_v18 }
0x129f   : > { %v17460_v33 = vmul.f32 %v17428_v17, %v30252_v8  ;;  %v17429_v42 = vmax.f32 %v17397_v11, 0.0 }
0x12a0   : > { %v17514_v15 = vadd.f32 %v17513_v38, %v17512_v49  ;;  %v17463_v44 = vmul.f32 %v17431_v6, %v30256_v7  ;;  %v17519_v50 = vsel %vm30258_vm10, %v17462_v35, 0.0 }
0x12a1   : > { %v17515_v14 = vsel %vm30254_vm9, %v17460_v33, 0.0  ;;  %v17461_v10 = vmul.f32 %v17429_v42, %v30255_v32  ;;  %v22343_v20 = vpop.f32.mrb[92].mxu1 }
0x12a2   : > { %v17516_v9 = vadd.f32 %v17515_v14, %v17514_v15  ;;  %v17402_v58 = vadd.f32 %v22343_v20, %v29385_v52  ;;  %v17318_v12 = vpop.f32.mrb[93].mxu1  ;;  %v17521_v4 = vsel %vm30259_vm1, %v17463_v44, 0.0 }
0x12a3   : > { %v17517_v22 = vsel %vm30257_vm5, %v17461_v10, 0.0  ;;  %v17400_v36 = vadd.f32 %v29385_v52, %v17318_v12  ;;  %v22344_v60 = vpop.f32.mrb[94].mxu1 }
0x12a4   : > { %v17518_v54 = vadd.f32 %v17517_v22, %v17516_v9  ;;  %v17403_v46 = vadd.f32 %v22344_v60, %v29385_v52  ;;  %v17321_v57 = vpop.f32.mrb[95].mxu1  ;;  %v17434_v43 = vmax.f32 %v17402_v58, 0.0 }
0x12a5   : > { %v17432_v45 = vmax.f32 %v17400_v36, 0.0  ;;  %v17401_v55 = vadd.f32 %v29385_v52, %v17321_v57  ;;  %v24346_v3 = vpop.eup %24345 }
0x12a6   : > { %v17520_v41 = vadd.f32 %v17519_v50, %v17518_v54  ;;  %v17435_v21 = vmax.f32 %v17403_v46, 0.0  ;;  %v17466_v61 = vmul.f32 %v17434_v43, %v30261_v0 }
0x12a7   : > { %v17464_v37 = vmul.f32 %v17432_v45, %v30260_v56  ;;  %v17433_v59 = vmax.f32 %v17401_v55, 0.0 }
0x12a8   : > { %v17522_v26 = vadd.f32 %v17521_v4, %v17520_v41  ;;  %v17467_v19 = vmul.f32 %v17435_v21, %v30264_v13  ;;  %v17527_v48 = vsel %vm30266_vm14, %v17466_v61, 0.0 }
0x12a9   : > { %v17523_v23 = vsel %vm30262_vm12, %v17464_v37, 0.0  ;;  %v17465_v62 = vmul.f32 %v17433_v59, %v30263_v39 }
0x12aa   : > { %v17524_v30 = vadd.f32 %v17523_v23, %v17522_v26  ;;  %v17529_v5 = vsel %vm30235_vm0, %v17467_v19, 0.0 }
0x12ab   : > { %v17525_v52 = vsel %vm30265_vm15, %v17465_v62, 0.0 }
0x12ac   : > { %v17526_v1 = vadd.f32 %v17525_v52, %v17524_v30 }
0x12ae   : > { %v17528_v28 = vadd.f32 %v17527_v48, %v17526_v1 }
0x12b0   : > { %v17530_v51 = vadd.f32 %v17529_v5, %v17528_v28 }
0x12b2   : > { %v17531_v29 = vrot.slane %v17530_v51, 4 }
0x12b4   : > { %v17532_v25 = vadd.f32 %v17531_v29, %v17530_v51 }
0x12b6   : > { %v17533_v27 = vrot.slane %v17532_v25, 2 }
0x12b8   : > { %v17534_v53 = vadd.f32 %v17533_v27, %v17532_v25 }
0x12ba   : > { %v17535_v24 = vrot.slane %v17534_v53, 1 }
0x12bc   : > { %v17536_v31 = vadd.f32 %v17535_v24, %v17534_v53 }
0x12be   : > { %v17614_v16 = vmul.f32 %v24346_v3, %v17536_v31 }
0x12c0   : > { %17615 = vst.msk [vmem:[%s521_s2] sm:$0x1] %vm30268_vm6, %v17614_v16 }
0x12c1   : > { %24388 = shalt.err (!%p24385_p9)
}
0x12c2   : > { %s24389_s18 = scalar_lea.hbm %s29489_s25, 16  ;;  %s24393_s28 = scalar_lea.hbm %s29547_s14, 32 }
0x12c3   : > { %p24390_p10 = scmp.ne.s32.totalorder %s29489_s25, %s24389_s18  ;;  %p24394_p13 = scmp.lt.u32.totalorder %s29489_s25, %s29547_s14 }
0x12c4   : > { %p24395_p0 = scmp.lt.u32.totalorder %s24393_s28, %s24389_s18  ;;  %p24397_p2 = scmp.lt.u32.totalorder %s24389_s18, %s29489_s25 }
0x12c5   : > { %p24391_p11 = pnand %p24390_p10, %p24562_p5 }
0x12c6   : > { %p24396_p1 = por %p24395_p0, %p24394_p13 }
0x12c7   : > { %p24392_p12 = pneg %p24391_p11 }
0x12c8   : > { %p24398_p3 = por %p24397_p2, %p24396_p1 }
0x12ca   : > { %p24399_p4 = pnand %p24398_p3, %p24392_p12 }
0x12cc   : > { %24402 = shalt.err (!%p24399_p4)
}
0x12cd   : > { %23907 = dma.vmem_to_hbm [thread:$0]  (%p24562_p5), %s29491_s27, 16, %s29489_s25, %s17626_s26  }
0x12ce PF: > { %p23917_p7 = scmp.ge.s32.totalorder %s24441_s16, 2  ;;  %s17674_s1 = sand.u32 1, %s24429_s29  }
0x12cf   : > { %s17675_s3 = scalar_lea.sflag [#allocation3], %s17674_s1 }
0x12d0   : > { %p23911_p8 = pnand %p23917_p7, %p24566_p6 }
0x12d2   : > { %24420 = dma.done.wait (!%p23911_p8), %s17675_s3, 16  }
0x12d3   : > { %24422 = vsyncadd (!%p23911_p8), %s17675_s3, 4294967280  ;;  %s17683_s17 = scalar_lea.sflag [#allocation5], %s17674_s1 }
0x12d4   : > { %24424 = dma.done.wait (!%p23911_p8), %s17683_s17, 16  }
0x12d5   : > { %24426 = vsyncadd (!%p23911_p8), %s17683_s17, 4294967280  ;;  %p28_p5 = scmp.ge.s32.totalorder %s24549_s19, 4   ;;  %s30269_s29 = smov %s24433_s30 }
0x12d6   : > { %s30270_s30 = smov %s24437_s15  ;;  %s30271_s15 = smov %s24560_s22 }
0x12d7   : > { %s30272_s16 = smov %s24549_s19  ;;  %30 = sbr.rel (!%p28_p5) target bundleno = 11 (0xb), region = 173 }
0x12de   :  { %17687 = vsyncpa [#allocation3], 1 }
0x12df   :  { %17689 = vsyncpa [#allocation3 + $0x1], 1 }
0x12e0   :  { %17690 = vsyncpa [#allocation5], 1 }
0x12e1   :  { %17692 = vsyncpa [#allocation5 + $0x1], 1 }

</bundles_post_ra>
